<compile_context>
chip_gen: v7x
topology: tpu7x:2x2x1
jax: 0.10.0
libtpu: 0.0.40
codegen_flags: <defaults>
</compile_context>

<pallas_src>
import math
import jax
import jax.numpy as jnp
from jax.experimental import pallas as pl
from jax.experimental.pallas import tpu as pltpu

# ---------------- config (small synthetic ViT consistent with the module) ----
B = 2            # batch
C = 3            # image channels
IMG = 16         # image H == W
PATCH = 4        # patch size  -> 4x4 = 16 patches
D = 32           # embed dim (stand-in for in_planes=768)
HEADS = 2
HD = D // HEADS
DM = 4 * D       # MLP hidden
DEPTH = 3        # base uses blocks[:-1] (= 2 blocks); last block feeds b1/b2/b3
NUM_PATCHES = (IMG // PATCH) ** 2
N_TOK = NUM_PATCHES + 1
SHIFT_NUM = 5
SHUFFLE_GROUPS = 2
DIVIDE_LENGTH = 4
REARRANGE = True
LN_EPS = 1e-6
BN_EPS = 1e-5

_BLOCK_NAMES = ("ln1g", "ln1b", "wq", "bq", "wk", "bk", "wv", "bv",
                "wo", "bo", "ln2g", "ln2b", "w1", "b1", "w2", "b2")


def _zero_map(nd):
    return lambda g: (0,) * nd


# ---------------- in-kernel helpers -------------------------------------------

def _ln(xx, g, b):
    mu = jnp.mean(xx, axis=-1, keepdims=True)
    var = jnp.mean(jnp.square(xx - mu), axis=-1, keepdims=True)
    return (xx - mu) * jax.lax.rsqrt(var + LN_EPS) * g + b


def _one_block(xx, r):
    """One timm-style ViT encoder block on a (N, D) token slab.
       x = x + MHSA(LN1(x));  x = x + MLP(LN2(x)).  `r` are weight Refs."""
    (ln1g, ln1b, wq, bq, wk, bk, wv, bv, wo, bo,
     ln2g, ln2b, w1, b1_, w2, b2_) = r
    heads, _, hd = wq.shape
    scale = 1.0 / math.sqrt(hd)

    xn = _ln(xx, ln1g[...], ln1b[...])

    # Per-head weight slabs; summing per-head output projections is identical
    # to concat + Wo matmul.  (Per-head layout kept deliberately: at HD=16 a
    # fused (D,3D) QKV would require sub-128-lane value slicing inside the
    # kernel, which is riskier to lower than these small known-good matmuls.)
    attn = jnp.zeros(xx.shape, jnp.float32) + bo[...]
    for h in range(heads):
        qh = jnp.dot(xn, wq[h], preferred_element_type=jnp.float32) + bq[h]
        kh = jnp.dot(xn, wk[h], preferred_element_type=jnp.float32) + bk[h]
        vh = jnp.dot(xn, wv[h], preferred_element_type=jnp.float32) + bv[h]
        s = jax.lax.dot_general(qh, kh, (((1,), (1,)), ((), ())),
                                preferred_element_type=jnp.float32) * scale
        m = jnp.max(s, axis=-1, keepdims=True)
        e = jnp.exp(s - m)
        p = e * pl.reciprocal(jnp.sum(e, axis=-1, keepdims=True), approx=True)
        oh = jnp.dot(p, vh, preferred_element_type=jnp.float32)
        attn = attn + jnp.dot(oh, wo[h], preferred_element_type=jnp.float32)
    x1 = xx + attn  # residual (drop_path is identity in eval)

    xn2 = _ln(x1, ln2g[...], ln2b[...])
    h1 = jnp.dot(xn2, w1[...], preferred_element_type=jnp.float32) + b1_[...]
    # TODO(synk): PyTorch nn.GELU uses exact erf; tanh approximation used here.
    g = 0.5 * h1 * (1.0 + jnp.tanh(0.7978845608028654 * (h1 + 0.044715 * h1 * h1 * h1)))
    h2 = jnp.dot(g, w2[...], preferred_element_type=jnp.float32) + b2_[...]
    return x1 + h2


# ---------------- Pallas kernels ----------------------------------------------

def vit_blocks(x, blocks, final_ln=None):
    """Apply a chain of ViT blocks (and an optional trailing LayerNorm) to
    x: (Bb, N, D) in a single pallas_call.  The leading (item) axis is split
    into a 2-step 'parallel' grid (v7x dual-TC); items within a step are an
    unrolled Python loop, so per-grid-step pipeline overhead stays minimal."""
    Bb, N, Dx = x.shape
    n_blocks = len(blocks)
    with_ln = final_ln is not None

    flat = []
    for blk in blocks:
        flat += [blk[n] for n in _BLOCK_NAMES]
    if with_ln:
        flat += list(final_ln)

    G = 2 if Bb % 2 == 0 else 1      # grid steps (parallel -> 2 TCs on v7x)
    ips = Bb // G                    # items per grid step
    n_per = len(_BLOCK_NAMES)

    def kern(x_ref, *refs):
        w_refs, o_ref = refs[:-1], refs[-1]
        blocks_r = [w_refs[i * n_per:(i + 1) * n_per] for i in range(n_blocks)]
        fin_r = w_refs[n_blocks * n_per:]
        for it in range(ips):
            y = x_ref[it]
            for br in blocks_r:
                y = _one_block(y, br)
            if with_ln:
                y = _ln(y, fin_r[0][...], fin_r[1][...])
            o_ref[it] = y.astype(o_ref.dtype)

    wspecs = [pl.BlockSpec(w.shape, _zero_map(w.ndim)) for w in flat]
    return pl.pallas_call(
        kern,
        out_shape=jax.ShapeDtypeStruct((Bb, N, Dx), x.dtype),
        grid=(G,),
        in_specs=[pl.BlockSpec((ips, N, Dx), lambda g: (g, 0, 0))] + wspecs,
        out_specs=pl.BlockSpec((ips, N, Dx), lambda g: (g, 0, 0)),
        compiler_params=pltpu.CompilerParams(dimension_semantics=("parallel",)),
    )(x, *flat)


def linear(x, w, b):
    """(M, K) @ (K, Dout) + (1, Dout) — the patch-embedding conv
    (kernel==stride conv rewritten as an im2col matmul)."""
    M, K = x.shape
    _, Dout = w.shape

    def kern(x_ref, w_ref, b_ref, o_ref):
        o_ref[...] = (
            jnp.dot(x_ref[...], w_ref[...], preferred_element_type=jnp.float32)
            + b_ref[...]
        ).astype(o_ref.dtype)

    return pl.pallas_call(
        kern,
        out_shape=jax.ShapeDtypeStruct((M, Dout), x.dtype),
        grid=(1,),
        in_specs=[
            pl.BlockSpec((M, K), lambda i: (0, 0)),
            pl.BlockSpec((K, Dout), lambda i: (0, 0)),
            pl.BlockSpec((1, Dout), lambda i: (0, 0)),
        ],
        out_specs=pl.BlockSpec((M, Dout), lambda i: (0, 0)),
    )(x, w, b)


def fused_bn_concat(xcat, scale, shift):
    """Single lane-dense kernel replacing the six eval BatchNorm1d layers, the
    /4 scaling of the local features and the final concat: out = x*scale+shift
    on the pre-concatenated (B, 6*D) feature slab."""
    Bx, Dc = xcat.shape

    def kern(x_ref, s_ref, t_ref, o_ref):
        o_ref[...] = (x_ref[...] * s_ref[...] + t_ref[...]).astype(o_ref.dtype)

    v1 = pl.BlockSpec((1, Dc), lambda i: (0, 0))
    return pl.pallas_call(
        kern,
        out_shape=jax.ShapeDtypeStruct((Bx, Dc), xcat.dtype),
        grid=(1,),
        in_specs=[pl.BlockSpec((Bx, Dc), lambda i: (0, 0)), v1, v1],
        out_specs=pl.BlockSpec((Bx, Dc), lambda i: (0, 0)),
    )(xcat, scale, shift)


# ---------------- plain-JAX glue ----------------------------------------------

def patch_embed(x, w_flat, b_flat):
    """Conv2d(C, D, kernel=PATCH, stride=PATCH) as im2col + Pallas matmul.
    x: (B, C, H, W) NCHW."""
    Bx, Cx, H, W = x.shape
    ph, pw = H // PATCH, W // PATCH
    xp = x.reshape(Bx, Cx, ph, PATCH, pw, PATCH)
    xp = jnp.transpose(xp, (0, 2, 4, 1, 3, 5)).reshape(Bx * ph * pw, Cx * PATCH * PATCH)
    out = linear(xp, w_flat, b_flat)
    return out.reshape(Bx, ph * pw, -1)  # (B, num_patches, D), row-major patches


def shuffle_unit(features, shift, group, begin=1):
    Bx, N, Dx = features.shape
    fr = jnp.concatenate(
        [features[:, begin - 1 + shift:], features[:, begin:begin - 1 + shift]], axis=1)
    # NOTE: the torch try/except padding branch is never taken for these shapes.
    x = fr.reshape(Bx, group, -1, Dx)
    x = jnp.transpose(x, (0, 2, 1, 3)).reshape(Bx, -1, Dx)
    return x


# ---------------- parameter construction (deterministic, synthetic) -----------

def init_block(key):
    ks = jax.random.split(key, 6)
    s = 0.02
    f32 = jnp.float32
    return dict(
        ln1g=jnp.ones((1, D), f32), ln1b=jnp.zeros((1, D), f32),
        wq=(jax.random.normal(ks[0], (HEADS, D, HD)) * s).astype(f32),
        bq=jnp.zeros((HEADS, 1, HD), f32),
        wk=(jax.random.normal(ks[1], (HEADS, D, HD)) * s).astype(f32),
        bk=jnp.zeros((HEADS, 1, HD), f32),
        wv=(jax.random.normal(ks[2], (HEADS, D, HD)) * s).astype(f32),
        bv=jnp.zeros((HEADS, 1, HD), f32),
        wo=(jax.random.normal(ks[3], (HEADS, HD, D)) * s).astype(f32),
        bo=jnp.zeros((1, D), f32),
        ln2g=jnp.ones((1, D), f32), ln2b=jnp.zeros((1, D), f32),
        w1=(jax.random.normal(ks[4], (D, DM)) * s).astype(f32),
        b1=jnp.zeros((1, DM), f32),
        w2=(jax.random.normal(ks[5], (DM, D)) * s).astype(f32),
        b2=jnp.zeros((1, D), f32),
    )


def init_params(key):
    ks = jax.random.split(key, DEPTH + 4)
    f32 = jnp.float32
    bn = lambda: (jnp.ones((1, D), f32), jnp.zeros((1, D), f32),   # gamma, beta
                  jnp.zeros((1, D), f32), jnp.ones((1, D), f32))   # running mean, var
    return dict(
        patch_w=(jax.random.normal(ks[0], (C * PATCH * PATCH, D)) * 0.02).astype(f32),
        patch_b=jnp.zeros((1, D), f32),
        cls_token=(jax.random.normal(ks[1], (1, 1, D)) * 0.02).astype(f32),
        pos_embed=(jax.random.normal(ks[2], (1, N_TOK, D)) * 0.02).astype(f32),
        base_blocks=[init_block(ks[3 + i]) for i in range(DEPTH - 1)],
        last_block=init_block(ks[3 + DEPTH - 1]),   # blocks[-1]; b1/b2/b3 are deepcopies
        norm_g=jnp.ones((1, D), f32), norm_b=jnp.zeros((1, D), f32),
        bn=bn(), bn_1=bn(), bn_2=bn(), bn_3=bn(), bn_4=bn(), bn_grl=bn(),
    )


# ---------------- forward (eval, neck_feat == 'after') -------------------------

def forward(params, x, kp_x=None, cam_label=None, view_label=None):
    del kp_x, cam_label, view_label  # unused in this path (SIE off, eval mode)

    # --- self.base(x): patch embed + cls + pos embed + blocks[:-1] (local_feature=True)
    patches = patch_embed(x, params["patch_w"], params["patch_b"])
    Bx = x.shape[0]
    cls = jnp.broadcast_to(params["cls_token"], (Bx, 1, D))
    feats = jnp.concatenate([cls, patches], axis=1) + params["pos_embed"]
    features = vit_blocks(feats, params["base_blocks"])      # both base blocks, one call

    last = params["last_block"]
    fin = (params["norm_g"], params["norm_b"])

    # --- b1 branch (block + fused final LayerNorm, one call).  b3 is a deepcopy
    #     of the same (block, norm) pair applied to the same input, so in eval
    #     b3_feat == b1_feat bit-for-bit; reuse it instead of recomputing.
    # TODO(synk): if b1/b2/b3 were fine-tuned to different weights, they would
    #             need separate weight sets here.
    b1_feat = vit_blocks(features, [last], final_ln=fin)
    global_feat = b1_feat[:, 0]        # (B, D)
    attr_feat = global_feat            # == b3_feat[:, 0]

    # --- 4 local JPM branches, batched into a single call (shared b2 weights)
    feature_length = features.shape[1] - 1
    patch_length = feature_length // DIVIDE_LENGTH
    token = features[:, 0:1]
    xs = shuffle_unit(features, SHIFT_NUM, SHUFFLE_GROUPS) if REARRANGE else features[:, 1:]
    local_in = [jnp.concatenate(
        [token, xs[:, i * patch_length:(i + 1) * patch_length]], axis=1) for i in range(4)]
    stacked = jnp.concatenate(local_in, axis=0)               # (4*B, 1+patch_length, D)
    local_out = vit_blocks(stacked, [last], final_ln=fin)     # one call for all 4 locals
    local_cls = local_out[:, 0]                               # (4*B, D)
    lf = [local_cls[i * Bx:(i + 1) * Bx] for i in range(4)]

    # --- six eval BatchNorm1d layers + /4 + concat fused into one kernel:
    #     fold gamma/beta/mean/var (and the /4) into per-feature scale/shift.
    bn_sets = [("bn", 1.0), ("bn_1", 0.25), ("bn_2", 0.25),
               ("bn_3", 0.25), ("bn_4", 0.25), ("bn_grl", 1.0)]
    scales, shifts = [], []
    for name, coef in bn_sets:
        g, b_, m, v = params[name]
        inv = g * jax.lax.rsqrt(v + BN_EPS)
        scales.append(inv * coef)
        shifts.append((b_ - m * inv) * coef)
    scale = jnp.concatenate(scales, axis=1)                   # (1, 6*D)
    shift = jnp.concatenate(shifts, axis=1)

    xcat = jnp.concatenate([global_feat, lf[0], lf[1], lf[2], lf[3], attr_feat], axis=1)

    # eval path, neck_feat == 'after'
    return fused_bn_concat(xcat, scale, shift)
    # TODO(synk): training branch (classifier / classifier_1..4 / classifier_grl with
    # RevGrad) is not exercised in this eval-mode forward.


if __name__ == "__main__":
    key = jax.random.PRNGKey(0)
    pkey, xkey, kkey = jax.random.split(key, 3)
    params = init_params(pkey)
    x = jax.random.normal(xkey, (B, C, IMG, IMG), jnp.float32)     # NCHW image
    kp_x = jax.random.normal(kkey, (B, C, IMG, IMG), jnp.float32)  # unused, as in torch

    out = jax.jit(forward)(params, x, kp_x)
    out = jax.block_until_ready(out)
    assert out.shape == (B, 6 * D), out.shape
    assert bool(jnp.all(jnp.isfinite(out)))
    print("KERNEL_OK")
</pallas_src>

<mosaic_0001>
module attributes {stable_mosaic.version = 11 : i64} {
  func.func @kern(%arg0: i32, %arg1: memref<32x48xf32, #tpu.memory_space<vmem>>, %arg2: memref<48x32xf32, #tpu.memory_space<vmem>>, %arg3: memref<1x32xf32, #tpu.memory_space<vmem>>, %arg4: memref<32x32xf32, #tpu.memory_space<vmem>>) attributes {dimension_semantics = [#tpu.dimension_semantics<arbitrary>], iteration_bounds = array<i64: 1>, scalar_prefetch = 0 : i64, scratch_operands = 0 : i64, tpu.core_type = #tpu.core_type<tc>, window_params = [{pipeline_mode = #tpu.pipeline_mode<synchronous>, transform_indices = @transform_0, window_bounds = array<i64: 32, 48>}, {pipeline_mode = #tpu.pipeline_mode<synchronous>, transform_indices = @transform_1, window_bounds = array<i64: 48, 32>}, {pipeline_mode = #tpu.pipeline_mode<synchronous>, transform_indices = @transform_2, window_bounds = array<i64: 1, 32>}, {pipeline_mode = #tpu.pipeline_mode<synchronous>, transform_indices = @transform_3, window_bounds = array<i64: 32, 32>}]} {
    %c0 = arith.constant 0 : index
    %c0_0 = arith.constant 0 : index
    %0 = vector.load %arg1[%c0, %c0_0] : memref<32x48xf32, #tpu.memory_space<vmem>>, vector<32x48xf32>
    %c0_1 = arith.constant 0 : index
    %c0_2 = arith.constant 0 : index
    %1 = vector.load %arg2[%c0_1, %c0_2] : memref<48x32xf32, #tpu.memory_space<vmem>>, vector<48x32xf32>
    %cst = arith.constant dense<0.000000e+00> : vector<32x32xf32>
    %2 = tpu.matmul %0, %1, %cst {dimension_numbers = #tpu.dot_dimension_numbers<[1], [0], [0], [1], [0, 0, 1, 1], [], []>} : vector<32x48xf32>, vector<48x32xf32>, vector<32x32xf32> -> vector<32x32xf32>
    %c0_3 = arith.constant 0 : index
    %c0_4 = arith.constant 0 : index
    %3 = vector.load %arg3[%c0_3, %c0_4] : memref<1x32xf32, #tpu.memory_space<vmem>>, vector<1x32xf32>
    %4 = vector.broadcast %3 : vector<1x32xf32> to vector<32x32xf32>
    %5 = arith.addf %2, %4 : vector<32x32xf32>
    %c0_5 = arith.constant 0 : index
    %c0_6 = arith.constant 0 : index
    %6 = vector.load %arg4[%c0_5, %c0_6] : memref<32x32xf32, #tpu.memory_space<vmem>>, vector<32x32xf32>
    tpu.vector_store %arg4[%c0_5, %c0_6], %5 {strides = array<i32>} : memref<32x32xf32, #tpu.memory_space<vmem>>, vector<32x32xf32>,
    return
  }
  func.func @transform_0(%arg0: i32) -> (i32, i32) {
    %c0_i32 = arith.constant 0 : i32
    %c0_i32_0 = arith.constant 0 : i32
    %c0_i32_1 = arith.constant 0 : i32
    return %c0_i32, %c0_i32_0 : i32, i32
  }
  func.func @transform_1(%arg0: i32) -> (i32, i32) {
    %c0_i32 = arith.constant 0 : i32
    %c0_i32_0 = arith.constant 0 : i32
    %c0_i32_1 = arith.constant 0 : i32
    return %c0_i32, %c0_i32_0 : i32, i32
  }
  func.func @transform_2(%arg0: i32) -> (i32, i32) {
    %c0_i32 = arith.constant 0 : i32
    %c0_i32_0 = arith.constant 0 : i32
    %c0_i32_1 = arith.constant 0 : i32
    return %c0_i32, %c0_i32_0 : i32, i32
  }
  func.func @transform_3(%arg0: i32) -> (i32, i32) {
    %c0_i32 = arith.constant 0 : i32
    %c0_i32_0 = arith.constant 0 : i32
    %c0_i32_1 = arith.constant 0 : i32
    return %c0_i32, %c0_i32_0 : i32, i32
  }
}

module attributes {stable_mosaic.version = 11 : i64} {
  func.func @kern(%arg0: i32, %arg1: memref<1x17x32xf32, #tpu.memory_space<vmem>>, %arg2: memref<1x32xf32, #tpu.memory_space<vmem>>, %arg3: memref<1x32xf32, #tpu.memory_space<vmem>>, %arg4: memref<2x32x16xf32, #tpu.memory_space<vmem>>, %arg5: memref<2x1x16xf32, #tpu.memory_space<vmem>>, %arg6: memref<2x32x16xf32, #tpu.memory_space<vmem>>, %arg7: memref<2x1x16xf32, #tpu.memory_space<vmem>>, %arg8: memref<2x32x16xf32, #tpu.memory_space<vmem>>, %arg9: memref<2x1x16xf32, #tpu.memory_space<vmem>>, %arg10: memref<2x16x32xf32, #tpu.memory_space<vmem>>, %arg11: memref<1x32xf32, #tpu.memory_space<vmem>>, %arg12: memref<1x32xf32, #tpu.memory_space<vmem>>, %arg13: memref<1x32xf32, #tpu.memory_space<vmem>>, %arg14: memref<32x128xf32, #tpu.memory_space<vmem>>, %arg15: memref<1x128xf32, #tpu.memory_space<vmem>>, %arg16: memref<128x32xf32, #tpu.memory_space<vmem>>, %arg17: memref<1x32xf32, #tpu.memory_space<vmem>>, %arg18: memref<1x32xf32, #tpu.memory_space<vmem>>, %arg19: memref<1x32xf32, #tpu.memory_space<vmem>>, %arg20: memref<2x32x16xf32, #tpu.memory_space<vmem>>, %arg21: memref<2x1x16xf32, #tpu.memory_space<vmem>>, %arg22: memref<2x32x16xf32, #tpu.memory_space<vmem>>, %arg23: memref<2x1x16xf32, #tpu.memory_space<vmem>>, %arg24: memref<2x32x16xf32, #tpu.memory_space<vmem>>, %arg25: memref<2x1x16xf32, #tpu.memory_space<vmem>>, %arg26: memref<2x16x32xf32, #tpu.memory_space<vmem>>, %arg27: memref<1x32xf32, #tpu.memory_space<vmem>>, %arg28: memref<1x32xf32, #tpu.memory_space<vmem>>, %arg29: memref<1x32xf32, #tpu.memory_space<vmem>>, %arg30: memref<32x128xf32, #tpu.memory_space<vmem>>, %arg31: memref<1x128xf32, #tpu.memory_space<vmem>>, %arg32: memref<128x32xf32, #tpu.memory_space<vmem>>, %arg33: memref<1x32xf32, #tpu.memory_space<vmem>>, %arg34: memref<1x17x32xf32, #tpu.memory_space<vmem>>) attributes {dimension_semantics = [#tpu.dimension_semantics<parallel>], iteration_bounds = array<i64: 2>, scalar_prefetch = 0 : i64, scratch_operands = 0 : i64, tpu.core_type = #tpu.core_type<tc>, window_params = [{transform_indices = @transform_0, window_bounds = array<i64: 1, 17, 32>}, {pipeline_mode = #tpu.pipeline_mode<synchronous>, transform_indices = @transform_1, window_bounds = array<i64: 1, 32>}, {pipeline_mode = #tpu.pipeline_mode<synchronous>, transform_indices = @transform_2, window_bounds = array<i64: 1, 32>}, {pipeline_mode = #tpu.pipeline_mode<synchronous>, transform_indices = @transform_3, window_bounds = array<i64: 2, 32, 16>}, {pipeline_mode = #tpu.pipeline_mode<synchronous>, transform_indices = @transform_4, window_bounds = array<i64: 2, 1, 16>}, {pipeline_mode = #tpu.pipeline_mode<synchronous>, transform_indices = @transform_5, window_bounds = array<i64: 2, 32, 16>}, {pipeline_mode = #tpu.pipeline_mode<synchronous>, transform_indices = @transform_6, window_bounds = array<i64: 2, 1, 16>}, {pipeline_mode = #tpu.pipeline_mode<synchronous>, transform_indices = @transform_7, window_bounds = array<i64: 2, 32, 16>}, {pipeline_mode = #tpu.pipeline_mode<synchronous>, transform_indices = @transform_8, window_bounds = array<i64: 2, 1, 16>}, {pipeline_mode = #tpu.pipeline_mode<synchronous>, transform_indices = @transform_9, window_bounds = array<i64: 2, 16, 32>}, {pipeline_mode = #tpu.pipeline_mode<synchronous>, transform_indices = @transform_10, window_bounds = array<i64: 1, 32>}, {pipeline_mode = #tpu.pipeline_mode<synchronous>, transform_indices = @transform_11, window_bounds = array<i64: 1, 32>}, {pipeline_mode = #tpu.pipeline_mode<synchronous>, transform_indices = @transform_12, window_bounds = array<i64: 1, 32>}, {pipeline_mode = #tpu.pipeline_mode<synchronous>, transform_indices = @transform_13, window_bounds = array<i64: 32, 128>}, {pipeline_mode = #tpu.pipeline_mode<synchronous>, transform_indices = @transform_14, window_bounds = array<i64: 1, 128>}, {pipeline_mode = #tpu.pipeline_mode<synchronous>, transform_indices = @transform_15, window_bounds = array<i64: 128, 32>}, {pipeline_mode = #tpu.pipeline_mode<synchronous>, transform_indices = @transform_16, window_bounds = array<i64: 1, 32>}, {pipeline_mode = #tpu.pipeline_mode<synchronous>, transform_indices = @transform_17, window_bounds = array<i64: 1, 32>}, {pipeline_mode = #tpu.pipeline_mode<synchronous>, transform_indices = @transform_18, window_bounds = array<i64: 1, 32>}, {pipeline_mode = #tpu.pipeline_mode<synchronous>, transform_indices = @transform_19, window_bounds = array<i64: 2, 32, 16>}, {pipeline_mode = #tpu.pipeline_mode<synchronous>, transform_indices = @transform_20, window_bounds = array<i64: 2, 1, 16>}, {pipeline_mode = #tpu.pipeline_mode<synchronous>, transform_indices = @transform_21, window_bounds = array<i64: 2, 32, 16>}, {pipeline_mode = #tpu.pipeline_mode<synchronous>, transform_indices = @transform_22, window_bounds = array<i64: 2, 1, 16>}, {pipeline_mode = #tpu.pipeline_mode<synchronous>, transform_indices = @transform_23, window_bounds = array<i64: 2, 32, 16>}, {pipeline_mode = #tpu.pipeline_mode<synchronous>, transform_indices = @transform_24, window_bounds = array<i64: 2, 1, 16>}, {pipeline_mode = #tpu.pipeline_mode<synchronous>, transform_indices = @transform_25, window_bounds = array<i64: 2, 16, 32>}, {pipeline_mode = #tpu.pipeline_mode<synchronous>, transform_indices = @transform_26, window_bounds = array<i64: 1, 32>}, {pipeline_mode = #tpu.pipeline_mode<synchronous>, transform_indices = @transform_27, window_bounds = array<i64: 1, 32>}, {pipeline_mode = #tpu.pipeline_mode<synchronous>, transform_indices = @transform_28, window_bounds = array<i64: 1, 32>}, {pipeline_mode = #tpu.pipeline_mode<synchronous>, transform_indices = @transform_29, window_bounds = array<i64: 32, 128>}, {pipeline_mode = #tpu.pipeline_mode<synchronous>, transform_indices = @transform_30, window_bounds = array<i64: 1, 128>}, {pipeline_mode = #tpu.pipeline_mode<synchronous>, transform_indices = @transform_31, window_bounds = array<i64: 128, 32>}, {pipeline_mode = #tpu.pipeline_mode<synchronous>, transform_indices = @transform_32, window_bounds = array<i64: 1, 32>}, {transform_indices = @transform_33, window_bounds = array<i64: 1, 17, 32>}]} {
    %c0 = arith.constant 0 : index
    %c0_0 = arith.constant 0 : index
    %c0_1 = arith.constant 0 : index
    %0 = vector.load %arg1[%c0, %c0_0, %c0_1] : memref<1x17x32xf32, #tpu.memory_space<vmem>>, vector<1x17x32xf32>
    %1 = vector.shape_cast %0 : vector<1x17x32xf32> to vector<17x32xf32>
    %c0_2 = arith.constant 0 : index
    %c0_3 = arith.constant 0 : index
    %2 = vector.load %arg2[%c0_2, %c0_3] : memref<1x32xf32, #tpu.memory_space<vmem>>, vector<1x32xf32>
    %c0_4 = arith.constant 0 : index
    %c0_5 = arith.constant 0 : index
    %3 = vector.load %arg3[%c0_4, %c0_5] : memref<1x32xf32, #tpu.memory_space<vmem>>, vector<1x32xf32>
    %cst = arith.constant dense<0.000000e+00> : vector<17xf32>
    %4 = vector.multi_reduction <add>, %1, %cst [1] : vector<17x32xf32> to vector<17xf32>
    %5 = vector.shape_cast %4 : vector<17xf32> to vector<17x1xf32>
    %cst_6 = arith.constant 3.200000e+01 : f32
    %6 = vector.broadcast %cst_6 : f32 to vector<17x1xf32>
    %7 = arith.divf %5, %6 : vector<17x1xf32>
    %8 = vector.broadcast %7 : vector<17x1xf32> to vector<17x32xf32>
    %9 = arith.subf %1, %8 : vector<17x32xf32>
    %10 = arith.mulf %9, %9 : vector<17x32xf32>
    %cst_7 = arith.constant dense<0.000000e+00> : vector<17xf32>
    %11 = vector.multi_reduction <add>, %10, %cst_7 [1] : vector<17x32xf32> to vector<17xf32>
    %12 = vector.shape_cast %11 : vector<17xf32> to vector<17x1xf32>
    %cst_8 = arith.constant 3.200000e+01 : f32
    %13 = vector.broadcast %cst_8 : f32 to vector<17x1xf32>
    %14 = arith.divf %12, %13 : vector<17x1xf32>
    %15 = vector.broadcast %7 : vector<17x1xf32> to vector<17x32xf32>
    %16 = arith.subf %1, %15 : vector<17x32xf32>
    %cst_9 = arith.constant 9.99999997E-7 : f32
    %17 = vector.broadcast %cst_9 : f32 to vector<17x1xf32>
    %18 = arith.addf %14, %17 : vector<17x1xf32>
    %19 = math.rsqrt %18 : vector<17x1xf32>
    %20 = vector.broadcast %19 : vector<17x1xf32> to vector<17x32xf32>
    %21 = arith.mulf %16, %20 : vector<17x32xf32>
    %22 = vector.broadcast %2 : vector<1x32xf32> to vector<17x32xf32>
    %23 = arith.mulf %21, %22 : vector<17x32xf32>
    %24 = vector.broadcast %3 : vector<1x32xf32> to vector<17x32xf32>
    %25 = arith.addf %23, %24 : vector<17x32xf32>
    %cst_10 = arith.constant 0.000000e+00 : f32
    %26 = vector.broadcast %cst_10 : f32 to vector<17x32xf32>
    %c0_11 = arith.constant 0 : index
    %c0_12 = arith.constant 0 : index
    %27 = vector.load %arg11[%c0_11, %c0_12] : memref<1x32xf32, #tpu.memory_space<vmem>>, vector<1x32xf32>
    %28 = vector.broadcast %27 : vector<1x32xf32> to vector<17x32xf32>
    %29 = arith.addf %26, %28 : vector<17x32xf32>
    %c0_13 = arith.constant 0 : index
    %c0_14 = arith.constant 0 : index
    %c0_15 = arith.constant 0 : index
    %30 = vector.load %arg4[%c0_13, %c0_14, %c0_15] : memref<2x32x16xf32, #tpu.memory_space<vmem>>, vector<1x32x16xf32>
    %31 = vector.shape_cast %30 : vector<1x32x16xf32> to vector<32x16xf32>
    %cst_16 = arith.constant dense<0.000000e+00> : vector<17x16xf32>
    %32 = tpu.matmul %25, %31, %cst_16 {dimension_numbers = #tpu.dot_dimension_numbers<[1], [0], [0], [1], [0, 0, 1, 1], [], []>} : vector<17x32xf32>, vector<32x16xf32>, vector<17x16xf32> -> vector<17x16xf32>
    %c0_17 = arith.constant 0 : index
    %c0_18 = arith.constant 0 : index
    %c0_19 = arith.constant 0 : index
    %33 = vector.load %arg5[%c0_17, %c0_18, %c0_19] : memref<2x1x16xf32, #tpu.memory_space<vmem>>, vector<1x1x16xf32>
    %34 = vector.shape_cast %33 : vector<1x1x16xf32> to vector<1x16xf32>
    %35 = vector.broadcast %34 : vector<1x16xf32> to vector<17x16xf32>
    %36 = arith.addf %32, %35 : vector<17x16xf32>
    %c0_20 = arith.constant 0 : index
    %c0_21 = arith.constant 0 : index
    %c0_22 = arith.constant 0 : index
    %37 = vector.load %arg6[%c0_20, %c0_21, %c0_22] : memref<2x32x16xf32, #tpu.memory_space<vmem>>, vector<1x32x16xf32>
    %38 = vector.shape_cast %37 : vector<1x32x16xf32> to vector<32x16xf32>
    %cst_23 = arith.constant dense<0.000000e+00> : vector<17x16xf32>
    %39 = tpu.matmul %25, %38, %cst_23 {dimension_numbers = #tpu.dot_dimension_numbers<[1], [0], [0], [1], [0, 0, 1, 1], [], []>} : vector<17x32xf32>, vector<32x16xf32>, vector<17x16xf32> -> vector<17x16xf32>
    %c0_24 = arith.constant 0 : index
    %c0_25 = arith.constant 0 : index
    %c0_26 = arith.constant 0 : index
    %40 = vector.load %arg7[%c0_24, %c0_25, %c0_26] : memref<2x1x16xf32, #tpu.memory_space<vmem>>, vector<1x1x16xf32>
    %41 = vector.shape_cast %40 : vector<1x1x16xf32> to vector<1x16xf32>
    %42 = vector.broadcast %41 : vector<1x16xf32> to vector<17x16xf32>
    %43 = arith.addf %39, %42 : vector<17x16xf32>
    %c0_27 = arith.constant 0 : index
    %c0_28 = arith.constant 0 : index
    %c0_29 = arith.constant 0 : index
    %44 = vector.load %arg8[%c0_27, %c0_28, %c0_29] : memref<2x32x16xf32, #tpu.memory_space<vmem>>, vector<1x32x16xf32>
    %45 = vector.shape_cast %44 : vector<1x32x16xf32> to vector<32x16xf32>
    %cst_30 = arith.constant dense<0.000000e+00> : vector<17x16xf32>
    %46 = tpu.matmul %25, %45, %cst_30 {dimension_numbers = #tpu.dot_dimension_numbers<[1], [0], [0], [1], [0, 0, 1, 1], [], []>} : vector<17x32xf32>, vector<32x16xf32>, vector<17x16xf32> -> vector<17x16xf32>
    %c0_31 = arith.constant 0 : index
    %c0_32 = arith.constant 0 : index
    %c0_33 = arith.constant 0 : index
    %47 = vector.load %arg9[%c0_31, %c0_32, %c0_33] : memref<2x1x16xf32, #tpu.memory_space<vmem>>, vector<1x1x16xf32>
    %48 = vector.shape_cast %47 : vector<1x1x16xf32> to vector<1x16xf32>
    %49 = vector.broadcast %48 : vector<1x16xf32> to vector<17x16xf32>
    %50 = arith.addf %46, %49 : vector<17x16xf32>
    %cst_34 = arith.constant dense<0.000000e+00> : vector<17x17xf32>
    %51 = tpu.matmul %36, %43, %cst_34 {dimension_numbers = #tpu.dot_dimension_numbers<[1], [1], [0], [0], [0, 0, 1, 0], [], []>} : vector<17x16xf32>, vector<17x16xf32>, vector<17x17xf32> -> vector<17x17xf32>
    %cst_35 = arith.constant 2.500000e-01 : f32
    %52 = vector.broadcast %cst_35 : f32 to vector<17x17xf32>
    %53 = arith.mulf %51, %52 : vector<17x17xf32>
    %cst_36 = arith.constant dense<0xFF800000> : vector<17xf32>
    %54 = vector.multi_reduction <maximumf>, %53, %cst_36 [1] : vector<17x17xf32> to vector<17xf32>
    %55 = vector.shape_cast %54 : vector<17xf32> to vector<17x1xf32>
    %56 = vector.broadcast %55 : vector<17x1xf32> to vector<17x17xf32>
    %57 = arith.subf %53, %56 : vector<17x17xf32>
    %58 = math.exp %57 : vector<17x17xf32>
    %cst_37 = arith.constant dense<0.000000e+00> : vector<17xf32>
    %59 = vector.multi_reduction <add>, %58, %cst_37 [1] : vector<17x17xf32> to vector<17xf32>
    %60 = vector.shape_cast %59 : vector<17xf32> to vector<17x1xf32>
    %61 = tpu.reciprocal %60 {approx = true} : vector<17x1xf32> -> vector<17x1xf32>
    %62 = vector.broadcast %61 : vector<17x1xf32> to vector<17x17xf32>
    %63 = arith.mulf %58, %62 : vector<17x17xf32>
    %cst_38 = arith.constant dense<0.000000e+00> : vector<17x16xf32>
    %64 = tpu.matmul %63, %50, %cst_38 {dimension_numbers = #tpu.dot_dimension_numbers<[1], [0], [0], [1], [0, 0, 1, 1], [], []>} : vector<17x17xf32>, vector<17x16xf32>, vector<17x16xf32> -> vector<17x16xf32>
    %c0_39 = arith.constant 0 : index
    %c0_40 = arith.constant 0 : index
    %c0_41 = arith.constant 0 : index
    %65 = vector.load %arg10[%c0_39, %c0_40, %c0_41] : memref<2x16x32xf32, #tpu.memory_space<vmem>>, vector<1x16x32xf32>
    %66 = vector.shape_cast %65 : vector<1x16x32xf32> to vector<16x32xf32>
    %cst_42 = arith.constant dense<0.000000e+00> : vector<17x32xf32>
    %67 = tpu.matmul %64, %66, %cst_42 {dimension_numbers = #tpu.dot_dimension_numbers<[1], [0], [0], [1], [0, 0, 1, 1], [], []>} : vector<17x16xf32>, vector<16x32xf32>, vector<17x32xf32> -> vector<17x32xf32>
    %68 = arith.addf %29, %67 : vector<17x32xf32>
    %c1 = arith.constant 1 : index
    %c0_43 = arith.constant 0 : index
    %c0_44 = arith.constant 0 : index
    %69 = vector.load %arg4[%c1, %c0_43, %c0_44] : memref<2x32x16xf32, #tpu.memory_space<vmem>>, vector<1x32x16xf32>
    %70 = vector.shape_cast %69 : vector<1x32x16xf32> to vector<32x16xf32>
    %cst_45 = arith.constant dense<0.000000e+00> : vector<17x16xf32>
    %71 = tpu.matmul %25, %70, %cst_45 {dimension_numbers = #tpu.dot_dimension_numbers<[1], [0], [0], [1], [0, 0, 1, 1], [], []>} : vector<17x32xf32>, vector<32x16xf32>, vector<17x16xf32> -> vector<17x16xf32>
    %c1_46 = arith.constant 1 : index
    %c0_47 = arith.constant 0 : index
    %c0_48 = arith.constant 0 : index
    %72 = vector.load %arg5[%c1_46, %c0_47, %c0_48] : memref<2x1x16xf32, #tpu.memory_space<vmem>>, vector<1x1x16xf32>
    %73 = vector.shape_cast %72 : vector<1x1x16xf32> to vector<1x16xf32>
    %74 = vector.broadcast %73 : vector<1x16xf32> to vector<17x16xf32>
    %75 = arith.addf %71, %74 : vector<17x16xf32>
    %c1_49 = arith.constant 1 : index
    %c0_50 = arith.constant 0 : index
    %c0_51 = arith.constant 0 : index
    %76 = vector.load %arg6[%c1_49, %c0_50, %c0_51] : memref<2x32x16xf32, #tpu.memory_space<vmem>>, vector<1x32x16xf32>
    %77 = vector.shape_cast %76 : vector<1x32x16xf32> to vector<32x16xf32>
    %cst_52 = arith.constant dense<0.000000e+00> : vector<17x16xf32>
    %78 = tpu.matmul %25, %77, %cst_52 {dimension_numbers = #tpu.dot_dimension_numbers<[1], [0], [0], [1], [0, 0, 1, 1], [], []>} : vector<17x32xf32>, vector<32x16xf32>, vector<17x16xf32> -> vector<17x16xf32>
    %c1_53 = arith.constant 1 : index
    %c0_54 = arith.constant 0 : index
    %c0_55 = arith.constant 0 : index
    %79 = vector.load %arg7[%c1_53, %c0_54, %c0_55] : memref<2x1x16xf32, #tpu.memory_space<vmem>>, vector<1x1x16xf32>
    %80 = vector.shape_cast %79 : vector<1x1x16xf32> to vector<1x16xf32>
    %81 = vector.broadcast %80 : vector<1x16xf32> to vector<17x16xf32>
    %82 = arith.addf %78, %81 : vector<17x16xf32>
    %c1_56 = arith.constant 1 : index
    %c0_57 = arith.constant 0 : index
    %c0_58 = arith.constant 0 : index
    %83 = vector.load %arg8[%c1_56, %c0_57, %c0_58] : memref<2x32x16xf32, #tpu.memory_space<vmem>>, vector<1x32x16xf32>
    %84 = vector.shape_cast %83 : vector<1x32x16xf32> to vector<32x16xf32>
    %cst_59 = arith.constant dense<0.000000e+00> : vector<17x16xf32>
    %85 = tpu.matmul %25, %84, %cst_59 {dimension_numbers = #tpu.dot_dimension_numbers<[1], [0], [0], [1], [0, 0, 1, 1], [], []>} : vector<17x32xf32>, vector<32x16xf32>, vector<17x16xf32> -> vector<17x16xf32>
    %c1_60 = arith.constant 1 : index
    %c0_61 = arith.constant 0 : index
    %c0_62 = arith.constant 0 : index
    %86 = vector.load %arg9[%c1_60, %c0_61, %c0_62] : memref<2x1x16xf32, #tpu.memory_space<vmem>>, vector<1x1x16xf32>
    %87 = vector.shape_cast %86 : vector<1x1x16xf32> to vector<1x16xf32>
    %88 = vector.broadcast %87 : vector<1x16xf32> to vector<17x16xf32>
    %89 = arith.addf %85, %88 : vector<17x16xf32>
    %cst_63 = arith.constant dense<0.000000e+00> : vector<17x17xf32>
    %90 = tpu.matmul %75, %82, %cst_63 {dimension_numbers = #tpu.dot_dimension_numbers<[1], [1], [0], [0], [0, 0, 1, 0], [], []>} : vector<17x16xf32>, vector<17x16xf32>, vector<17x17xf32> -> vector<17x17xf32>
    %cst_64 = arith.constant 2.500000e-01 : f32
    %91 = vector.broadcast %cst_64 : f32 to vector<17x17xf32>
    %92 = arith.mulf %90, %91 : vector<17x17xf32>
    %cst_65 = arith.constant dense<0xFF800000> : vector<17xf32>
    %93 = vector.multi_reduction <maximumf>, %92, %cst_65 [1] : vector<17x17xf32> to vector<17xf32>
    %94 = vector.shape_cast %93 : vector<17xf32> to vector<17x1xf32>
    %95 = vector.broadcast %94 : vector<17x1xf32> to vector<17x17xf32>
    %96 = arith.subf %92, %95 : vector<17x17xf32>
    %97 = math.exp %96 : vector<17x17xf32>
    %cst_66 = arith.constant dense<0.000000e+00> : vector<17xf32>
    %98 = vector.multi_reduction <add>, %97, %cst_66 [1] : vector<17x17xf32> to vector<17xf32>
    %99 = vector.shape_cast %98 : vector<17xf32> to vector<17x1xf32>
    %100 = tpu.reciprocal %99 {approx = true} : vector<17x1xf32> -> vector<17x1xf32>
    %101 = vector.broadcast %100 : vector<17x1xf32> to vector<17x17xf32>
    %102 = arith.mulf %97, %101 : vector<17x17xf32>
    %cst_67 = arith.constant dense<0.000000e+00> : vector<17x16xf32>
    %103 = tpu.matmul %102, %89, %cst_67 {dimension_numbers = #tpu.dot_dimension_numbers<[1], [0], [0], [1], [0, 0, 1, 1], [], []>} : vector<17x17xf32>, vector<17x16xf32>, vector<17x16xf32> -> vector<17x16xf32>
    %c1_68 = arith.constant 1 : index
    %c0_69 = arith.constant 0 : index
    %c0_70 = arith.constant 0 : index
    %104 = vector.load %arg10[%c1_68, %c0_69, %c0_70] : memref<2x16x32xf32, #tpu.memory_space<vmem>>, vector<1x16x32xf32>
    %105 = vector.shape_cast %104 : vector<1x16x32xf32> to vector<16x32xf32>
    %cst_71 = arith.constant dense<0.000000e+00> : vector<17x32xf32>
    %106 = tpu.matmul %103, %105, %cst_71 {dimension_numbers = #tpu.dot_dimension_numbers<[1], [0], [0], [1], [0, 0, 1, 1], [], []>} : vector<17x16xf32>, vector<16x32xf32>, vector<17x32xf32> -> vector<17x32xf32>
    %107 = arith.addf %68, %106 : vector<17x32xf32>
    %108 = arith.addf %1, %107 : vector<17x32xf32>
    %c0_72 = arith.constant 0 : index
    %c0_73 = arith.constant 0 : index
    %109 = vector.load %arg12[%c0_72, %c0_73] : memref<1x32xf32, #tpu.memory_space<vmem>>, vector<1x32xf32>
    %c0_74 = arith.constant 0 : index
    %c0_75 = arith.constant 0 : index
    %110 = vector.load %arg13[%c0_74, %c0_75] : memref<1x32xf32, #tpu.memory_space<vmem>>, vector<1x32xf32>
    %cst_76 = arith.constant dense<0.000000e+00> : vector<17xf32>
    %111 = vector.multi_reduction <add>, %108, %cst_76 [1] : vector<17x32xf32> to vector<17xf32>
    %112 = vector.shape_cast %111 : vector<17xf32> to vector<17x1xf32>
    %cst_77 = arith.constant 3.200000e+01 : f32
    %113 = vector.broadcast %cst_77 : f32 to vector<17x1xf32>
    %114 = arith.divf %112, %113 : vector<17x1xf32>
    %115 = vector.broadcast %114 : vector<17x1xf32> to vector<17x32xf32>
    %116 = arith.subf %108, %115 : vector<17x32xf32>
    %117 = arith.mulf %116, %116 : vector<17x32xf32>
    %cst_78 = arith.constant dense<0.000000e+00> : vector<17xf32>
    %118 = vector.multi_reduction <add>, %117, %cst_78 [1] : vector<17x32xf32> to vector<17xf32>
    %119 = vector.shape_cast %118 : vector<17xf32> to vector<17x1xf32>
    %cst_79 = arith.constant 3.200000e+01 : f32
    %120 = vector.broadcast %cst_79 : f32 to vector<17x1xf32>
    %121 = arith.divf %119, %120 : vector<17x1xf32>
    %122 = vector.broadcast %114 : vector<17x1xf32> to vector<17x32xf32>
    %123 = arith.subf %108, %122 : vector<17x32xf32>
    %cst_80 = arith.constant 9.99999997E-7 : f32
    %124 = vector.broadcast %cst_80 : f32 to vector<17x1xf32>
    %125 = arith.addf %121, %124 : vector<17x1xf32>
    %126 = math.rsqrt %125 : vector<17x1xf32>
    %127 = vector.broadcast %126 : vector<17x1xf32> to vector<17x32xf32>
    %128 = arith.mulf %123, %127 : vector<17x32xf32>
    %129 = vector.broadcast %109 : vector<1x32xf32> to vector<17x32xf32>
    %130 = arith.mulf %128, %129 : vector<17x32xf32>
    %131 = vector.broadcast %110 : vector<1x32xf32> to vector<17x32xf32>
    %132 = arith.addf %130, %131 : vector<17x32xf32>
    %c0_81 = arith.constant 0 : index
    %c0_82 = arith.constant 0 : index
    %133 = vector.load %arg14[%c0_81, %c0_82] : memref<32x128xf32, #tpu.memory_space<vmem>>, vector<32x128xf32>
    %cst_83 = arith.constant dense<0.000000e+00> : vector<17x128xf32>
    %134 = tpu.matmul %132, %133, %cst_83 {dimension_numbers = #tpu.dot_dimension_numbers<[1], [0], [0], [1], [0, 0, 1, 1], [], []>} : vector<17x32xf32>, vector<32x128xf32>, vector<17x128xf32> -> vector<17x128xf32>
    %c0_84 = arith.constant 0 : index
    %c0_85 = arith.constant 0 : index
    %135 = vector.load %arg15[%c0_84, %c0_85] : memref<1x128xf32, #tpu.memory_space<vmem>>, vector<1x128xf32>
    %136 = vector.broadcast %135 : vector<1x128xf32> to vector<17x128xf32>
    %137 = arith.addf %134, %136 : vector<17x128xf32>
    %cst_86 = arith.constant 5.000000e-01 : f32
    %138 = vector.broadcast %cst_86 : f32 to vector<17x128xf32>
    %139 = arith.mulf %138, %137 : vector<17x128xf32>
    %cst_87 = arith.constant 4.471500e-02 : f32
    %140 = vector.broadcast %cst_87 : f32 to vector<17x128xf32>
    %141 = arith.mulf %140, %137 : vector<17x128xf32>
    %142 = arith.mulf %141, %137 : vector<17x128xf32>
    %143 = arith.mulf %142, %137 : vector<17x128xf32>
    %144 = arith.addf %137, %143 : vector<17x128xf32>
    %cst_88 = arith.constant 0.797884583 : f32
    %145 = vector.broadcast %cst_88 : f32 to vector<17x128xf32>
    %146 = arith.mulf %145, %144 : vector<17x128xf32>
    %147 = math.tanh %146 : vector<17x128xf32>
    %cst_89 = arith.constant 1.000000e+00 : f32
    %148 = vector.broadcast %cst_89 : f32 to vector<17x128xf32>
    %149 = arith.addf %148, %147 : vector<17x128xf32>
    %150 = arith.mulf %139, %149 : vector<17x128xf32>
    %c0_90 = arith.constant 0 : index
    %c0_91 = arith.constant 0 : index
    %151 = vector.load %arg16[%c0_90, %c0_91] : memref<128x32xf32, #tpu.memory_space<vmem>>, vector<128x32xf32>
    %cst_92 = arith.constant dense<0.000000e+00> : vector<17x32xf32>
    %152 = tpu.matmul %150, %151, %cst_92 {dimension_numbers = #tpu.dot_dimension_numbers<[1], [0], [0], [1], [0, 0, 1, 1], [], []>} : vector<17x128xf32>, vector<128x32xf32>, vector<17x32xf32> -> vector<17x32xf32>
    %c0_93 = arith.constant 0 : index
    %c0_94 = arith.constant 0 : index
    %153 = vector.load %arg17[%c0_93, %c0_94] : memref<1x32xf32, #tpu.memory_space<vmem>>, vector<1x32xf32>
    %154 = vector.broadcast %153 : vector<1x32xf32> to vector<17x32xf32>
    %155 = arith.addf %152, %154 : vector<17x32xf32>
    %156 = arith.addf %108, %155 : vector<17x32xf32>
    %c0_95 = arith.constant 0 : index
    %c0_96 = arith.constant 0 : index
    %157 = vector.load %arg18[%c0_95, %c0_96] : memref<1x32xf32, #tpu.memory_space<vmem>>, vector<1x32xf32>
    %c0_97 = arith.constant 0 : index
    %c0_98 = arith.constant 0 : index
    %158 = vector.load %arg19[%c0_97, %c0_98] : memref<1x32xf32, #tpu.memory_space<vmem>>, vector<1x32xf32>
    %cst_99 = arith.constant dense<0.000000e+00> : vector<17xf32>
    %159 = vector.multi_reduction <add>, %156, %cst_99 [1] : vector<17x32xf32> to vector<17xf32>
    %160 = vector.shape_cast %159 : vector<17xf32> to vector<17x1xf32>
    %cst_100 = arith.constant 3.200000e+01 : f32
    %161 = vector.broadcast %cst_100 : f32 to vector<17x1xf32>
    %162 = arith.divf %160, %161 : vector<17x1xf32>
    %163 = vector.broadcast %162 : vector<17x1xf32> to vector<17x32xf32>
    %164 = arith.subf %156, %163 : vector<17x32xf32>
    %165 = arith.mulf %164, %164 : vector<17x32xf32>
    %cst_101 = arith.constant dense<0.000000e+00> : vector<17xf32>
    %166 = vector.multi_reduction <add>, %165, %cst_101 [1] : vector<17x32xf32> to vector<17xf32>
    %167 = vector.shape_cast %166 : vector<17xf32> to vector<17x1xf32>
    %cst_102 = arith.constant 3.200000e+01 : f32
    %168 = vector.broadcast %cst_102 : f32 to vector<17x1xf32>
    %169 = arith.divf %167, %168 : vector<17x1xf32>
    %170 = vector.broadcast %162 : vector<17x1xf32> to vector<17x32xf32>
    %171 = arith.subf %156, %170 : vector<17x32xf32>
    %cst_103 = arith.constant 9.99999997E-7 : f32
    %172 = vector.broadcast %cst_103 : f32 to vector<17x1xf32>
    %173 = arith.addf %169, %172 : vector<17x1xf32>
    %174 = math.rsqrt %173 : vector<17x1xf32>
    %175 = vector.broadcast %174 : vector<17x1xf32> to vector<17x32xf32>
    %176 = arith.mulf %171, %175 : vector<17x32xf32>
    %177 = vector.broadcast %157 : vector<1x32xf32> to vector<17x32xf32>
    %178 = arith.mulf %176, %177 : vector<17x32xf32>
    %179 = vector.broadcast %158 : vector<1x32xf32> to vector<17x32xf32>
    %180 = arith.addf %178, %179 : vector<17x32xf32>
    %cst_104 = arith.constant 0.000000e+00 : f32
    %181 = vector.broadcast %cst_104 : f32 to vector<17x32xf32>
    %c0_105 = arith.constant 0 : index
    %c0_106 = arith.constant 0 : index
    %182 = vector.load %arg27[%c0_105, %c0_106] : memref<1x32xf32, #tpu.memory_space<vmem>>, vector<1x32xf32>
    %183 = vector.broadcast %182 : vector<1x32xf32> to vector<17x32xf32>
    %184 = arith.addf %181, %183 : vector<17x32xf32>
    %c0_107 = arith.constant 0 : index
    %c0_108 = arith.constant 0 : index
    %c0_109 = arith.constant 0 : index
    %185 = vector.load %arg20[%c0_107, %c0_108, %c0_109] : memref<2x32x16xf32, #tpu.memory_space<vmem>>, vector<1x32x16xf32>
    %186 = vector.shape_cast %185 : vector<1x32x16xf32> to vector<32x16xf32>
    %cst_110 = arith.constant dense<0.000000e+00> : vector<17x16xf32>
    %187 = tpu.matmul %180, %186, %cst_110 {dimension_numbers = #tpu.dot_dimension_numbers<[1], [0], [0], [1], [0, 0, 1, 1], [], []>} : vector<17x32xf32>, vector<32x16xf32>, vector<17x16xf32> -> vector<17x16xf32>
    %c0_111 = arith.constant 0 : index
    %c0_112 = arith.constant 0 : index
    %c0_113 = arith.constant 0 : index
    %188 = vector.load %arg21[%c0_111, %c0_112, %c0_113] : memref<2x1x16xf32, #tpu.memory_space<vmem>>, vector<1x1x16xf32>
    %189 = vector.shape_cast %188 : vector<1x1x16xf32> to vector<1x16xf32>
    %190 = vector.broadcast %189 : vector<1x16xf32> to vector<17x16xf32>
    %191 = arith.addf %187, %190 : vector<17x16xf32>
    %c0_114 = arith.constant 0 : index
    %c0_115 = arith.constant 0 : index
    %c0_116 = arith.constant 0 : index
    %192 = vector.load %arg22[%c0_114, %c0_115, %c0_116] : memref<2x32x16xf32, #tpu.memory_space<vmem>>, vector<1x32x16xf32>
    %193 = vector.shape_cast %192 : vector<1x32x16xf32> to vector<32x16xf32>
    %cst_117 = arith.constant dense<0.000000e+00> : vector<17x16xf32>
    %194 = tpu.matmul %180, %193, %cst_117 {dimension_numbers = #tpu.dot_dimension_numbers<[1], [0], [0], [1], [0, 0, 1, 1], [], []>} : vector<17x32xf32>, vector<32x16xf32>, vector<17x16xf32> -> vector<17x16xf32>
    %c0_118 = arith.constant 0 : index
    %c0_119 = arith.constant 0 : index
    %c0_120 = arith.constant 0 : index
    %195 = vector.load %arg23[%c0_118, %c0_119, %c0_120] : memref<2x1x16xf32, #tpu.memory_space<vmem>>, vector<1x1x16xf32>
    %196 = vector.shape_cast %195 : vector<1x1x16xf32> to vector<1x16xf32>
    %197 = vector.broadcast %196 : vector<1x16xf32> to vector<17x16xf32>
    %198 = arith.addf %194, %197 : vector<17x16xf32>
    %c0_121 = arith.constant 0 : index
    %c0_122 = arith.constant 0 : index
    %c0_123 = arith.constant 0 : index
    %199 = vector.load %arg24[%c0_121, %c0_122, %c0_123] : memref<2x32x16xf32, #tpu.memory_space<vmem>>, vector<1x32x16xf32>
    %200 = vector.shape_cast %199 : vector<1x32x16xf32> to vector<32x16xf32>
    %cst_124 = arith.constant dense<0.000000e+00> : vector<17x16xf32>
    %201 = tpu.matmul %180, %200, %cst_124 {dimension_numbers = #tpu.dot_dimension_numbers<[1], [0], [0], [1], [0, 0, 1, 1], [], []>} : vector<17x32xf32>, vector<32x16xf32>, vector<17x16xf32> -> vector<17x16xf32>
    %c0_125 = arith.constant 0 : index
    %c0_126 = arith.constant 0 : index
    %c0_127 = arith.constant 0 : index
    %202 = vector.load %arg25[%c0_125, %c0_126, %c0_127] : memref<2x1x16xf32, #tpu.memory_space<vmem>>, vector<1x1x16xf32>
    %203 = vector.shape_cast %202 : vector<1x1x16xf32> to vector<1x16xf32>
    %204 = vector.broadcast %203 : vector<1x16xf32> to vector<17x16xf32>
    %205 = arith.addf %201, %204 : vector<17x16xf32>
    %cst_128 = arith.constant dense<0.000000e+00> : vector<17x17xf32>
    %206 = tpu.matmul %191, %198, %cst_128 {dimension_numbers = #tpu.dot_dimension_numbers<[1], [1], [0], [0], [0, 0, 1, 0], [], []>} : vector<17x16xf32>, vector<17x16xf32>, vector<17x17xf32> -> vector<17x17xf32>
    %cst_129 = arith.constant 2.500000e-01 : f32
    %207 = vector.broadcast %cst_129 : f32 to vector<17x17xf32>
    %208 = arith.mulf %206, %207 : vector<17x17xf32>
    %cst_130 = arith.constant dense<0xFF800000> : vector<17xf32>
    %209 = vector.multi_reduction <maximumf>, %208, %cst_130 [1] : vector<17x17xf32> to vector<17xf32>
    %210 = vector.shape_cast %209 : vector<17xf32> to vector<17x1xf32>
    %211 = vector.broadcast %210 : vector<17x1xf32> to vector<17x17xf32>
    %212 = arith.subf %208, %211 : vector<17x17xf32>
    %213 = math.exp %212 : vector<17x17xf32>
    %cst_131 = arith.constant dense<0.000000e+00> : vector<17xf32>
    %214 = vector.multi_reduction <add>, %213, %cst_131 [1] : vector<17x17xf32> to vector<17xf32>
    %215 = vector.shape_cast %214 : vector<17xf32> to vector<17x1xf32>
    %216 = tpu.reciprocal %215 {approx = true} : vector<17x1xf32> -> vector<17x1xf32>
    %217 = vector.broadcast %216 : vector<17x1xf32> to vector<17x17xf32>
    %218 = arith.mulf %213, %217 : vector<17x17xf32>
    %cst_132 = arith.constant dense<0.000000e+00> : vector<17x16xf32>
    %219 = tpu.matmul %218, %205, %cst_132 {dimension_numbers = #tpu.dot_dimension_numbers<[1], [0], [0], [1], [0, 0, 1, 1], [], []>} : vector<17x17xf32>, vector<17x16xf32>, vector<17x16xf32> -> vector<17x16xf32>
    %c0_133 = arith.constant 0 : index
    %c0_134 = arith.constant 0 : index
    %c0_135 = arith.constant 0 : index
    %220 = vector.load %arg26[%c0_133, %c0_134, %c0_135] : memref<2x16x32xf32, #tpu.memory_space<vmem>>, vector<1x16x32xf32>
    %221 = vector.shape_cast %220 : vector<1x16x32xf32> to vector<16x32xf32>
    %cst_136 = arith.constant dense<0.000000e+00> : vector<17x32xf32>
    %222 = tpu.matmul %219, %221, %cst_136 {dimension_numbers = #tpu.dot_dimension_numbers<[1], [0], [0], [1], [0, 0, 1, 1], [], []>} : vector<17x16xf32>, vector<16x32xf32>, vector<17x32xf32> -> vector<17x32xf32>
    %223 = arith.addf %184, %222 : vector<17x32xf32>
    %c1_137 = arith.constant 1 : index
    %c0_138 = arith.constant 0 : index
    %c0_139 = arith.constant 0 : index
    %224 = vector.load %arg20[%c1_137, %c0_138, %c0_139] : memref<2x32x16xf32, #tpu.memory_space<vmem>>, vector<1x32x16xf32>
    %225 = vector.shape_cast %224 : vector<1x32x16xf32> to vector<32x16xf32>
    %cst_140 = arith.constant dense<0.000000e+00> : vector<17x16xf32>
    %226 = tpu.matmul %180, %225, %cst_140 {dimension_numbers = #tpu.dot_dimension_numbers<[1], [0], [0], [1], [0, 0, 1, 1], [], []>} : vector<17x32xf32>, vector<32x16xf32>, vector<17x16xf32> -> vector<17x16xf32>
    %c1_141 = arith.constant 1 : index
    %c0_142 = arith.constant 0 : index
    %c0_143 = arith.constant 0 : index
    %227 = vector.load %arg21[%c1_141, %c0_142, %c0_143] : memref<2x1x16xf32, #tpu.memory_space<vmem>>, vector<1x1x16xf32>
    %228 = vector.shape_cast %227 : vector<1x1x16xf32> to vector<1x16xf32>
    %229 = vector.broadcast %228 : vector<1x16xf32> to vector<17x16xf32>
    %230 = arith.addf %226, %229 : vector<17x16xf32>
    %c1_144 = arith.constant 1 : index
    %c0_145 = arith.constant 0 : index
    %c0_146 = arith.constant 0 : index
    %231 = vector.load %arg22[%c1_144, %c0_145, %c0_146] : memref<2x32x16xf32, #tpu.memory_space<vmem>>, vector<1x32x16xf32>
    %232 = vector.shape_cast %231 : vector<1x32x16xf32> to vector<32x16xf32>
    %cst_147 = arith.constant dense<0.000000e+00> : vector<17x16xf32>
    %233 = tpu.matmul %180, %232, %cst_147 {dimension_numbers = #tpu.dot_dimension_numbers<[1], [0], [0], [1], [0, 0, 1, 1], [], []>} : vector<17x32xf32>, vector<32x16xf32>, vector<17x16xf32> -> vector<17x16xf32>
    %c1_148 = arith.constant 1 : index
    %c0_149 = arith.constant 0 : index
    %c0_150 = arith.constant 0 : index
    %234 = vector.load %arg23[%c1_148, %c0_149, %c0_150] : memref<2x1x16xf32, #tpu.memory_space<vmem>>, vector<1x1x16xf32>
    %235 = vector.shape_cast %234 : vector<1x1x16xf32> to vector<1x16xf32>
    %236 = vector.broadcast %235 : vector<1x16xf32> to vector<17x16xf32>
    %237 = arith.addf %233, %236 : vector<17x16xf32>
    %c1_151 = arith.constant 1 : index
    %c0_152 = arith.constant 0 : index
    %c0_153 = arith.constant 0 : index
    %238 = vector.load %arg24[%c1_151, %c0_152, %c0_153] : memref<2x32x16xf32, #tpu.memory_space<vmem>>, vector<1x32x16xf32>
    %239 = vector.shape_cast %238 : vector<1x32x16xf32> to vector<32x16xf32>
    %cst_154 = arith.constant dense<0.000000e+00> : vector<17x16xf32>
    %240 = tpu.matmul %180, %239, %cst_154 {dimension_numbers = #tpu.dot_dimension_numbers<[1], [0], [0], [1], [0, 0, 1, 1], [], []>} : vector<17x32xf32>, vector<32x16xf32>, vector<17x16xf32> -> vector<17x16xf32>
    %c1_155 = arith.constant 1 : index
    %c0_156 = arith.constant 0 : index
    %c0_157 = arith.constant 0 : index
    %241 = vector.load %arg25[%c1_155, %c0_156, %c0_157] : memref<2x1x16xf32, #tpu.memory_space<vmem>>, vector<1x1x16xf32>
    %242 = vector.shape_cast %241 : vector<1x1x16xf32> to vector<1x16xf32>
    %243 = vector.broadcast %242 : vector<1x16xf32> to vector<17x16xf32>
    %244 = arith.addf %240, %243 : vector<17x16xf32>
    %cst_158 = arith.constant dense<0.000000e+00> : vector<17x17xf32>
    %245 = tpu.matmul %230, %237, %cst_158 {dimension_numbers = #tpu.dot_dimension_numbers<[1], [1], [0], [0], [0, 0, 1, 0], [], []>} : vector<17x16xf32>, vector<17x16xf32>, vector<17x17xf32> -> vector<17x17xf32>
    %cst_159 = arith.constant 2.500000e-01 : f32
    %246 = vector.broadcast %cst_159 : f32 to vector<17x17xf32>
    %247 = arith.mulf %245, %246 : vector<17x17xf32>
    %cst_160 = arith.constant dense<0xFF800000> : vector<17xf32>
    %248 = vector.multi_reduction <maximumf>, %247, %cst_160 [1] : vector<17x17xf32> to vector<17xf32>
    %249 = vector.shape_cast %248 : vector<17xf32> to vector<17x1xf32>
    %250 = vector.broadcast %249 : vector<17x1xf32> to vector<17x17xf32>
    %251 = arith.subf %247, %250 : vector<17x17xf32>
    %252 = math.exp %251 : vector<17x17xf32>
    %cst_161 = arith.constant dense<0.000000e+00> : vector<17xf32>
    %253 = vector.multi_reduction <add>, %252, %cst_161 [1] : vector<17x17xf32> to vector<17xf32>
    %254 = vector.shape_cast %253 : vector<17xf32> to vector<17x1xf32>
    %255 = tpu.reciprocal %254 {approx = true} : vector<17x1xf32> -> vector<17x1xf32>
    %256 = vector.broadcast %255 : vector<17x1xf32> to vector<17x17xf32>
    %257 = arith.mulf %252, %256 : vector<17x17xf32>
    %cst_162 = arith.constant dense<0.000000e+00> : vector<17x16xf32>
    %258 = tpu.matmul %257, %244, %cst_162 {dimension_numbers = #tpu.dot_dimension_numbers<[1], [0], [0], [1], [0, 0, 1, 1], [], []>} : vector<17x17xf32>, vector<17x16xf32>, vector<17x16xf32> -> vector<17x16xf32>
    %c1_163 = arith.constant 1 : index
    %c0_164 = arith.constant 0 : index
    %c0_165 = arith.constant 0 : index
    %259 = vector.load %arg26[%c1_163, %c0_164, %c0_165] : memref<2x16x32xf32, #tpu.memory_space<vmem>>, vector<1x16x32xf32>
    %260 = vector.shape_cast %259 : vector<1x16x32xf32> to vector<16x32xf32>
    %cst_166 = arith.constant dense<0.000000e+00> : vector<17x32xf32>
    %261 = tpu.matmul %258, %260, %cst_166 {dimension_numbers = #tpu.dot_dimension_numbers<[1], [0], [0], [1], [0, 0, 1, 1], [], []>} : vector<17x16xf32>, vector<16x32xf32>, vector<17x32xf32> -> vector<17x32xf32>
    %262 = arith.addf %223, %261 : vector<17x32xf32>
    %263 = arith.addf %156, %262 : vector<17x32xf32>
    %c0_167 = arith.constant 0 : index
    %c0_168 = arith.constant 0 : index
    %264 = vector.load %arg28[%c0_167, %c0_168] : memref<1x32xf32, #tpu.memory_space<vmem>>, vector<1x32xf32>
    %c0_169 = arith.constant 0 : index
    %c0_170 = arith.constant 0 : index
    %265 = vector.load %arg29[%c0_169, %c0_170] : memref<1x32xf32, #tpu.memory_space<vmem>>, vector<1x32xf32>
    %cst_171 = arith.constant dense<0.000000e+00> : vector<17xf32>
    %266 = vector.multi_reduction <add>, %263, %cst_171 [1] : vector<17x32xf32> to vector<17xf32>
    %267 = vector.shape_cast %266 : vector<17xf32> to vector<17x1xf32>
    %cst_172 = arith.constant 3.200000e+01 : f32
    %268 = vector.broadcast %cst_172 : f32 to vector<17x1xf32>
    %269 = arith.divf %267, %268 : vector<17x1xf32>
    %270 = vector.broadcast %269 : vector<17x1xf32> to vector<17x32xf32>
    %271 = arith.subf %263, %270 : vector<17x32xf32>
    %272 = arith.mulf %271, %271 : vector<17x32xf32>
    %cst_173 = arith.constant dense<0.000000e+00> : vector<17xf32>
    %273 = vector.multi_reduction <add>, %272, %cst_173 [1] : vector<17x32xf32> to vector<17xf32>
    %274 = vector.shape_cast %273 : vector<17xf32> to vector<17x1xf32>
    %cst_174 = arith.constant 3.200000e+01 : f32
    %275 = vector.broadcast %cst_174 : f32 to vector<17x1xf32>
    %276 = arith.divf %274, %275 : vector<17x1xf32>
    %277 = vector.broadcast %269 : vector<17x1xf32> to vector<17x32xf32>
    %278 = arith.subf %263, %277 : vector<17x32xf32>
    %cst_175 = arith.constant 9.99999997E-7 : f32
    %279 = vector.broadcast %cst_175 : f32 to vector<17x1xf32>
    %280 = arith.addf %276, %279 : vector<17x1xf32>
    %281 = math.rsqrt %280 : vector<17x1xf32>
    %282 = vector.broadcast %281 : vector<17x1xf32> to vector<17x32xf32>
    %283 = arith.mulf %278, %282 : vector<17x32xf32>
    %284 = vector.broadcast %264 : vector<1x32xf32> to vector<17x32xf32>
    %285 = arith.mulf %283, %284 : vector<17x32xf32>
    %286 = vector.broadcast %265 : vector<1x32xf32> to vector<17x32xf32>
    %287 = arith.addf %285, %286 : vector<17x32xf32>
    %c0_176 = arith.constant 0 : index
    %c0_177 = arith.constant 0 : index
    %288 = vector.load %arg30[%c0_176, %c0_177] : memref<32x128xf32, #tpu.memory_space<vmem>>, vector<32x128xf32>
    %cst_178 = arith.constant dense<0.000000e+00> : vector<17x128xf32>
    %289 = tpu.matmul %287, %288, %cst_178 {dimension_numbers = #tpu.dot_dimension_numbers<[1], [0], [0], [1], [0, 0, 1, 1], [], []>} : vector<17x32xf32>, vector<32x128xf32>, vector<17x128xf32> -> vector<17x128xf32>
    %c0_179 = arith.constant 0 : index
    %c0_180 = arith.constant 0 : index
    %290 = vector.load %arg31[%c0_179, %c0_180] : memref<1x128xf32, #tpu.memory_space<vmem>>, vector<1x128xf32>
    %291 = vector.broadcast %290 : vector<1x128xf32> to vector<17x128xf32>
    %292 = arith.addf %289, %291 : vector<17x128xf32>
    %cst_181 = arith.constant 5.000000e-01 : f32
    %293 = vector.broadcast %cst_181 : f32 to vector<17x128xf32>
    %294 = arith.mulf %293, %292 : vector<17x128xf32>
    %cst_182 = arith.constant 4.471500e-02 : f32
    %295 = vector.broadcast %cst_182 : f32 to vector<17x128xf32>
    %296 = arith.mulf %295, %292 : vector<17x128xf32>
    %297 = arith.mulf %296, %292 : vector<17x128xf32>
    %298 = arith.mulf %297, %292 : vector<17x128xf32>
    %299 = arith.addf %292, %298 : vector<17x128xf32>
    %cst_183 = arith.constant 0.797884583 : f32
    %300 = vector.broadcast %cst_183 : f32 to vector<17x128xf32>
    %301 = arith.mulf %300, %299 : vector<17x128xf32>
    %302 = math.tanh %301 : vector<17x128xf32>
    %cst_184 = arith.constant 1.000000e+00 : f32
    %303 = vector.broadcast %cst_184 : f32 to vector<17x128xf32>
    %304 = arith.addf %303, %302 : vector<17x128xf32>
    %305 = arith.mulf %294, %304 : vector<17x128xf32>
    %c0_185 = arith.constant 0 : index
    %c0_186 = arith.constant 0 : index
    %306 = vector.load %arg32[%c0_185, %c0_186] : memref<128x32xf32, #tpu.memory_space<vmem>>, vector<128x32xf32>
    %cst_187 = arith.constant dense<0.000000e+00> : vector<17x32xf32>
    %307 = tpu.matmul %305, %306, %cst_187 {dimension_numbers = #tpu.dot_dimension_numbers<[1], [0], [0], [1], [0, 0, 1, 1], [], []>} : vector<17x128xf32>, vector<128x32xf32>, vector<17x32xf32> -> vector<17x32xf32>
    %c0_188 = arith.constant 0 : index
    %c0_189 = arith.constant 0 : index
    %308 = vector.load %arg33[%c0_188, %c0_189] : memref<1x32xf32, #tpu.memory_space<vmem>>, vector<1x32xf32>
    %309 = vector.broadcast %308 : vector<1x32xf32> to vector<17x32xf32>
    %310 = arith.addf %307, %309 : vector<17x32xf32>
    %311 = arith.addf %263, %310 : vector<17x32xf32>
    %c0_190 = arith.constant 0 : index
    %c0_191 = arith.constant 0 : index
    %c0_192 = arith.constant 0 : index
    %312 = vector.load %arg34[%c0_190, %c0_191, %c0_192] : memref<1x17x32xf32, #tpu.memory_space<vmem>>, vector<1x17x32xf32>
    %313 = vector.shape_cast %312 : vector<1x17x32xf32> to vector<17x32xf32>
    %314 = vector.shape_cast %311 : vector<17x32xf32> to vector<1x17x32xf32>
    tpu.vector_store %arg34[%c0_190, %c0_191, %c0_192], %314 {strides = array<i32>} : memref<1x17x32xf32, #tpu.memory_space<vmem>>, vector<1x17x32xf32>,
    return
  }
  func.func @transform_0(%arg0: i32) -> (i32, i32, i32) {
    %c0_i32 = arith.constant 0 : i32
    %c0_i32_0 = arith.constant 0 : i32
    %c0_i32_1 = arith.constant 0 : i32
    return %arg0, %c0_i32, %c0_i32_0 : i32, i32, i32
  }
  func.func @transform_1(%arg0: i32) -> (i32, i32) {
    %c0_i32 = arith.constant 0 : i32
    %c0_i32_0 = arith.constant 0 : i32
    %c0_i32_1 = arith.constant 0 : i32
    return %c0_i32, %c0_i32_0 : i32, i32
  }
  func.func @transform_2(%arg0: i32) -> (i32, i32) {
    %c0_i32 = arith.constant 0 : i32
    %c0_i32_0 = arith.constant 0 : i32
    %c0_i32_1 = arith.constant 0 : i32
    return %c0_i32, %c0_i32_0 : i32, i32
  }
  func.func @transform_3(%arg0: i32) -> (i32, i32, i32) {
    %c0_i32 = arith.constant 0 : i32
    %c0_i32_0 = arith.constant 0 : i32
    %c0_i32_1 = arith.constant 0 : i32
    %c0_i32_2 = arith.constant 0 : i32
    return %c0_i32, %c0_i32_0, %c0_i32_1 : i32, i32, i32
  }
  func.func @transform_4(%arg0: i32) -> (i32, i32, i32) {
    %c0_i32 = arith.constant 0 : i32
    %c0_i32_0 = arith.constant 0 : i32
    %c0_i32_1 = arith.constant 0 : i32
    %c0_i32_2 = arith.constant 0 : i32
    return %c0_i32, %c0_i32_0, %c0_i32_1 : i32, i32, i32
  }
  func.func @transform_5(%arg0: i32) -> (i32, i32, i32) {
    %c0_i32 = arith.constant 0 : i32
    %c0_i32_0 = arith.constant 0 : i32
    %c0_i32_1 = arith.constant 0 : i32
    %c0_i32_2 = arith.constant 0 : i32
    return %c0_i32, %c0_i32_0, %c0_i32_1 : i32, i32, i32
  }
  func.func @transform_6(%arg0: i32) -> (i32, i32, i32) {
    %c0_i32 = arith.constant 0 : i32
    %c0_i32_0 = arith.constant 0 : i32
    %c0_i32_1 = arith.constant 0 : i32
    %c0_i32_2 = arith.constant 0 : i32
    return %c0_i32, %c0_i32_0, %c0_i32_1 : i32, i32, i32
  }
  func.func @transform_7(%arg0: i32) -> (i32, i32, i32) {
    %c0_i32 = arith.constant 0 : i32
    %c0_i32_0 = arith.constant 0 : i32
    %c0_i32_1 = arith.constant 0 : i32
    %c0_i32_2 = arith.constant 0 : i32
    return %c0_i32, %c0_i32_0, %c0_i32_1 : i32, i32, i32
  }
  func.func @transform_8(%arg0: i32) -> (i32, i32, i32) {
    %c0_i32 = arith.constant 0 : i32
    %c0_i32_0 = arith.constant 0 : i32
    %c0_i32_1 = arith.constant 0 : i32
    %c0_i32_2 = arith.constant 0 : i32
    return %c0_i32, %c0_i32_0, %c0_i32_1 : i32, i32, i32
  }
  func.func @transform_9(%arg0: i32) -> (i32, i32, i32) {
    %c0_i32 = arith.constant 0 : i32
    %c0_i32_0 = arith.constant 0 : i32
    %c0_i32_1 = arith.constant 0 : i32
    %c0_i32_2 = arith.constant 0 : i32
    return %c0_i32, %c0_i32_0, %c0_i32_1 : i32, i32, i32
  }
  func.func @transform_10(%arg0: i32) -> (i32, i32) {
    %c0_i32 = arith.constant 0 : i32
    %c0_i32_0 = arith.constant 0 : i32
    %c0_i32_1 = arith.constant 0 : i32
    return %c0_i32, %c0_i32_0 : i32, i32
  }
  func.func @transform_11(%arg0: i32) -> (i32, i32) {
    %c0_i32 = arith.constant 0 : i32
    %c0_i32_0 = arith.constant 0 : i32
    %c0_i32_1 = arith.constant 0 : i32
    return %c0_i32, %c0_i32_0 : i32, i32
  }
  func.func @transform_12(%arg0: i32) -> (i32, i32) {
    %c0_i32 = arith.constant 0 : i32
    %c0_i32_0 = arith.constant 0 : i32
    %c0_i32_1 = arith.constant 0 : i32
    return %c0_i32, %c0_i32_0 : i32, i32
  }
  func.func @transform_13(%arg0: i32) -> (i32, i32) {
    %c0_i32 = arith.constant 0 : i32
    %c0_i32_0 = arith.constant 0 : i32
    %c0_i32_1 = arith.constant 0 : i32
    return %c0_i32, %c0_i32_0 : i32, i32
  }
  func.func @transform_14(%arg0: i32) -> (i32, i32) {
    %c0_i32 = arith.constant 0 : i32
    %c0_i32_0 = arith.constant 0 : i32
    %c0_i32_1 = arith.constant 0 : i32
    return %c0_i32, %c0_i32_0 : i32, i32
  }
  func.func @transform_15(%arg0: i32) -> (i32, i32) {
    %c0_i32 = arith.constant 0 : i32
    %c0_i32_0 = arith.constant 0 : i32
    %c0_i32_1 = arith.constant 0 : i32
    return %c0_i32, %c0_i32_0 : i32, i32
  }
  func.func @transform_16(%arg0: i32) -> (i32, i32) {
    %c0_i32 = arith.constant 0 : i32
    %c0_i32_0 = arith.constant 0 : i32
    %c0_i32_1 = arith.constant 0 : i32
    return %c0_i32, %c0_i32_0 : i32, i32
  }
  func.func @transform_17(%arg0: i32) -> (i32, i32) {
    %c0_i32 = arith.constant 0 : i32
    %c0_i32_0 = arith.constant 0 : i32
    %c0_i32_1 = arith.constant 0 : i32
    return %c0_i32, %c0_i32_0 : i32, i32
  }
  func.func @transform_18(%arg0: i32) -> (i32, i32) {
    %c0_i32 = arith.constant 0 : i32
    %c0_i32_0 = arith.constant 0 : i32
    %c0_i32_1 = arith.constant 0 : i32
    return %c0_i32, %c0_i32_0 : i32, i32
  }
  func.func @transform_19(%arg0: i32) -> (i32, i32, i32) {
    %c0_i32 = arith.constant 0 : i32
    %c0_i32_0 = arith.constant 0 : i32
    %c0_i32_1 = arith.constant 0 : i32
    %c0_i32_2 = arith.constant 0 : i32
    return %c0_i32, %c0_i32_0, %c0_i32_1 : i32, i32, i32
  }
  func.func @transform_20(%arg0: i32) -> (i32, i32, i32) {
    %c0_i32 = arith.constant 0 : i32
    %c0_i32_0 = arith.constant 0 : i32
    %c0_i32_1 = arith.constant 0 : i32
    %c0_i32_2 = arith.constant 0 : i32
    return %c0_i32, %c0_i32_0, %c0_i32_1 : i32, i32, i32
  }
  func.func @transform_21(%arg0: i32) -> (i32, i32, i32) {
    %c0_i32 = arith.constant 0 : i32
    %c0_i32_0 = arith.constant 0 : i32
    %c0_i32_1 = arith.constant 0 : i32
    %c0_i32_2 = arith.constant 0 : i32
    return %c0_i32, %c0_i32_0, %c0_i32_1 : i32, i32, i32
  }
  func.func @transform_22(%arg0: i32) -> (i32, i32, i32) {
    %c0_i32 = arith.constant 0 : i32
    %c0_i32_0 = arith.constant 0 : i32
    %c0_i32_1 = arith.constant 0 : i32
    %c0_i32_2 = arith.constant 0 : i32
    return %c0_i32, %c0_i32_0, %c0_i32_1 : i32, i32, i32
  }
  func.func @transform_23(%arg0: i32) -> (i32, i32, i32) {
    %c0_i32 = arith.constant 0 : i32
    %c0_i32_0 = arith.constant 0 : i32
    %c0_i32_1 = arith.constant 0 : i32
    %c0_i32_2 = arith.constant 0 : i32
    return %c0_i32, %c0_i32_0, %c0_i32_1 : i32, i32, i32
  }
  func.func @transform_24(%arg0: i32) -> (i32, i32, i32) {
    %c0_i32 = arith.constant 0 : i32
    %c0_i32_0 = arith.constant 0 : i32
    %c0_i32_1 = arith.constant 0 : i32
    %c0_i32_2 = arith.constant 0 : i32
    return %c0_i32, %c0_i32_0, %c0_i32_1 : i32, i32, i32
  }
  func.func @transform_25(%arg0: i32) -> (i32, i32, i32) {
    %c0_i32 = arith.constant 0 : i32
    %c0_i32_0 = arith.constant 0 : i32
    %c0_i32_1 = arith.constant 0 : i32
    %c0_i32_2 = arith.constant 0 : i32
    return %c0_i32, %c0_i32_0, %c0_i32_1 : i32, i32, i32
  }
  func.func @transform_26(%arg0: i32) -> (i32, i32) {
    %c0_i32 = arith.constant 0 : i32
    %c0_i32_0 = arith.constant 0 : i32
    %c0_i32_1 = arith.constant 0 : i32
    return %c0_i32, %c0_i32_0 : i32, i32
  }
  func.func @transform_27(%arg0: i32) -> (i32, i32) {
    %c0_i32 = arith.constant 0 : i32
    %c0_i32_0 = arith.constant 0 : i32
    %c0_i32_1 = arith.constant 0 : i32
    return %c0_i32, %c0_i32_0 : i32, i32
  }
  func.func @transform_28(%arg0: i32) -> (i32, i32) {
    %c0_i32 = arith.constant 0 : i32
    %c0_i32_0 = arith.constant 0 : i32
    %c0_i32_1 = arith.constant 0 : i32
    return %c0_i32, %c0_i32_0 : i32, i32
  }
  func.func @transform_29(%arg0: i32) -> (i32, i32) {
    %c0_i32 = arith.constant 0 : i32
    %c0_i32_0 = arith.constant 0 : i32
    %c0_i32_1 = arith.constant 0 : i32
    return %c0_i32, %c0_i32_0 : i32, i32
  }
  func.func @transform_30(%arg0: i32) -> (i32, i32) {
    %c0_i32 = arith.constant 0 : i32
    %c0_i32_0 = arith.constant 0 : i32
    %c0_i32_1 = arith.constant 0 : i32
    return %c0_i32, %c0_i32_0 : i32, i32
  }
  func.func @transform_31(%arg0: i32) -> (i32, i32) {
    %c0_i32 = arith.constant 0 : i32
    %c0_i32_0 = arith.constant 0 : i32
    %c0_i32_1 = arith.constant 0 : i32
    return %c0_i32, %c0_i32_0 : i32, i32
  }
  func.func @transform_32(%arg0: i32) -> (i32, i32) {
    %c0_i32 = arith.constant 0 : i32
    %c0_i32_0 = arith.constant 0 : i32
    %c0_i32_1 = arith.constant 0 : i32
    return %c0_i32, %c0_i32_0 : i32, i32
  }
  func.func @transform_33(%arg0: i32) -> (i32, i32, i32) {
    %c0_i32 = arith.constant 0 : i32
    %c0_i32_0 = arith.constant 0 : i32
    %c0_i32_1 = arith.constant 0 : i32
    return %arg0, %c0_i32, %c0_i32_0 : i32, i32, i32
  }
}

module attributes {stable_mosaic.version = 11 : i64} {
  func.func @kern(%arg0: i32, %arg1: memref<1x17x32xf32, #tpu.memory_space<vmem>>, %arg2: memref<1x32xf32, #tpu.memory_space<vmem>>, %arg3: memref<1x32xf32, #tpu.memory_space<vmem>>, %arg4: memref<2x32x16xf32, #tpu.memory_space<vmem>>, %arg5: memref<2x1x16xf32, #tpu.memory_space<vmem>>, %arg6: memref<2x32x16xf32, #tpu.memory_space<vmem>>, %arg7: memref<2x1x16xf32, #tpu.memory_space<vmem>>, %arg8: memref<2x32x16xf32, #tpu.memory_space<vmem>>, %arg9: memref<2x1x16xf32, #tpu.memory_space<vmem>>, %arg10: memref<2x16x32xf32, #tpu.memory_space<vmem>>, %arg11: memref<1x32xf32, #tpu.memory_space<vmem>>, %arg12: memref<1x32xf32, #tpu.memory_space<vmem>>, %arg13: memref<1x32xf32, #tpu.memory_space<vmem>>, %arg14: memref<32x128xf32, #tpu.memory_space<vmem>>, %arg15: memref<1x128xf32, #tpu.memory_space<vmem>>, %arg16: memref<128x32xf32, #tpu.memory_space<vmem>>, %arg17: memref<1x32xf32, #tpu.memory_space<vmem>>, %arg18: memref<1x32xf32, #tpu.memory_space<vmem>>, %arg19: memref<1x32xf32, #tpu.memory_space<vmem>>, %arg20: memref<1x17x32xf32, #tpu.memory_space<vmem>>) attributes {dimension_semantics = [#tpu.dimension_semantics<parallel>], iteration_bounds = array<i64: 2>, scalar_prefetch = 0 : i64, scratch_operands = 0 : i64, tpu.core_type = #tpu.core_type<tc>, window_params = [{transform_indices = @transform_0, window_bounds = array<i64: 1, 17, 32>}, {pipeline_mode = #tpu.pipeline_mode<synchronous>, transform_indices = @transform_1, window_bounds = array<i64: 1, 32>}, {pipeline_mode = #tpu.pipeline_mode<synchronous>, transform_indices = @transform_2, window_bounds = array<i64: 1, 32>}, {pipeline_mode = #tpu.pipeline_mode<synchronous>, transform_indices = @transform_3, window_bounds = array<i64: 2, 32, 16>}, {pipeline_mode = #tpu.pipeline_mode<synchronous>, transform_indices = @transform_4, window_bounds = array<i64: 2, 1, 16>}, {pipeline_mode = #tpu.pipeline_mode<synchronous>, transform_indices = @transform_5, window_bounds = array<i64: 2, 32, 16>}, {pipeline_mode = #tpu.pipeline_mode<synchronous>, transform_indices = @transform_6, window_bounds = array<i64: 2, 1, 16>}, {pipeline_mode = #tpu.pipeline_mode<synchronous>, transform_indices = @transform_7, window_bounds = array<i64: 2, 32, 16>}, {pipeline_mode = #tpu.pipeline_mode<synchronous>, transform_indices = @transform_8, window_bounds = array<i64: 2, 1, 16>}, {pipeline_mode = #tpu.pipeline_mode<synchronous>, transform_indices = @transform_9, window_bounds = array<i64: 2, 16, 32>}, {pipeline_mode = #tpu.pipeline_mode<synchronous>, transform_indices = @transform_10, window_bounds = array<i64: 1, 32>}, {pipeline_mode = #tpu.pipeline_mode<synchronous>, transform_indices = @transform_11, window_bounds = array<i64: 1, 32>}, {pipeline_mode = #tpu.pipeline_mode<synchronous>, transform_indices = @transform_12, window_bounds = array<i64: 1, 32>}, {pipeline_mode = #tpu.pipeline_mode<synchronous>, transform_indices = @transform_13, window_bounds = array<i64: 32, 128>}, {pipeline_mode = #tpu.pipeline_mode<synchronous>, transform_indices = @transform_14, window_bounds = array<i64: 1, 128>}, {pipeline_mode = #tpu.pipeline_mode<synchronous>, transform_indices = @transform_15, window_bounds = array<i64: 128, 32>}, {pipeline_mode = #tpu.pipeline_mode<synchronous>, transform_indices = @transform_16, window_bounds = array<i64: 1, 32>}, {pipeline_mode = #tpu.pipeline_mode<synchronous>, transform_indices = @transform_17, window_bounds = array<i64: 1, 32>}, {pipeline_mode = #tpu.pipeline_mode<synchronous>, transform_indices = @transform_18, window_bounds = array<i64: 1, 32>}, {transform_indices = @transform_19, window_bounds = array<i64: 1, 17, 32>}]} {
    %c0 = arith.constant 0 : index
    %c0_0 = arith.constant 0 : index
    %c0_1 = arith.constant 0 : index
    %0 = vector.load %arg1[%c0, %c0_0, %c0_1] : memref<1x17x32xf32, #tpu.memory_space<vmem>>, vector<1x17x32xf32>
    %1 = vector.shape_cast %0 : vector<1x17x32xf32> to vector<17x32xf32>
    %c0_2 = arith.constant 0 : index
    %c0_3 = arith.constant 0 : index
    %2 = vector.load %arg2[%c0_2, %c0_3] : memref<1x32xf32, #tpu.memory_space<vmem>>, vector<1x32xf32>
    %c0_4 = arith.constant 0 : index
    %c0_5 = arith.constant 0 : index
    %3 = vector.load %arg3[%c0_4, %c0_5] : memref<1x32xf32, #tpu.memory_space<vmem>>, vector<1x32xf32>
    %cst = arith.constant dense<0.000000e+00> : vector<17xf32>
    %4 = vector.multi_reduction <add>, %1, %cst [1] : vector<17x32xf32> to vector<17xf32>
    %5 = vector.shape_cast %4 : vector<17xf32> to vector<17x1xf32>
    %cst_6 = arith.constant 3.200000e+01 : f32
    %6 = vector.broadcast %cst_6 : f32 to vector<17x1xf32>
    %7 = arith.divf %5, %6 : vector<17x1xf32>
    %8 = vector.broadcast %7 : vector<17x1xf32> to vector<17x32xf32>
    %9 = arith.subf %1, %8 : vector<17x32xf32>
    %10 = arith.mulf %9, %9 : vector<17x32xf32>
    %cst_7 = arith.constant dense<0.000000e+00> : vector<17xf32>
    %11 = vector.multi_reduction <add>, %10, %cst_7 [1] : vector<17x32xf32> to vector<17xf32>
    %12 = vector.shape_cast %11 : vector<17xf32> to vector<17x1xf32>
    %cst_8 = arith.constant 3.200000e+01 : f32
    %13 = vector.broadcast %cst_8 : f32 to vector<17x1xf32>
    %14 = arith.divf %12, %13 : vector<17x1xf32>
    %15 = vector.broadcast %7 : vector<17x1xf32> to vector<17x32xf32>
    %16 = arith.subf %1, %15 : vector<17x32xf32>
    %cst_9 = arith.constant 9.99999997E-7 : f32
    %17 = vector.broadcast %cst_9 : f32 to vector<17x1xf32>
    %18 = arith.addf %14, %17 : vector<17x1xf32>
    %19 = math.rsqrt %18 : vector<17x1xf32>
    %20 = vector.broadcast %19 : vector<17x1xf32> to vector<17x32xf32>
    %21 = arith.mulf %16, %20 : vector<17x32xf32>
    %22 = vector.broadcast %2 : vector<1x32xf32> to vector<17x32xf32>
    %23 = arith.mulf %21, %22 : vector<17x32xf32>
    %24 = vector.broadcast %3 : vector<1x32xf32> to vector<17x32xf32>
    %25 = arith.addf %23, %24 : vector<17x32xf32>
    %cst_10 = arith.constant 0.000000e+00 : f32
    %26 = vector.broadcast %cst_10 : f32 to vector<17x32xf32>
    %c0_11 = arith.constant 0 : index
    %c0_12 = arith.constant 0 : index
    %27 = vector.load %arg11[%c0_11, %c0_12] : memref<1x32xf32, #tpu.memory_space<vmem>>, vector<1x32xf32>
    %28 = vector.broadcast %27 : vector<1x32xf32> to vector<17x32xf32>
    %29 = arith.addf %26, %28 : vector<17x32xf32>
    %c0_13 = arith.constant 0 : index
    %c0_14 = arith.constant 0 : index
    %c0_15 = arith.constant 0 : index
    %30 = vector.load %arg4[%c0_13, %c0_14, %c0_15] : memref<2x32x16xf32, #tpu.memory_space<vmem>>, vector<1x32x16xf32>
    %31 = vector.shape_cast %30 : vector<1x32x16xf32> to vector<32x16xf32>
    %cst_16 = arith.constant dense<0.000000e+00> : vector<17x16xf32>
    %32 = tpu.matmul %25, %31, %cst_16 {dimension_numbers = #tpu.dot_dimension_numbers<[1], [0], [0], [1], [0, 0, 1, 1], [], []>} : vector<17x32xf32>, vector<32x16xf32>, vector<17x16xf32> -> vector<17x16xf32>
    %c0_17 = arith.constant 0 : index
    %c0_18 = arith.constant 0 : index
    %c0_19 = arith.constant 0 : index
    %33 = vector.load %arg5[%c0_17, %c0_18, %c0_19] : memref<2x1x16xf32, #tpu.memory_space<vmem>>, vector<1x1x16xf32>
    %34 = vector.shape_cast %33 : vector<1x1x16xf32> to vector<1x16xf32>
    %35 = vector.broadcast %34 : vector<1x16xf32> to vector<17x16xf32>
    %36 = arith.addf %32, %35 : vector<17x16xf32>
    %c0_20 = arith.constant 0 : index
    %c0_21 = arith.constant 0 : index
    %c0_22 = arith.constant 0 : index
    %37 = vector.load %arg6[%c0_20, %c0_21, %c0_22] : memref<2x32x16xf32, #tpu.memory_space<vmem>>, vector<1x32x16xf32>
    %38 = vector.shape_cast %37 : vector<1x32x16xf32> to vector<32x16xf32>
    %cst_23 = arith.constant dense<0.000000e+00> : vector<17x16xf32>
    %39 = tpu.matmul %25, %38, %cst_23 {dimension_numbers = #tpu.dot_dimension_numbers<[1], [0], [0], [1], [0, 0, 1, 1], [], []>} : vector<17x32xf32>, vector<32x16xf32>, vector<17x16xf32> -> vector<17x16xf32>
    %c0_24 = arith.constant 0 : index
    %c0_25 = arith.constant 0 : index
    %c0_26 = arith.constant 0 : index
    %40 = vector.load %arg7[%c0_24, %c0_25, %c0_26] : memref<2x1x16xf32, #tpu.memory_space<vmem>>, vector<1x1x16xf32>
    %41 = vector.shape_cast %40 : vector<1x1x16xf32> to vector<1x16xf32>
    %42 = vector.broadcast %41 : vector<1x16xf32> to vector<17x16xf32>
    %43 = arith.addf %39, %42 : vector<17x16xf32>
    %c0_27 = arith.constant 0 : index
    %c0_28 = arith.constant 0 : index
    %c0_29 = arith.constant 0 : index
    %44 = vector.load %arg8[%c0_27, %c0_28, %c0_29] : memref<2x32x16xf32, #tpu.memory_space<vmem>>, vector<1x32x16xf32>
    %45 = vector.shape_cast %44 : vector<1x32x16xf32> to vector<32x16xf32>
    %cst_30 = arith.constant dense<0.000000e+00> : vector<17x16xf32>
    %46 = tpu.matmul %25, %45, %cst_30 {dimension_numbers = #tpu.dot_dimension_numbers<[1], [0], [0], [1], [0, 0, 1, 1], [], []>} : vector<17x32xf32>, vector<32x16xf32>, vector<17x16xf32> -> vector<17x16xf32>
    %c0_31 = arith.constant 0 : index
    %c0_32 = arith.constant 0 : index
    %c0_33 = arith.constant 0 : index
    %47 = vector.load %arg9[%c0_31, %c0_32, %c0_33] : memref<2x1x16xf32, #tpu.memory_space<vmem>>, vector<1x1x16xf32>
    %48 = vector.shape_cast %47 : vector<1x1x16xf32> to vector<1x16xf32>
    %49 = vector.broadcast %48 : vector<1x16xf32> to vector<17x16xf32>
    %50 = arith.addf %46, %49 : vector<17x16xf32>
    %cst_34 = arith.constant dense<0.000000e+00> : vector<17x17xf32>
    %51 = tpu.matmul %36, %43, %cst_34 {dimension_numbers = #tpu.dot_dimension_numbers<[1], [1], [0], [0], [0, 0, 1, 0], [], []>} : vector<17x16xf32>, vector<17x16xf32>, vector<17x17xf32> -> vector<17x17xf32>
    %cst_35 = arith.constant 2.500000e-01 : f32
    %52 = vector.broadcast %cst_35 : f32 to vector<17x17xf32>
    %53 = arith.mulf %51, %52 : vector<17x17xf32>
    %cst_36 = arith.constant dense<0xFF800000> : vector<17xf32>
    %54 = vector.multi_reduction <maximumf>, %53, %cst_36 [1] : vector<17x17xf32> to vector<17xf32>
    %55 = vector.shape_cast %54 : vector<17xf32> to vector<17x1xf32>
    %56 = vector.broadcast %55 : vector<17x1xf32> to vector<17x17xf32>
    %57 = arith.subf %53, %56 : vector<17x17xf32>
    %58 = math.exp %57 : vector<17x17xf32>
    %cst_37 = arith.constant dense<0.000000e+00> : vector<17xf32>
    %59 = vector.multi_reduction <add>, %58, %cst_37 [1] : vector<17x17xf32> to vector<17xf32>
    %60 = vector.shape_cast %59 : vector<17xf32> to vector<17x1xf32>
    %61 = tpu.reciprocal %60 {approx = true} : vector<17x1xf32> -> vector<17x1xf32>
    %62 = vector.broadcast %61 : vector<17x1xf32> to vector<17x17xf32>
    %63 = arith.mulf %58, %62 : vector<17x17xf32>
    %cst_38 = arith.constant dense<0.000000e+00> : vector<17x16xf32>
    %64 = tpu.matmul %63, %50, %cst_38 {dimension_numbers = #tpu.dot_dimension_numbers<[1], [0], [0], [1], [0, 0, 1, 1], [], []>} : vector<17x17xf32>, vector<17x16xf32>, vector<17x16xf32> -> vector<17x16xf32>
    %c0_39 = arith.constant 0 : index
    %c0_40 = arith.constant 0 : index
    %c0_41 = arith.constant 0 : index
    %65 = vector.load %arg10[%c0_39, %c0_40, %c0_41] : memref<2x16x32xf32, #tpu.memory_space<vmem>>, vector<1x16x32xf32>
    %66 = vector.shape_cast %65 : vector<1x16x32xf32> to vector<16x32xf32>
    %cst_42 = arith.constant dense<0.000000e+00> : vector<17x32xf32>
    %67 = tpu.matmul %64, %66, %cst_42 {dimension_numbers = #tpu.dot_dimension_numbers<[1], [0], [0], [1], [0, 0, 1, 1], [], []>} : vector<17x16xf32>, vector<16x32xf32>, vector<17x32xf32> -> vector<17x32xf32>
    %68 = arith.addf %29, %67 : vector<17x32xf32>
    %c1 = arith.constant 1 : index
    %c0_43 = arith.constant 0 : index
    %c0_44 = arith.constant 0 : index
    %69 = vector.load %arg4[%c1, %c0_43, %c0_44] : memref<2x32x16xf32, #tpu.memory_space<vmem>>, vector<1x32x16xf32>
    %70 = vector.shape_cast %69 : vector<1x32x16xf32> to vector<32x16xf32>
    %cst_45 = arith.constant dense<0.000000e+00> : vector<17x16xf32>
    %71 = tpu.matmul %25, %70, %cst_45 {dimension_numbers = #tpu.dot_dimension_numbers<[1], [0], [0], [1], [0, 0, 1, 1], [], []>} : vector<17x32xf32>, vector<32x16xf32>, vector<17x16xf32> -> vector<17x16xf32>
    %c1_46 = arith.constant 1 : index
    %c0_47 = arith.constant 0 : index
    %c0_48 = arith.constant 0 : index
    %72 = vector.load %arg5[%c1_46, %c0_47, %c0_48] : memref<2x1x16xf32, #tpu.memory_space<vmem>>, vector<1x1x16xf32>
    %73 = vector.shape_cast %72 : vector<1x1x16xf32> to vector<1x16xf32>
    %74 = vector.broadcast %73 : vector<1x16xf32> to vector<17x16xf32>
    %75 = arith.addf %71, %74 : vector<17x16xf32>
    %c1_49 = arith.constant 1 : index
    %c0_50 = arith.constant 0 : index
    %c0_51 = arith.constant 0 : index
    %76 = vector.load %arg6[%c1_49, %c0_50, %c0_51] : memref<2x32x16xf32, #tpu.memory_space<vmem>>, vector<1x32x16xf32>
    %77 = vector.shape_cast %76 : vector<1x32x16xf32> to vector<32x16xf32>
    %cst_52 = arith.constant dense<0.000000e+00> : vector<17x16xf32>
    %78 = tpu.matmul %25, %77, %cst_52 {dimension_numbers = #tpu.dot_dimension_numbers<[1], [0], [0], [1], [0, 0, 1, 1], [], []>} : vector<17x32xf32>, vector<32x16xf32>, vector<17x16xf32> -> vector<17x16xf32>
    %c1_53 = arith.constant 1 : index
    %c0_54 = arith.constant 0 : index
    %c0_55 = arith.constant 0 : index
    %79 = vector.load %arg7[%c1_53, %c0_54, %c0_55] : memref<2x1x16xf32, #tpu.memory_space<vmem>>, vector<1x1x16xf32>
    %80 = vector.shape_cast %79 : vector<1x1x16xf32> to vector<1x16xf32>
    %81 = vector.broadcast %80 : vector<1x16xf32> to vector<17x16xf32>
    %82 = arith.addf %78, %81 : vector<17x16xf32>
    %c1_56 = arith.constant 1 : index
    %c0_57 = arith.constant 0 : index
    %c0_58 = arith.constant 0 : index
    %83 = vector.load %arg8[%c1_56, %c0_57, %c0_58] : memref<2x32x16xf32, #tpu.memory_space<vmem>>, vector<1x32x16xf32>
    %84 = vector.shape_cast %83 : vector<1x32x16xf32> to vector<32x16xf32>
    %cst_59 = arith.constant dense<0.000000e+00> : vector<17x16xf32>
    %85 = tpu.matmul %25, %84, %cst_59 {dimension_numbers = #tpu.dot_dimension_numbers<[1], [0], [0], [1], [0, 0, 1, 1], [], []>} : vector<17x32xf32>, vector<32x16xf32>, vector<17x16xf32> -> vector<17x16xf32>
    %c1_60 = arith.constant 1 : index
    %c0_61 = arith.constant 0 : index
    %c0_62 = arith.constant 0 : index
    %86 = vector.load %arg9[%c1_60, %c0_61, %c0_62] : memref<2x1x16xf32, #tpu.memory_space<vmem>>, vector<1x1x16xf32>
    %87 = vector.shape_cast %86 : vector<1x1x16xf32> to vector<1x16xf32>
    %88 = vector.broadcast %87 : vector<1x16xf32> to vector<17x16xf32>
    %89 = arith.addf %85, %88 : vector<17x16xf32>
    %cst_63 = arith.constant dense<0.000000e+00> : vector<17x17xf32>
    %90 = tpu.matmul %75, %82, %cst_63 {dimension_numbers = #tpu.dot_dimension_numbers<[1], [1], [0], [0], [0, 0, 1, 0], [], []>} : vector<17x16xf32>, vector<17x16xf32>, vector<17x17xf32> -> vector<17x17xf32>
    %cst_64 = arith.constant 2.500000e-01 : f32
    %91 = vector.broadcast %cst_64 : f32 to vector<17x17xf32>
    %92 = arith.mulf %90, %91 : vector<17x17xf32>
    %cst_65 = arith.constant dense<0xFF800000> : vector<17xf32>
    %93 = vector.multi_reduction <maximumf>, %92, %cst_65 [1] : vector<17x17xf32> to vector<17xf32>
    %94 = vector.shape_cast %93 : vector<17xf32> to vector<17x1xf32>
    %95 = vector.broadcast %94 : vector<17x1xf32> to vector<17x17xf32>
    %96 = arith.subf %92, %95 : vector<17x17xf32>
    %97 = math.exp %96 : vector<17x17xf32>
    %cst_66 = arith.constant dense<0.000000e+00> : vector<17xf32>
    %98 = vector.multi_reduction <add>, %97, %cst_66 [1] : vector<17x17xf32> to vector<17xf32>
    %99 = vector.shape_cast %98 : vector<17xf32> to vector<17x1xf32>
    %100 = tpu.reciprocal %99 {approx = true} : vector<17x1xf32> -> vector<17x1xf32>
    %101 = vector.broadcast %100 : vector<17x1xf32> to vector<17x17xf32>
    %102 = arith.mulf %97, %101 : vector<17x17xf32>
    %cst_67 = arith.constant dense<0.000000e+00> : vector<17x16xf32>
    %103 = tpu.matmul %102, %89, %cst_67 {dimension_numbers = #tpu.dot_dimension_numbers<[1], [0], [0], [1], [0, 0, 1, 1], [], []>} : vector<17x17xf32>, vector<17x16xf32>, vector<17x16xf32> -> vector<17x16xf32>
    %c1_68 = arith.constant 1 : index
    %c0_69 = arith.constant 0 : index
    %c0_70 = arith.constant 0 : index
    %104 = vector.load %arg10[%c1_68, %c0_69, %c0_70] : memref<2x16x32xf32, #tpu.memory_space<vmem>>, vector<1x16x32xf32>
    %105 = vector.shape_cast %104 : vector<1x16x32xf32> to vector<16x32xf32>
    %cst_71 = arith.constant dense<0.000000e+00> : vector<17x32xf32>
    %106 = tpu.matmul %103, %105, %cst_71 {dimension_numbers = #tpu.dot_dimension_numbers<[1], [0], [0], [1], [0, 0, 1, 1], [], []>} : vector<17x16xf32>, vector<16x32xf32>, vector<17x32xf32> -> vector<17x32xf32>
    %107 = arith.addf %68, %106 : vector<17x32xf32>
    %108 = arith.addf %1, %107 : vector<17x32xf32>
    %c0_72 = arith.constant 0 : index
    %c0_73 = arith.constant 0 : index
    %109 = vector.load %arg12[%c0_72, %c0_73] : memref<1x32xf32, #tpu.memory_space<vmem>>, vector<1x32xf32>
    %c0_74 = arith.constant 0 : index
    %c0_75 = arith.constant 0 : index
    %110 = vector.load %arg13[%c0_74, %c0_75] : memref<1x32xf32, #tpu.memory_space<vmem>>, vector<1x32xf32>
    %cst_76 = arith.constant dense<0.000000e+00> : vector<17xf32>
    %111 = vector.multi_reduction <add>, %108, %cst_76 [1] : vector<17x32xf32> to vector<17xf32>
    %112 = vector.shape_cast %111 : vector<17xf32> to vector<17x1xf32>
    %cst_77 = arith.constant 3.200000e+01 : f32
    %113 = vector.broadcast %cst_77 : f32 to vector<17x1xf32>
    %114 = arith.divf %112, %113 : vector<17x1xf32>
    %115 = vector.broadcast %114 : vector<17x1xf32> to vector<17x32xf32>
    %116 = arith.subf %108, %115 : vector<17x32xf32>
    %117 = arith.mulf %116, %116 : vector<17x32xf32>
    %cst_78 = arith.constant dense<0.000000e+00> : vector<17xf32>
    %118 = vector.multi_reduction <add>, %117, %cst_78 [1] : vector<17x32xf32> to vector<17xf32>
    %119 = vector.shape_cast %118 : vector<17xf32> to vector<17x1xf32>
    %cst_79 = arith.constant 3.200000e+01 : f32
    %120 = vector.broadcast %cst_79 : f32 to vector<17x1xf32>
    %121 = arith.divf %119, %120 : vector<17x1xf32>
    %122 = vector.broadcast %114 : vector<17x1xf32> to vector<17x32xf32>
    %123 = arith.subf %108, %122 : vector<17x32xf32>
    %cst_80 = arith.constant 9.99999997E-7 : f32
    %124 = vector.broadcast %cst_80 : f32 to vector<17x1xf32>
    %125 = arith.addf %121, %124 : vector<17x1xf32>
    %126 = math.rsqrt %125 : vector<17x1xf32>
    %127 = vector.broadcast %126 : vector<17x1xf32> to vector<17x32xf32>
    %128 = arith.mulf %123, %127 : vector<17x32xf32>
    %129 = vector.broadcast %109 : vector<1x32xf32> to vector<17x32xf32>
    %130 = arith.mulf %128, %129 : vector<17x32xf32>
    %131 = vector.broadcast %110 : vector<1x32xf32> to vector<17x32xf32>
    %132 = arith.addf %130, %131 : vector<17x32xf32>
    %c0_81 = arith.constant 0 : index
    %c0_82 = arith.constant 0 : index
    %133 = vector.load %arg14[%c0_81, %c0_82] : memref<32x128xf32, #tpu.memory_space<vmem>>, vector<32x128xf32>
    %cst_83 = arith.constant dense<0.000000e+00> : vector<17x128xf32>
    %134 = tpu.matmul %132, %133, %cst_83 {dimension_numbers = #tpu.dot_dimension_numbers<[1], [0], [0], [1], [0, 0, 1, 1], [], []>} : vector<17x32xf32>, vector<32x128xf32>, vector<17x128xf32> -> vector<17x128xf32>
    %c0_84 = arith.constant 0 : index
    %c0_85 = arith.constant 0 : index
    %135 = vector.load %arg15[%c0_84, %c0_85] : memref<1x128xf32, #tpu.memory_space<vmem>>, vector<1x128xf32>
    %136 = vector.broadcast %135 : vector<1x128xf32> to vector<17x128xf32>
    %137 = arith.addf %134, %136 : vector<17x128xf32>
    %cst_86 = arith.constant 5.000000e-01 : f32
    %138 = vector.broadcast %cst_86 : f32 to vector<17x128xf32>
    %139 = arith.mulf %138, %137 : vector<17x128xf32>
    %cst_87 = arith.constant 4.471500e-02 : f32
    %140 = vector.broadcast %cst_87 : f32 to vector<17x128xf32>
    %141 = arith.mulf %140, %137 : vector<17x128xf32>
    %142 = arith.mulf %141, %137 : vector<17x128xf32>
    %143 = arith.mulf %142, %137 : vector<17x128xf32>
    %144 = arith.addf %137, %143 : vector<17x128xf32>
    %cst_88 = arith.constant 0.797884583 : f32
    %145 = vector.broadcast %cst_88 : f32 to vector<17x128xf32>
    %146 = arith.mulf %145, %144 : vector<17x128xf32>
    %147 = math.tanh %146 : vector<17x128xf32>
    %cst_89 = arith.constant 1.000000e+00 : f32
    %148 = vector.broadcast %cst_89 : f32 to vector<17x128xf32>
    %149 = arith.addf %148, %147 : vector<17x128xf32>
    %150 = arith.mulf %139, %149 : vector<17x128xf32>
    %c0_90 = arith.constant 0 : index
    %c0_91 = arith.constant 0 : index
    %151 = vector.load %arg16[%c0_90, %c0_91] : memref<128x32xf32, #tpu.memory_space<vmem>>, vector<128x32xf32>
    %cst_92 = arith.constant dense<0.000000e+00> : vector<17x32xf32>
    %152 = tpu.matmul %150, %151, %cst_92 {dimension_numbers = #tpu.dot_dimension_numbers<[1], [0], [0], [1], [0, 0, 1, 1], [], []>} : vector<17x128xf32>, vector<128x32xf32>, vector<17x32xf32> -> vector<17x32xf32>
    %c0_93 = arith.constant 0 : index
    %c0_94 = arith.constant 0 : index
    %153 = vector.load %arg17[%c0_93, %c0_94] : memref<1x32xf32, #tpu.memory_space<vmem>>, vector<1x32xf32>
    %154 = vector.broadcast %153 : vector<1x32xf32> to vector<17x32xf32>
    %155 = arith.addf %152, %154 : vector<17x32xf32>
    %156 = arith.addf %108, %155 : vector<17x32xf32>
    %c0_95 = arith.constant 0 : index
    %c0_96 = arith.constant 0 : index
    %157 = vector.load %arg18[%c0_95, %c0_96] : memref<1x32xf32, #tpu.memory_space<vmem>>, vector<1x32xf32>
    %c0_97 = arith.constant 0 : index
    %c0_98 = arith.constant 0 : index
    %158 = vector.load %arg19[%c0_97, %c0_98] : memref<1x32xf32, #tpu.memory_space<vmem>>, vector<1x32xf32>
    %cst_99 = arith.constant dense<0.000000e+00> : vector<17xf32>
    %159 = vector.multi_reduction <add>, %156, %cst_99 [1] : vector<17x32xf32> to vector<17xf32>
    %160 = vector.shape_cast %159 : vector<17xf32> to vector<17x1xf32>
    %cst_100 = arith.constant 3.200000e+01 : f32
    %161 = vector.broadcast %cst_100 : f32 to vector<17x1xf32>
    %162 = arith.divf %160, %161 : vector<17x1xf32>
    %163 = vector.broadcast %162 : vector<17x1xf32> to vector<17x32xf32>
    %164 = arith.subf %156, %163 : vector<17x32xf32>
    %165 = arith.mulf %164, %164 : vector<17x32xf32>
    %cst_101 = arith.constant dense<0.000000e+00> : vector<17xf32>
    %166 = vector.multi_reduction <add>, %165, %cst_101 [1] : vector<17x32xf32> to vector<17xf32>
    %167 = vector.shape_cast %166 : vector<17xf32> to vector<17x1xf32>
    %cst_102 = arith.constant 3.200000e+01 : f32
    %168 = vector.broadcast %cst_102 : f32 to vector<17x1xf32>
    %169 = arith.divf %167, %168 : vector<17x1xf32>
    %170 = vector.broadcast %162 : vector<17x1xf32> to vector<17x32xf32>
    %171 = arith.subf %156, %170 : vector<17x32xf32>
    %cst_103 = arith.constant 9.99999997E-7 : f32
    %172 = vector.broadcast %cst_103 : f32 to vector<17x1xf32>
    %173 = arith.addf %169, %172 : vector<17x1xf32>
    %174 = math.rsqrt %173 : vector<17x1xf32>
    %175 = vector.broadcast %174 : vector<17x1xf32> to vector<17x32xf32>
    %176 = arith.mulf %171, %175 : vector<17x32xf32>
    %177 = vector.broadcast %157 : vector<1x32xf32> to vector<17x32xf32>
    %178 = arith.mulf %176, %177 : vector<17x32xf32>
    %179 = vector.broadcast %158 : vector<1x32xf32> to vector<17x32xf32>
    %180 = arith.addf %178, %179 : vector<17x32xf32>
    %c0_104 = arith.constant 0 : index
    %c0_105 = arith.constant 0 : index
    %c0_106 = arith.constant 0 : index
    %181 = vector.load %arg20[%c0_104, %c0_105, %c0_106] : memref<1x17x32xf32, #tpu.memory_space<vmem>>, vector<1x17x32xf32>
    %182 = vector.shape_cast %181 : vector<1x17x32xf32> to vector<17x32xf32>
    %183 = vector.shape_cast %180 : vector<17x32xf32> to vector<1x17x32xf32>
    tpu.vector_store %arg20[%c0_104, %c0_105, %c0_106], %183 {strides = array<i32>} : memref<1x17x32xf32, #tpu.memory_space<vmem>>, vector<1x17x32xf32>,
    return
  }
  func.func @transform_0(%arg0: i32) -> (i32, i32, i32) {
    %c0_i32 = arith.constant 0 : i32
    %c0_i32_0 = arith.constant 0 : i32
    %c0_i32_1 = arith.constant 0 : i32
    return %arg0, %c0_i32, %c0_i32_0 : i32, i32, i32
  }
  func.func @transform_1(%arg0: i32) -> (i32, i32) {
    %c0_i32 = arith.constant 0 : i32
    %c0_i32_0 = arith.constant 0 : i32
    %c0_i32_1 = arith.constant 0 : i32
    return %c0_i32, %c0_i32_0 : i32, i32
  }
  func.func @transform_2(%arg0: i32) -> (i32, i32) {
    %c0_i32 = arith.constant 0 : i32
    %c0_i32_0 = arith.constant 0 : i32
    %c0_i32_1 = arith.constant 0 : i32
    return %c0_i32, %c0_i32_0 : i32, i32
  }
  func.func @transform_3(%arg0: i32) -> (i32, i32, i32) {
    %c0_i32 = arith.constant 0 : i32
    %c0_i32_0 = arith.constant 0 : i32
    %c0_i32_1 = arith.constant 0 : i32
    %c0_i32_2 = arith.constant 0 : i32
    return %c0_i32, %c0_i32_0, %c0_i32_1 : i32, i32, i32
  }
  func.func @transform_4(%arg0: i32) -> (i32, i32, i32) {
    %c0_i32 = arith.constant 0 : i32
    %c0_i32_0 = arith.constant 0 : i32
    %c0_i32_1 = arith.constant 0 : i32
    %c0_i32_2 = arith.constant 0 : i32
    return %c0_i32, %c0_i32_0, %c0_i32_1 : i32, i32, i32
  }
  func.func @transform_5(%arg0: i32) -> (i32, i32, i32) {
    %c0_i32 = arith.constant 0 : i32
    %c0_i32_0 = arith.constant 0 : i32
    %c0_i32_1 = arith.constant 0 : i32
    %c0_i32_2 = arith.constant 0 : i32
    return %c0_i32, %c0_i32_0, %c0_i32_1 : i32, i32, i32
  }
  func.func @transform_6(%arg0: i32) -> (i32, i32, i32) {
    %c0_i32 = arith.constant 0 : i32
    %c0_i32_0 = arith.constant 0 : i32
    %c0_i32_1 = arith.constant 0 : i32
    %c0_i32_2 = arith.constant 0 : i32
    return %c0_i32, %c0_i32_0, %c0_i32_1 : i32, i32, i32
  }
  func.func @transform_7(%arg0: i32) -> (i32, i32, i32) {
    %c0_i32 = arith.constant 0 : i32
    %c0_i32_0 = arith.constant 0 : i32
    %c0_i32_1 = arith.constant 0 : i32
    %c0_i32_2 = arith.constant 0 : i32
    return %c0_i32, %c0_i32_0, %c0_i32_1 : i32, i32, i32
  }
  func.func @transform_8(%arg0: i32) -> (i32, i32, i32) {
    %c0_i32 = arith.constant 0 : i32
    %c0_i32_0 = arith.constant 0 : i32
    %c0_i32_1 = arith.constant 0 : i32
    %c0_i32_2 = arith.constant 0 : i32
    return %c0_i32, %c0_i32_0, %c0_i32_1 : i32, i32, i32
  }
  func.func @transform_9(%arg0: i32) -> (i32, i32, i32) {
    %c0_i32 = arith.constant 0 : i32
    %c0_i32_0 = arith.constant 0 : i32
    %c0_i32_1 = arith.constant 0 : i32
    %c0_i32_2 = arith.constant 0 : i32
    return %c0_i32, %c0_i32_0, %c0_i32_1 : i32, i32, i32
  }
  func.func @transform_10(%arg0: i32) -> (i32, i32) {
    %c0_i32 = arith.constant 0 : i32
    %c0_i32_0 = arith.constant 0 : i32
    %c0_i32_1 = arith.constant 0 : i32
    return %c0_i32, %c0_i32_0 : i32, i32
  }
  func.func @transform_11(%arg0: i32) -> (i32, i32) {
    %c0_i32 = arith.constant 0 : i32
    %c0_i32_0 = arith.constant 0 : i32
    %c0_i32_1 = arith.constant 0 : i32
    return %c0_i32, %c0_i32_0 : i32, i32
  }
  func.func @transform_12(%arg0: i32) -> (i32, i32) {
    %c0_i32 = arith.constant 0 : i32
    %c0_i32_0 = arith.constant 0 : i32
    %c0_i32_1 = arith.constant 0 : i32
    return %c0_i32, %c0_i32_0 : i32, i32
  }
  func.func @transform_13(%arg0: i32) -> (i32, i32) {
    %c0_i32 = arith.constant 0 : i32
    %c0_i32_0 = arith.constant 0 : i32
    %c0_i32_1 = arith.constant 0 : i32
    return %c0_i32, %c0_i32_0 : i32, i32
  }
  func.func @transform_14(%arg0: i32) -> (i32, i32) {
    %c0_i32 = arith.constant 0 : i32
    %c0_i32_0 = arith.constant 0 : i32
    %c0_i32_1 = arith.constant 0 : i32
    return %c0_i32, %c0_i32_0 : i32, i32
  }
  func.func @transform_15(%arg0: i32) -> (i32, i32) {
    %c0_i32 = arith.constant 0 : i32
    %c0_i32_0 = arith.constant 0 : i32
    %c0_i32_1 = arith.constant 0 : i32
    return %c0_i32, %c0_i32_0 : i32, i32
  }
  func.func @transform_16(%arg0: i32) -> (i32, i32) {
    %c0_i32 = arith.constant 0 : i32
    %c0_i32_0 = arith.constant 0 : i32
    %c0_i32_1 = arith.constant 0 : i32
    return %c0_i32, %c0_i32_0 : i32, i32
  }
  func.func @transform_17(%arg0: i32) -> (i32, i32) {
    %c0_i32 = arith.constant 0 : i32
    %c0_i32_0 = arith.constant 0 : i32
    %c0_i32_1 = arith.constant 0 : i32
    return %c0_i32, %c0_i32_0 : i32, i32
  }
  func.func @transform_18(%arg0: i32) -> (i32, i32) {
    %c0_i32 = arith.constant 0 : i32
    %c0_i32_0 = arith.constant 0 : i32
    %c0_i32_1 = arith.constant 0 : i32
    return %c0_i32, %c0_i32_0 : i32, i32
  }
  func.func @transform_19(%arg0: i32) -> (i32, i32, i32) {
    %c0_i32 = arith.constant 0 : i32
    %c0_i32_0 = arith.constant 0 : i32
    %c0_i32_1 = arith.constant 0 : i32
    return %arg0, %c0_i32, %c0_i32_0 : i32, i32, i32
  }
}

module attributes {stable_mosaic.version = 11 : i64} {
  func.func @kern(%arg0: i32, %arg1: memref<4x5x32xf32, #tpu.memory_space<vmem>>, %arg2: memref<1x32xf32, #tpu.memory_space<vmem>>, %arg3: memref<1x32xf32, #tpu.memory_space<vmem>>, %arg4: memref<2x32x16xf32, #tpu.memory_space<vmem>>, %arg5: memref<2x1x16xf32, #tpu.memory_space<vmem>>, %arg6: memref<2x32x16xf32, #tpu.memory_space<vmem>>, %arg7: memref<2x1x16xf32, #tpu.memory_space<vmem>>, %arg8: memref<2x32x16xf32, #tpu.memory_space<vmem>>, %arg9: memref<2x1x16xf32, #tpu.memory_space<vmem>>, %arg10: memref<2x16x32xf32, #tpu.memory_space<vmem>>, %arg11: memref<1x32xf32, #tpu.memory_space<vmem>>, %arg12: memref<1x32xf32, #tpu.memory_space<vmem>>, %arg13: memref<1x32xf32, #tpu.memory_space<vmem>>, %arg14: memref<32x128xf32, #tpu.memory_space<vmem>>, %arg15: memref<1x128xf32, #tpu.memory_space<vmem>>, %arg16: memref<128x32xf32, #tpu.memory_space<vmem>>, %arg17: memref<1x32xf32, #tpu.memory_space<vmem>>, %arg18: memref<1x32xf32, #tpu.memory_space<vmem>>, %arg19: memref<1x32xf32, #tpu.memory_space<vmem>>, %arg20: memref<4x5x32xf32, #tpu.memory_space<vmem>>) attributes {dimension_semantics = [#tpu.dimension_semantics<parallel>], iteration_bounds = array<i64: 2>, scalar_prefetch = 0 : i64, scratch_operands = 0 : i64, tpu.core_type = #tpu.core_type<tc>, window_params = [{transform_indices = @transform_0, window_bounds = array<i64: 4, 5, 32>}, {pipeline_mode = #tpu.pipeline_mode<synchronous>, transform_indices = @transform_1, window_bounds = array<i64: 1, 32>}, {pipeline_mode = #tpu.pipeline_mode<synchronous>, transform_indices = @transform_2, window_bounds = array<i64: 1, 32>}, {pipeline_mode = #tpu.pipeline_mode<synchronous>, transform_indices = @transform_3, window_bounds = array<i64: 2, 32, 16>}, {pipeline_mode = #tpu.pipeline_mode<synchronous>, transform_indices = @transform_4, window_bounds = array<i64: 2, 1, 16>}, {pipeline_mode = #tpu.pipeline_mode<synchronous>, transform_indices = @transform_5, window_bounds = array<i64: 2, 32, 16>}, {pipeline_mode = #tpu.pipeline_mode<synchronous>, transform_indices = @transform_6, window_bounds = array<i64: 2, 1, 16>}, {pipeline_mode = #tpu.pipeline_mode<synchronous>, transform_indices = @transform_7, window_bounds = array<i64: 2, 32, 16>}, {pipeline_mode = #tpu.pipeline_mode<synchronous>, transform_indices = @transform_8, window_bounds = array<i64: 2, 1, 16>}, {pipeline_mode = #tpu.pipeline_mode<synchronous>, transform_indices = @transform_9, window_bounds = array<i64: 2, 16, 32>}, {pipeline_mode = #tpu.pipeline_mode<synchronous>, transform_indices = @transform_10, window_bounds = array<i64: 1, 32>}, {pipeline_mode = #tpu.pipeline_mode<synchronous>, transform_indices = @transform_11, window_bounds = array<i64: 1, 32>}, {pipeline_mode = #tpu.pipeline_mode<synchronous>, transform_indices = @transform_12, window_bounds = array<i64: 1, 32>}, {pipeline_mode = #tpu.pipeline_mode<synchronous>, transform_indices = @transform_13, window_bounds = array<i64: 32, 128>}, {pipeline_mode = #tpu.pipeline_mode<synchronous>, transform_indices = @transform_14, window_bounds = array<i64: 1, 128>}, {pipeline_mode = #tpu.pipeline_mode<synchronous>, transform_indices = @transform_15, window_bounds = array<i64: 128, 32>}, {pipeline_mode = #tpu.pipeline_mode<synchronous>, transform_indices = @transform_16, window_bounds = array<i64: 1, 32>}, {pipeline_mode = #tpu.pipeline_mode<synchronous>, transform_indices = @transform_17, window_bounds = array<i64: 1, 32>}, {pipeline_mode = #tpu.pipeline_mode<synchronous>, transform_indices = @transform_18, window_bounds = array<i64: 1, 32>}, {transform_indices = @transform_19, window_bounds = array<i64: 4, 5, 32>}]} {
    %c0 = arith.constant 0 : index
    %c0_0 = arith.constant 0 : index
    %c0_1 = arith.constant 0 : index
    %0 = vector.load %arg1[%c0, %c0_0, %c0_1] : memref<4x5x32xf32, #tpu.memory_space<vmem>>, vector<1x5x32xf32>
    %1 = vector.shape_cast %0 : vector<1x5x32xf32> to vector<5x32xf32>
    %c0_2 = arith.constant 0 : index
    %c0_3 = arith.constant 0 : index
    %2 = vector.load %arg2[%c0_2, %c0_3] : memref<1x32xf32, #tpu.memory_space<vmem>>, vector<1x32xf32>
    %c0_4 = arith.constant 0 : index
    %c0_5 = arith.constant 0 : index
    %3 = vector.load %arg3[%c0_4, %c0_5] : memref<1x32xf32, #tpu.memory_space<vmem>>, vector<1x32xf32>
    %cst = arith.constant dense<0.000000e+00> : vector<5xf32>
    %4 = vector.multi_reduction <add>, %1, %cst [1] : vector<5x32xf32> to vector<5xf32>
    %5 = vector.shape_cast %4 : vector<5xf32> to vector<5x1xf32>
    %cst_6 = arith.constant 3.200000e+01 : f32
    %6 = vector.broadcast %cst_6 : f32 to vector<5x1xf32>
    %7 = arith.divf %5, %6 : vector<5x1xf32>
    %8 = vector.broadcast %7 : vector<5x1xf32> to vector<5x32xf32>
    %9 = arith.subf %1, %8 : vector<5x32xf32>
    %10 = arith.mulf %9, %9 : vector<5x32xf32>
    %cst_7 = arith.constant dense<0.000000e+00> : vector<5xf32>
    %11 = vector.multi_reduction <add>, %10, %cst_7 [1] : vector<5x32xf32> to vector<5xf32>
    %12 = vector.shape_cast %11 : vector<5xf32> to vector<5x1xf32>
    %cst_8 = arith.constant 3.200000e+01 : f32
    %13 = vector.broadcast %cst_8 : f32 to vector<5x1xf32>
    %14 = arith.divf %12, %13 : vector<5x1xf32>
    %15 = vector.broadcast %7 : vector<5x1xf32> to vector<5x32xf32>
    %16 = arith.subf %1, %15 : vector<5x32xf32>
    %cst_9 = arith.constant 9.99999997E-7 : f32
    %17 = vector.broadcast %cst_9 : f32 to vector<5x1xf32>
    %18 = arith.addf %14, %17 : vector<5x1xf32>
    %19 = math.rsqrt %18 : vector<5x1xf32>
    %20 = vector.broadcast %19 : vector<5x1xf32> to vector<5x32xf32>
    %21 = arith.mulf %16, %20 : vector<5x32xf32>
    %22 = vector.broadcast %2 : vector<1x32xf32> to vector<5x32xf32>
    %23 = arith.mulf %21, %22 : vector<5x32xf32>
    %24 = vector.broadcast %3 : vector<1x32xf32> to vector<5x32xf32>
    %25 = arith.addf %23, %24 : vector<5x32xf32>
    %cst_10 = arith.constant 0.000000e+00 : f32
    %26 = vector.broadcast %cst_10 : f32 to vector<5x32xf32>
    %c0_11 = arith.constant 0 : index
    %c0_12 = arith.constant 0 : index
    %27 = vector.load %arg11[%c0_11, %c0_12] : memref<1x32xf32, #tpu.memory_space<vmem>>, vector<1x32xf32>
    %28 = vector.broadcast %27 : vector<1x32xf32> to vector<5x32xf32>
    %29 = arith.addf %26, %28 : vector<5x32xf32>
    %c0_13 = arith.constant 0 : index
    %c0_14 = arith.constant 0 : index
    %c0_15 = arith.constant 0 : index
    %30 = vector.load %arg4[%c0_13, %c0_14, %c0_15] : memref<2x32x16xf32, #tpu.memory_space<vmem>>, vector<1x32x16xf32>
    %31 = vector.shape_cast %30 : vector<1x32x16xf32> to vector<32x16xf32>
    %cst_16 = arith.constant dense<0.000000e+00> : vector<5x16xf32>
    %32 = tpu.matmul %25, %31, %cst_16 {dimension_numbers = #tpu.dot_dimension_numbers<[1], [0], [0], [1], [0, 0, 1, 1], [], []>} : vector<5x32xf32>, vector<32x16xf32>, vector<5x16xf32> -> vector<5x16xf32>
    %c0_17 = arith.constant 0 : index
    %c0_18 = arith.constant 0 : index
    %c0_19 = arith.constant 0 : index
    %33 = vector.load %arg5[%c0_17, %c0_18, %c0_19] : memref<2x1x16xf32, #tpu.memory_space<vmem>>, vector<1x1x16xf32>
    %34 = vector.shape_cast %33 : vector<1x1x16xf32> to vector<1x16xf32>
    %35 = vector.broadcast %34 : vector<1x16xf32> to vector<5x16xf32>
    %36 = arith.addf %32, %35 : vector<5x16xf32>
    %c0_20 = arith.constant 0 : index
    %c0_21 = arith.constant 0 : index
    %c0_22 = arith.constant 0 : index
    %37 = vector.load %arg6[%c0_20, %c0_21, %c0_22] : memref<2x32x16xf32, #tpu.memory_space<vmem>>, vector<1x32x16xf32>
    %38 = vector.shape_cast %37 : vector<1x32x16xf32> to vector<32x16xf32>
    %cst_23 = arith.constant dense<0.000000e+00> : vector<5x16xf32>
    %39 = tpu.matmul %25, %38, %cst_23 {dimension_numbers = #tpu.dot_dimension_numbers<[1], [0], [0], [1], [0, 0, 1, 1], [], []>} : vector<5x32xf32>, vector<32x16xf32>, vector<5x16xf32> -> vector<5x16xf32>
    %c0_24 = arith.constant 0 : index
    %c0_25 = arith.constant 0 : index
    %c0_26 = arith.constant 0 : index
    %40 = vector.load %arg7[%c0_24, %c0_25, %c0_26] : memref<2x1x16xf32, #tpu.memory_space<vmem>>, vector<1x1x16xf32>
    %41 = vector.shape_cast %40 : vector<1x1x16xf32> to vector<1x16xf32>
    %42 = vector.broadcast %41 : vector<1x16xf32> to vector<5x16xf32>
    %43 = arith.addf %39, %42 : vector<5x16xf32>
    %c0_27 = arith.constant 0 : index
    %c0_28 = arith.constant 0 : index
    %c0_29 = arith.constant 0 : index
    %44 = vector.load %arg8[%c0_27, %c0_28, %c0_29] : memref<2x32x16xf32, #tpu.memory_space<vmem>>, vector<1x32x16xf32>
    %45 = vector.shape_cast %44 : vector<1x32x16xf32> to vector<32x16xf32>
    %cst_30 = arith.constant dense<0.000000e+00> : vector<5x16xf32>
    %46 = tpu.matmul %25, %45, %cst_30 {dimension_numbers = #tpu.dot_dimension_numbers<[1], [0], [0], [1], [0, 0, 1, 1], [], []>} : vector<5x32xf32>, vector<32x16xf32>, vector<5x16xf32> -> vector<5x16xf32>
    %c0_31 = arith.constant 0 : index
    %c0_32 = arith.constant 0 : index
    %c0_33 = arith.constant 0 : index
    %47 = vector.load %arg9[%c0_31, %c0_32, %c0_33] : memref<2x1x16xf32, #tpu.memory_space<vmem>>, vector<1x1x16xf32>
    %48 = vector.shape_cast %47 : vector<1x1x16xf32> to vector<1x16xf32>
    %49 = vector.broadcast %48 : vector<1x16xf32> to vector<5x16xf32>
    %50 = arith.addf %46, %49 : vector<5x16xf32>
    %cst_34 = arith.constant dense<0.000000e+00> : vector<5x5xf32>
    %51 = tpu.matmul %36, %43, %cst_34 {dimension_numbers = #tpu.dot_dimension_numbers<[1], [1], [0], [0], [0, 0, 1, 0], [], []>} : vector<5x16xf32>, vector<5x16xf32>, vector<5x5xf32> -> vector<5x5xf32>
    %cst_35 = arith.constant 2.500000e-01 : f32
    %52 = vector.broadcast %cst_35 : f32 to vector<5x5xf32>
    %53 = arith.mulf %51, %52 : vector<5x5xf32>
    %cst_36 = arith.constant dense<0xFF800000> : vector<5xf32>
    %54 = vector.multi_reduction <maximumf>, %53, %cst_36 [1] : vector<5x5xf32> to vector<5xf32>
    %55 = vector.shape_cast %54 : vector<5xf32> to vector<5x1xf32>
    %56 = vector.broadcast %55 : vector<5x1xf32> to vector<5x5xf32>
    %57 = arith.subf %53, %56 : vector<5x5xf32>
    %58 = math.exp %57 : vector<5x5xf32>
    %cst_37 = arith.constant dense<0.000000e+00> : vector<5xf32>
    %59 = vector.multi_reduction <add>, %58, %cst_37 [1] : vector<5x5xf32> to vector<5xf32>
    %60 = vector.shape_cast %59 : vector<5xf32> to vector<5x1xf32>
    %61 = tpu.reciprocal %60 {approx = true} : vector<5x1xf32> -> vector<5x1xf32>
    %62 = vector.broadcast %61 : vector<5x1xf32> to vector<5x5xf32>
    %63 = arith.mulf %58, %62 : vector<5x5xf32>
    %cst_38 = arith.constant dense<0.000000e+00> : vector<5x16xf32>
    %64 = tpu.matmul %63, %50, %cst_38 {dimension_numbers = #tpu.dot_dimension_numbers<[1], [0], [0], [1], [0, 0, 1, 1], [], []>} : vector<5x5xf32>, vector<5x16xf32>, vector<5x16xf32> -> vector<5x16xf32>
    %c0_39 = arith.constant 0 : index
    %c0_40 = arith.constant 0 : index
    %c0_41 = arith.constant 0 : index
    %65 = vector.load %arg10[%c0_39, %c0_40, %c0_41] : memref<2x16x32xf32, #tpu.memory_space<vmem>>, vector<1x16x32xf32>
    %66 = vector.shape_cast %65 : vector<1x16x32xf32> to vector<16x32xf32>
    %cst_42 = arith.constant dense<0.000000e+00> : vector<5x32xf32>
    %67 = tpu.matmul %64, %66, %cst_42 {dimension_numbers = #tpu.dot_dimension_numbers<[1], [0], [0], [1], [0, 0, 1, 1], [], []>} : vector<5x16xf32>, vector<16x32xf32>, vector<5x32xf32> -> vector<5x32xf32>
    %68 = arith.addf %29, %67 : vector<5x32xf32>
    %c1 = arith.constant 1 : index
    %c0_43 = arith.constant 0 : index
    %c0_44 = arith.constant 0 : index
    %69 = vector.load %arg4[%c1, %c0_43, %c0_44] : memref<2x32x16xf32, #tpu.memory_space<vmem>>, vector<1x32x16xf32>
    %70 = vector.shape_cast %69 : vector<1x32x16xf32> to vector<32x16xf32>
    %cst_45 = arith.constant dense<0.000000e+00> : vector<5x16xf32>
    %71 = tpu.matmul %25, %70, %cst_45 {dimension_numbers = #tpu.dot_dimension_numbers<[1], [0], [0], [1], [0, 0, 1, 1], [], []>} : vector<5x32xf32>, vector<32x16xf32>, vector<5x16xf32> -> vector<5x16xf32>
    %c1_46 = arith.constant 1 : index
    %c0_47 = arith.constant 0 : index
    %c0_48 = arith.constant 0 : index
    %72 = vector.load %arg5[%c1_46, %c0_47, %c0_48] : memref<2x1x16xf32, #tpu.memory_space<vmem>>, vector<1x1x16xf32>
    %73 = vector.shape_cast %72 : vector<1x1x16xf32> to vector<1x16xf32>
    %74 = vector.broadcast %73 : vector<1x16xf32> to vector<5x16xf32>
    %75 = arith.addf %71, %74 : vector<5x16xf32>
    %c1_49 = arith.constant 1 : index
    %c0_50 = arith.constant 0 : index
    %c0_51 = arith.constant 0 : index
    %76 = vector.load %arg6[%c1_49, %c0_50, %c0_51] : memref<2x32x16xf32, #tpu.memory_space<vmem>>, vector<1x32x16xf32>
    %77 = vector.shape_cast %76 : vector<1x32x16xf32> to vector<32x16xf32>
    %cst_52 = arith.constant dense<0.000000e+00> : vector<5x16xf32>
    %78 = tpu.matmul %25, %77, %cst_52 {dimension_numbers = #tpu.dot_dimension_numbers<[1], [0], [0], [1], [0, 0, 1, 1], [], []>} : vector<5x32xf32>, vector<32x16xf32>, vector<5x16xf32> -> vector<5x16xf32>
    %c1_53 = arith.constant 1 : index
    %c0_54 = arith.constant 0 : index
    %c0_55 = arith.constant 0 : index
    %79 = vector.load %arg7[%c1_53, %c0_54, %c0_55] : memref<2x1x16xf32, #tpu.memory_space<vmem>>, vector<1x1x16xf32>
    %80 = vector.shape_cast %79 : vector<1x1x16xf32> to vector<1x16xf32>
    %81 = vector.broadcast %80 : vector<1x16xf32> to vector<5x16xf32>
    %82 = arith.addf %78, %81 : vector<5x16xf32>
    %c1_56 = arith.constant 1 : index
    %c0_57 = arith.constant 0 : index
    %c0_58 = arith.constant 0 : index
    %83 = vector.load %arg8[%c1_56, %c0_57, %c0_58] : memref<2x32x16xf32, #tpu.memory_space<vmem>>, vector<1x32x16xf32>
    %84 = vector.shape_cast %83 : vector<1x32x16xf32> to vector<32x16xf32>
    %cst_59 = arith.constant dense<0.000000e+00> : vector<5x16xf32>
    %85 = tpu.matmul %25, %84, %cst_59 {dimension_numbers = #tpu.dot_dimension_numbers<[1], [0], [0], [1], [0, 0, 1, 1], [], []>} : vector<5x32xf32>, vector<32x16xf32>, vector<5x16xf32> -> vector<5x16xf32>
    %c1_60 = arith.constant 1 : index
    %c0_61 = arith.constant 0 : index
    %c0_62 = arith.constant 0 : index
    %86 = vector.load %arg9[%c1_60, %c0_61, %c0_62] : memref<2x1x16xf32, #tpu.memory_space<vmem>>, vector<1x1x16xf32>
    %87 = vector.shape_cast %86 : vector<1x1x16xf32> to vector<1x16xf32>
    %88 = vector.broadcast %87 : vector<1x16xf32> to vector<5x16xf32>
    %89 = arith.addf %85, %88 : vector<5x16xf32>
    %cst_63 = arith.constant dense<0.000000e+00> : vector<5x5xf32>
    %90 = tpu.matmul %75, %82, %cst_63 {dimension_numbers = #tpu.dot_dimension_numbers<[1], [1], [0], [0], [0, 0, 1, 0], [], []>} : vector<5x16xf32>, vector<5x16xf32>, vector<5x5xf32> -> vector<5x5xf32>
    %cst_64 = arith.constant 2.500000e-01 : f32
    %91 = vector.broadcast %cst_64 : f32 to vector<5x5xf32>
    %92 = arith.mulf %90, %91 : vector<5x5xf32>
    %cst_65 = arith.constant dense<0xFF800000> : vector<5xf32>
    %93 = vector.multi_reduction <maximumf>, %92, %cst_65 [1] : vector<5x5xf32> to vector<5xf32>
    %94 = vector.shape_cast %93 : vector<5xf32> to vector<5x1xf32>
    %95 = vector.broadcast %94 : vector<5x1xf32> to vector<5x5xf32>
    %96 = arith.subf %92, %95 : vector<5x5xf32>
    %97 = math.exp %96 : vector<5x5xf32>
    %cst_66 = arith.constant dense<0.000000e+00> : vector<5xf32>
    %98 = vector.multi_reduction <add>, %97, %cst_66 [1] : vector<5x5xf32> to vector<5xf32>
    %99 = vector.shape_cast %98 : vector<5xf32> to vector<5x1xf32>
    %100 = tpu.reciprocal %99 {approx = true} : vector<5x1xf32> -> vector<5x1xf32>
    %101 = vector.broadcast %100 : vector<5x1xf32> to vector<5x5xf32>
    %102 = arith.mulf %97, %101 : vector<5x5xf32>
    %cst_67 = arith.constant dense<0.000000e+00> : vector<5x16xf32>
    %103 = tpu.matmul %102, %89, %cst_67 {dimension_numbers = #tpu.dot_dimension_numbers<[1], [0], [0], [1], [0, 0, 1, 1], [], []>} : vector<5x5xf32>, vector<5x16xf32>, vector<5x16xf32> -> vector<5x16xf32>
    %c1_68 = arith.constant 1 : index
    %c0_69 = arith.constant 0 : index
    %c0_70 = arith.constant 0 : index
    %104 = vector.load %arg10[%c1_68, %c0_69, %c0_70] : memref<2x16x32xf32, #tpu.memory_space<vmem>>, vector<1x16x32xf32>
    %105 = vector.shape_cast %104 : vector<1x16x32xf32> to vector<16x32xf32>
    %cst_71 = arith.constant dense<0.000000e+00> : vector<5x32xf32>
    %106 = tpu.matmul %103, %105, %cst_71 {dimension_numbers = #tpu.dot_dimension_numbers<[1], [0], [0], [1], [0, 0, 1, 1], [], []>} : vector<5x16xf32>, vector<16x32xf32>, vector<5x32xf32> -> vector<5x32xf32>
    %107 = arith.addf %68, %106 : vector<5x32xf32>
    %108 = arith.addf %1, %107 : vector<5x32xf32>
    %c0_72 = arith.constant 0 : index
    %c0_73 = arith.constant 0 : index
    %109 = vector.load %arg12[%c0_72, %c0_73] : memref<1x32xf32, #tpu.memory_space<vmem>>, vector<1x32xf32>
    %c0_74 = arith.constant 0 : index
    %c0_75 = arith.constant 0 : index
    %110 = vector.load %arg13[%c0_74, %c0_75] : memref<1x32xf32, #tpu.memory_space<vmem>>, vector<1x32xf32>
    %cst_76 = arith.constant dense<0.000000e+00> : vector<5xf32>
    %111 = vector.multi_reduction <add>, %108, %cst_76 [1] : vector<5x32xf32> to vector<5xf32>
    %112 = vector.shape_cast %111 : vector<5xf32> to vector<5x1xf32>
    %cst_77 = arith.constant 3.200000e+01 : f32
    %113 = vector.broadcast %cst_77 : f32 to vector<5x1xf32>
    %114 = arith.divf %112, %113 : vector<5x1xf32>
    %115 = vector.broadcast %114 : vector<5x1xf32> to vector<5x32xf32>
    %116 = arith.subf %108, %115 : vector<5x32xf32>
    %117 = arith.mulf %116, %116 : vector<5x32xf32>
    %cst_78 = arith.constant dense<0.000000e+00> : vector<5xf32>
    %118 = vector.multi_reduction <add>, %117, %cst_78 [1] : vector<5x32xf32> to vector<5xf32>
    %119 = vector.shape_cast %118 : vector<5xf32> to vector<5x1xf32>
    %cst_79 = arith.constant 3.200000e+01 : f32
    %120 = vector.broadcast %cst_79 : f32 to vector<5x1xf32>
    %121 = arith.divf %119, %120 : vector<5x1xf32>
    %122 = vector.broadcast %114 : vector<5x1xf32> to vector<5x32xf32>
    %123 = arith.subf %108, %122 : vector<5x32xf32>
    %cst_80 = arith.constant 9.99999997E-7 : f32
    %124 = vector.broadcast %cst_80 : f32 to vector<5x1xf32>
    %125 = arith.addf %121, %124 : vector<5x1xf32>
    %126 = math.rsqrt %125 : vector<5x1xf32>
    %127 = vector.broadcast %126 : vector<5x1xf32> to vector<5x32xf32>
    %128 = arith.mulf %123, %127 : vector<5x32xf32>
    %129 = vector.broadcast %109 : vector<1x32xf32> to vector<5x32xf32>
    %130 = arith.mulf %128, %129 : vector<5x32xf32>
    %131 = vector.broadcast %110 : vector<1x32xf32> to vector<5x32xf32>
    %132 = arith.addf %130, %131 : vector<5x32xf32>
    %c0_81 = arith.constant 0 : index
    %c0_82 = arith.constant 0 : index
    %133 = vector.load %arg14[%c0_81, %c0_82] : memref<32x128xf32, #tpu.memory_space<vmem>>, vector<32x128xf32>
    %cst_83 = arith.constant dense<0.000000e+00> : vector<5x128xf32>
    %134 = tpu.matmul %132, %133, %cst_83 {dimension_numbers = #tpu.dot_dimension_numbers<[1], [0], [0], [1], [0, 0, 1, 1], [], []>} : vector<5x32xf32>, vector<32x128xf32>, vector<5x128xf32> -> vector<5x128xf32>
    %c0_84 = arith.constant 0 : index
    %c0_85 = arith.constant 0 : index
    %135 = vector.load %arg15[%c0_84, %c0_85] : memref<1x128xf32, #tpu.memory_space<vmem>>, vector<1x128xf32>
    %136 = vector.broadcast %135 : vector<1x128xf32> to vector<5x128xf32>
    %137 = arith.addf %134, %136 : vector<5x128xf32>
    %cst_86 = arith.constant 5.000000e-01 : f32
    %138 = vector.broadcast %cst_86 : f32 to vector<5x128xf32>
    %139 = arith.mulf %138, %137 : vector<5x128xf32>
    %cst_87 = arith.constant 4.471500e-02 : f32
    %140 = vector.broadcast %cst_87 : f32 to vector<5x128xf32>
    %141 = arith.mulf %140, %137 : vector<5x128xf32>
    %142 = arith.mulf %141, %137 : vector<5x128xf32>
    %143 = arith.mulf %142, %137 : vector<5x128xf32>
    %144 = arith.addf %137, %143 : vector<5x128xf32>
    %cst_88 = arith.constant 0.797884583 : f32
    %145 = vector.broadcast %cst_88 : f32 to vector<5x128xf32>
    %146 = arith.mulf %145, %144 : vector<5x128xf32>
    %147 = math.tanh %146 : vector<5x128xf32>
    %cst_89 = arith.constant 1.000000e+00 : f32
    %148 = vector.broadcast %cst_89 : f32 to vector<5x128xf32>
    %149 = arith.addf %148, %147 : vector<5x128xf32>
    %150 = arith.mulf %139, %149 : vector<5x128xf32>
    %c0_90 = arith.constant 0 : index
    %c0_91 = arith.constant 0 : index
    %151 = vector.load %arg16[%c0_90, %c0_91] : memref<128x32xf32, #tpu.memory_space<vmem>>, vector<128x32xf32>
    %cst_92 = arith.constant dense<0.000000e+00> : vector<5x32xf32>
    %152 = tpu.matmul %150, %151, %cst_92 {dimension_numbers = #tpu.dot_dimension_numbers<[1], [0], [0], [1], [0, 0, 1, 1], [], []>} : vector<5x128xf32>, vector<128x32xf32>, vector<5x32xf32> -> vector<5x32xf32>
    %c0_93 = arith.constant 0 : index
    %c0_94 = arith.constant 0 : index
    %153 = vector.load %arg17[%c0_93, %c0_94] : memref<1x32xf32, #tpu.memory_space<vmem>>, vector<1x32xf32>
    %154 = vector.broadcast %153 : vector<1x32xf32> to vector<5x32xf32>
    %155 = arith.addf %152, %154 : vector<5x32xf32>
    %156 = arith.addf %108, %155 : vector<5x32xf32>
    %c0_95 = arith.constant 0 : index
    %c0_96 = arith.constant 0 : index
    %157 = vector.load %arg18[%c0_95, %c0_96] : memref<1x32xf32, #tpu.memory_space<vmem>>, vector<1x32xf32>
    %c0_97 = arith.constant 0 : index
    %c0_98 = arith.constant 0 : index
    %158 = vector.load %arg19[%c0_97, %c0_98] : memref<1x32xf32, #tpu.memory_space<vmem>>, vector<1x32xf32>
    %cst_99 = arith.constant dense<0.000000e+00> : vector<5xf32>
    %159 = vector.multi_reduction <add>, %156, %cst_99 [1] : vector<5x32xf32> to vector<5xf32>
    %160 = vector.shape_cast %159 : vector<5xf32> to vector<5x1xf32>
    %cst_100 = arith.constant 3.200000e+01 : f32
    %161 = vector.broadcast %cst_100 : f32 to vector<5x1xf32>
    %162 = arith.divf %160, %161 : vector<5x1xf32>
    %163 = vector.broadcast %162 : vector<5x1xf32> to vector<5x32xf32>
    %164 = arith.subf %156, %163 : vector<5x32xf32>
    %165 = arith.mulf %164, %164 : vector<5x32xf32>
    %cst_101 = arith.constant dense<0.000000e+00> : vector<5xf32>
    %166 = vector.multi_reduction <add>, %165, %cst_101 [1] : vector<5x32xf32> to vector<5xf32>
    %167 = vector.shape_cast %166 : vector<5xf32> to vector<5x1xf32>
    %cst_102 = arith.constant 3.200000e+01 : f32
    %168 = vector.broadcast %cst_102 : f32 to vector<5x1xf32>
    %169 = arith.divf %167, %168 : vector<5x1xf32>
    %170 = vector.broadcast %162 : vector<5x1xf32> to vector<5x32xf32>
    %171 = arith.subf %156, %170 : vector<5x32xf32>
    %cst_103 = arith.constant 9.99999997E-7 : f32
    %172 = vector.broadcast %cst_103 : f32 to vector<5x1xf32>
    %173 = arith.addf %169, %172 : vector<5x1xf32>
    %174 = math.rsqrt %173 : vector<5x1xf32>
    %175 = vector.broadcast %174 : vector<5x1xf32> to vector<5x32xf32>
    %176 = arith.mulf %171, %175 : vector<5x32xf32>
    %177 = vector.broadcast %157 : vector<1x32xf32> to vector<5x32xf32>
    %178 = arith.mulf %176, %177 : vector<5x32xf32>
    %179 = vector.broadcast %158 : vector<1x32xf32> to vector<5x32xf32>
    %180 = arith.addf %178, %179 : vector<5x32xf32>
    %c0_104 = arith.constant 0 : index
    %c0_105 = arith.constant 0 : index
    %c0_106 = arith.constant 0 : index
    %181 = vector.load %arg20[%c0_104, %c0_105, %c0_106] : memref<4x5x32xf32, #tpu.memory_space<vmem>>, vector<1x5x32xf32>
    %182 = vector.shape_cast %181 : vector<1x5x32xf32> to vector<5x32xf32>
    %183 = vector.shape_cast %180 : vector<5x32xf32> to vector<1x5x32xf32>
    tpu.vector_store %arg20[%c0_104, %c0_105, %c0_106], %183 {strides = array<i32>} : memref<4x5x32xf32, #tpu.memory_space<vmem>>, vector<1x5x32xf32>,
    %c1_107 = arith.constant 1 : index
    %c0_108 = arith.constant 0 : index
    %c0_109 = arith.constant 0 : index
    %184 = vector.load %arg1[%c1_107, %c0_108, %c0_109] : memref<4x5x32xf32, #tpu.memory_space<vmem>>, vector<1x5x32xf32>
    %185 = vector.shape_cast %184 : vector<1x5x32xf32> to vector<5x32xf32>
    %c0_110 = arith.constant 0 : index
    %c0_111 = arith.constant 0 : index
    %186 = vector.load %arg2[%c0_110, %c0_111] : memref<1x32xf32, #tpu.memory_space<vmem>>, vector<1x32xf32>
    %c0_112 = arith.constant 0 : index
    %c0_113 = arith.constant 0 : index
    %187 = vector.load %arg3[%c0_112, %c0_113] : memref<1x32xf32, #tpu.memory_space<vmem>>, vector<1x32xf32>
    %cst_114 = arith.constant dense<0.000000e+00> : vector<5xf32>
    %188 = vector.multi_reduction <add>, %185, %cst_114 [1] : vector<5x32xf32> to vector<5xf32>
    %189 = vector.shape_cast %188 : vector<5xf32> to vector<5x1xf32>
    %cst_115 = arith.constant 3.200000e+01 : f32
    %190 = vector.broadcast %cst_115 : f32 to vector<5x1xf32>
    %191 = arith.divf %189, %190 : vector<5x1xf32>
    %192 = vector.broadcast %191 : vector<5x1xf32> to vector<5x32xf32>
    %193 = arith.subf %185, %192 : vector<5x32xf32>
    %194 = arith.mulf %193, %193 : vector<5x32xf32>
    %cst_116 = arith.constant dense<0.000000e+00> : vector<5xf32>
    %195 = vector.multi_reduction <add>, %194, %cst_116 [1] : vector<5x32xf32> to vector<5xf32>
    %196 = vector.shape_cast %195 : vector<5xf32> to vector<5x1xf32>
    %cst_117 = arith.constant 3.200000e+01 : f32
    %197 = vector.broadcast %cst_117 : f32 to vector<5x1xf32>
    %198 = arith.divf %196, %197 : vector<5x1xf32>
    %199 = vector.broadcast %191 : vector<5x1xf32> to vector<5x32xf32>
    %200 = arith.subf %185, %199 : vector<5x32xf32>
    %cst_118 = arith.constant 9.99999997E-7 : f32
    %201 = vector.broadcast %cst_118 : f32 to vector<5x1xf32>
    %202 = arith.addf %198, %201 : vector<5x1xf32>
    %203 = math.rsqrt %202 : vector<5x1xf32>
    %204 = vector.broadcast %203 : vector<5x1xf32> to vector<5x32xf32>
    %205 = arith.mulf %200, %204 : vector<5x32xf32>
    %206 = vector.broadcast %186 : vector<1x32xf32> to vector<5x32xf32>
    %207 = arith.mulf %205, %206 : vector<5x32xf32>
    %208 = vector.broadcast %187 : vector<1x32xf32> to vector<5x32xf32>
    %209 = arith.addf %207, %208 : vector<5x32xf32>
    %cst_119 = arith.constant 0.000000e+00 : f32
    %210 = vector.broadcast %cst_119 : f32 to vector<5x32xf32>
    %c0_120 = arith.constant 0 : index
    %c0_121 = arith.constant 0 : index
    %211 = vector.load %arg11[%c0_120, %c0_121] : memref<1x32xf32, #tpu.memory_space<vmem>>, vector<1x32xf32>
    %212 = vector.broadcast %211 : vector<1x32xf32> to vector<5x32xf32>
    %213 = arith.addf %210, %212 : vector<5x32xf32>
    %c0_122 = arith.constant 0 : index
    %c0_123 = arith.constant 0 : index
    %c0_124 = arith.constant 0 : index
    %214 = vector.load %arg4[%c0_122, %c0_123, %c0_124] : memref<2x32x16xf32, #tpu.memory_space<vmem>>, vector<1x32x16xf32>
    %215 = vector.shape_cast %214 : vector<1x32x16xf32> to vector<32x16xf32>
    %cst_125 = arith.constant dense<0.000000e+00> : vector<5x16xf32>
    %216 = tpu.matmul %209, %215, %cst_125 {dimension_numbers = #tpu.dot_dimension_numbers<[1], [0], [0], [1], [0, 0, 1, 1], [], []>} : vector<5x32xf32>, vector<32x16xf32>, vector<5x16xf32> -> vector<5x16xf32>
    %c0_126 = arith.constant 0 : index
    %c0_127 = arith.constant 0 : index
    %c0_128 = arith.constant 0 : index
    %217 = vector.load %arg5[%c0_126, %c0_127, %c0_128] : memref<2x1x16xf32, #tpu.memory_space<vmem>>, vector<1x1x16xf32>
    %218 = vector.shape_cast %217 : vector<1x1x16xf32> to vector<1x16xf32>
    %219 = vector.broadcast %218 : vector<1x16xf32> to vector<5x16xf32>
    %220 = arith.addf %216, %219 : vector<5x16xf32>
    %c0_129 = arith.constant 0 : index
    %c0_130 = arith.constant 0 : index
    %c0_131 = arith.constant 0 : index
    %221 = vector.load %arg6[%c0_129, %c0_130, %c0_131] : memref<2x32x16xf32, #tpu.memory_space<vmem>>, vector<1x32x16xf32>
    %222 = vector.shape_cast %221 : vector<1x32x16xf32> to vector<32x16xf32>
    %cst_132 = arith.constant dense<0.000000e+00> : vector<5x16xf32>
    %223 = tpu.matmul %209, %222, %cst_132 {dimension_numbers = #tpu.dot_dimension_numbers<[1], [0], [0], [1], [0, 0, 1, 1], [], []>} : vector<5x32xf32>, vector<32x16xf32>, vector<5x16xf32> -> vector<5x16xf32>
    %c0_133 = arith.constant 0 : index
    %c0_134 = arith.constant 0 : index
    %c0_135 = arith.constant 0 : index
    %224 = vector.load %arg7[%c0_133, %c0_134, %c0_135] : memref<2x1x16xf32, #tpu.memory_space<vmem>>, vector<1x1x16xf32>
    %225 = vector.shape_cast %224 : vector<1x1x16xf32> to vector<1x16xf32>
    %226 = vector.broadcast %225 : vector<1x16xf32> to vector<5x16xf32>
    %227 = arith.addf %223, %226 : vector<5x16xf32>
    %c0_136 = arith.constant 0 : index
    %c0_137 = arith.constant 0 : index
    %c0_138 = arith.constant 0 : index
    %228 = vector.load %arg8[%c0_136, %c0_137, %c0_138] : memref<2x32x16xf32, #tpu.memory_space<vmem>>, vector<1x32x16xf32>
    %229 = vector.shape_cast %228 : vector<1x32x16xf32> to vector<32x16xf32>
    %cst_139 = arith.constant dense<0.000000e+00> : vector<5x16xf32>
    %230 = tpu.matmul %209, %229, %cst_139 {dimension_numbers = #tpu.dot_dimension_numbers<[1], [0], [0], [1], [0, 0, 1, 1], [], []>} : vector<5x32xf32>, vector<32x16xf32>, vector<5x16xf32> -> vector<5x16xf32>
    %c0_140 = arith.constant 0 : index
    %c0_141 = arith.constant 0 : index
    %c0_142 = arith.constant 0 : index
    %231 = vector.load %arg9[%c0_140, %c0_141, %c0_142] : memref<2x1x16xf32, #tpu.memory_space<vmem>>, vector<1x1x16xf32>
    %232 = vector.shape_cast %231 : vector<1x1x16xf32> to vector<1x16xf32>
    %233 = vector.broadcast %232 : vector<1x16xf32> to vector<5x16xf32>
    %234 = arith.addf %230, %233 : vector<5x16xf32>
    %cst_143 = arith.constant dense<0.000000e+00> : vector<5x5xf32>
    %235 = tpu.matmul %220, %227, %cst_143 {dimension_numbers = #tpu.dot_dimension_numbers<[1], [1], [0], [0], [0, 0, 1, 0], [], []>} : vector<5x16xf32>, vector<5x16xf32>, vector<5x5xf32> -> vector<5x5xf32>
    %cst_144 = arith.constant 2.500000e-01 : f32
    %236 = vector.broadcast %cst_144 : f32 to vector<5x5xf32>
    %237 = arith.mulf %235, %236 : vector<5x5xf32>
    %cst_145 = arith.constant dense<0xFF800000> : vector<5xf32>
    %238 = vector.multi_reduction <maximumf>, %237, %cst_145 [1] : vector<5x5xf32> to vector<5xf32>
    %239 = vector.shape_cast %238 : vector<5xf32> to vector<5x1xf32>
    %240 = vector.broadcast %239 : vector<5x1xf32> to vector<5x5xf32>
    %241 = arith.subf %237, %240 : vector<5x5xf32>
    %242 = math.exp %241 : vector<5x5xf32>
    %cst_146 = arith.constant dense<0.000000e+00> : vector<5xf32>
    %243 = vector.multi_reduction <add>, %242, %cst_146 [1] : vector<5x5xf32> to vector<5xf32>
    %244 = vector.shape_cast %243 : vector<5xf32> to vector<5x1xf32>
    %245 = tpu.reciprocal %244 {approx = true} : vector<5x1xf32> -> vector<5x1xf32>
    %246 = vector.broadcast %245 : vector<5x1xf32> to vector<5x5xf32>
    %247 = arith.mulf %242, %246 : vector<5x5xf32>
    %cst_147 = arith.constant dense<0.000000e+00> : vector<5x16xf32>
    %248 = tpu.matmul %247, %234, %cst_147 {dimension_numbers = #tpu.dot_dimension_numbers<[1], [0], [0], [1], [0, 0, 1, 1], [], []>} : vector<5x5xf32>, vector<5x16xf32>, vector<5x16xf32> -> vector<5x16xf32>
    %c0_148 = arith.constant 0 : index
    %c0_149 = arith.constant 0 : index
    %c0_150 = arith.constant 0 : index
    %249 = vector.load %arg10[%c0_148, %c0_149, %c0_150] : memref<2x16x32xf32, #tpu.memory_space<vmem>>, vector<1x16x32xf32>
    %250 = vector.shape_cast %249 : vector<1x16x32xf32> to vector<16x32xf32>
    %cst_151 = arith.constant dense<0.000000e+00> : vector<5x32xf32>
    %251 = tpu.matmul %248, %250, %cst_151 {dimension_numbers = #tpu.dot_dimension_numbers<[1], [0], [0], [1], [0, 0, 1, 1], [], []>} : vector<5x16xf32>, vector<16x32xf32>, vector<5x32xf32> -> vector<5x32xf32>
    %252 = arith.addf %213, %251 : vector<5x32xf32>
    %c1_152 = arith.constant 1 : index
    %c0_153 = arith.constant 0 : index
    %c0_154 = arith.constant 0 : index
    %253 = vector.load %arg4[%c1_152, %c0_153, %c0_154] : memref<2x32x16xf32, #tpu.memory_space<vmem>>, vector<1x32x16xf32>
    %254 = vector.shape_cast %253 : vector<1x32x16xf32> to vector<32x16xf32>
    %cst_155 = arith.constant dense<0.000000e+00> : vector<5x16xf32>
    %255 = tpu.matmul %209, %254, %cst_155 {dimension_numbers = #tpu.dot_dimension_numbers<[1], [0], [0], [1], [0, 0, 1, 1], [], []>} : vector<5x32xf32>, vector<32x16xf32>, vector<5x16xf32> -> vector<5x16xf32>
    %c1_156 = arith.constant 1 : index
    %c0_157 = arith.constant 0 : index
    %c0_158 = arith.constant 0 : index
    %256 = vector.load %arg5[%c1_156, %c0_157, %c0_158] : memref<2x1x16xf32, #tpu.memory_space<vmem>>, vector<1x1x16xf32>
    %257 = vector.shape_cast %256 : vector<1x1x16xf32> to vector<1x16xf32>
    %258 = vector.broadcast %257 : vector<1x16xf32> to vector<5x16xf32>
    %259 = arith.addf %255, %258 : vector<5x16xf32>
    %c1_159 = arith.constant 1 : index
    %c0_160 = arith.constant 0 : index
    %c0_161 = arith.constant 0 : index
    %260 = vector.load %arg6[%c1_159, %c0_160, %c0_161] : memref<2x32x16xf32, #tpu.memory_space<vmem>>, vector<1x32x16xf32>
    %261 = vector.shape_cast %260 : vector<1x32x16xf32> to vector<32x16xf32>
    %cst_162 = arith.constant dense<0.000000e+00> : vector<5x16xf32>
    %262 = tpu.matmul %209, %261, %cst_162 {dimension_numbers = #tpu.dot_dimension_numbers<[1], [0], [0], [1], [0, 0, 1, 1], [], []>} : vector<5x32xf32>, vector<32x16xf32>, vector<5x16xf32> -> vector<5x16xf32>
    %c1_163 = arith.constant 1 : index
    %c0_164 = arith.constant 0 : index
    %c0_165 = arith.constant 0 : index
    %263 = vector.load %arg7[%c1_163, %c0_164, %c0_165] : memref<2x1x16xf32, #tpu.memory_space<vmem>>, vector<1x1x16xf32>
    %264 = vector.shape_cast %263 : vector<1x1x16xf32> to vector<1x16xf32>
    %265 = vector.broadcast %264 : vector<1x16xf32> to vector<5x16xf32>
    %266 = arith.addf %262, %265 : vector<5x16xf32>
    %c1_166 = arith.constant 1 : index
    %c0_167 = arith.constant 0 : index
    %c0_168 = arith.constant 0 : index
    %267 = vector.load %arg8[%c1_166, %c0_167, %c0_168] : memref<2x32x16xf32, #tpu.memory_space<vmem>>, vector<1x32x16xf32>
    %268 = vector.shape_cast %267 : vector<1x32x16xf32> to vector<32x16xf32>
    %cst_169 = arith.constant dense<0.000000e+00> : vector<5x16xf32>
    %269 = tpu.matmul %209, %268, %cst_169 {dimension_numbers = #tpu.dot_dimension_numbers<[1], [0], [0], [1], [0, 0, 1, 1], [], []>} : vector<5x32xf32>, vector<32x16xf32>, vector<5x16xf32> -> vector<5x16xf32>
    %c1_170 = arith.constant 1 : index
    %c0_171 = arith.constant 0 : index
    %c0_172 = arith.constant 0 : index
    %270 = vector.load %arg9[%c1_170, %c0_171, %c0_172] : memref<2x1x16xf32, #tpu.memory_space<vmem>>, vector<1x1x16xf32>
    %271 = vector.shape_cast %270 : vector<1x1x16xf32> to vector<1x16xf32>
    %272 = vector.broadcast %271 : vector<1x16xf32> to vector<5x16xf32>
    %273 = arith.addf %269, %272 : vector<5x16xf32>
    %cst_173 = arith.constant dense<0.000000e+00> : vector<5x5xf32>
    %274 = tpu.matmul %259, %266, %cst_173 {dimension_numbers = #tpu.dot_dimension_numbers<[1], [1], [0], [0], [0, 0, 1, 0], [], []>} : vector<5x16xf32>, vector<5x16xf32>, vector<5x5xf32> -> vector<5x5xf32>
    %cst_174 = arith.constant 2.500000e-01 : f32
    %275 = vector.broadcast %cst_174 : f32 to vector<5x5xf32>
    %276 = arith.mulf %274, %275 : vector<5x5xf32>
    %cst_175 = arith.constant dense<0xFF800000> : vector<5xf32>
    %277 = vector.multi_reduction <maximumf>, %276, %cst_175 [1] : vector<5x5xf32> to vector<5xf32>
    %278 = vector.shape_cast %277 : vector<5xf32> to vector<5x1xf32>
    %279 = vector.broadcast %278 : vector<5x1xf32> to vector<5x5xf32>
    %280 = arith.subf %276, %279 : vector<5x5xf32>
    %281 = math.exp %280 : vector<5x5xf32>
    %cst_176 = arith.constant dense<0.000000e+00> : vector<5xf32>
    %282 = vector.multi_reduction <add>, %281, %cst_176 [1] : vector<5x5xf32> to vector<5xf32>
    %283 = vector.shape_cast %282 : vector<5xf32> to vector<5x1xf32>
    %284 = tpu.reciprocal %283 {approx = true} : vector<5x1xf32> -> vector<5x1xf32>
    %285 = vector.broadcast %284 : vector<5x1xf32> to vector<5x5xf32>
    %286 = arith.mulf %281, %285 : vector<5x5xf32>
    %cst_177 = arith.constant dense<0.000000e+00> : vector<5x16xf32>
    %287 = tpu.matmul %286, %273, %cst_177 {dimension_numbers = #tpu.dot_dimension_numbers<[1], [0], [0], [1], [0, 0, 1, 1], [], []>} : vector<5x5xf32>, vector<5x16xf32>, vector<5x16xf32> -> vector<5x16xf32>
    %c1_178 = arith.constant 1 : index
    %c0_179 = arith.constant 0 : index
    %c0_180 = arith.constant 0 : index
    %288 = vector.load %arg10[%c1_178, %c0_179, %c0_180] : memref<2x16x32xf32, #tpu.memory_space<vmem>>, vector<1x16x32xf32>
    %289 = vector.shape_cast %288 : vector<1x16x32xf32> to vector<16x32xf32>
    %cst_181 = arith.constant dense<0.000000e+00> : vector<5x32xf32>
    %290 = tpu.matmul %287, %289, %cst_181 {dimension_numbers = #tpu.dot_dimension_numbers<[1], [0], [0], [1], [0, 0, 1, 1], [], []>} : vector<5x16xf32>, vector<16x32xf32>, vector<5x32xf32> -> vector<5x32xf32>
    %291 = arith.addf %252, %290 : vector<5x32xf32>
    %292 = arith.addf %185, %291 : vector<5x32xf32>
    %c0_182 = arith.constant 0 : index
    %c0_183 = arith.constant 0 : index
    %293 = vector.load %arg12[%c0_182, %c0_183] : memref<1x32xf32, #tpu.memory_space<vmem>>, vector<1x32xf32>
    %c0_184 = arith.constant 0 : index
    %c0_185 = arith.constant 0 : index
    %294 = vector.load %arg13[%c0_184, %c0_185] : memref<1x32xf32, #tpu.memory_space<vmem>>, vector<1x32xf32>
    %cst_186 = arith.constant dense<0.000000e+00> : vector<5xf32>
    %295 = vector.multi_reduction <add>, %292, %cst_186 [1] : vector<5x32xf32> to vector<5xf32>
    %296 = vector.shape_cast %295 : vector<5xf32> to vector<5x1xf32>
    %cst_187 = arith.constant 3.200000e+01 : f32
    %297 = vector.broadcast %cst_187 : f32 to vector<5x1xf32>
    %298 = arith.divf %296, %297 : vector<5x1xf32>
    %299 = vector.broadcast %298 : vector<5x1xf32> to vector<5x32xf32>
    %300 = arith.subf %292, %299 : vector<5x32xf32>
    %301 = arith.mulf %300, %300 : vector<5x32xf32>
    %cst_188 = arith.constant dense<0.000000e+00> : vector<5xf32>
    %302 = vector.multi_reduction <add>, %301, %cst_188 [1] : vector<5x32xf32> to vector<5xf32>
    %303 = vector.shape_cast %302 : vector<5xf32> to vector<5x1xf32>
    %cst_189 = arith.constant 3.200000e+01 : f32
    %304 = vector.broadcast %cst_189 : f32 to vector<5x1xf32>
    %305 = arith.divf %303, %304 : vector<5x1xf32>
    %306 = vector.broadcast %298 : vector<5x1xf32> to vector<5x32xf32>
    %307 = arith.subf %292, %306 : vector<5x32xf32>
    %cst_190 = arith.constant 9.99999997E-7 : f32
    %308 = vector.broadcast %cst_190 : f32 to vector<5x1xf32>
    %309 = arith.addf %305, %308 : vector<5x1xf32>
    %310 = math.rsqrt %309 : vector<5x1xf32>
    %311 = vector.broadcast %310 : vector<5x1xf32> to vector<5x32xf32>
    %312 = arith.mulf %307, %311 : vector<5x32xf32>
    %313 = vector.broadcast %293 : vector<1x32xf32> to vector<5x32xf32>
    %314 = arith.mulf %312, %313 : vector<5x32xf32>
    %315 = vector.broadcast %294 : vector<1x32xf32> to vector<5x32xf32>
    %316 = arith.addf %314, %315 : vector<5x32xf32>
    %c0_191 = arith.constant 0 : index
    %c0_192 = arith.constant 0 : index
    %317 = vector.load %arg14[%c0_191, %c0_192] : memref<32x128xf32, #tpu.memory_space<vmem>>, vector<32x128xf32>
    %cst_193 = arith.constant dense<0.000000e+00> : vector<5x128xf32>
    %318 = tpu.matmul %316, %317, %cst_193 {dimension_numbers = #tpu.dot_dimension_numbers<[1], [0], [0], [1], [0, 0, 1, 1], [], []>} : vector<5x32xf32>, vector<32x128xf32>, vector<5x128xf32> -> vector<5x128xf32>
    %c0_194 = arith.constant 0 : index
    %c0_195 = arith.constant 0 : index
    %319 = vector.load %arg15[%c0_194, %c0_195] : memref<1x128xf32, #tpu.memory_space<vmem>>, vector<1x128xf32>
    %320 = vector.broadcast %319 : vector<1x128xf32> to vector<5x128xf32>
    %321 = arith.addf %318, %320 : vector<5x128xf32>
    %cst_196 = arith.constant 5.000000e-01 : f32
    %322 = vector.broadcast %cst_196 : f32 to vector<5x128xf32>
    %323 = arith.mulf %322, %321 : vector<5x128xf32>
    %cst_197 = arith.constant 4.471500e-02 : f32
    %324 = vector.broadcast %cst_197 : f32 to vector<5x128xf32>
    %325 = arith.mulf %324, %321 : vector<5x128xf32>
    %326 = arith.mulf %325, %321 : vector<5x128xf32>
    %327 = arith.mulf %326, %321 : vector<5x128xf32>
    %328 = arith.addf %321, %327 : vector<5x128xf32>
    %cst_198 = arith.constant 0.797884583 : f32
    %329 = vector.broadcast %cst_198 : f32 to vector<5x128xf32>
    %330 = arith.mulf %329, %328 : vector<5x128xf32>
    %331 = math.tanh %330 : vector<5x128xf32>
    %cst_199 = arith.constant 1.000000e+00 : f32
    %332 = vector.broadcast %cst_199 : f32 to vector<5x128xf32>
    %333 = arith.addf %332, %331 : vector<5x128xf32>
    %334 = arith.mulf %323, %333 : vector<5x128xf32>
    %c0_200 = arith.constant 0 : index
    %c0_201 = arith.constant 0 : index
    %335 = vector.load %arg16[%c0_200, %c0_201] : memref<128x32xf32, #tpu.memory_space<vmem>>, vector<128x32xf32>
    %cst_202 = arith.constant dense<0.000000e+00> : vector<5x32xf32>
    %336 = tpu.matmul %334, %335, %cst_202 {dimension_numbers = #tpu.dot_dimension_numbers<[1], [0], [0], [1], [0, 0, 1, 1], [], []>} : vector<5x128xf32>, vector<128x32xf32>, vector<5x32xf32> -> vector<5x32xf32>
    %c0_203 = arith.constant 0 : index
    %c0_204 = arith.constant 0 : index
    %337 = vector.load %arg17[%c0_203, %c0_204] : memref<1x32xf32, #tpu.memory_space<vmem>>, vector<1x32xf32>
    %338 = vector.broadcast %337 : vector<1x32xf32> to vector<5x32xf32>
    %339 = arith.addf %336, %338 : vector<5x32xf32>
    %340 = arith.addf %292, %339 : vector<5x32xf32>
    %c0_205 = arith.constant 0 : index
    %c0_206 = arith.constant 0 : index
    %341 = vector.load %arg18[%c0_205, %c0_206] : memref<1x32xf32, #tpu.memory_space<vmem>>, vector<1x32xf32>
    %c0_207 = arith.constant 0 : index
    %c0_208 = arith.constant 0 : index
    %342 = vector.load %arg19[%c0_207, %c0_208] : memref<1x32xf32, #tpu.memory_space<vmem>>, vector<1x32xf32>
    %cst_209 = arith.constant dense<0.000000e+00> : vector<5xf32>
    %343 = vector.multi_reduction <add>, %340, %cst_209 [1] : vector<5x32xf32> to vector<5xf32>
    %344 = vector.shape_cast %343 : vector<5xf32> to vector<5x1xf32>
    %cst_210 = arith.constant 3.200000e+01 : f32
    %345 = vector.broadcast %cst_210 : f32 to vector<5x1xf32>
    %346 = arith.divf %344, %345 : vector<5x1xf32>
    %347 = vector.broadcast %346 : vector<5x1xf32> to vector<5x32xf32>
    %348 = arith.subf %340, %347 : vector<5x32xf32>
    %349 = arith.mulf %348, %348 : vector<5x32xf32>
    %cst_211 = arith.constant dense<0.000000e+00> : vector<5xf32>
    %350 = vector.multi_reduction <add>, %349, %cst_211 [1] : vector<5x32xf32> to vector<5xf32>
    %351 = vector.shape_cast %350 : vector<5xf32> to vector<5x1xf32>
    %cst_212 = arith.constant 3.200000e+01 : f32
    %352 = vector.broadcast %cst_212 : f32 to vector<5x1xf32>
    %353 = arith.divf %351, %352 : vector<5x1xf32>
    %354 = vector.broadcast %346 : vector<5x1xf32> to vector<5x32xf32>
    %355 = arith.subf %340, %354 : vector<5x32xf32>
    %cst_213 = arith.constant 9.99999997E-7 : f32
    %356 = vector.broadcast %cst_213 : f32 to vector<5x1xf32>
    %357 = arith.addf %353, %356 : vector<5x1xf32>
    %358 = math.rsqrt %357 : vector<5x1xf32>
    %359 = vector.broadcast %358 : vector<5x1xf32> to vector<5x32xf32>
    %360 = arith.mulf %355, %359 : vector<5x32xf32>
    %361 = vector.broadcast %341 : vector<1x32xf32> to vector<5x32xf32>
    %362 = arith.mulf %360, %361 : vector<5x32xf32>
    %363 = vector.broadcast %342 : vector<1x32xf32> to vector<5x32xf32>
    %364 = arith.addf %362, %363 : vector<5x32xf32>
    %c1_214 = arith.constant 1 : index
    %c0_215 = arith.constant 0 : index
    %c0_216 = arith.constant 0 : index
    %365 = vector.load %arg20[%c1_214, %c0_215, %c0_216] : memref<4x5x32xf32, #tpu.memory_space<vmem>>, vector<1x5x32xf32>
    %366 = vector.shape_cast %365 : vector<1x5x32xf32> to vector<5x32xf32>
    %367 = vector.shape_cast %364 : vector<5x32xf32> to vector<1x5x32xf32>
    tpu.vector_store %arg20[%c1_214, %c0_215, %c0_216], %367 {strides = array<i32>} : memref<4x5x32xf32, #tpu.memory_space<vmem>>, vector<1x5x32xf32>,
    %c2 = arith.constant 2 : index
    %c0_217 = arith.constant 0 : index
    %c0_218 = arith.constant 0 : index
    %368 = vector.load %arg1[%c2, %c0_217, %c0_218] : memref<4x5x32xf32, #tpu.memory_space<vmem>>, vector<1x5x32xf32>
    %369 = vector.shape_cast %368 : vector<1x5x32xf32> to vector<5x32xf32>
    %c0_219 = arith.constant 0 : index
    %c0_220 = arith.constant 0 : index
    %370 = vector.load %arg2[%c0_219, %c0_220] : memref<1x32xf32, #tpu.memory_space<vmem>>, vector<1x32xf32>
    %c0_221 = arith.constant 0 : index
    %c0_222 = arith.constant 0 : index
    %371 = vector.load %arg3[%c0_221, %c0_222] : memref<1x32xf32, #tpu.memory_space<vmem>>, vector<1x32xf32>
    %cst_223 = arith.constant dense<0.000000e+00> : vector<5xf32>
    %372 = vector.multi_reduction <add>, %369, %cst_223 [1] : vector<5x32xf32> to vector<5xf32>
    %373 = vector.shape_cast %372 : vector<5xf32> to vector<5x1xf32>
    %cst_224 = arith.constant 3.200000e+01 : f32
    %374 = vector.broadcast %cst_224 : f32 to vector<5x1xf32>
    %375 = arith.divf %373, %374 : vector<5x1xf32>
    %376 = vector.broadcast %375 : vector<5x1xf32> to vector<5x32xf32>
    %377 = arith.subf %369, %376 : vector<5x32xf32>
    %378 = arith.mulf %377, %377 : vector<5x32xf32>
    %cst_225 = arith.constant dense<0.000000e+00> : vector<5xf32>
    %379 = vector.multi_reduction <add>, %378, %cst_225 [1] : vector<5x32xf32> to vector<5xf32>
    %380 = vector.shape_cast %379 : vector<5xf32> to vector<5x1xf32>
    %cst_226 = arith.constant 3.200000e+01 : f32
    %381 = vector.broadcast %cst_226 : f32 to vector<5x1xf32>
    %382 = arith.divf %380, %381 : vector<5x1xf32>
    %383 = vector.broadcast %375 : vector<5x1xf32> to vector<5x32xf32>
    %384 = arith.subf %369, %383 : vector<5x32xf32>
    %cst_227 = arith.constant 9.99999997E-7 : f32
    %385 = vector.broadcast %cst_227 : f32 to vector<5x1xf32>
    %386 = arith.addf %382, %385 : vector<5x1xf32>
    %387 = math.rsqrt %386 : vector<5x1xf32>
    %388 = vector.broadcast %387 : vector<5x1xf32> to vector<5x32xf32>
    %389 = arith.mulf %384, %388 : vector<5x32xf32>
    %390 = vector.broadcast %370 : vector<1x32xf32> to vector<5x32xf32>
    %391 = arith.mulf %389, %390 : vector<5x32xf32>
    %392 = vector.broadcast %371 : vector<1x32xf32> to vector<5x32xf32>
    %393 = arith.addf %391, %392 : vector<5x32xf32>
    %cst_228 = arith.constant 0.000000e+00 : f32
    %394 = vector.broadcast %cst_228 : f32 to vector<5x32xf32>
    %c0_229 = arith.constant 0 : index
    %c0_230 = arith.constant 0 : index
    %395 = vector.load %arg11[%c0_229, %c0_230] : memref<1x32xf32, #tpu.memory_space<vmem>>, vector<1x32xf32>
    %396 = vector.broadcast %395 : vector<1x32xf32> to vector<5x32xf32>
    %397 = arith.addf %394, %396 : vector<5x32xf32>
    %c0_231 = arith.constant 0 : index
    %c0_232 = arith.constant 0 : index
    %c0_233 = arith.constant 0 : index
    %398 = vector.load %arg4[%c0_231, %c0_232, %c0_233] : memref<2x32x16xf32, #tpu.memory_space<vmem>>, vector<1x32x16xf32>
    %399 = vector.shape_cast %398 : vector<1x32x16xf32> to vector<32x16xf32>
    %cst_234 = arith.constant dense<0.000000e+00> : vector<5x16xf32>
    %400 = tpu.matmul %393, %399, %cst_234 {dimension_numbers = #tpu.dot_dimension_numbers<[1], [0], [0], [1], [0, 0, 1, 1], [], []>} : vector<5x32xf32>, vector<32x16xf32>, vector<5x16xf32> -> vector<5x16xf32>
    %c0_235 = arith.constant 0 : index
    %c0_236 = arith.constant 0 : index
    %c0_237 = arith.constant 0 : index
    %401 = vector.load %arg5[%c0_235, %c0_236, %c0_237] : memref<2x1x16xf32, #tpu.memory_space<vmem>>, vector<1x1x16xf32>
    %402 = vector.shape_cast %401 : vector<1x1x16xf32> to vector<1x16xf32>
    %403 = vector.broadcast %402 : vector<1x16xf32> to vector<5x16xf32>
    %404 = arith.addf %400, %403 : vector<5x16xf32>
    %c0_238 = arith.constant 0 : index
    %c0_239 = arith.constant 0 : index
    %c0_240 = arith.constant 0 : index
    %405 = vector.load %arg6[%c0_238, %c0_239, %c0_240] : memref<2x32x16xf32, #tpu.memory_space<vmem>>, vector<1x32x16xf32>
    %406 = vector.shape_cast %405 : vector<1x32x16xf32> to vector<32x16xf32>
    %cst_241 = arith.constant dense<0.000000e+00> : vector<5x16xf32>
    %407 = tpu.matmul %393, %406, %cst_241 {dimension_numbers = #tpu.dot_dimension_numbers<[1], [0], [0], [1], [0, 0, 1, 1], [], []>} : vector<5x32xf32>, vector<32x16xf32>, vector<5x16xf32> -> vector<5x16xf32>
    %c0_242 = arith.constant 0 : index
    %c0_243 = arith.constant 0 : index
    %c0_244 = arith.constant 0 : index
    %408 = vector.load %arg7[%c0_242, %c0_243, %c0_244] : memref<2x1x16xf32, #tpu.memory_space<vmem>>, vector<1x1x16xf32>
    %409 = vector.shape_cast %408 : vector<1x1x16xf32> to vector<1x16xf32>
    %410 = vector.broadcast %409 : vector<1x16xf32> to vector<5x16xf32>
    %411 = arith.addf %407, %410 : vector<5x16xf32>
    %c0_245 = arith.constant 0 : index
    %c0_246 = arith.constant 0 : index
    %c0_247 = arith.constant 0 : index
    %412 = vector.load %arg8[%c0_245, %c0_246, %c0_247] : memref<2x32x16xf32, #tpu.memory_space<vmem>>, vector<1x32x16xf32>
    %413 = vector.shape_cast %412 : vector<1x32x16xf32> to vector<32x16xf32>
    %cst_248 = arith.constant dense<0.000000e+00> : vector<5x16xf32>
    %414 = tpu.matmul %393, %413, %cst_248 {dimension_numbers = #tpu.dot_dimension_numbers<[1], [0], [0], [1], [0, 0, 1, 1], [], []>} : vector<5x32xf32>, vector<32x16xf32>, vector<5x16xf32> -> vector<5x16xf32>
    %c0_249 = arith.constant 0 : index
    %c0_250 = arith.constant 0 : index
    %c0_251 = arith.constant 0 : index
    %415 = vector.load %arg9[%c0_249, %c0_250, %c0_251] : memref<2x1x16xf32, #tpu.memory_space<vmem>>, vector<1x1x16xf32>
    %416 = vector.shape_cast %415 : vector<1x1x16xf32> to vector<1x16xf32>
    %417 = vector.broadcast %416 : vector<1x16xf32> to vector<5x16xf32>
    %418 = arith.addf %414, %417 : vector<5x16xf32>
    %cst_252 = arith.constant dense<0.000000e+00> : vector<5x5xf32>
    %419 = tpu.matmul %404, %411, %cst_252 {dimension_numbers = #tpu.dot_dimension_numbers<[1], [1], [0], [0], [0, 0, 1, 0], [], []>} : vector<5x16xf32>, vector<5x16xf32>, vector<5x5xf32> -> vector<5x5xf32>
    %cst_253 = arith.constant 2.500000e-01 : f32
    %420 = vector.broadcast %cst_253 : f32 to vector<5x5xf32>
    %421 = arith.mulf %419, %420 : vector<5x5xf32>
    %cst_254 = arith.constant dense<0xFF800000> : vector<5xf32>
    %422 = vector.multi_reduction <maximumf>, %421, %cst_254 [1] : vector<5x5xf32> to vector<5xf32>
    %423 = vector.shape_cast %422 : vector<5xf32> to vector<5x1xf32>
    %424 = vector.broadcast %423 : vector<5x1xf32> to vector<5x5xf32>
    %425 = arith.subf %421, %424 : vector<5x5xf32>
    %426 = math.exp %425 : vector<5x5xf32>
    %cst_255 = arith.constant dense<0.000000e+00> : vector<5xf32>
    %427 = vector.multi_reduction <add>, %426, %cst_255 [1] : vector<5x5xf32> to vector<5xf32>
    %428 = vector.shape_cast %427 : vector<5xf32> to vector<5x1xf32>
    %429 = tpu.reciprocal %428 {approx = true} : vector<5x1xf32> -> vector<5x1xf32>
    %430 = vector.broadcast %429 : vector<5x1xf32> to vector<5x5xf32>
    %431 = arith.mulf %426, %430 : vector<5x5xf32>
    %cst_256 = arith.constant dense<0.000000e+00> : vector<5x16xf32>
    %432 = tpu.matmul %431, %418, %cst_256 {dimension_numbers = #tpu.dot_dimension_numbers<[1], [0], [0], [1], [0, 0, 1, 1], [], []>} : vector<5x5xf32>, vector<5x16xf32>, vector<5x16xf32> -> vector<5x16xf32>
    %c0_257 = arith.constant 0 : index
    %c0_258 = arith.constant 0 : index
    %c0_259 = arith.constant 0 : index
    %433 = vector.load %arg10[%c0_257, %c0_258, %c0_259] : memref<2x16x32xf32, #tpu.memory_space<vmem>>, vector<1x16x32xf32>
    %434 = vector.shape_cast %433 : vector<1x16x32xf32> to vector<16x32xf32>
    %cst_260 = arith.constant dense<0.000000e+00> : vector<5x32xf32>
    %435 = tpu.matmul %432, %434, %cst_260 {dimension_numbers = #tpu.dot_dimension_numbers<[1], [0], [0], [1], [0, 0, 1, 1], [], []>} : vector<5x16xf32>, vector<16x32xf32>, vector<5x32xf32> -> vector<5x32xf32>
    %436 = arith.addf %397, %435 : vector<5x32xf32>
    %c1_261 = arith.constant 1 : index
    %c0_262 = arith.constant 0 : index
    %c0_263 = arith.constant 0 : index
    %437 = vector.load %arg4[%c1_261, %c0_262, %c0_263] : memref<2x32x16xf32, #tpu.memory_space<vmem>>, vector<1x32x16xf32>
    %438 = vector.shape_cast %437 : vector<1x32x16xf32> to vector<32x16xf32>
    %cst_264 = arith.constant dense<0.000000e+00> : vector<5x16xf32>
    %439 = tpu.matmul %393, %438, %cst_264 {dimension_numbers = #tpu.dot_dimension_numbers<[1], [0], [0], [1], [0, 0, 1, 1], [], []>} : vector<5x32xf32>, vector<32x16xf32>, vector<5x16xf32> -> vector<5x16xf32>
    %c1_265 = arith.constant 1 : index
    %c0_266 = arith.constant 0 : index
    %c0_267 = arith.constant 0 : index
    %440 = vector.load %arg5[%c1_265, %c0_266, %c0_267] : memref<2x1x16xf32, #tpu.memory_space<vmem>>, vector<1x1x16xf32>
    %441 = vector.shape_cast %440 : vector<1x1x16xf32> to vector<1x16xf32>
    %442 = vector.broadcast %441 : vector<1x16xf32> to vector<5x16xf32>
    %443 = arith.addf %439, %442 : vector<5x16xf32>
    %c1_268 = arith.constant 1 : index
    %c0_269 = arith.constant 0 : index
    %c0_270 = arith.constant 0 : index
    %444 = vector.load %arg6[%c1_268, %c0_269, %c0_270] : memref<2x32x16xf32, #tpu.memory_space<vmem>>, vector<1x32x16xf32>
    %445 = vector.shape_cast %444 : vector<1x32x16xf32> to vector<32x16xf32>
    %cst_271 = arith.constant dense<0.000000e+00> : vector<5x16xf32>
    %446 = tpu.matmul %393, %445, %cst_271 {dimension_numbers = #tpu.dot_dimension_numbers<[1], [0], [0], [1], [0, 0, 1, 1], [], []>} : vector<5x32xf32>, vector<32x16xf32>, vector<5x16xf32> -> vector<5x16xf32>
    %c1_272 = arith.constant 1 : index
    %c0_273 = arith.constant 0 : index
    %c0_274 = arith.constant 0 : index
    %447 = vector.load %arg7[%c1_272, %c0_273, %c0_274] : memref<2x1x16xf32, #tpu.memory_space<vmem>>, vector<1x1x16xf32>
    %448 = vector.shape_cast %447 : vector<1x1x16xf32> to vector<1x16xf32>
    %449 = vector.broadcast %448 : vector<1x16xf32> to vector<5x16xf32>
    %450 = arith.addf %446, %449 : vector<5x16xf32>
    %c1_275 = arith.constant 1 : index
    %c0_276 = arith.constant 0 : index
    %c0_277 = arith.constant 0 : index
    %451 = vector.load %arg8[%c1_275, %c0_276, %c0_277] : memref<2x32x16xf32, #tpu.memory_space<vmem>>, vector<1x32x16xf32>
    %452 = vector.shape_cast %451 : vector<1x32x16xf32> to vector<32x16xf32>
    %cst_278 = arith.constant dense<0.000000e+00> : vector<5x16xf32>
    %453 = tpu.matmul %393, %452, %cst_278 {dimension_numbers = #tpu.dot_dimension_numbers<[1], [0], [0], [1], [0, 0, 1, 1], [], []>} : vector<5x32xf32>, vector<32x16xf32>, vector<5x16xf32> -> vector<5x16xf32>
    %c1_279 = arith.constant 1 : index
    %c0_280 = arith.constant 0 : index
    %c0_281 = arith.constant 0 : index
    %454 = vector.load %arg9[%c1_279, %c0_280, %c0_281] : memref<2x1x16xf32, #tpu.memory_space<vmem>>, vector<1x1x16xf32>
    %455 = vector.shape_cast %454 : vector<1x1x16xf32> to vector<1x16xf32>
    %456 = vector.broadcast %455 : vector<1x16xf32> to vector<5x16xf32>
    %457 = arith.addf %453, %456 : vector<5x16xf32>
    %cst_282 = arith.constant dense<0.000000e+00> : vector<5x5xf32>
    %458 = tpu.matmul %443, %450, %cst_282 {dimension_numbers = #tpu.dot_dimension_numbers<[1], [1], [0], [0], [0, 0, 1, 0], [], []>} : vector<5x16xf32>, vector<5x16xf32>, vector<5x5xf32> -> vector<5x5xf32>
    %cst_283 = arith.constant 2.500000e-01 : f32
    %459 = vector.broadcast %cst_283 : f32 to vector<5x5xf32>
    %460 = arith.mulf %458, %459 : vector<5x5xf32>
    %cst_284 = arith.constant dense<0xFF800000> : vector<5xf32>
    %461 = vector.multi_reduction <maximumf>, %460, %cst_284 [1] : vector<5x5xf32> to vector<5xf32>
    %462 = vector.shape_cast %461 : vector<5xf32> to vector<5x1xf32>
    %463 = vector.broadcast %462 : vector<5x1xf32> to vector<5x5xf32>
    %464 = arith.subf %460, %463 : vector<5x5xf32>
    %465 = math.exp %464 : vector<5x5xf32>
    %cst_285 = arith.constant dense<0.000000e+00> : vector<5xf32>
    %466 = vector.multi_reduction <add>, %465, %cst_285 [1] : vector<5x5xf32> to vector<5xf32>
    %467 = vector.shape_cast %466 : vector<5xf32> to vector<5x1xf32>
    %468 = tpu.reciprocal %467 {approx = true} : vector<5x1xf32> -> vector<5x1xf32>
    %469 = vector.broadcast %468 : vector<5x1xf32> to vector<5x5xf32>
    %470 = arith.mulf %465, %469 : vector<5x5xf32>
    %cst_286 = arith.constant dense<0.000000e+00> : vector<5x16xf32>
    %471 = tpu.matmul %470, %457, %cst_286 {dimension_numbers = #tpu.dot_dimension_numbers<[1], [0], [0], [1], [0, 0, 1, 1], [], []>} : vector<5x5xf32>, vector<5x16xf32>, vector<5x16xf32> -> vector<5x16xf32>
    %c1_287 = arith.constant 1 : index
    %c0_288 = arith.constant 0 : index
    %c0_289 = arith.constant 0 : index
    %472 = vector.load %arg10[%c1_287, %c0_288, %c0_289] : memref<2x16x32xf32, #tpu.memory_space<vmem>>, vector<1x16x32xf32>
    %473 = vector.shape_cast %472 : vector<1x16x32xf32> to vector<16x32xf32>
    %cst_290 = arith.constant dense<0.000000e+00> : vector<5x32xf32>
    %474 = tpu.matmul %471, %473, %cst_290 {dimension_numbers = #tpu.dot_dimension_numbers<[1], [0], [0], [1], [0, 0, 1, 1], [], []>} : vector<5x16xf32>, vector<16x32xf32>, vector<5x32xf32> -> vector<5x32xf32>
    %475 = arith.addf %436, %474 : vector<5x32xf32>
    %476 = arith.addf %369, %475 : vector<5x32xf32>
    %c0_291 = arith.constant 0 : index
    %c0_292 = arith.constant 0 : index
    %477 = vector.load %arg12[%c0_291, %c0_292] : memref<1x32xf32, #tpu.memory_space<vmem>>, vector<1x32xf32>
    %c0_293 = arith.constant 0 : index
    %c0_294 = arith.constant 0 : index
    %478 = vector.load %arg13[%c0_293, %c0_294] : memref<1x32xf32, #tpu.memory_space<vmem>>, vector<1x32xf32>
    %cst_295 = arith.constant dense<0.000000e+00> : vector<5xf32>
    %479 = vector.multi_reduction <add>, %476, %cst_295 [1] : vector<5x32xf32> to vector<5xf32>
    %480 = vector.shape_cast %479 : vector<5xf32> to vector<5x1xf32>
    %cst_296 = arith.constant 3.200000e+01 : f32
    %481 = vector.broadcast %cst_296 : f32 to vector<5x1xf32>
    %482 = arith.divf %480, %481 : vector<5x1xf32>
    %483 = vector.broadcast %482 : vector<5x1xf32> to vector<5x32xf32>
    %484 = arith.subf %476, %483 : vector<5x32xf32>
    %485 = arith.mulf %484, %484 : vector<5x32xf32>
    %cst_297 = arith.constant dense<0.000000e+00> : vector<5xf32>
    %486 = vector.multi_reduction <add>, %485, %cst_297 [1] : vector<5x32xf32> to vector<5xf32>
    %487 = vector.shape_cast %486 : vector<5xf32> to vector<5x1xf32>
    %cst_298 = arith.constant 3.200000e+01 : f32
    %488 = vector.broadcast %cst_298 : f32 to vector<5x1xf32>
    %489 = arith.divf %487, %488 : vector<5x1xf32>
    %490 = vector.broadcast %482 : vector<5x1xf32> to vector<5x32xf32>
    %491 = arith.subf %476, %490 : vector<5x32xf32>
    %cst_299 = arith.constant 9.99999997E-7 : f32
    %492 = vector.broadcast %cst_299 : f32 to vector<5x1xf32>
    %493 = arith.addf %489, %492 : vector<5x1xf32>
    %494 = math.rsqrt %493 : vector<5x1xf32>
    %495 = vector.broadcast %494 : vector<5x1xf32> to vector<5x32xf32>
    %496 = arith.mulf %491, %495 : vector<5x32xf32>
    %497 = vector.broadcast %477 : vector<1x32xf32> to vector<5x32xf32>
    %498 = arith.mulf %496, %497 : vector<5x32xf32>
    %499 = vector.broadcast %478 : vector<1x32xf32> to vector<5x32xf32>
    %500 = arith.addf %498, %499 : vector<5x32xf32>
    %c0_300 = arith.constant 0 : index
    %c0_301 = arith.constant 0 : index
    %501 = vector.load %arg14[%c0_300, %c0_301] : memref<32x128xf32, #tpu.memory_space<vmem>>, vector<32x128xf32>
    %cst_302 = arith.constant dense<0.000000e+00> : vector<5x128xf32>
    %502 = tpu.matmul %500, %501, %cst_302 {dimension_numbers = #tpu.dot_dimension_numbers<[1], [0], [0], [1], [0, 0, 1, 1], [], []>} : vector<5x32xf32>, vector<32x128xf32>, vector<5x128xf32> -> vector<5x128xf32>
    %c0_303 = arith.constant 0 : index
    %c0_304 = arith.constant 0 : index
    %503 = vector.load %arg15[%c0_303, %c0_304] : memref<1x128xf32, #tpu.memory_space<vmem>>, vector<1x128xf32>
    %504 = vector.broadcast %503 : vector<1x128xf32> to vector<5x128xf32>
    %505 = arith.addf %502, %504 : vector<5x128xf32>
    %cst_305 = arith.constant 5.000000e-01 : f32
    %506 = vector.broadcast %cst_305 : f32 to vector<5x128xf32>
    %507 = arith.mulf %506, %505 : vector<5x128xf32>
    %cst_306 = arith.constant 4.471500e-02 : f32
    %508 = vector.broadcast %cst_306 : f32 to vector<5x128xf32>
    %509 = arith.mulf %508, %505 : vector<5x128xf32>
    %510 = arith.mulf %509, %505 : vector<5x128xf32>
    %511 = arith.mulf %510, %505 : vector<5x128xf32>
    %512 = arith.addf %505, %511 : vector<5x128xf32>
    %cst_307 = arith.constant 0.797884583 : f32
    %513 = vector.broadcast %cst_307 : f32 to vector<5x128xf32>
    %514 = arith.mulf %513, %512 : vector<5x128xf32>
    %515 = math.tanh %514 : vector<5x128xf32>
    %cst_308 = arith.constant 1.000000e+00 : f32
    %516 = vector.broadcast %cst_308 : f32 to vector<5x128xf32>
    %517 = arith.addf %516, %515 : vector<5x128xf32>
    %518 = arith.mulf %507, %517 : vector<5x128xf32>
    %c0_309 = arith.constant 0 : index
    %c0_310 = arith.constant 0 : index
    %519 = vector.load %arg16[%c0_309, %c0_310] : memref<128x32xf32, #tpu.memory_space<vmem>>, vector<128x32xf32>
    %cst_311 = arith.constant dense<0.000000e+00> : vector<5x32xf32>
    %520 = tpu.matmul %518, %519, %cst_311 {dimension_numbers = #tpu.dot_dimension_numbers<[1], [0], [0], [1], [0, 0, 1, 1], [], []>} : vector<5x128xf32>, vector<128x32xf32>, vector<5x32xf32> -> vector<5x32xf32>
    %c0_312 = arith.constant 0 : index
    %c0_313 = arith.constant 0 : index
    %521 = vector.load %arg17[%c0_312, %c0_313] : memref<1x32xf32, #tpu.memory_space<vmem>>, vector<1x32xf32>
    %522 = vector.broadcast %521 : vector<1x32xf32> to vector<5x32xf32>
    %523 = arith.addf %520, %522 : vector<5x32xf32>
    %524 = arith.addf %476, %523 : vector<5x32xf32>
    %c0_314 = arith.constant 0 : index
    %c0_315 = arith.constant 0 : index
    %525 = vector.load %arg18[%c0_314, %c0_315] : memref<1x32xf32, #tpu.memory_space<vmem>>, vector<1x32xf32>
    %c0_316 = arith.constant 0 : index
    %c0_317 = arith.constant 0 : index
    %526 = vector.load %arg19[%c0_316, %c0_317] : memref<1x32xf32, #tpu.memory_space<vmem>>, vector<1x32xf32>
    %cst_318 = arith.constant dense<0.000000e+00> : vector<5xf32>
    %527 = vector.multi_reduction <add>, %524, %cst_318 [1] : vector<5x32xf32> to vector<5xf32>
    %528 = vector.shape_cast %527 : vector<5xf32> to vector<5x1xf32>
    %cst_319 = arith.constant 3.200000e+01 : f32
    %529 = vector.broadcast %cst_319 : f32 to vector<5x1xf32>
    %530 = arith.divf %528, %529 : vector<5x1xf32>
    %531 = vector.broadcast %530 : vector<5x1xf32> to vector<5x32xf32>
    %532 = arith.subf %524, %531 : vector<5x32xf32>
    %533 = arith.mulf %532, %532 : vector<5x32xf32>
    %cst_320 = arith.constant dense<0.000000e+00> : vector<5xf32>
    %534 = vector.multi_reduction <add>, %533, %cst_320 [1] : vector<5x32xf32> to vector<5xf32>
    %535 = vector.shape_cast %534 : vector<5xf32> to vector<5x1xf32>
    %cst_321 = arith.constant 3.200000e+01 : f32
    %536 = vector.broadcast %cst_321 : f32 to vector<5x1xf32>
    %537 = arith.divf %535, %536 : vector<5x1xf32>
    %538 = vector.broadcast %530 : vector<5x1xf32> to vector<5x32xf32>
    %539 = arith.subf %524, %538 : vector<5x32xf32>
    %cst_322 = arith.constant 9.99999997E-7 : f32
    %540 = vector.broadcast %cst_322 : f32 to vector<5x1xf32>
    %541 = arith.addf %537, %540 : vector<5x1xf32>
    %542 = math.rsqrt %541 : vector<5x1xf32>
    %543 = vector.broadcast %542 : vector<5x1xf32> to vector<5x32xf32>
    %544 = arith.mulf %539, %543 : vector<5x32xf32>
    %545 = vector.broadcast %525 : vector<1x32xf32> to vector<5x32xf32>
    %546 = arith.mulf %544, %545 : vector<5x32xf32>
    %547 = vector.broadcast %526 : vector<1x32xf32> to vector<5x32xf32>
    %548 = arith.addf %546, %547 : vector<5x32xf32>
    %c2_323 = arith.constant 2 : index
    %c0_324 = arith.constant 0 : index
    %c0_325 = arith.constant 0 : index
    %549 = vector.load %arg20[%c2_323, %c0_324, %c0_325] : memref<4x5x32xf32, #tpu.memory_space<vmem>>, vector<1x5x32xf32>
    %550 = vector.shape_cast %549 : vector<1x5x32xf32> to vector<5x32xf32>
    %551 = vector.shape_cast %548 : vector<5x32xf32> to vector<1x5x32xf32>
    tpu.vector_store %arg20[%c2_323, %c0_324, %c0_325], %551 {strides = array<i32>} : memref<4x5x32xf32, #tpu.memory_space<vmem>>, vector<1x5x32xf32>,
    %c3 = arith.constant 3 : index
    %c0_326 = arith.constant 0 : index
    %c0_327 = arith.constant 0 : index
    %552 = vector.load %arg1[%c3, %c0_326, %c0_327] : memref<4x5x32xf32, #tpu.memory_space<vmem>>, vector<1x5x32xf32>
    %553 = vector.shape_cast %552 : vector<1x5x32xf32> to vector<5x32xf32>
    %c0_328 = arith.constant 0 : index
    %c0_329 = arith.constant 0 : index
    %554 = vector.load %arg2[%c0_328, %c0_329] : memref<1x32xf32, #tpu.memory_space<vmem>>, vector<1x32xf32>
    %c0_330 = arith.constant 0 : index
    %c0_331 = arith.constant 0 : index
    %555 = vector.load %arg3[%c0_330, %c0_331] : memref<1x32xf32, #tpu.memory_space<vmem>>, vector<1x32xf32>
    %cst_332 = arith.constant dense<0.000000e+00> : vector<5xf32>
    %556 = vector.multi_reduction <add>, %553, %cst_332 [1] : vector<5x32xf32> to vector<5xf32>
    %557 = vector.shape_cast %556 : vector<5xf32> to vector<5x1xf32>
    %cst_333 = arith.constant 3.200000e+01 : f32
    %558 = vector.broadcast %cst_333 : f32 to vector<5x1xf32>
    %559 = arith.divf %557, %558 : vector<5x1xf32>
    %560 = vector.broadcast %559 : vector<5x1xf32> to vector<5x32xf32>
    %561 = arith.subf %553, %560 : vector<5x32xf32>
    %562 = arith.mulf %561, %561 : vector<5x32xf32>
    %cst_334 = arith.constant dense<0.000000e+00> : vector<5xf32>
    %563 = vector.multi_reduction <add>, %562, %cst_334 [1] : vector<5x32xf32> to vector<5xf32>
    %564 = vector.shape_cast %563 : vector<5xf32> to vector<5x1xf32>
    %cst_335 = arith.constant 3.200000e+01 : f32
    %565 = vector.broadcast %cst_335 : f32 to vector<5x1xf32>
    %566 = arith.divf %564, %565 : vector<5x1xf32>
    %567 = vector.broadcast %559 : vector<5x1xf32> to vector<5x32xf32>
    %568 = arith.subf %553, %567 : vector<5x32xf32>
    %cst_336 = arith.constant 9.99999997E-7 : f32
    %569 = vector.broadcast %cst_336 : f32 to vector<5x1xf32>
    %570 = arith.addf %566, %569 : vector<5x1xf32>
    %571 = math.rsqrt %570 : vector<5x1xf32>
    %572 = vector.broadcast %571 : vector<5x1xf32> to vector<5x32xf32>
    %573 = arith.mulf %568, %572 : vector<5x32xf32>
    %574 = vector.broadcast %554 : vector<1x32xf32> to vector<5x32xf32>
    %575 = arith.mulf %573, %574 : vector<5x32xf32>
    %576 = vector.broadcast %555 : vector<1x32xf32> to vector<5x32xf32>
    %577 = arith.addf %575, %576 : vector<5x32xf32>
    %cst_337 = arith.constant 0.000000e+00 : f32
    %578 = vector.broadcast %cst_337 : f32 to vector<5x32xf32>
    %c0_338 = arith.constant 0 : index
    %c0_339 = arith.constant 0 : index
    %579 = vector.load %arg11[%c0_338, %c0_339] : memref<1x32xf32, #tpu.memory_space<vmem>>, vector<1x32xf32>
    %580 = vector.broadcast %579 : vector<1x32xf32> to vector<5x32xf32>
    %581 = arith.addf %578, %580 : vector<5x32xf32>
    %c0_340 = arith.constant 0 : index
    %c0_341 = arith.constant 0 : index
    %c0_342 = arith.constant 0 : index
    %582 = vector.load %arg4[%c0_340, %c0_341, %c0_342] : memref<2x32x16xf32, #tpu.memory_space<vmem>>, vector<1x32x16xf32>
    %583 = vector.shape_cast %582 : vector<1x32x16xf32> to vector<32x16xf32>
    %cst_343 = arith.constant dense<0.000000e+00> : vector<5x16xf32>
    %584 = tpu.matmul %577, %583, %cst_343 {dimension_numbers = #tpu.dot_dimension_numbers<[1], [0], [0], [1], [0, 0, 1, 1], [], []>} : vector<5x32xf32>, vector<32x16xf32>, vector<5x16xf32> -> vector<5x16xf32>
    %c0_344 = arith.constant 0 : index
    %c0_345 = arith.constant 0 : index
    %c0_346 = arith.constant 0 : index
    %585 = vector.load %arg5[%c0_344, %c0_345, %c0_346] : memref<2x1x16xf32, #tpu.memory_space<vmem>>, vector<1x1x16xf32>
    %586 = vector.shape_cast %585 : vector<1x1x16xf32> to vector<1x16xf32>
    %587 = vector.broadcast %586 : vector<1x16xf32> to vector<5x16xf32>
    %588 = arith.addf %584, %587 : vector<5x16xf32>
    %c0_347 = arith.constant 0 : index
    %c0_348 = arith.constant 0 : index
    %c0_349 = arith.constant 0 : index
    %589 = vector.load %arg6[%c0_347, %c0_348, %c0_349] : memref<2x32x16xf32, #tpu.memory_space<vmem>>, vector<1x32x16xf32>
    %590 = vector.shape_cast %589 : vector<1x32x16xf32> to vector<32x16xf32>
    %cst_350 = arith.constant dense<0.000000e+00> : vector<5x16xf32>
    %591 = tpu.matmul %577, %590, %cst_350 {dimension_numbers = #tpu.dot_dimension_numbers<[1], [0], [0], [1], [0, 0, 1, 1], [], []>} : vector<5x32xf32>, vector<32x16xf32>, vector<5x16xf32> -> vector<5x16xf32>
    %c0_351 = arith.constant 0 : index
    %c0_352 = arith.constant 0 : index
    %c0_353 = arith.constant 0 : index
    %592 = vector.load %arg7[%c0_351, %c0_352, %c0_353] : memref<2x1x16xf32, #tpu.memory_space<vmem>>, vector<1x1x16xf32>
    %593 = vector.shape_cast %592 : vector<1x1x16xf32> to vector<1x16xf32>
    %594 = vector.broadcast %593 : vector<1x16xf32> to vector<5x16xf32>
    %595 = arith.addf %591, %594 : vector<5x16xf32>
    %c0_354 = arith.constant 0 : index
    %c0_355 = arith.constant 0 : index
    %c0_356 = arith.constant 0 : index
    %596 = vector.load %arg8[%c0_354, %c0_355, %c0_356] : memref<2x32x16xf32, #tpu.memory_space<vmem>>, vector<1x32x16xf32>
    %597 = vector.shape_cast %596 : vector<1x32x16xf32> to vector<32x16xf32>
    %cst_357 = arith.constant dense<0.000000e+00> : vector<5x16xf32>
    %598 = tpu.matmul %577, %597, %cst_357 {dimension_numbers = #tpu.dot_dimension_numbers<[1], [0], [0], [1], [0, 0, 1, 1], [], []>} : vector<5x32xf32>, vector<32x16xf32>, vector<5x16xf32> -> vector<5x16xf32>
    %c0_358 = arith.constant 0 : index
    %c0_359 = arith.constant 0 : index
    %c0_360 = arith.constant 0 : index
    %599 = vector.load %arg9[%c0_358, %c0_359, %c0_360] : memref<2x1x16xf32, #tpu.memory_space<vmem>>, vector<1x1x16xf32>
    %600 = vector.shape_cast %599 : vector<1x1x16xf32> to vector<1x16xf32>
    %601 = vector.broadcast %600 : vector<1x16xf32> to vector<5x16xf32>
    %602 = arith.addf %598, %601 : vector<5x16xf32>
    %cst_361 = arith.constant dense<0.000000e+00> : vector<5x5xf32>
    %603 = tpu.matmul %588, %595, %cst_361 {dimension_numbers = #tpu.dot_dimension_numbers<[1], [1], [0], [0], [0, 0, 1, 0], [], []>} : vector<5x16xf32>, vector<5x16xf32>, vector<5x5xf32> -> vector<5x5xf32>
    %cst_362 = arith.constant 2.500000e-01 : f32
    %604 = vector.broadcast %cst_362 : f32 to vector<5x5xf32>
    %605 = arith.mulf %603, %604 : vector<5x5xf32>
    %cst_363 = arith.constant dense<0xFF800000> : vector<5xf32>
    %606 = vector.multi_reduction <maximumf>, %605, %cst_363 [1] : vector<5x5xf32> to vector<5xf32>
    %607 = vector.shape_cast %606 : vector<5xf32> to vector<5x1xf32>
    %608 = vector.broadcast %607 : vector<5x1xf32> to vector<5x5xf32>
    %609 = arith.subf %605, %608 : vector<5x5xf32>
    %610 = math.exp %609 : vector<5x5xf32>
    %cst_364 = arith.constant dense<0.000000e+00> : vector<5xf32>
    %611 = vector.multi_reduction <add>, %610, %cst_364 [1] : vector<5x5xf32> to vector<5xf32>
    %612 = vector.shape_cast %611 : vector<5xf32> to vector<5x1xf32>
    %613 = tpu.reciprocal %612 {approx = true} : vector<5x1xf32> -> vector<5x1xf32>
    %614 = vector.broadcast %613 : vector<5x1xf32> to vector<5x5xf32>
    %615 = arith.mulf %610, %614 : vector<5x5xf32>
    %cst_365 = arith.constant dense<0.000000e+00> : vector<5x16xf32>
    %616 = tpu.matmul %615, %602, %cst_365 {dimension_numbers = #tpu.dot_dimension_numbers<[1], [0], [0], [1], [0, 0, 1, 1], [], []>} : vector<5x5xf32>, vector<5x16xf32>, vector<5x16xf32> -> vector<5x16xf32>
    %c0_366 = arith.constant 0 : index
    %c0_367 = arith.constant 0 : index
    %c0_368 = arith.constant 0 : index
    %617 = vector.load %arg10[%c0_366, %c0_367, %c0_368] : memref<2x16x32xf32, #tpu.memory_space<vmem>>, vector<1x16x32xf32>
    %618 = vector.shape_cast %617 : vector<1x16x32xf32> to vector<16x32xf32>
    %cst_369 = arith.constant dense<0.000000e+00> : vector<5x32xf32>
    %619 = tpu.matmul %616, %618, %cst_369 {dimension_numbers = #tpu.dot_dimension_numbers<[1], [0], [0], [1], [0, 0, 1, 1], [], []>} : vector<5x16xf32>, vector<16x32xf32>, vector<5x32xf32> -> vector<5x32xf32>
    %620 = arith.addf %581, %619 : vector<5x32xf32>
    %c1_370 = arith.constant 1 : index
    %c0_371 = arith.constant 0 : index
    %c0_372 = arith.constant 0 : index
    %621 = vector.load %arg4[%c1_370, %c0_371, %c0_372] : memref<2x32x16xf32, #tpu.memory_space<vmem>>, vector<1x32x16xf32>
    %622 = vector.shape_cast %621 : vector<1x32x16xf32> to vector<32x16xf32>
    %cst_373 = arith.constant dense<0.000000e+00> : vector<5x16xf32>
    %623 = tpu.matmul %577, %622, %cst_373 {dimension_numbers = #tpu.dot_dimension_numbers<[1], [0], [0], [1], [0, 0, 1, 1], [], []>} : vector<5x32xf32>, vector<32x16xf32>, vector<5x16xf32> -> vector<5x16xf32>
    %c1_374 = arith.constant 1 : index
    %c0_375 = arith.constant 0 : index
    %c0_376 = arith.constant 0 : index
    %624 = vector.load %arg5[%c1_374, %c0_375, %c0_376] : memref<2x1x16xf32, #tpu.memory_space<vmem>>, vector<1x1x16xf32>
    %625 = vector.shape_cast %624 : vector<1x1x16xf32> to vector<1x16xf32>
    %626 = vector.broadcast %625 : vector<1x16xf32> to vector<5x16xf32>
    %627 = arith.addf %623, %626 : vector<5x16xf32>
    %c1_377 = arith.constant 1 : index
    %c0_378 = arith.constant 0 : index
    %c0_379 = arith.constant 0 : index
    %628 = vector.load %arg6[%c1_377, %c0_378, %c0_379] : memref<2x32x16xf32, #tpu.memory_space<vmem>>, vector<1x32x16xf32>
    %629 = vector.shape_cast %628 : vector<1x32x16xf32> to vector<32x16xf32>
    %cst_380 = arith.constant dense<0.000000e+00> : vector<5x16xf32>
    %630 = tpu.matmul %577, %629, %cst_380 {dimension_numbers = #tpu.dot_dimension_numbers<[1], [0], [0], [1], [0, 0, 1, 1], [], []>} : vector<5x32xf32>, vector<32x16xf32>, vector<5x16xf32> -> vector<5x16xf32>
    %c1_381 = arith.constant 1 : index
    %c0_382 = arith.constant 0 : index
    %c0_383 = arith.constant 0 : index
    %631 = vector.load %arg7[%c1_381, %c0_382, %c0_383] : memref<2x1x16xf32, #tpu.memory_space<vmem>>, vector<1x1x16xf32>
    %632 = vector.shape_cast %631 : vector<1x1x16xf32> to vector<1x16xf32>
    %633 = vector.broadcast %632 : vector<1x16xf32> to vector<5x16xf32>
    %634 = arith.addf %630, %633 : vector<5x16xf32>
    %c1_384 = arith.constant 1 : index
    %c0_385 = arith.constant 0 : index
    %c0_386 = arith.constant 0 : index
    %635 = vector.load %arg8[%c1_384, %c0_385, %c0_386] : memref<2x32x16xf32, #tpu.memory_space<vmem>>, vector<1x32x16xf32>
    %636 = vector.shape_cast %635 : vector<1x32x16xf32> to vector<32x16xf32>
    %cst_387 = arith.constant dense<0.000000e+00> : vector<5x16xf32>
    %637 = tpu.matmul %577, %636, %cst_387 {dimension_numbers = #tpu.dot_dimension_numbers<[1], [0], [0], [1], [0, 0, 1, 1], [], []>} : vector<5x32xf32>, vector<32x16xf32>, vector<5x16xf32> -> vector<5x16xf32>
    %c1_388 = arith.constant 1 : index
    %c0_389 = arith.constant 0 : index
    %c0_390 = arith.constant 0 : index
    %638 = vector.load %arg9[%c1_388, %c0_389, %c0_390] : memref<2x1x16xf32, #tpu.memory_space<vmem>>, vector<1x1x16xf32>
    %639 = vector.shape_cast %638 : vector<1x1x16xf32> to vector<1x16xf32>
    %640 = vector.broadcast %639 : vector<1x16xf32> to vector<5x16xf32>
    %641 = arith.addf %637, %640 : vector<5x16xf32>
    %cst_391 = arith.constant dense<0.000000e+00> : vector<5x5xf32>
    %642 = tpu.matmul %627, %634, %cst_391 {dimension_numbers = #tpu.dot_dimension_numbers<[1], [1], [0], [0], [0, 0, 1, 0], [], []>} : vector<5x16xf32>, vector<5x16xf32>, vector<5x5xf32> -> vector<5x5xf32>
    %cst_392 = arith.constant 2.500000e-01 : f32
    %643 = vector.broadcast %cst_392 : f32 to vector<5x5xf32>
    %644 = arith.mulf %642, %643 : vector<5x5xf32>
    %cst_393 = arith.constant dense<0xFF800000> : vector<5xf32>
    %645 = vector.multi_reduction <maximumf>, %644, %cst_393 [1] : vector<5x5xf32> to vector<5xf32>
    %646 = vector.shape_cast %645 : vector<5xf32> to vector<5x1xf32>
    %647 = vector.broadcast %646 : vector<5x1xf32> to vector<5x5xf32>
    %648 = arith.subf %644, %647 : vector<5x5xf32>
    %649 = math.exp %648 : vector<5x5xf32>
    %cst_394 = arith.constant dense<0.000000e+00> : vector<5xf32>
    %650 = vector.multi_reduction <add>, %649, %cst_394 [1] : vector<5x5xf32> to vector<5xf32>
    %651 = vector.shape_cast %650 : vector<5xf32> to vector<5x1xf32>
    %652 = tpu.reciprocal %651 {approx = true} : vector<5x1xf32> -> vector<5x1xf32>
    %653 = vector.broadcast %652 : vector<5x1xf32> to vector<5x5xf32>
    %654 = arith.mulf %649, %653 : vector<5x5xf32>
    %cst_395 = arith.constant dense<0.000000e+00> : vector<5x16xf32>
    %655 = tpu.matmul %654, %641, %cst_395 {dimension_numbers = #tpu.dot_dimension_numbers<[1], [0], [0], [1], [0, 0, 1, 1], [], []>} : vector<5x5xf32>, vector<5x16xf32>, vector<5x16xf32> -> vector<5x16xf32>
    %c1_396 = arith.constant 1 : index
    %c0_397 = arith.constant 0 : index
    %c0_398 = arith.constant 0 : index
    %656 = vector.load %arg10[%c1_396, %c0_397, %c0_398] : memref<2x16x32xf32, #tpu.memory_space<vmem>>, vector<1x16x32xf32>
    %657 = vector.shape_cast %656 : vector<1x16x32xf32> to vector<16x32xf32>
    %cst_399 = arith.constant dense<0.000000e+00> : vector<5x32xf32>
    %658 = tpu.matmul %655, %657, %cst_399 {dimension_numbers = #tpu.dot_dimension_numbers<[1], [0], [0], [1], [0, 0, 1, 1], [], []>} : vector<5x16xf32>, vector<16x32xf32>, vector<5x32xf32> -> vector<5x32xf32>
    %659 = arith.addf %620, %658 : vector<5x32xf32>
    %660 = arith.addf %553, %659 : vector<5x32xf32>
    %c0_400 = arith.constant 0 : index
    %c0_401 = arith.constant 0 : index
    %661 = vector.load %arg12[%c0_400, %c0_401] : memref<1x32xf32, #tpu.memory_space<vmem>>, vector<1x32xf32>
    %c0_402 = arith.constant 0 : index
    %c0_403 = arith.constant 0 : index
    %662 = vector.load %arg13[%c0_402, %c0_403] : memref<1x32xf32, #tpu.memory_space<vmem>>, vector<1x32xf32>
    %cst_404 = arith.constant dense<0.000000e+00> : vector<5xf32>
    %663 = vector.multi_reduction <add>, %660, %cst_404 [1] : vector<5x32xf32> to vector<5xf32>
    %664 = vector.shape_cast %663 : vector<5xf32> to vector<5x1xf32>
    %cst_405 = arith.constant 3.200000e+01 : f32
    %665 = vector.broadcast %cst_405 : f32 to vector<5x1xf32>
    %666 = arith.divf %664, %665 : vector<5x1xf32>
    %667 = vector.broadcast %666 : vector<5x1xf32> to vector<5x32xf32>
    %668 = arith.subf %660, %667 : vector<5x32xf32>
    %669 = arith.mulf %668, %668 : vector<5x32xf32>
    %cst_406 = arith.constant dense<0.000000e+00> : vector<5xf32>
    %670 = vector.multi_reduction <add>, %669, %cst_406 [1] : vector<5x32xf32> to vector<5xf32>
    %671 = vector.shape_cast %670 : vector<5xf32> to vector<5x1xf32>
    %cst_407 = arith.constant 3.200000e+01 : f32
    %672 = vector.broadcast %cst_407 : f32 to vector<5x1xf32>
    %673 = arith.divf %671, %672 : vector<5x1xf32>
    %674 = vector.broadcast %666 : vector<5x1xf32> to vector<5x32xf32>
    %675 = arith.subf %660, %674 : vector<5x32xf32>
    %cst_408 = arith.constant 9.99999997E-7 : f32
    %676 = vector.broadcast %cst_408 : f32 to vector<5x1xf32>
    %677 = arith.addf %673, %676 : vector<5x1xf32>
    %678 = math.rsqrt %677 : vector<5x1xf32>
    %679 = vector.broadcast %678 : vector<5x1xf32> to vector<5x32xf32>
    %680 = arith.mulf %675, %679 : vector<5x32xf32>
    %681 = vector.broadcast %661 : vector<1x32xf32> to vector<5x32xf32>
    %682 = arith.mulf %680, %681 : vector<5x32xf32>
    %683 = vector.broadcast %662 : vector<1x32xf32> to vector<5x32xf32>
    %684 = arith.addf %682, %683 : vector<5x32xf32>
    %c0_409 = arith.constant 0 : index
    %c0_410 = arith.constant 0 : index
    %685 = vector.load %arg14[%c0_409, %c0_410] : memref<32x128xf32, #tpu.memory_space<vmem>>, vector<32x128xf32>
    %cst_411 = arith.constant dense<0.000000e+00> : vector<5x128xf32>
    %686 = tpu.matmul %684, %685, %cst_411 {dimension_numbers = #tpu.dot_dimension_numbers<[1], [0], [0], [1], [0, 0, 1, 1], [], []>} : vector<5x32xf32>, vector<32x128xf32>, vector<5x128xf32> -> vector<5x128xf32>
    %c0_412 = arith.constant 0 : index
    %c0_413 = arith.constant 0 : index
    %687 = vector.load %arg15[%c0_412, %c0_413] : memref<1x128xf32, #tpu.memory_space<vmem>>, vector<1x128xf32>
    %688 = vector.broadcast %687 : vector<1x128xf32> to vector<5x128xf32>
    %689 = arith.addf %686, %688 : vector<5x128xf32>
    %cst_414 = arith.constant 5.000000e-01 : f32
    %690 = vector.broadcast %cst_414 : f32 to vector<5x128xf32>
    %691 = arith.mulf %690, %689 : vector<5x128xf32>
    %cst_415 = arith.constant 4.471500e-02 : f32
    %692 = vector.broadcast %cst_415 : f32 to vector<5x128xf32>
    %693 = arith.mulf %692, %689 : vector<5x128xf32>
    %694 = arith.mulf %693, %689 : vector<5x128xf32>
    %695 = arith.mulf %694, %689 : vector<5x128xf32>
    %696 = arith.addf %689, %695 : vector<5x128xf32>
    %cst_416 = arith.constant 0.797884583 : f32
    %697 = vector.broadcast %cst_416 : f32 to vector<5x128xf32>
    %698 = arith.mulf %697, %696 : vector<5x128xf32>
    %699 = math.tanh %698 : vector<5x128xf32>
    %cst_417 = arith.constant 1.000000e+00 : f32
    %700 = vector.broadcast %cst_417 : f32 to vector<5x128xf32>
    %701 = arith.addf %700, %699 : vector<5x128xf32>
    %702 = arith.mulf %691, %701 : vector<5x128xf32>
    %c0_418 = arith.constant 0 : index
    %c0_419 = arith.constant 0 : index
    %703 = vector.load %arg16[%c0_418, %c0_419] : memref<128x32xf32, #tpu.memory_space<vmem>>, vector<128x32xf32>
    %cst_420 = arith.constant dense<0.000000e+00> : vector<5x32xf32>
    %704 = tpu.matmul %702, %703, %cst_420 {dimension_numbers = #tpu.dot_dimension_numbers<[1], [0], [0], [1], [0, 0, 1, 1], [], []>} : vector<5x128xf32>, vector<128x32xf32>, vector<5x32xf32> -> vector<5x32xf32>
    %c0_421 = arith.constant 0 : index
    %c0_422 = arith.constant 0 : index
    %705 = vector.load %arg17[%c0_421, %c0_422] : memref<1x32xf32, #tpu.memory_space<vmem>>, vector<1x32xf32>
    %706 = vector.broadcast %705 : vector<1x32xf32> to vector<5x32xf32>
    %707 = arith.addf %704, %706 : vector<5x32xf32>
    %708 = arith.addf %660, %707 : vector<5x32xf32>
    %c0_423 = arith.constant 0 : index
    %c0_424 = arith.constant 0 : index
    %709 = vector.load %arg18[%c0_423, %c0_424] : memref<1x32xf32, #tpu.memory_space<vmem>>, vector<1x32xf32>
    %c0_425 = arith.constant 0 : index
    %c0_426 = arith.constant 0 : index
    %710 = vector.load %arg19[%c0_425, %c0_426] : memref<1x32xf32, #tpu.memory_space<vmem>>, vector<1x32xf32>
    %cst_427 = arith.constant dense<0.000000e+00> : vector<5xf32>
    %711 = vector.multi_reduction <add>, %708, %cst_427 [1] : vector<5x32xf32> to vector<5xf32>
    %712 = vector.shape_cast %711 : vector<5xf32> to vector<5x1xf32>
    %cst_428 = arith.constant 3.200000e+01 : f32
    %713 = vector.broadcast %cst_428 : f32 to vector<5x1xf32>
    %714 = arith.divf %712, %713 : vector<5x1xf32>
    %715 = vector.broadcast %714 : vector<5x1xf32> to vector<5x32xf32>
    %716 = arith.subf %708, %715 : vector<5x32xf32>
    %717 = arith.mulf %716, %716 : vector<5x32xf32>
    %cst_429 = arith.constant dense<0.000000e+00> : vector<5xf32>
    %718 = vector.multi_reduction <add>, %717, %cst_429 [1] : vector<5x32xf32> to vector<5xf32>
    %719 = vector.shape_cast %718 : vector<5xf32> to vector<5x1xf32>
    %cst_430 = arith.constant 3.200000e+01 : f32
    %720 = vector.broadcast %cst_430 : f32 to vector<5x1xf32>
    %721 = arith.divf %719, %720 : vector<5x1xf32>
    %722 = vector.broadcast %714 : vector<5x1xf32> to vector<5x32xf32>
    %723 = arith.subf %708, %722 : vector<5x32xf32>
    %cst_431 = arith.constant 9.99999997E-7 : f32
    %724 = vector.broadcast %cst_431 : f32 to vector<5x1xf32>
    %725 = arith.addf %721, %724 : vector<5x1xf32>
    %726 = math.rsqrt %725 : vector<5x1xf32>
    %727 = vector.broadcast %726 : vector<5x1xf32> to vector<5x32xf32>
    %728 = arith.mulf %723, %727 : vector<5x32xf32>
    %729 = vector.broadcast %709 : vector<1x32xf32> to vector<5x32xf32>
    %730 = arith.mulf %728, %729 : vector<5x32xf32>
    %731 = vector.broadcast %710 : vector<1x32xf32> to vector<5x32xf32>
    %732 = arith.addf %730, %731 : vector<5x32xf32>
    %c3_432 = arith.constant 3 : index
    %c0_433 = arith.constant 0 : index
    %c0_434 = arith.constant 0 : index
    %733 = vector.load %arg20[%c3_432, %c0_433, %c0_434] : memref<4x5x32xf32, #tpu.memory_space<vmem>>, vector<1x5x32xf32>
    %734 = vector.shape_cast %733 : vector<1x5x32xf32> to vector<5x32xf32>
    %735 = vector.shape_cast %732 : vector<5x32xf32> to vector<1x5x32xf32>
    tpu.vector_store %arg20[%c3_432, %c0_433, %c0_434], %735 {strides = array<i32>} : memref<4x5x32xf32, #tpu.memory_space<vmem>>, vector<1x5x32xf32>,
    return
  }
  func.func @transform_0(%arg0: i32) -> (i32, i32, i32) {
    %c0_i32 = arith.constant 0 : i32
    %c0_i32_0 = arith.constant 0 : i32
    %c0_i32_1 = arith.constant 0 : i32
    return %arg0, %c0_i32, %c0_i32_0 : i32, i32, i32
  }
  func.func @transform_1(%arg0: i32) -> (i32, i32) {
    %c0_i32 = arith.constant 0 : i32
    %c0_i32_0 = arith.constant 0 : i32
    %c0_i32_1 = arith.constant 0 : i32
    return %c0_i32, %c0_i32_0 : i32, i32
  }
  func.func @transform_2(%arg0: i32) -> (i32, i32) {
    %c0_i32 = arith.constant 0 : i32
    %c0_i32_0 = arith.constant 0 : i32
    %c0_i32_1 = arith.constant 0 : i32
    return %c0_i32, %c0_i32_0 : i32, i32
  }
  func.func @transform_3(%arg0: i32) -> (i32, i32, i32) {
    %c0_i32 = arith.constant 0 : i32
    %c0_i32_0 = arith.constant 0 : i32
    %c0_i32_1 = arith.constant 0 : i32
    %c0_i32_2 = arith.constant 0 : i32
    return %c0_i32, %c0_i32_0, %c0_i32_1 : i32, i32, i32
  }
  func.func @transform_4(%arg0: i32) -> (i32, i32, i32) {
    %c0_i32 = arith.constant 0 : i32
    %c0_i32_0 = arith.constant 0 : i32
    %c0_i32_1 = arith.constant 0 : i32
    %c0_i32_2 = arith.constant 0 : i32
    return %c0_i32, %c0_i32_0, %c0_i32_1 : i32, i32, i32
  }
  func.func @transform_5(%arg0: i32) -> (i32, i32, i32) {
    %c0_i32 = arith.constant 0 : i32
    %c0_i32_0 = arith.constant 0 : i32
    %c0_i32_1 = arith.constant 0 : i32
    %c0_i32_2 = arith.constant 0 : i32
    return %c0_i32, %c0_i32_0, %c0_i32_1 : i32, i32, i32
  }
  func.func @transform_6(%arg0: i32) -> (i32, i32, i32) {
    %c0_i32 = arith.constant 0 : i32
    %c0_i32_0 = arith.constant 0 : i32
    %c0_i32_1 = arith.constant 0 : i32
    %c0_i32_2 = arith.constant 0 : i32
    return %c0_i32, %c0_i32_0, %c0_i32_1 : i32, i32, i32
  }
  func.func @transform_7(%arg0: i32) -> (i32, i32, i32) {
    %c0_i32 = arith.constant 0 : i32
    %c0_i32_0 = arith.constant 0 : i32
    %c0_i32_1 = arith.constant 0 : i32
    %c0_i32_2 = arith.constant 0 : i32
    return %c0_i32, %c0_i32_0, %c0_i32_1 : i32, i32, i32
  }
  func.func @transform_8(%arg0: i32) -> (i32, i32, i32) {
    %c0_i32 = arith.constant 0 : i32
    %c0_i32_0 = arith.constant 0 : i32
    %c0_i32_1 = arith.constant 0 : i32
    %c0_i32_2 = arith.constant 0 : i32
    return %c0_i32, %c0_i32_0, %c0_i32_1 : i32, i32, i32
  }
  func.func @transform_9(%arg0: i32) -> (i32, i32, i32) {
    %c0_i32 = arith.constant 0 : i32
    %c0_i32_0 = arith.constant 0 : i32
    %c0_i32_1 = arith.constant 0 : i32
    %c0_i32_2 = arith.constant 0 : i32
    return %c0_i32, %c0_i32_0, %c0_i32_1 : i32, i32, i32
  }
  func.func @transform_10(%arg0: i32) -> (i32, i32) {
    %c0_i32 = arith.constant 0 : i32
    %c0_i32_0 = arith.constant 0 : i32
    %c0_i32_1 = arith.constant 0 : i32
    return %c0_i32, %c0_i32_0 : i32, i32
  }
  func.func @transform_11(%arg0: i32) -> (i32, i32) {
    %c0_i32 = arith.constant 0 : i32
    %c0_i32_0 = arith.constant 0 : i32
    %c0_i32_1 = arith.constant 0 : i32
    return %c0_i32, %c0_i32_0 : i32, i32
  }
  func.func @transform_12(%arg0: i32) -> (i32, i32) {
    %c0_i32 = arith.constant 0 : i32
    %c0_i32_0 = arith.constant 0 : i32
    %c0_i32_1 = arith.constant 0 : i32
    return %c0_i32, %c0_i32_0 : i32, i32
  }
  func.func @transform_13(%arg0: i32) -> (i32, i32) {
    %c0_i32 = arith.constant 0 : i32
    %c0_i32_0 = arith.constant 0 : i32
    %c0_i32_1 = arith.constant 0 : i32
    return %c0_i32, %c0_i32_0 : i32, i32
  }
  func.func @transform_14(%arg0: i32) -> (i32, i32) {
    %c0_i32 = arith.constant 0 : i32
    %c0_i32_0 = arith.constant 0 : i32
    %c0_i32_1 = arith.constant 0 : i32
    return %c0_i32, %c0_i32_0 : i32, i32
  }
  func.func @transform_15(%arg0: i32) -> (i32, i32) {
    %c0_i32 = arith.constant 0 : i32
    %c0_i32_0 = arith.constant 0 : i32
    %c0_i32_1 = arith.constant 0 : i32
    return %c0_i32, %c0_i32_0 : i32, i32
  }
  func.func @transform_16(%arg0: i32) -> (i32, i32) {
    %c0_i32 = arith.constant 0 : i32
    %c0_i32_0 = arith.constant 0 : i32
    %c0_i32_1 = arith.constant 0 : i32
    return %c0_i32, %c0_i32_0 : i32, i32
  }
  func.func @transform_17(%arg0: i32) -> (i32, i32) {
    %c0_i32 = arith.constant 0 : i32
    %c0_i32_0 = arith.constant 0 : i32
    %c0_i32_1 = arith.constant 0 : i32
    return %c0_i32, %c0_i32_0 : i32, i32
  }
  func.func @transform_18(%arg0: i32) -> (i32, i32) {
    %c0_i32 = arith.constant 0 : i32
    %c0_i32_0 = arith.constant 0 : i32
    %c0_i32_1 = arith.constant 0 : i32
    return %c0_i32, %c0_i32_0 : i32, i32
  }
  func.func @transform_19(%arg0: i32) -> (i32, i32, i32) {
    %c0_i32 = arith.constant 0 : i32
    %c0_i32_0 = arith.constant 0 : i32
    %c0_i32_1 = arith.constant 0 : i32
    return %arg0, %c0_i32, %c0_i32_0 : i32, i32, i32
  }
}

module attributes {stable_mosaic.version = 11 : i64} {
  func.func @kern(%arg0: i32, %arg1: memref<2x192xf32, #tpu.memory_space<vmem>>, %arg2: memref<1x192xf32, #tpu.memory_space<vmem>>, %arg3: memref<1x192xf32, #tpu.memory_space<vmem>>, %arg4: memref<2x192xf32, #tpu.memory_space<vmem>>) attributes {dimension_semantics = [#tpu.dimension_semantics<arbitrary>], iteration_bounds = array<i64: 1>, scalar_prefetch = 0 : i64, scratch_operands = 0 : i64, tpu.core_type = #tpu.core_type<tc>, window_params = [{pipeline_mode = #tpu.pipeline_mode<synchronous>, transform_indices = @transform_0, window_bounds = array<i64: 2, 192>}, {pipeline_mode = #tpu.pipeline_mode<synchronous>, transform_indices = @transform_1, window_bounds = array<i64: 1, 192>}, {pipeline_mode = #tpu.pipeline_mode<synchronous>, transform_indices = @transform_2, window_bounds = array<i64: 1, 192>}, {pipeline_mode = #tpu.pipeline_mode<synchronous>, transform_indices = @transform_3, window_bounds = array<i64: 2, 192>}]} {
    %c0 = arith.constant 0 : index
    %c0_0 = arith.constant 0 : index
    %0 = vector.load %arg1[%c0, %c0_0] : memref<2x192xf32, #tpu.memory_space<vmem>>, vector<2x192xf32>
    %c0_1 = arith.constant 0 : index
    %c0_2 = arith.constant 0 : index
    %1 = vector.load %arg2[%c0_1, %c0_2] : memref<1x192xf32, #tpu.memory_space<vmem>>, vector<1x192xf32>
    %2 = vector.broadcast %1 : vector<1x192xf32> to vector<2x192xf32>
    %3 = arith.mulf %0, %2 : vector<2x192xf32>
    %c0_3 = arith.constant 0 : index
    %c0_4 = arith.constant 0 : index
    %4 = vector.load %arg3[%c0_3, %c0_4] : memref<1x192xf32, #tpu.memory_space<vmem>>, vector<1x192xf32>
    %5 = vector.broadcast %4 : vector<1x192xf32> to vector<2x192xf32>
    %6 = arith.addf %3, %5 : vector<2x192xf32>
    %c0_5 = arith.constant 0 : index
    %c0_6 = arith.constant 0 : index
    %7 = vector.load %arg4[%c0_5, %c0_6] : memref<2x192xf32, #tpu.memory_space<vmem>>, vector<2x192xf32>
    tpu.vector_store %arg4[%c0_5, %c0_6], %6 {strides = array<i32>} : memref<2x192xf32, #tpu.memory_space<vmem>>, vector<2x192xf32>,
    return
  }
  func.func @transform_0(%arg0: i32) -> (i32, i32) {
    %c0_i32 = arith.constant 0 : i32
    %c0_i32_0 = arith.constant 0 : i32
    %c0_i32_1 = arith.constant 0 : i32
    return %c0_i32, %c0_i32_0 : i32, i32
  }
  func.func @transform_1(%arg0: i32) -> (i32, i32) {
    %c0_i32 = arith.constant 0 : i32
    %c0_i32_0 = arith.constant 0 : i32
    %c0_i32_1 = arith.constant 0 : i32
    return %c0_i32, %c0_i32_0 : i32, i32
  }
  func.func @transform_2(%arg0: i32) -> (i32, i32) {
    %c0_i32 = arith.constant 0 : i32
    %c0_i32_0 = arith.constant 0 : i32
    %c0_i32_1 = arith.constant 0 : i32
    return %c0_i32, %c0_i32_0 : i32, i32
  }
  func.func @transform_3(%arg0: i32) -> (i32, i32) {
    %c0_i32 = arith.constant 0 : i32
    %c0_i32_0 = arith.constant 0 : i32
    %c0_i32_1 = arith.constant 0 : i32
    return %c0_i32, %c0_i32_0 : i32, i32
  }
}

</mosaic_0001>

<bundles_post_ra>
// kernel: forward.5
= control target key start
LH: loop header
LB: loop body
LE: loop exit
PB: predicated region body
PF: predicated region fallthrough
CT: control target
= control target key end

     0   :  { %vm31_vm0 = vcmask 392192   ;;  %vm129_vm1 = vcmask 261120   ;;  %s258_s1 = inlined_call_operand.vmem [shape: f32[48,32], index: 1, kind: input, shape index: {}]   ;;  %s259_s0 = inlined_call_operand.vmem [shape: f32[32,48], index: 0, kind: input, shape index: {}]   ;;  %s260_s2 = inlined_call_operand.vmem [shape: f32[1,32], index: 2, kind: input, shape index: {}]   ;;  %s261_s3 = inlined_call_operand.vmem [shape: f32[32,32], index: 3, kind: output, shape index: {}]  }
   0x1   :  { %v18_v0 = vld [vmem:[%s258_s1] sm:$0xff]  ;;  %v19_v1 = vld [vmem:[%s258_s1 + $0x8] sm:$0xff]  ;;  %v20_v2 = vld [vmem:[%s258_s1 + $0x10] sm:$0xff] }
   0x2   :  { %v171_v3 = vpack.c.bf16 %v19_v1, %v18_v0  ;;  %v21_v4 = vld [vmem:[%s258_s1 + $0x18] sm:$0xff]  ;;  %v22_v6 = vld [vmem:[%s258_s1 + $0x20] sm:$0xff]  ;;  %v23_v7 = vld [vmem:[%s258_s1 + $0x28] sm:$0xff] }
   0x3   :  { %v175_v5 = vpack.c.bf16 %v21_v4, %v20_v2  ;;  %v14_v8 = vld [vmem:[%s259_s0] sm:$0xff]  ;;  %v16_v9 = vld [vmem:[%s259_s0 + $0x10] sm:$0xff]  ;;  %v179_v10 = vpack.c.bf16 %v23_v7, %v22_v6  ;;  %v15_v11 = vld [vmem:[%s259_s0 + $0x8] sm:$0xff] }
   0x4   :  { %172 = vmatprep.subr.bf16.mxu0 %v171_v3  ;;  %183 = vmatprep.subr.bf16.mxu1 %v171_v3  ;;  %v17_v12 = vld [vmem:[%s259_s0 + $0x18] sm:$0xff]  ;;  %v138_v13 = vld [vmem:[%s260_s2] ss:$0 sm:$0xff] }
   0x5   :  { %174 = vmatpush3.bf16.msra.mxu0 %v171_v3  ;;  %186 = vmatpush3.bf16.msra.mxu1 %v171_v3 }
   0x6   :  { %176 = vmatprep.subr.bf16.mxu0 %v175_v5  ;;  %184 = vmatprep.subr.bf16.mxu1 %v175_v5 }
   0x7   :  { %165 = vmatprep.mubr.msk.f32.mxu0 %vm31_vm0, %v14_v8  ;;  %168 = vmatprep.mubr.msk.f32.mxu1 %vm31_vm0, %v16_v9 }
   0x9   :  { %178 = vmatpush3.bf16.msra.mxu0 %v175_v5  ;;  %187 = vmatpush3.bf16.msra.mxu1 %v175_v5 }
   0xa   :  { %180 = vmatprep.subr.bf16.mxu0 %v179_v10  ;;  %185 = vmatprep.subr.bf16.mxu1 %v179_v10 }
   0xd   :  { %182 = vmatpush3.bf16.msra.mxu0 %v179_v10  ;;  %188 = vmatpush3.bf16.msra.mxu1 %v179_v10 }
  0x10   :  { %166 = vmatmul.mubr.msk.f32.vlgmr.msra.gmra.mrb[0].mxu0 %vm31_vm0, %v15_v11  ;;  %169 = vmatmul.mubr.msk.f32.vlgmr.msra.gmra.mrb[0].mxu1 %vm31_vm0, %v17_v12 }
  0xe3   :  { %v167_v14 = vpop.f32.mrb[0].mxu0  ;;  %v170_v15 = vpop.f32.mrb[0].mxu1 }
  0xe4   :  { %v116_v16 = vadd.f32 %v167_v14, %v138_v13  ;;  %v126_v17 = vadd.f32 %v170_v15, %v138_v13  ;;  %v110_v18 = vpop.f32.mrb[1].mxu0  ;;  %v120_v19 = vpop.f32.mrb[1].mxu1 }
  0xe5   :  { %v111_v20 = vadd.f32 %v138_v13, %v110_v18  ;;  %v121_v21 = vadd.f32 %v138_v13, %v120_v19 }
  0xe6   :  { %131 = vst.msk [vmem:[%s261_s3 + $0x8] sm:$0xff] %vm129_vm1, %v116_v16  ;;  %133 = vst.msk [vmem:[%s261_s3 + $0x18] sm:$0xff] %vm129_vm1, %v126_v17 }
  0xe7   :  { %130 = vst.msk [vmem:[%s261_s3] sm:$0xff] %vm129_vm1, %v111_v20  ;;  %132 = vst.msk [vmem:[%s261_s3 + $0x10] sm:$0xff] %vm129_vm1, %v121_v21 }

// kernel: forward.9
= control target key start
LH: loop header
LB: loop body
LE: loop exit
PB: predicated region body
PF: predicated region fallthrough
CT: control target
= control target key end

     0   :  { %v18_v0 = vlaneseq  ;;  %v100_v1 = vmov 1983009808   ;;  %s143_s0 = inlined_call_operand.vmem [shape: f32[2,192], index: 0, kind: input, shape index: {}]   ;;  %s144_s1 = inlined_call_operand.vmem [shape: f32[1,192], index: 1, kind: input, shape index: {}]   ;;  %s145_s2 = inlined_call_operand.vmem [shape: f32[1,192], index: 2, kind: input, shape index: {}]   ;;  %s146_s3 = inlined_call_operand.hbm [shape: f32[2,192], index: 3, kind: output, shape index: {}]  }
   0x1   :  { %v28_v2 = vunpack.c.l.s4 %v100_v1 }
   0x2   :  { %8 = vsyncpa [#allocation3], 0  ;;  %v19_v3 = vshrl.u32 %v18_v0, 7  ;;  %v16_v4 = vld [vmem:[%s144_s1] sm:$0x3]  ;;  %vm56_vm0 = vcmask 1041408  }
   0x3   :  { %v29_v5 = vunpack.c.0.s8 %v28_v2  ;;  %v36_v6 = vld [vmem:[%s145_s2] sm:$0x3]  ;;  %vm57_vm1 = vcmask 519170   ;;  %s101_s1 = smov [#allocation2]  }
   0x4   :  { %v20_v7 = vsub.s32 0, %v19_v3  ;;  %v24_v8 = vsub.s32 1, %v19_v3  ;;  %v15_v16 = vld [vmem:[%s143_s0] sm:$0xf]  ;;  %s66_s18 = sshll.u32 %s101_s1, 4  ;;  %vm58_vm2 = vmor %vm57_vm1, %vm56_vm0  ;;  %s67_s18 = int_to_ptr.vmem [resolvable:$true] %s66_s18 }
   0x5   :  { %v32_v9 = vsub.s32 %v29_v5, %v19_v3  ;;  %s76_s2 = scalar_lea.vmem %s67_s18, 64  ;;  %p81_p1 = scmp.lt.s32.totalorder %s67_s18, %s67_s18 }
   0x6   :  { %v21_v10 = vrot.slane %v16_v4, %v20_v7  ;;  %v25_v11 = vrot.slane %v16_v4, %v24_v8  ;;  %v41_v12 = vrot.slane %v36_v6, %v20_v7  ;;  %v45_v13 = vrot.slane %v36_v6, %v24_v8  ;;  %p77_p0 = scmp.ne.s32.totalorder %s67_s18, %s76_s2  ;;  %p82_p2 = scmp.lt.s32.totalorder %s76_s2, %s76_s2 }
   0x8   :  { %v26_v14 = vcombine.low %v21_v10, %v25_v11  ;;  %v46_v15 = vcombine.low %v41_v12, %v45_v13  ;;  %p83_p3 = por %p82_p2, %p81_p1 }
   0xa   :  { %v33_v17 = vrot.slane %v26_v14, %v32_v9  ;;  %v53_v18 = vrot.slane %v46_v15, %v32_v9  ;;  %p84_p4 = pnand %p83_p3, %p77_p0 }
   0xc   :  { %v35_v19 = vmul.f32 %v33_v17, %v15_v16 }
   0xe   :  { %v55_v20 = vadd.f32 %v53_v18, %v35_v19 }
  0x10   :  { %59 = vst.msk [vmem:[#allocation2] sm:$0xf] %vm58_vm2, %v55_v20 }
  0x11   :  { %87 = shalt.err (!%p84_p4)
}
  0x12   :  { %s88_s20 = scalar_lea.hbm %s146_s3, 64 }
  0x13   :  { %p89_p5 = scmp.ne.s32.totalorder %s146_s3, %s88_s20  ;;  %p92_p6 = scmp.lt.u32.totalorder %s88_s20, %s146_s3 }
  0x15   :  { %p94_p7 = pnand %p92_p6, %p89_p5 }
  0x17   :  { %97 = shalt.err (!%p94_p7)
}
  0x18   :  { %69 = dma.vmem_to_hbm [thread:$0]  %s67_s18, 64, %s146_s3, [#allocation3]  }
  0x19   :  { %98 = dma.done.wait [#allocation3], 64  }
  0x1a   :  { %99 = vsyncadd [#allocation3], 4294967232 }
  0x1b   :  { %73 = vsyncpa [#allocation3], 1 }

// kernel: forward.7
= control target key start
LH: loop header
LB: loop body
LE: loop exit
PB: predicated region body
PF: predicated region fallthrough
CT: control target
= control target key end

     0   :  { %s3465_s0 = inlined_call_operand.vmem [shape: f32[2,17,32], index: 0, kind: input, shape index: {}]   ;;  %s3466_s1 = inlined_call_operand.vmem [shape: f32[1,32], index: 1, kind: input, shape index: {}]   ;;  %s3467_s2 = inlined_call_operand.vmem [shape: f32[1,32], index: 2, kind: input, shape index: {}]   ;;  %s3468_s3 = inlined_call_operand.vmem [shape: f32[2,32,16], index: 3, kind: input, shape index: {}]   ;;  %s3469_s4 = inlined_call_operand.vmem [shape: f32[2,1,16], index: 4, kind: input, shape index: {}]   ;;  %s3470_s5 = inlined_call_operand.vmem [shape: f32[2,32,16], index: 5, kind: input, shape index: {}]   ;;  %s3471_s6 = inlined_call_operand.vmem [shape: f32[2,1,16], index: 6, kind: input, shape index: {}]   ;;  %s3472_s7 = inlined_call_operand.vmem [shape: f32[2,32,16], index: 7, kind: input, shape index: {}]   ;;  %s3473_s8 = inlined_call_operand.vmem [shape: f32[2,1,16], index: 8, kind: input, shape index: {}]   ;;  %s3474_s9 = inlined_call_operand.vmem [shape: f32[2,16,32], index: 9, kind: input, shape index: {}]   ;;  %s3475_s10 = inlined_call_operand.vmem [shape: f32[1,32], index: 10, kind: input, shape index: {}]   ;;  %s3476_s11 = inlined_call_operand.vmem [shape: f32[1,32], index: 11, kind: input, shape index: {}]   ;;  %s3477_s12 = inlined_call_operand.vmem [shape: f32[1,32], index: 12, kind: input, shape index: {}]   ;;  %s3478_s13 = inlined_call_operand.vmem [shape: f32[32,128], index: 13, kind: input, shape index: {}]   ;;  %s3479_s14 = inlined_call_operand.vmem [shape: f32[1,128], index: 14, kind: input, shape index: {}]   ;;  %s3480_s15 = inlined_call_operand.vmem [shape: f32[128,32], index: 15, kind: input, shape index: {}]   ;;  %s3481_s16 = inlined_call_operand.vmem [shape: f32[1,32], index: 16, kind: input, shape index: {}]   ;;  %s3482_s17 = inlined_call_operand.vmem [shape: f32[1,32], index: 17, kind: input, shape index: {}]   ;;  %s3483_s18 = inlined_call_operand.vmem [shape: f32[1,32], index: 18, kind: input, shape index: {}]   ;;  %s3484_s19 = inlined_call_operand.vmem [shape: f32[2,17,32], index: 19, kind: output, shape index: {}]  }
   0x1   :  { %3486 = sst [smem:[#allocation2_spill]] %s3465_s0  ;;  %s2987_s0 = smov 0  }
   0x2   :  { %3487 = sst [smem:[#allocation3_spill]] %s3466_s1 }
   0x3   :  { %3488 = sst [smem:[#allocation4_spill]] %s3467_s2 }
   0x4   :  { %3489 = sst [smem:[#allocation5_spill]] %s3468_s3 }
   0x5 LB: > { %s2294_s30 = sadd.s32 4294967295, %s2882_s0   ;;  %p2298_p0 = scmp.ge.s32.totalorder %s2882_s0, 1  ;;  %s2882_s0 = sphi %s2987_s0, %s29_s0  }
   0x6   : > { %p537_p1 = scmp.lt.s32.totalorder %s2882_s0, 3 }
   0x8   : > { %p538_p2 = pnand %p2298_p0, %p537_p1 }
   0x9   : > { %p593_p3 = scmp.lt.s32.totalorder (!%p538_p2), %s2294_s30, 1  ;;  %vm608_vm0 = vcmask (!%p538_p2), 261120   ;;  %vm615_vm1 = vcmask (!%p538_p2), 253952   ;;  %s3490_s22 = sld [smem:[#allocation2_spill]] (!%p538_p2)  ;;  %v2884_v24 = vmov (!%p538_p2), 0.0|0.0   ;;  %vm2885_vm2 = vmmov (!%p538_p2), 0  }
   0xa   : > { %541 = sbr.rel (%p538_p2) target bundleno = 3608 (0xe18), region = 96  ;;  %s3491_s25 = sld [smem:[#allocation5_spill]] (!%p538_p2)  ;;  %2730 = vmatprep.subr.bf16.mxu0 (!%p538_p2), %v2884_v24  ;;  %2748 = vmatprep.subr.bf16.mxu1 (!%p538_p2), %v2884_v24  ;;  %v2886_v28 = vmov (!%p538_p2), 0.0   ;;  %v776_v41 = vld [vmem:[%s3470_s5] sm:$0xff] (!%p538_p2)  ;;  %v777_v42 = vld [vmem:[%s3470_s5 + $0x8] sm:$0xff] (!%p538_p2)  ;;  %v778_v51 = vld [vmem:[%s3470_s5 + $0x10] sm:$0xff] (!%p538_p2) }
   0xb   : > { %2492 = vmatprep.mubr.msk.f32.mxu0 (!%p538_p2), %vm2885_vm2, %v2886_v28  ;;  %2541 = vmatprep.mubr.msk.f32.mxu1 (!%p538_p2), %vm2885_vm2, %v2886_v28  ;;  %s3493_s29 = sld [smem:[#allocation4_spill]] (!%p538_p2)  ;;  %v2737_v46 = vpack.c.bf16 (!%p538_p2), %v777_v42, %v776_v41  ;;  %v779_v52 = vld [vmem:[%s3470_s5 + $0x18] sm:$0xff] (!%p538_p2)  ;;  %v867_v58 = vld [vmem:[%s3472_s7] sm:$0xff] (!%p538_p2)  ;;  %v868_v59 = vld [vmem:[%s3472_s7 + $0x8] sm:$0xff] (!%p538_p2)  ;;  %vm958_vm3 = vcmask (!%p538_p2), 130048   ;;  %vm1104_vm5 = vcmask (!%p538_p2), 1040384  }
   0xc   : > { %v2740_v54 = vpack.c.bf16 (!%p538_p2), %v779_v52, %v778_v51  ;;  %v2743_v60 = vpack.c.bf16 (!%p538_p2), %v868_v59, %v867_v58  ;;  %v869_v61 = vld [vmem:[%s3472_s7 + $0x10] sm:$0xff] (!%p538_p2)  ;;  %v870_v62 = vld [vmem:[%s3472_s7 + $0x18] sm:$0xff] (!%p538_p2)  ;;  %vm3122_vm4 = vmpackc.low (!%p538_p2), %vm958_vm3, %vm958_vm3  ;;  %vm1060_vm6 = vcmask (!%p538_p2), 138240   ;;  %vm1067_vm7 = vcmask (!%p538_p2), 131072  }
   0xd   : > { %v2746_v63 = vpack.c.bf16 (!%p538_p2), %v870_v62, %v869_v61 }
  0x10   : > { %v676_v21 = vld [vmem:[%s3491_s25] sm:$0xff] (!%p538_p2)  ;;  %v677_v22 = vld [vmem:[%s3491_s25 + $0x8] sm:$0xff] (!%p538_p2)  ;;  %v678_v25 = vld [vmem:[%s3491_s25 + $0x10] sm:$0xff] (!%p538_p2) }
  0x11   : > { %s3497_s30 = smov (!%p593_p3, %s2294_s30), 1  ;;  %v2731_v23 = vpack.c.bf16 %v677_v22, %v676_v21  ;;  %v679_v26 = vld [vmem:[%s3491_s25 + $0x18] sm:$0xff]  ;;  %v2302_v43 = vld [vmem:[%s3493_s29] ss:$0 sm:$0xff] }
  0x12   : > { %s2816_s20 = smul.u32 24, %s3497_s30  ;;  %v2734_v27 = vpack.c.bf16 %v679_v26, %v678_v25  ;;  %v2312_v22 = vld [vmem:[%s3473_s8] ss:$0 sm:$0xff] }
  0x13   : > { %2732 = vmatpush3.bf16.msra.mxu0 %v2731_v23  ;;  %v2304_v23 = vld [vmem:[%s3469_s4] ss:$0 sm:$0xff] }
  0x14   : > { %s597_s2 = scalar_lea.vmem %s3490_s22, %s2816_s20  ;;  %2733 = vmatprep.subr.bf16.mxu0 %v2884_v24  ;;  %s602_s22 = scalar_lea.vmem %s3484_s19, %s2816_s20 }
  0x15   : > { %v3003_v0 = vld [vmem:[%s597_s2] sm:$0xff]  ;;  %v3005_v1 = vld [vmem:[%s597_s2 + $0x10] sm:$0x1]  ;;  %v3007_v2 = vld [vmem:[%s597_s2 + $0x8] sm:$0xff]  ;;  %s3492_s2 = sld [smem:[#allocation3_spill]] }
  0x16   : > { %v609_v3 = vsel %vm608_vm0, %v3003_v0, 0.0  ;;  %v616_v4 = vsel %vm615_vm1, %v3005_v1, 0.0  ;;  %v612_v5 = vsel %vm608_vm0, %v3007_v2, 0.0 }
  0x17   : > { %610 = vadd.xlane.f32.xlu0 %v609_v3  ;;  %617 = vadd.xlane.f32.xlu1 %v616_v4 }
  0x18   : > { %2735 = vmatpush3.bf16.msra.mxu0 %v2734_v27 }
  0x19   : > { %2736 = vmatprep.subr.bf16.mxu0 %v2884_v24 }
  0x1b   : > { %613 = vadd.xlane.f32.xlu0 %v612_v5  ;;  %v2301_v39 = vld [vmem:[%s3492_s2] ss:$0 sm:$0xff] }
  0xa4   : > { %v611_v6 = vpop.xlane.xlu0 %610  ;;  %v618_v7 = vpop.xlane.xlu1 %617 }
  0xa5   : > { %v620_v8 = vmul.f32 0.03125, %v611_v6  ;;  %v622_v9 = vmul.f32 0.03125, %v618_v7 }
  0xa7   : > { %v623_v10 = vsub.f32 %v3003_v0, %v620_v8  ;;  %v625_v11 = vsub.f32 %v3005_v1, %v622_v9 }
  0xa8   : > { %v614_v12 = vpop.xlane.xlu0 %613 }
  0xa9   : > { %v621_v13 = vmul.f32 0.03125, %v614_v12  ;;  %v626_v14 = vmul.f32 %v623_v10, %v623_v10  ;;  %v628_v15 = vmul.f32 %v625_v11, %v625_v11 }
  0xab   : > { %v624_v16 = vsub.f32 %v3007_v2, %v621_v13  ;;  %v629_v17 = vsel %vm608_vm0, %v626_v14, 0.0  ;;  %v635_v18 = vsel %vm615_vm1, %v628_v15, 0.0 }
  0xac   : > { %630 = vadd.xlane.f32.xlu1 %v629_v17 }
  0xad   : > { %v627_v19 = vmul.f32 %v624_v16, %v624_v16 }
  0xaf   : > { %v632_v20 = vsel %vm608_vm0, %v627_v19, 0.0 }
  0xb0   : > { %636 = vadd.xlane.f32.xlu1 %v635_v18  ;;  %633 = vadd.xlane.f32.xlu0 %v632_v20 }
 0x139   : > { %v631_v29 = vpop.xlane.xlu1 %630 }
 0x13a   : > { %v638_v30 = vmul.f32 0.03125, %v631_v29 }
 0x13c   : > { %v641_v31 = vadd.f32 1e-06, %v638_v30 }
 0x13d   : > { %v637_v32 = vpop.xlane.xlu1 %636  ;;  %v634_v33 = vpop.xlane.xlu0 %633 }
 0x13e   : > { %2828 = vrsqrt.f32 %v641_v31  ;;  %v640_v34 = vmul.f32 0.03125, %v637_v32  ;;  %v639_v35 = vmul.f32 0.03125, %v634_v33 }
 0x140   : > { %v643_v36 = vadd.f32 1e-06, %v640_v34  ;;  %v642_v37 = vadd.f32 1e-06, %v639_v35 }
 0x142   : > { %2830 = vrsqrt.f32 %v643_v36 }
 0x143   : > { %2832 = vrsqrt.f32 %v642_v37 }
 0x148   : > { %v2829_v38 = vpop.eup %2828 }
 0x149   : > { %v647_v40 = vmul.f32 %v2829_v38, %v623_v10 }
 0x14b   : > { %v656_v44 = vmul.f32 %v2301_v39, %v647_v40 }
 0x14c   : > { %v2831_v45 = vpop.eup %2830 }
 0x14d   : > { %v2833_v47 = vpop.eup %2832  ;;  %v3053_v48 = vadd.f32 %v2302_v43, %v656_v44  ;;  %v649_v49 = vmul.f32 %v2831_v45, %v625_v11  ;;  %v2308_v11 = vld [vmem:[%s3471_s6] ss:$0 sm:$0xff] }
 0x14e   : > { %v648_v50 = vmul.f32 %v2833_v47, %v624_v16 }
 0x14f   : > { %2493 = vmatmul.mubr.msk.f32.vlgmr.msra.gmra.mrb[0].mxu0 %vm608_vm0, %v3053_v48  ;;  %v658_v55 = vmul.f32 %v2301_v39, %v649_v49 }
 0x150   : > { %v657_v53 = vmul.f32 %v2301_v39, %v648_v50  ;;  %2495 = vmatprep.mubr.msk.f32.mxu0 %vm2885_vm2, %v2886_v28  ;;  %2738 = vmatpush3.bf16.msra.mxu0 %v2737_v46 }
 0x151   : > { %2739 = vmatprep.subr.bf16.mxu0 %v2884_v24  ;;  %v3072_v57 = vadd.f32 %v2302_v43, %v658_v55 }
 0x152   : > { %v3066_v56 = vadd.f32 %v2302_v43, %v657_v53 }
 0x154   : > { %2496 = vmatmul.mubr.msk.f32.gmra.mrb[2].mxu0 %vm608_vm0, %v3066_v56 }
 0x155   : > { %2498 = vmatprep.mubr.msk.f32.mxu0 %vm2885_vm2, %v2886_v28  ;;  %2741 = vmatpush3.bf16.msra.mxu0 %v2740_v54 }
 0x156   : > { %2742 = vmatprep.subr.bf16.mxu0 %v2884_v24 }
 0x158   : > { %2499 = vmatmul.mubr.msk.f32.gmra.mrb[4].mxu0 %vm608_vm0, %v3072_v57 }
 0x159   : > { %2509 = vmatprep.mubr.msk.f32.mxu0 %vm2885_vm2, %v2886_v28 }
 0x15c   : > { %2510 = vmatmul.mubr.msk.f32.vlgmr.msra.gmra.mrb[6].mxu0 %vm608_vm0, %v3053_v48 }
 0x15d   : > { %2512 = vmatprep.mubr.msk.f32.mxu0 %vm2885_vm2, %v2886_v28  ;;  %2744 = vmatpush3.bf16.msra.mxu0 %v2743_v60 }
 0x15e   : > { %2745 = vmatprep.subr.bf16.mxu0 %v2884_v24 }
 0x160   : > { %2513 = vmatmul.mubr.msk.f32.gmra.mrb[8].mxu0 %vm608_vm0, %v3066_v56 }
 0x161   : > { %2515 = vmatprep.mubr.msk.f32.mxu0 %vm2885_vm2, %v2886_v28  ;;  %2747 = vmatpush3.bf16.msra.mxu0 %v2746_v63 }
 0x162   : > { %2752 = vmatprep.subr.bf16.mxu0 %v2884_v24 }
 0x164   : > { %2516 = vmatmul.mubr.msk.f32.gmra.mrb[10].mxu0 %vm608_vm0, %v3072_v57 }
 0x165   : > { %2526 = vmatprep.mubr.msk.f32.mxu0 %vm2885_vm2, %v2886_v28 }
 0x168   : > { %2527 = vmatmul.mubr.msk.f32.vlgmr.msra.gmra.mrb[12].mxu0 %vm608_vm0, %v3053_v48 }
 0x169   : > { %2529 = vmatprep.mubr.msk.f32.mxu0 %vm2885_vm2, %v2886_v28 }
 0x16c   : > { %2530 = vmatmul.mubr.msk.f32.gmra.mrb[14].mxu0 %vm608_vm0, %v3066_v56 }
 0x16d   : > { %2532 = vmatprep.mubr.msk.f32.mxu0 %vm2885_vm2, %v2886_v28 }
 0x170   : > { %2533 = vmatmul.mubr.msk.f32.gmra.mrb[16].mxu0 %vm608_vm0, %v3072_v57 }
 0x171   : > { %2556 = vmatprep.mubr.msk.f32.mxu0 %vm2885_vm2, %v2886_v28 }
 0x222   : > { %v762_v3 = vpop.f32.mrb[0].mxu0 }
 0x223   : > { %v2494_v4 = vpop.f32.mrb[1].mxu0  ;;  %v763_v31 = vadd.f32 %v2304_v23, %v762_v3 }
 0x227   : > { %v767_v5 = vpop.f32.mrb[2].mxu0 }
 0x228   : > { %v2497_v6 = vpop.f32.mrb[3].mxu0  ;;  %v768_v35 = vadd.f32 %v2304_v23, %v767_v5 }
 0x22b   : > { %v772_v7 = vpop.f32.mrb[4].mxu0 }
 0x22c   : > { %v2500_v8 = vpop.f32.mrb[5].mxu0  ;;  %v773_v37 = vadd.f32 %v2304_v23, %v772_v7  ;;  %v1188_v7 = vld [vmem:[%s3474_s9] sm:$0xff] }
 0x22d   : > { %v1189_v8 = vld [vmem:[%s3474_s9 + $0x8] sm:$0xff] }
 0x22f   : > { %v853_v9 = vpop.f32.mrb[6].mxu0 }
 0x230   : > { %v2511_v10 = vpop.f32.mrb[7].mxu0  ;;  %v854_v13 = vadd.f32 %v2308_v11, %v853_v9  ;;  %v2756_v9 = vpack.c.bf16 %v1189_v8, %v1188_v7 }
 0x233   : > { %v858_v12 = vpop.f32.mrb[8].mxu0 }
 0x234   : > { %v859_v14 = vadd.f32 %v2308_v11, %v858_v12  ;;  %v2514_v15 = vpop.f32.mrb[9].mxu0 }
 0x236   : > { %v2749_v17 = vpack.c.bf16 %v859_v14, %v854_v13  ;;  %v2329_v13 = vld [vmem:[%s3491_s25 + $0x20] sm:$0xff]  ;;  %v2330_v14 = vld [vmem:[%s3491_s25 + $0x28] sm:$0xff] }
 0x237   : > { %v863_v18 = vpop.f32.mrb[10].mxu0 }
 0x238   : > { %v2517_v19 = vpop.f32.mrb[11].mxu0  ;;  %2751 = vmatpush3.bf16.xpose.msk.msra.mxu1 %vm3122_vm4, %v2749_v17  ;;  %v864_v25 = vadd.f32 %v2308_v11, %v863_v18  ;;  %v2759_v17 = vpack.c.bf16 %v2330_v14, %v2329_v13 }
 0x239   : > { %2539 = vmatprep.subr.mxu1 %v2886_v28  ;;  %v2331_v19 = vld [vmem:[%s3491_s25 + $0x30] sm:$0xff] }
 0x23b   : > { %v944_v20 = vpop.f32.mrb[12].mxu0 }
 0x23c   : > { %v2528_v21 = vpop.f32.mrb[13].mxu0  ;;  %v945_v27 = vadd.f32 %v2312_v22, %v944_v20  ;;  %v2332_v20 = vld [vmem:[%s3491_s25 + $0x38] sm:$0xff] }
 0x23f   : > { %v949_v26 = vpop.f32.mrb[14].mxu0 }
 0x240   : > { %v950_v29 = vadd.f32 %v2312_v22, %v949_v26  ;;  %v2531_v30 = vpop.f32.mrb[15].mxu0  ;;  %2540 = vmatpush3.xpose.msk.msra.mxu1 %vm958_vm3, %v864_v25 }
 0x241   : > { %2755 = vmatprep.subr.bf16.mxu1 %v2884_v24 }
 0x242   : > { %v2753_v32 = vpack.c.bf16 %v950_v29, %v945_v27  ;;  %v2347_v27 = vld [vmem:[%s3472_s7 + $0x20] sm:$0xff]  ;;  %v2348_v29 = vld [vmem:[%s3472_s7 + $0x28] sm:$0xff] }
 0x243   : > { %v954_v33 = vpop.f32.mrb[16].mxu0  ;;  %2542 = vmatmul.mubr.msk.f32.vlgmr.msra.gmra.mrb[0].mxu1 %vm958_vm3, %v763_v31  ;;  %v2771_v30 = vpack.c.bf16 %v2348_v29, %v2347_v27  ;;  %v2349_v31 = vld [vmem:[%s3472_s7 + $0x30] sm:$0xff] }
 0x244   : > { %v2534_v34 = vpop.f32.mrb[17].mxu0  ;;  %2754 = vmatpush3.bf16.msra.mxu0 %v2753_v32  ;;  %2544 = vmatprep.mubr.msk.f32.mxu1 %vm2885_vm2, %v2886_v28  ;;  %v955_v36 = vadd.f32 %v2312_v22, %v954_v33  ;;  %v2762_v22 = vpack.c.bf16 %v2332_v20, %v2331_v19  ;;  %v2350_v32 = vld [vmem:[%s3472_s7 + $0x38] sm:$0xff]  ;;  %v2334_v19 = vld [vmem:[%s3469_s4 + $0x1] ss:$0 sm:$0xff] }
 0x245   : > { %2554 = vmatprep.subr.mxu0 %v2886_v28  ;;  %2757 = vmatpush3.bf16.msra.mxu1 %v2756_v9  ;;  %v2774_v33 = vpack.c.bf16 %v2350_v32, %v2349_v31  ;;  %v2338_v34 = vld [vmem:[%s3470_s5 + $0x20] sm:$0xff] }
 0x246   : > { %2764 = vmatprep.subr.bf16.mxu1 %v2884_v24 }
 0x247   : > { %2545 = vmatmul.mubr.msk.f32.gmra.mrb[2].mxu1 %vm958_vm3, %v768_v35  ;;  %v2339_v35 = vld [vmem:[%s3470_s5 + $0x28] sm:$0xff] }
 0x248   : > { %2555 = vmatpush3.msk.msra.mxu0 %vm1104_vm5, %v955_v36  ;;  %2547 = vmatprep.mubr.msk.f32.mxu1 %vm2885_vm2, %v2886_v28  ;;  %v2765_v36 = vpack.c.bf16 %v2339_v35, %v2338_v34 }
 0x249   : > { %2758 = vmatprep.subr.bf16.mxu0 %v2884_v24 }
 0x24b   : > { %2548 = vmatmul.mubr.msk.f32.gmra.mrb[4].mxu1 %vm958_vm3, %v773_v37  ;;  %v2340_v37 = vld [vmem:[%s3470_s5 + $0x30] sm:$0xff] }
 0x24c   : > { %2569 = vmatprep.mubr.msk.f32.mxu1 %vm2885_vm2, %v2886_v28 }
 0x316   : > { %v1043_v38 = vpop.f32.mrb[0].mxu1 }
 0x317   : > { %v1057_v39 = vmul.f32 0.25, %v1043_v38  ;;  %v2543_v40 = vpop.f32.mrb[1].mxu1  ;;  %v2341_v38 = vld [vmem:[%s3470_s5 + $0x38] sm:$0xff] }
 0x319   : > { %v1061_v41 = vsel %vm1060_vm6, %v1057_v39, -inf }
 0x31a   : > { %1062 = vmax.xlane.f32.xlu0 %v1061_v41  ;;  %v1048_v42 = vpop.f32.mrb[2].mxu1  ;;  %v2768_v41 = vpack.c.bf16 %v2341_v38, %v2340_v37 }
 0x31b   : > { %v1058_v43 = vmul.f32 0.25, %v1048_v42  ;;  %v2546_v44 = vpop.f32.mrb[3].mxu1 }
 0x31d   : > { %v1064_v45 = vsel %vm1060_vm6, %v1058_v43, -inf }
 0x31e   : > { %1065 = vmax.xlane.f32.xlu1 %v1064_v45  ;;  %v1053_v46 = vpop.f32.mrb[4].mxu1 }
 0x31f   : > { %v1059_v47 = vmul.f32 0.25, %v1053_v46  ;;  %v2549_v49 = vpop.f32.mrb[5].mxu1 }
 0x321   : > { %v1068_v50 = vsel %vm1067_vm7, %v1059_v47, -inf }
 0x322   : > { %1069 = vmax.xlane.f32.xlu0 %v1068_v50 }
 0x3a7   : > { %v1063_v51 = vpop.xlane.xlu0 %1062 }
 0x3a8   : > { %v1071_v52 = vsub.f32 %v1057_v39, %v1063_v51 }
 0x3aa   : > { %v1074_v53 = vmul.f32 1.442695, %v1071_v52 }
 0x3ab   : > { %v1066_v54 = vpop.xlane.xlu1 %1065 }
 0x3ac   : > { %2834 = vpow2.f32 %v1074_v53  ;;  %v1072_v55 = vsub.f32 %v1058_v43, %v1066_v54  ;;  %v2352_v54 = vld [vmem:[%s3473_s8 + $0x1] ss:$0 sm:$0xff] }
 0x3ae   : > { %v1076_v58 = vmul.f32 1.442695, %v1072_v55 }
 0x3af   : > { %v1070_v59 = vpop.xlane.xlu0 %1069 }
 0x3b0   : > { %2836 = vpow2.f32 %v1076_v58  ;;  %v1073_v60 = vsub.f32 %v1059_v47, %v1070_v59 }
 0x3b2   : > { %v1078_v61 = vmul.f32 1.442695, %v1073_v60 }
 0x3b4   : > { %2838 = vpow2.f32 %v1078_v61 }
 0x3b6   : > { %v2835_v62 = vpop.eup %2834 }
 0x3b7   : > { %v1080_v63 = vsel %vm1060_vm6, %v2835_v62, 0.0 }
 0x3b8   : > { %1081 = vadd.xlane.f32.xlu1 %v1080_v63 }
 0x3ba   : > { %v2837_v3 = vpop.eup %2836 }
 0x3bb   : > { %v1083_v4 = vsel %vm1060_vm6, %v2837_v3, 0.0 }
 0x3bc   : > { %1084 = vadd.xlane.f32.xlu0 %v1083_v4 }
 0x3be   : > { %v2839_v5 = vpop.eup %2838 }
 0x3bf   : > { %v1086_v6 = vsel %vm1067_vm7, %v2839_v5, 0.0 }
 0x3c0   : > { %1087 = vadd.xlane.f32.xlu1 %v1086_v6 }
 0x445   : > { %v1082_v10 = vpop.xlane.xlu1 %1081 }
 0x446   : > { %2840 = vrcp.f32 %v1082_v10  ;;  %v2343_v10 = vld [vmem:[%s3471_s6 + $0x1] ss:$0 sm:$0xff] }
 0x449   : > { %v1085_v11 = vpop.xlane.xlu0 %1084 }
 0x44a   : > { %2842 = vrcp.f32 %v1085_v11 }
 0x44d   : > { %v1088_v12 = vpop.xlane.xlu1 %1087 }
 0x44e   : > { %2844 = vrcp.f32 %v1088_v12 }
 0x450   : > { %v2841_v15 = vpop.eup %2840 }
 0x451   : > { %v1092_v18 = vmul.f32 %v2841_v15, %v2835_v62 }
 0x453   : > { %2557 = vmatmul.mubr.msk.f32.vlgmr.msra.gmra.mrb[18].mxu0 %vm1060_vm6, %v1092_v18 }
 0x454   : > { %v2843_v21 = vpop.eup %2842  ;;  %2559 = vmatprep.mubr.msk.f32.mxu0 %vm2885_vm2, %v2886_v28  ;;  %2760 = vmatpush3.bf16.msra.mxu0 %v2759_v17 }
 0x455   : > { %v1093_v23 = vmul.f32 %v2843_v21, %v2837_v3  ;;  %2761 = vmatprep.subr.bf16.mxu0 %v2884_v24 }
 0x457   : > { %2560 = vmatmul.mubr.msk.f32.gmra.mrb[20].mxu0 %vm1060_vm6, %v1093_v23 }
 0x458   : > { %v2845_v25 = vpop.eup %2844  ;;  %2562 = vmatprep.mubr.msk.f32.mxu0 %vm2885_vm2, %v2886_v28  ;;  %2763 = vmatpush3.bf16.msra.mxu0 %v2762_v22 }
 0x459   : > { %v1094_v26 = vmul.f32 %v2845_v25, %v2839_v5  ;;  %2770 = vmatprep.subr.bf16.mxu0 %v2884_v24 }
 0x45b   : > { %2563 = vmatmul.mubr.msk.f32.gmra.mrb[22].mxu0 %vm1060_vm6, %v1094_v26 }
 0x45c   : > { %2586 = vmatprep.mubr.msk.f32.mxu0 %vm2885_vm2, %v2886_v28 }
 0x45f   : > { %2587 = vmatmul.mubr.msk.f32.vlgmr.msra.gmra.mrb[24].mxu0 %vm608_vm0, %v3053_v48 }
 0x460   : > { %2589 = vmatprep.mubr.msk.f32.mxu0 %vm2885_vm2, %v2886_v28  ;;  %2772 = vmatpush3.bf16.msra.mxu0 %v2771_v30 }
 0x461   : > { %2773 = vmatprep.subr.bf16.mxu0 %v2884_v24 }
 0x463   : > { %2590 = vmatmul.mubr.msk.f32.gmra.mrb[26].mxu0 %vm608_vm0, %v3066_v56 }
 0x464   : > { %2592 = vmatprep.mubr.msk.f32.mxu0 %vm2885_vm2, %v2886_v28  ;;  %2775 = vmatpush3.bf16.msra.mxu0 %v2774_v33 }
 0x465   : > { %2780 = vmatprep.subr.bf16.mxu0 %v2884_v24 }
 0x467   : > { %2593 = vmatmul.mubr.msk.f32.gmra.mrb[28].mxu0 %vm608_vm0, %v3072_v57 }
 0x468   : > { %2620 = vmatprep.mubr.msk.f32.mxu0 %vm2885_vm2, %v2886_v28 }
 0x46b   : > { %2621 = vmatmul.mubr.msk.f32.vlgmr.msra.gmra.mrb[30].mxu0 %vm608_vm0, %v3053_v48 }
 0x46c   : > { %2623 = vmatprep.mubr.msk.f32.mxu0 %vm2885_vm2, %v2886_v28 }
 0x46f   : > { %2624 = vmatmul.mubr.msk.f32.gmra.mrb[32].mxu0 %vm608_vm0, %v3066_v56 }
 0x470   : > { %2626 = vmatprep.mubr.msk.f32.mxu0 %vm2885_vm2, %v2886_v28 }
 0x473   : > { %2627 = vmatmul.mubr.msk.f32.gmra.mrb[34].mxu0 %vm608_vm0, %v3072_v57 }
 0x474   : > { %2650 = vmatprep.mubr.msk.f32.mxu0 %vm2885_vm2, %v2886_v28 }
 0x526   : > { %v1174_v39 = vpop.f32.mrb[18].mxu0 }
 0x527   : > { %v2558_v40 = vpop.f32.mrb[19].mxu0  ;;  %2570 = vmatmul.mubr.msk.f32.vlgmr.msra.gmra.mrb[6].mxu1 %vm958_vm3, %v1174_v39 }
 0x528   : > { %2572 = vmatprep.mubr.msk.f32.mxu1 %vm2885_vm2, %v2886_v28  ;;  %2766 = vmatpush3.bf16.msra.mxu1 %v2765_v36 }
 0x529   : > { %2767 = vmatprep.subr.bf16.mxu1 %v2884_v24 }
 0x52a   : > { %v1179_v42 = vpop.f32.mrb[20].mxu0 }
 0x52b   : > { %v2561_v43 = vpop.f32.mrb[21].mxu0  ;;  %2573 = vmatmul.mubr.msk.f32.gmra.mrb[8].mxu1 %vm958_vm3, %v1179_v42 }
 0x52c   : > { %2575 = vmatprep.mubr.msk.f32.mxu1 %vm2885_vm2, %v2886_v28  ;;  %2769 = vmatpush3.bf16.msra.mxu1 %v2768_v41 }
 0x52d   : > { %2776 = vmatprep.subr.bf16.mxu1 %v2884_v24 }
 0x52e   : > { %v1184_v44 = vpop.f32.mrb[22].mxu0 }
 0x52f   : > { %v2564_v45 = vpop.f32.mrb[23].mxu0  ;;  %2576 = vmatmul.mubr.msk.f32.gmra.mrb[10].mxu1 %vm958_vm3, %v1184_v44 }
 0x530   : > { %2603 = vmatprep.mubr.msk.f32.mxu1 %vm2885_vm2, %v2886_v28 }
 0x532   : > { %v1361_v46 = vpop.f32.mrb[24].mxu0 }
 0x533   : > { %v2588_v47 = vpop.f32.mrb[25].mxu0  ;;  %2604 = vmatmul.mubr.msk.f32.vlgmr.msra.gmra.mrb[12].mxu1 %vm608_vm0, %v3053_v48  ;;  %v1362_v21 = vadd.f32 %v2334_v19, %v1361_v46 }
 0x534   : > { %2606 = vmatprep.mubr.msk.f32.mxu1 %vm2885_vm2, %v2886_v28 }
 0x536   : > { %v1366_v49 = vpop.f32.mrb[26].mxu0 }
 0x537   : > { %v2591_v50 = vpop.f32.mrb[27].mxu0  ;;  %2607 = vmatmul.mubr.msk.f32.gmra.mrb[14].mxu1 %vm608_vm0, %v3066_v56  ;;  %v1367_v22 = vadd.f32 %v2334_v19, %v1366_v49 }
 0x538   : > { %2609 = vmatprep.mubr.msk.f32.mxu1 %vm2885_vm2, %v2886_v28 }
 0x53a   : > { %v1371_v51 = vpop.f32.mrb[28].mxu0 }
 0x53b   : > { %v2594_v52 = vpop.f32.mrb[29].mxu0  ;;  %2610 = vmatmul.mubr.msk.f32.gmra.mrb[16].mxu1 %vm608_vm0, %v3072_v57  ;;  %v1372_v16 = vadd.f32 %v2334_v19, %v1371_v51 }
 0x53c   : > { %2635 = vmatprep.mubr.msk.f32.mxu1 %vm2885_vm2, %v2886_v28 }
 0x53e   : > { %v1547_v48 = vpop.f32.mrb[30].mxu0 }
 0x53f   : > { %v2622_v53 = vpop.f32.mrb[31].mxu0  ;;  %v1548_v58 = vadd.f32 %v2352_v54, %v1547_v48  ;;  %v2366_v48 = vld [vmem:[%s3474_s9 + $0x10] sm:$0xff] }
 0x540   : > { %v2367_v53 = vld [vmem:[%s3474_s9 + $0x18] sm:$0xff] }
 0x542   : > { %v1552_v55 = vpop.f32.mrb[32].mxu0 }
 0x543   : > { %v1553_v56 = vadd.f32 %v2352_v54, %v1552_v55  ;;  %v2625_v59 = vpop.f32.mrb[33].mxu0 }
 0x545   : > { %v2781_v60 = vpack.c.bf16 %v1553_v56, %v1548_v58 }
 0x546   : > { %v1557_v61 = vpop.f32.mrb[34].mxu0 }
 0x547   : > { %v2628_v62 = vpop.f32.mrb[35].mxu0  ;;  %2782 = vmatpush3.bf16.msra.mxu0 %v2781_v60  ;;  %v1558_v57 = vadd.f32 %v2352_v54, %v1557_v61  ;;  %v2784_v54 = vpack.c.bf16 %v2367_v53, %v2366_v48 }
 0x548   : > { %2648 = vmatprep.subr.mxu0 %v2886_v28 }
 0x54b   : > { %2649 = vmatpush3.msk.msra.mxu0 %vm1104_vm5, %v1558_v57 }
 0x54c   : > { %2786 = vmatprep.subr.bf16.mxu0 %v2884_v24 }
 0x5fa   : > { %v3264_v63 = vpop.f32.mrb[6].mxu1 }
 0x5fb   : > { %v2571_v3 = vpop.f32.mrb[7].mxu1 }
 0x5fe   : > { %v3266_v4 = vpop.f32.mrb[8].mxu1 }
 0x5ff   : > { %v2574_v5 = vpop.f32.mrb[9].mxu1 }
 0x602   : > { %v3268_v6 = vpop.f32.mrb[10].mxu1 }
 0x603   : > { %v2577_v7 = vpop.f32.mrb[11].mxu1 }
 0x606   : > { %v1454_v8 = vpop.f32.mrb[12].mxu1 }
 0x607   : > { %v2605_v9 = vpop.f32.mrb[13].mxu1  ;;  %v1455_v12 = vadd.f32 %v2343_v10, %v1454_v8 }
 0x60a   : > { %v1459_v11 = vpop.f32.mrb[14].mxu1 }
 0x60b   : > { %v1460_v13 = vadd.f32 %v2343_v10, %v1459_v11  ;;  %v2608_v14 = vpop.f32.mrb[15].mxu1 }
 0x60d   : > { %v2777_v15 = vpack.c.bf16 %v1460_v13, %v1455_v12  ;;  %v2303_v12 = vld [vmem:[%s3475_s10] ss:$0 sm:$0xff] }
 0x60e   : > { %v1464_v17 = vpop.f32.mrb[16].mxu1  ;;  %v1279_v13 = vadd.f32 %v2303_v12, %v3264_v63 }
 0x60f   : > { %v2611_v18 = vpop.f32.mrb[17].mxu1  ;;  %2779 = vmatpush3.bf16.xpose.msk.msra.mxu1 %vm3122_vm4, %v2777_v15  ;;  %v1465_v20 = vadd.f32 %v2343_v10, %v1464_v17 }
 0x610   : > { %2633 = vmatprep.subr.mxu1 %v2886_v28  ;;  %v1280_v18 = vadd.f32 %v2303_v12, %v3266_v4 }
 0x617   : > { %2634 = vmatpush3.xpose.msk.msra.mxu1 %vm958_vm3, %v1465_v20 }
 0x618   : > { %2783 = vmatprep.subr.bf16.mxu1 %v2884_v24 }
 0x61a   : > { %2636 = vmatmul.mubr.msk.f32.vlgmr.msra.gmra.mrb[18].mxu1 %vm958_vm3, %v1362_v21 }
 0x61b   : > { %2638 = vmatprep.mubr.msk.f32.mxu1 %vm2885_vm2, %v2886_v28  ;;  %2785 = vmatpush3.bf16.msra.mxu1 %v2784_v54 }
 0x61c   : > { %2792 = vmatprep.subr.bf16.mxu1 %v2884_v24 }
 0x61e   : > { %2639 = vmatmul.mubr.msk.f32.gmra.mrb[20].mxu1 %vm958_vm3, %v1367_v22 }
 0x61f   : > { %2641 = vmatprep.mubr.msk.f32.mxu1 %vm2885_vm2, %v2886_v28 }
 0x622   : > { %2642 = vmatmul.mubr.msk.f32.gmra.mrb[22].mxu1 %vm958_vm3, %v1372_v16 }
 0x623   : > { %2663 = vmatprep.mubr.msk.f32.mxu1 %vm2885_vm2, %v2886_v28 }
 0x6ed   : > { %v1645_v23 = vpop.f32.mrb[18].mxu1 }
 0x6ee   : > { %v1659_v25 = vmul.f32 0.25, %v1645_v23  ;;  %v2637_v26 = vpop.f32.mrb[19].mxu1  ;;  %v1281_v23 = vadd.f32 %v2303_v12, %v3268_v6 }
 0x6f0   : > { %v1662_v27 = vsel %vm1060_vm6, %v1659_v25, -inf }
 0x6f1   : > { %1663 = vmax.xlane.f32.xlu0 %v1662_v27  ;;  %v1650_v29 = vpop.f32.mrb[20].mxu1 }
 0x6f2   : > { %v1660_v30 = vmul.f32 0.25, %v1650_v29  ;;  %v2640_v31 = vpop.f32.mrb[21].mxu1 }
 0x6f4   : > { %v1665_v32 = vsel %vm1060_vm6, %v1660_v30, -inf }
 0x6f5   : > { %1666 = vmax.xlane.f32.xlu1 %v1665_v32  ;;  %v1655_v33 = vpop.f32.mrb[22].mxu1 }
 0x6f6   : > { %v1661_v34 = vmul.f32 0.25, %v1655_v33  ;;  %v2643_v35 = vpop.f32.mrb[23].mxu1 }
 0x6f8   : > { %v1668_v36 = vsel %vm1067_vm7, %v1661_v34, -inf }
 0x6f9   : > { %1669 = vmax.xlane.f32.xlu0 %v1668_v36 }
 0x77e   : > { %v1664_v37 = vpop.xlane.xlu0 %1663 }
 0x77f   : > { %v1671_v38 = vsub.f32 %v1659_v25, %v1664_v37 }
 0x781   : > { %v1674_v39 = vmul.f32 1.442695, %v1671_v38 }
 0x782   : > { %v1667_v40 = vpop.xlane.xlu1 %1666 }
 0x783   : > { %2846 = vpow2.f32 %v1674_v39  ;;  %v1672_v41 = vsub.f32 %v1660_v30, %v1667_v40 }
 0x785   : > { %v1676_v42 = vmul.f32 1.442695, %v1672_v41 }
 0x786   : > { %v1670_v43 = vpop.xlane.xlu0 %1669 }
 0x787   : > { %2848 = vpow2.f32 %v1676_v42  ;;  %v1673_v44 = vsub.f32 %v1661_v34, %v1670_v43  ;;  %v1944_v42 = vld [vmem:[%s3478_s13] sm:$0xff]  ;;  %v1945_v43 = vld [vmem:[%s3478_s13 + $0x8] sm:$0xff] }
 0x789   : > { %v1678_v45 = vmul.f32 1.442695, %v1673_v44  ;;  %v2787_v44 = vpack.c.bf16 %v1945_v43, %v1944_v42 }
 0x78b   : > { %2850 = vpow2.f32 %v1678_v45  ;;  %v1946_v45 = vld [vmem:[%s3478_s13 + $0x10] sm:$0xff] }
 0x78d   : > { %v2847_v46 = vpop.eup %2846 }
 0x78e   : > { %v1680_v47 = vsel %vm1060_vm6, %v2847_v46, 0.0 }
 0x78f   : > { %1681 = vadd.xlane.f32.xlu1 %v1680_v47 }
 0x791   : > { %v2849_v49 = vpop.eup %2848 }
 0x792   : > { %v1683_v50 = vsel %vm1060_vm6, %v2849_v49, 0.0 }
 0x793   : > { %1684 = vadd.xlane.f32.xlu0 %v1683_v50  ;;  %v2072_v50 = vld [vmem:[%s3480_s15 + $0x8] sm:$0xff] }
 0x795   : > { %v2851_v51 = vpop.eup %2850 }
 0x796   : > { %v1686_v52 = vsel %vm1067_vm7, %v2851_v51, 0.0 }
 0x797   : > { %1687 = vadd.xlane.f32.xlu1 %v1686_v52 }
 0x81c   : > { %v1682_v55 = vpop.xlane.xlu1 %1681 }
 0x81d   : > { %2852 = vrcp.f32 %v1682_v55 }
 0x820   : > { %v1685_v58 = vpop.xlane.xlu0 %1684 }
 0x821   : > { %2854 = vrcp.f32 %v1685_v58 }
 0x824   : > { %v1688_v56 = vpop.xlane.xlu1 %1687 }
 0x825   : > { %2856 = vrcp.f32 %v1688_v56 }
 0x827   : > { %v2853_v59 = vpop.eup %2852 }
 0x828   : > { %v1692_v60 = vmul.f32 %v2853_v59, %v2847_v46  ;;  %v1947_v46 = vld [vmem:[%s3478_s13 + $0x18] sm:$0xff] }
 0x829   : > { %v2790_v47 = vpack.c.bf16 %v1947_v46, %v1946_v45 }
 0x82a   : > { %2651 = vmatmul.mubr.msk.f32.vlgmr.msra.gmra.mrb[36].mxu0 %vm1060_vm6, %v1692_v60 }
 0x82b   : > { %v2855_v61 = vpop.eup %2854  ;;  %2653 = vmatprep.mubr.msk.f32.mxu0 %vm2885_vm2, %v2886_v28  ;;  %2788 = vmatpush3.bf16.msra.mxu0 %v2787_v44 }
 0x82c   : > { %v1693_v62 = vmul.f32 %v2855_v61, %v2849_v49  ;;  %2789 = vmatprep.subr.bf16.mxu0 %v2884_v24  ;;  %v2071_v49 = vld [vmem:[%s3480_s15] sm:$0xff] }
 0x82e   : > { %2654 = vmatmul.mubr.msk.f32.gmra.mrb[38].mxu0 %vm1060_vm6, %v1693_v62  ;;  %v2371_v62 = vld [vmem:[%s3476_s11] ss:$0 sm:$0xff] }
 0x82f   : > { %v2857_v57 = vpop.eup %2856  ;;  %2656 = vmatprep.mubr.msk.f32.mxu0 %vm2885_vm2, %v2886_v28  ;;  %2791 = vmatpush3.bf16.msra.mxu0 %v2790_v47 }
 0x830   : > { %v1694_v3 = vmul.f32 %v2857_v57, %v2851_v51  ;;  %v2793_v51 = vpack.c.bf16 %v2072_v50, %v2071_v49 }
 0x832   : > { %2657 = vmatmul.mubr.msk.f32.gmra.mrb[40].mxu0 %vm1060_vm6, %v1694_v3  ;;  %v2372_v3 = vld [vmem:[%s3477_s12] ss:$0 sm:$0xff] }
 0x833   : > { %2680 = vmatprep.mubr.msk.f32.mxu0 %vm2885_vm2, %v2886_v28 }
 0x8fd   : > { %v1773_v5 = vpop.f32.mrb[36].mxu0 }
 0x8fe   : > { %v2652_v7 = vpop.f32.mrb[37].mxu0  ;;  %2664 = vmatmul.mubr.msk.f32.vlgmr.msra.gmra.mrb[24].mxu1 %vm958_vm3, %v1773_v5 }
 0x8ff   : > { %2666 = vmatprep.mubr.msk.f32.mxu1 %vm2885_vm2, %v2886_v28  ;;  %2794 = vmatpush3.bf16.msra.mxu1 %v2793_v51 }
 0x900   : > { %2795 = vmatprep.subr.bf16.mxu1 %v2884_v24 }
 0x901   : > { %v1778_v8 = vpop.f32.mrb[38].mxu0 }
 0x902   : > { %v2655_v9 = vpop.f32.mrb[39].mxu0  ;;  %2667 = vmatmul.mubr.msk.f32.gmra.mrb[26].mxu1 %vm958_vm3, %v1778_v8 }
 0x903   : > { %2669 = vmatprep.mubr.msk.f32.mxu1 %vm2885_vm2, %v2886_v28 }
 0x905   : > { %v1783_v10 = vpop.f32.mrb[40].mxu0 }
 0x906   : > { %v2658_v11 = vpop.f32.mrb[41].mxu0  ;;  %2670 = vmatmul.mubr.msk.f32.gmra.mrb[28].mxu1 %vm958_vm3, %v1783_v10 }
 0x907   : > { %2721 = vmatprep.mubr.msk.f32.mxu1 %vm2885_vm2, %v2886_v28 }
 0x9d1   : > { %v1865_v14 = vpop.f32.mrb[24].mxu1 }
 0x9d2   : > { %v1879_v15 = vadd.f32 %v1865_v14, %v1279_v13  ;;  %v2665_v17 = vpop.f32.mrb[25].mxu1 }
 0x9d3   : > { %v2073_v17 = vld [vmem:[%s3480_s15 + $0x10] sm:$0xff] }
 0x9d4   : > { %v3327_v19 = vadd.f32 %v1879_v15, %v3003_v0 }
 0x9d5   : > { %v1870_v20 = vpop.f32.mrb[26].mxu1 }
 0x9d6   : > { %v1880_v21 = vadd.f32 %v1870_v20, %v1280_v18  ;;  %v2668_v22 = vpop.f32.mrb[27].mxu1  ;;  %v1887_v16 = vsel %vm608_vm0, %v3327_v19, 0.0  ;;  %v2074_v18 = vld [vmem:[%s3480_s15 + $0x18] sm:$0xff] }
 0x9d7   : > { %1888 = vadd.xlane.f32.xlu0 %v1887_v16  ;;  %v2796_v20 = vpack.c.bf16 %v2074_v18, %v2073_v17  ;;  %v2076_v22 = vld [vmem:[%s3480_s15 + $0x28] sm:$0xff] }
 0x9d8   : > { %v3333_v25 = vadd.f32 %v1880_v21, %v3007_v2  ;;  %v2075_v21 = vld [vmem:[%s3480_s15 + $0x20] sm:$0xff] }
 0x9d9   : > { %v1875_v63 = vpop.f32.mrb[28].mxu1  ;;  %2797 = vmatpush3.bf16.msra.mxu1 %v2796_v20  ;;  %v2799_v16 = vpack.c.bf16 %v2076_v22, %v2075_v21 }
 0x9da   : > { %v1881_v26 = vadd.f32 %v1875_v63, %v1281_v23  ;;  %v2671_v27 = vpop.f32.mrb[29].mxu1  ;;  %v1890_v4 = vsel %vm608_vm0, %v3333_v25, 0.0  ;;  %2798 = vmatprep.subr.bf16.mxu1 %v2884_v24  ;;  %v2077_v23 = vld [vmem:[%s3480_s15 + $0x30] sm:$0xff]  ;;  %v2078_v63 = vld [vmem:[%s3480_s15 + $0x38] sm:$0xff] }
 0x9db   : > { %1891 = vadd.xlane.f32.xlu1 %v1890_v4  ;;  %v2079_v27 = vld [vmem:[%s3480_s15 + $0x40] sm:$0xff]  ;;  %v2080_v4 = vld [vmem:[%s3480_s15 + $0x48] sm:$0xff] }
 0x9dc   : > { %v3338_v0 = vadd.f32 %v1881_v26, %v3005_v1  ;;  %v2802_v26 = vpack.c.bf16 %v2078_v63, %v2077_v23 }
 0x9dd   : > { %2800 = vmatpush3.bf16.msra.mxu1 %v2799_v16 }
 0x9de   : > { %v1893_v29 = vsel %vm615_vm1, %v3338_v0, 0.0  ;;  %2801 = vmatprep.subr.bf16.mxu1 %v2884_v24 }
 0x9df   : > { %1894 = vadd.xlane.f32.xlu0 %v1893_v29  ;;  %v2805_v29 = vpack.c.bf16 %v2080_v4, %v2079_v27 }
 0x9e1   : > { %2803 = vmatpush3.bf16.msra.mxu1 %v2802_v26 }
 0x9e2   : > { %2804 = vmatprep.subr.bf16.mxu1 %v2884_v24 }
 0x9e5   : > { %2806 = vmatpush3.bf16.msra.mxu1 %v2805_v29 }
 0x9e6   : > { %2807 = vmatprep.subr.bf16.mxu1 %v2884_v24 }
 0xa64   : > { %v1889_v30 = vpop.xlane.xlu0 %1888 }
 0xa65   : > { %v1896_v31 = vmul.f32 0.03125, %v1889_v30  ;;  %v2081_v30 = vld [vmem:[%s3480_s15 + $0x50] sm:$0xff] }
 0xa67   : > { %v1899_v6 = vsub.f32 %v3327_v19, %v1896_v31  ;;  %v2082_v31 = vld [vmem:[%s3480_s15 + $0x58] sm:$0xff] }
 0xa68   : > { %v1892_v2 = vpop.xlane.xlu1 %1891 }
 0xa69   : > { %v1897_v32 = vmul.f32 0.03125, %v1892_v2  ;;  %v1902_v33 = vmul.f32 %v1899_v6, %v1899_v6  ;;  %v2083_v2 = vld [vmem:[%s3480_s15 + $0x60] sm:$0xff] }
 0xa6b   : > { %v1900_v34 = vsub.f32 %v3333_v25, %v1897_v32  ;;  %v1905_v35 = vsel %vm608_vm0, %v1902_v33, 0.0  ;;  %v2084_v32 = vld [vmem:[%s3480_s15 + $0x68] sm:$0xff] }
 0xa6c   : > { %1906 = vadd.xlane.f32.xlu1 %v1905_v35  ;;  %v1895_v36 = vpop.xlane.xlu0 %1894  ;;  %v2811_v33 = vpack.c.bf16 %v2084_v32, %v2083_v2  ;;  %v2086_v35 = vld [vmem:[%s3480_s15 + $0x78] sm:$0xff] }
 0xa6d   : > { %v1898_v37 = vmul.f32 0.03125, %v1895_v36  ;;  %v1903_v1 = vmul.f32 %v1900_v34, %v1900_v34 }
 0xa6f   : > { %v1901_v38 = vsub.f32 %v3338_v0, %v1898_v37  ;;  %v1908_v39 = vsel %vm608_vm0, %v1903_v1, 0.0  ;;  %v2373_v37 = vld [vmem:[%s3479_s14] ss:$0 sm:$0xff] }
 0xa70   : > { %1909 = vadd.xlane.f32.xlu0 %v1908_v39 }
 0xa71   : > { %v1904_v40 = vmul.f32 %v1901_v38, %v1901_v38 }
 0xa73   : > { %v1911_v41 = vsel %vm615_vm1, %v1904_v40, 0.0 }
 0xa74   : > { %1912 = vadd.xlane.f32.xlu1 %v1911_v41 }
 0xaf9   : > { %v1907_v52 = vpop.xlane.xlu1 %1906 }
 0xafa   : > { %v1914_v48 = vmul.f32 0.03125, %v1907_v52 }
 0xafc   : > { %v1917_v53 = vadd.f32 1e-06, %v1914_v48 }
 0xafd   : > { %v1910_v54 = vpop.xlane.xlu0 %1909 }
 0xafe   : > { %2858 = vrsqrt.f32 %v1917_v53  ;;  %v1915_v55 = vmul.f32 0.03125, %v1910_v54 }
 0xb00   : > { %v1918_v58 = vadd.f32 1e-06, %v1915_v55 }
 0xb01   : > { %v1913_v56 = vpop.xlane.xlu1 %1912 }
 0xb02   : > { %2860 = vrsqrt.f32 %v1918_v58  ;;  %v1916_v59 = vmul.f32 0.03125, %v1913_v56 }
 0xb04   : > { %v1919_v60 = vadd.f32 1e-06, %v1916_v59 }
 0xb06   : > { %2862 = vrsqrt.f32 %v1919_v60 }
 0xb08   : > { %v2859_v61 = vpop.eup %2858 }
 0xb09   : > { %v1923_v57 = vmul.f32 %v2859_v61, %v1899_v6  ;;  %v2808_v6 = vpack.c.bf16 %v2082_v31, %v2081_v30 }
 0xb0b   : > { %v1932_v5 = vmul.f32 %v2371_v62, %v1923_v57  ;;  %2809 = vmatpush3.bf16.msra.mxu1 %v2808_v6 }
 0xb0c   : > { %v2861_v7 = vpop.eup %2860  ;;  %2810 = vmatprep.subr.bf16.mxu1 %v2884_v24 }
 0xb0d   : > { %v1941_v8 = vadd.f32 %v2372_v3, %v1932_v5  ;;  %v1924_v9 = vmul.f32 %v2861_v7, %v1900_v34  ;;  %v2085_v34 = vld [vmem:[%s3480_s15 + $0x70] sm:$0xff] }
 0xb0e   : > { %v2814_v36 = vpack.c.bf16 %v2086_v35, %v2085_v34 }
 0xb0f   : > { %2681 = vmatmul.mubr.msk.f32.vlgmr.msra.gmra.mrb[42].mxu0 %vm608_vm0, %v1941_v8  ;;  %v1933_v10 = vmul.f32 %v2371_v62, %v1924_v9  ;;  %2812 = vmatpush3.bf16.msra.mxu1 %v2811_v33 }
 0xb10   : > { %v2863_v11 = vpop.eup %2862  ;;  %2683 = vmatprep.mubr.msk.f32.mxu0 %vm2885_vm2, %v2886_v28  ;;  %2813 = vmatprep.subr.bf16.mxu1 %v2884_v24 }
 0xb11   : > { %v1942_v12 = vadd.f32 %v2372_v3, %v1933_v10  ;;  %v1925_v13 = vmul.f32 %v2863_v11, %v1901_v38 }
 0xb13   : > { %2684 = vmatmul.mubr.msk.f32.gmra.mrb[44].mxu0 %vm608_vm0, %v1942_v12  ;;  %v1934_v14 = vmul.f32 %v2371_v62, %v1925_v13  ;;  %2815 = vmatpush3.bf16.msra.mxu1 %v2814_v36 }
 0xb14   : > { %2686 = vmatprep.mubr.msk.f32.mxu0 %vm2885_vm2, %v2886_v28 }
 0xb15   : > { %v1943_v15 = vadd.f32 %v2372_v3, %v1934_v14  ;;  %v2377_v14 = vld [vmem:[%s3481_s16] ss:$0 sm:$0xff] }
 0xb17   : > { %2687 = vmatmul.mubr.msk.f32.gmra.mrb[46].mxu0 %vm608_vm0, %v1943_v15 }
 0xbe2   : > { %v2030_v1 = vpop.f32.mrb[42].mxu0 }
 0xbe3   : > { %v2031_v38 = vadd.f32 %v2373_v37, %v2030_v1  ;;  %v2682_v39 = vpop.f32.mrb[43].mxu0 }
 0xbe5   : > { %v2047_v40 = vmul.f32 0.044715, %v2031_v38  ;;  %v2044_v62 = vmul.f32 0.5, %v2031_v38 }
 0xbe6   : > { %v2035_v41 = vpop.f32.mrb[44].mxu0 }
 0xbe7   : > { %v2050_v42 = vmul.f32 %v2047_v40, %v2031_v38  ;;  %v2036_v43 = vadd.f32 %v2373_v37, %v2035_v41  ;;  %v2685_v44 = vpop.f32.mrb[45].mxu0 }
 0xbe9   : > { %v2053_v45 = vmul.f32 %v2050_v42, %v2031_v38  ;;  %v2048_v46 = vmul.f32 0.044715, %v2036_v43  ;;  %v2045_v7 = vmul.f32 0.5, %v2036_v43 }
 0xbea   : > { %v2040_v47 = vpop.f32.mrb[46].mxu0 }
 0xbeb   : > { %v2056_v49 = vadd.f32 %v2053_v45, %v2031_v38  ;;  %v2051_v50 = vmul.f32 %v2048_v46, %v2036_v43  ;;  %v2041_v51 = vadd.f32 %v2373_v37, %v2040_v47  ;;  %v2688_v24 = vpop.f32.mrb[47].mxu0 }
 0xbed   : > { %v2059_v52 = vmul.f32 0.7978846, %v2056_v49  ;;  %v2049_v48 = vmul.f32 0.044715, %v2041_v51  ;;  %v2054_v53 = vmul.f32 %v2051_v50, %v2036_v43  ;;  %v2046_v11 = vmul.f32 0.5, %v2041_v51 }
 0xbef   : > { %2864 = vtanh.f32 %v2059_v52  ;;  %v2052_v54 = vmul.f32 %v2049_v48, %v2041_v51  ;;  %v2057_v55 = vadd.f32 %v2054_v53, %v2036_v43  ;;  %v2379_v52 = vld [vmem:[%s3483_s18] ss:$0 sm:$0xff] }
 0xbf1   : > { %v2060_v58 = vmul.f32 0.7978846, %v2057_v55  ;;  %v2055_v56 = vmul.f32 %v2052_v54, %v2041_v51 }
 0xbf3   : > { %2866 = vtanh.f32 %v2060_v58  ;;  %v2058_v59 = vadd.f32 %v2055_v56, %v2041_v51  ;;  %v2378_v51 = vld [vmem:[%s3482_s17] ss:$0 sm:$0xff] }
 0xbf5   : > { %v2061_v60 = vmul.f32 0.7978846, %v2058_v59 }
 0xbf7   : > { %2868 = vtanh.f32 %v2061_v60 }
 0xbf9   : > { %v2865_v61 = vpop.eup %2864 }
 0xbfa   : > { %v2065_v57 = vadd.f32 1.0, %v2865_v61 }
 0xbfc   : > { %v2068_v3 = vmul.f32 %v2065_v57, %v2044_v62 }
 0xbfd   : > { %v2867_v5 = vpop.eup %2866 }
 0xbfe   : > { %2722 = vmatmul.mubr.f32.vlgmr.msra.gmra.mrb[30].mxu1 %v2068_v3  ;;  %v2066_v8 = vadd.f32 1.0, %v2867_v5 }
 0xbff   : > { %2724 = vmatprep.mubr.msk.f32.mxu1 %vm2885_vm2, %v2886_v28 }
 0xc00   : > { %v2069_v9 = vmul.f32 %v2066_v8, %v2045_v7 }
 0xc01   : > { %v2869_v10 = vpop.eup %2868 }
 0xc02   : > { %2725 = vmatmul.mubr.f32.gmra.mrb[32].mxu1 %v2069_v9  ;;  %v2067_v12 = vadd.f32 1.0, %v2869_v10 }
 0xc03   : > { %2727 = vmatprep.mubr.msk.f32.mxu1 %vm2885_vm2, %v2886_v28 }
 0xc04   : > { %v2070_v13 = vmul.f32 %v2067_v12, %v2046_v11 }
 0xc06   : > { %2728 = vmatmul.mubr.f32.gmra.mrb[34].mxu1 %v2070_v13 }
 0xcd1   : > { %v2160_v15 = vpop.f32.mrb[30].mxu1 }
 0xcd2   : > { %v2161_v17 = vadd.f32 %v2377_v14, %v2160_v15  ;;  %v2723_v18 = vpop.f32.mrb[31].mxu1 }
 0xcd4   : > { %v2174_v20 = vadd.f32 %v2161_v17, %v3327_v19 }
 0xcd5   : > { %v2165_v21 = vpop.f32.mrb[32].mxu1 }
 0xcd6   : > { %v2166_v22 = vadd.f32 %v2377_v14, %v2165_v21  ;;  %v2726_v16 = vpop.f32.mrb[33].mxu1  ;;  %v2179_v23 = vsel %vm608_vm0, %v2174_v20, 0.0 }
 0xcd7   : > { %2180 = vadd.xlane.f32.xlu0 %v2179_v23 }
 0xcd8   : > { %v2175_v63 = vadd.f32 %v2166_v22, %v3333_v25 }
 0xcd9   : > { %v2170_v28 = vpop.f32.mrb[34].mxu1 }
 0xcda   : > { %v2171_v26 = vadd.f32 %v2377_v14, %v2170_v28  ;;  %v2729_v27 = vpop.f32.mrb[35].mxu1  ;;  %v2182_v4 = vsel %vm608_vm0, %v2175_v63, 0.0 }
 0xcdb   : > { %2183 = vadd.xlane.f32.xlu1 %v2182_v4 }
 0xcdc   : > { %v2176_v29 = vadd.f32 %v2171_v26, %v3338_v0 }
 0xcde   : > { %v2185_v30 = vsel %vm615_vm1, %v2176_v29, 0.0 }
 0xcdf   : > { %2186 = vadd.xlane.f32.xlu0 %v2185_v30 }
 0xd64   : > { %v2181_v19 = vpop.xlane.xlu0 %2180 }
 0xd65   : > { %v2188_v31 = vmul.f32 0.03125, %v2181_v19 }
 0xd67   : > { %v2191_v6 = vsub.f32 %v2174_v20, %v2188_v31 }
 0xd68   : > { %v2184_v2 = vpop.xlane.xlu1 %2183 }
 0xd69   : > { %v2189_v32 = vmul.f32 0.03125, %v2184_v2  ;;  %v2194_v33 = vmul.f32 %v2191_v6, %v2191_v6 }
 0xd6b   : > { %v2192_v34 = vsub.f32 %v2175_v63, %v2189_v32  ;;  %v2197_v25 = vsel %vm608_vm0, %v2194_v33, 0.0 }
 0xd6c   : > { %2198 = vadd.xlane.f32.xlu1 %v2197_v25  ;;  %v2187_v35 = vpop.xlane.xlu0 %2186 }
 0xd6d   : > { %v2190_v36 = vmul.f32 0.03125, %v2187_v35  ;;  %v2195_v37 = vmul.f32 %v2192_v34, %v2192_v34 }
 0xd6f   : > { %v2193_v1 = vsub.f32 %v2176_v29, %v2190_v36  ;;  %v2200_v38 = vsel %vm608_vm0, %v2195_v37, 0.0 }
 0xd70   : > { %2201 = vadd.xlane.f32.xlu0 %v2200_v38 }
 0xd71   : > { %v2196_v0 = vmul.f32 %v2193_v1, %v2193_v1 }
 0xd73   : > { %v2203_v39 = vsel %vm615_vm1, %v2196_v0, 0.0 }
 0xd74   : > { %2204 = vadd.xlane.f32.xlu1 %v2203_v39 }
 0xdf9   : > { %v2199_v40 = vpop.xlane.xlu1 %2198 }
 0xdfa   : > { %v2206_v41 = vmul.f32 0.03125, %v2199_v40 }
 0xdfc   : > { %v2209_v42 = vadd.f32 1e-06, %v2206_v41 }
 0xdfd   : > { %v2202_v43 = vpop.xlane.xlu0 %2201 }
 0xdfe   : > { %2870 = vrsqrt.f32 %v2209_v42  ;;  %v2207_v44 = vmul.f32 0.03125, %v2202_v43 }
 0xe00   : > { %v2210_v45 = vadd.f32 1e-06, %v2207_v44 }
 0xe01   : > { %v2205_v46 = vpop.xlane.xlu1 %2204 }
 0xe02   : > { %2872 = vrsqrt.f32 %v2210_v45  ;;  %v2208_v47 = vmul.f32 0.03125, %v2205_v46 }
 0xe04   : > { %v2211_v49 = vadd.f32 1e-06, %v2208_v47 }
 0xe06   : > { %2874 = vrsqrt.f32 %v2211_v49 }
 0xe08   : > { %v2871_v50 = vpop.eup %2870 }
 0xe09   : > { %v2215_v24 = vmul.f32 %v2871_v50, %v2191_v6 }
 0xe0b   : > { %v2224_v48 = vmul.f32 %v2378_v51, %v2215_v24 }
 0xe0c   : > { %v2873_v53 = vpop.eup %2872 }
 0xe0d   : > { %v2233_v54 = vadd.f32 %v2379_v52, %v2224_v48  ;;  %v2216_v55 = vmul.f32 %v2873_v53, %v2192_v34 }
 0xe0f   : > { %2236 = vst.msk [vmem:[%s602_s22] sm:$0xff] %vm608_vm0, %v2233_v54  ;;  %v2225_v58 = vmul.f32 %v2378_v51, %v2216_v55 }
 0xe10   : > { %v2875_v56 = vpop.eup %2874 }
 0xe11   : > { %v2234_v59 = vadd.f32 %v2379_v52, %v2225_v58  ;;  %v2217_v60 = vmul.f32 %v2875_v56, %v2193_v1 }
 0xe13   : > { %2237 = vst.msk [vmem:[%s602_s22 + $0x8] sm:$0xff] %vm608_vm0, %v2234_v59  ;;  %v2226_v61 = vmul.f32 %v2378_v51, %v2217_v60 }
 0xe15   : > { %v2235_v62 = vadd.f32 %v2379_v52, %v2226_v61 }
 0xe17   : > { %2238 = vst.msk [vmem:[%s602_s22 + $0x10] sm:$0x1] %vm615_vm1, %v2235_v62 }
 0xe18 PF: > { %s29_s0 = sadd.s32 1, %s2882_s0  }
 0xe19   : > { %p26_p4 = scmp.ge.s32.totalorder %s29_s0, 4  }
 0xe1b   :  { %28 = sbr.rel (!%p26_p4) target bundleno = 5 (0x5), region = 133 }

// kernel: forward.6
= control target key start
LH: loop header
LB: loop body
LE: loop exit
PB: predicated region body
PF: predicated region fallthrough
CT: control target
= control target key end

     0   :  { %s5412_s6 = smov 1   ;;  %s5413_s10 = smov 2   ;;  %s6279_s0 = inlined_call_operand.smem [shape: u32[34], index: -1, kind: input, shape index: {}] }
   0x1   :  { %s5456_s5 = sld [smem:[%s6279_s0]]   ;;  %s5414_s14 = smov 3  }
   0x2   :  { %s5461_s9 = sld [smem:[%s6279_s0 + %s5412_s6]]   ;;  %s5415_s18 = smov 4  }
   0x3   :  { %s5466_s13 = sld [smem:[%s6279_s0 + %s5413_s10]]   ;;  %s5416_s22 = smov 5  }
   0x4   :  { %s5471_s17 = sld [smem:[%s6279_s0 + %s5414_s14]]   ;;  %s5417_s26 = smov 6  }
   0x5   :  { %s5476_s21 = sld [smem:[%s6279_s0 + %s5415_s18]]   ;;  %s5418_s30 = smov 7  }
   0x6   :  { %s5481_s25 = sld [smem:[%s6279_s0 + %s5416_s22]]   ;;  %s5419_s4 = smov 8  }
   0x7   :  { %s5486_s29 = sld [smem:[%s6279_s0 + %s5417_s26]]   ;;  %s5420_s10 = smov 9  }
   0x8   :  { %s5491_s3 = sld [smem:[%s6279_s0 + %s5418_s30]]   ;;  %s5421_s15 = smov 10  }
   0x9   :  { %s5496_s8 = sld [smem:[%s6279_s0 + %s5419_s4]]   ;;  %s5422_s20 = smov 11  }
   0xa   :  { %s5501_s14 = sld [smem:[%s6279_s0 + %s5420_s10]]   ;;  %s5423_s26 = smov 12  }
   0xb   :  { %s5506_s19 = sld [smem:[%s6279_s0 + %s5421_s15]]   ;;  %s5424_s1 = smov 13  }
   0xc   :  { %s5511_s24 = sld [smem:[%s6279_s0 + %s5422_s20]]   ;;  %s5425_s7 = smov 14  }
   0xd   :  { %s5516_s30 = sld [smem:[%s6279_s0 + %s5423_s26]]   ;;  %s5426_s15 = smov 15  }
   0xe   :  { %s5521_s6 = sld [smem:[%s6279_s0 + %s5424_s1]]   ;;  %s5427_s22 = smov 16  }
   0xf   :  { %s5526_s12 = sld [smem:[%s6279_s0 + %s5425_s7]]   ;;  %s5428_s28 = smov 17  }
  0x10   :  { %s5531_s20 = sld [smem:[%s6279_s0 + %s5426_s15]]   ;;  %s5429_s7 = smov 18  }
  0x11   :  { %s5536_s27 = sld [smem:[%s6279_s0 + %s5427_s22]]   ;;  %s5430_s15 = smov 19  }
  0x12   :  { %s5541_s4 = sld [smem:[%s6279_s0 + %s5428_s28]]   ;;  %s5431_s22 = smov 20  }
  0x13   :  { %6288 = sst [smem:[#allocation2_spill]] %s5516_s30  ;;  %s5432_s28 = smov 21  }
  0x14   :  { %s5551_s30 = sld [smem:[%s6279_s0 + %s5430_s15]]   ;;  %s5434_s15 = smov 23  }
  0x15   :  { %6289 = sst [smem:[#allocation3_spill]] %s5526_s12 }
  0x16   :  { %s5546_s12 = sld [smem:[%s6279_s0 + %s5429_s7]]   ;;  %s5433_s7 = smov 22  }
  0x17   :  { %6290 = sst [smem:[#allocation4_spill]] %s5536_s27 }
  0x18   :  { %6291 = sst [smem:[#allocation5_spill]] %s5541_s4 }
  0x19   :  { %s5556_s27 = sld [smem:[%s6279_s0 + %s5431_s22]]   ;;  %s5435_s22 = smov 24  }
  0x1a   :  { %6293 = sst [smem:[#allocation7_spill]] %s5551_s30 }
  0x1b   :  { %s5561_s4 = sld [smem:[%s6279_s0 + %s5432_s28]]   ;;  %s5436_s28 = smov 25  }
  0x1c   :  { %6292 = sst [smem:[#allocation6_spill]] %s5546_s12 }
  0x1d   :  { %s5566_s12 = sld [smem:[%s6279_s0 + %s5433_s7]]   ;;  %s5437_s7 = smov 26  }
  0x1e   :  { %s5571_s30 = sld [smem:[%s6279_s0 + %s5434_s15]]   ;;  %s5438_s15 = smov 27  }
  0x1f   :  { %6294 = sst [smem:[#allocation8_spill]] %s5556_s27 }
  0x20   :  { %s5576_s27 = sld [smem:[%s6279_s0 + %s5435_s22]]   ;;  %s5439_s22 = smov 28  }
  0x21   :  { %6295 = sst [smem:[#allocation9_spill]] %s5561_s4 }
  0x22   :  { %s5581_s4 = sld [smem:[%s6279_s0 + %s5436_s28]]   ;;  %s5440_s28 = smov 29  }
  0x23   :  { %6296 = sst [smem:[#allocation10_spill]] %s5566_s12 }
  0x24   :  { %6297 = sst [smem:[#allocation11_spill]] %s5571_s30 }
  0x25   :  { %s5586_s12 = sld [smem:[%s6279_s0 + %s5437_s7]]   ;;  %s5441_s7 = smov 30  }
  0x26   :  { %6298 = sst [smem:[#allocation12_spill]] %s5576_s27 }
  0x27   :  { %s5591_s30 = sld [smem:[%s6279_s0 + %s5438_s15]]   ;;  %s5442_s15 = smov 31  }
  0x28   :  { %6299 = sst [smem:[#allocation13_spill]] %s5581_s4 }
  0x29   :  { %s5596_s27 = sld [smem:[%s6279_s0 + %s5439_s22]]   ;;  %s5443_s22 = smov 32  }
  0x2a   :  { %s5601_s4 = sld [smem:[%s6279_s0 + %s5440_s28]]   ;;  %s5444_s28 = smov 33  }
  0x2b   :  { %6300 = sst [smem:[#allocation14_spill]] %s5586_s12 }
  0x2c   :  { %s5606_s12 = sld [smem:[%s6279_s0 + %s5441_s7]]   ;;  %s5623_s7 = smov 0  }
  0x2d   :  { %6301 = sst [smem:[#allocation15_spill]] %s5591_s30 }
  0x2e   :  { %s5611_s30 = sld [smem:[%s6279_s0 + %s5442_s15]]  }
  0x2f   :  { %6302 = sst [smem:[#allocation16_spill]] %s5596_s27 }
  0x30   :  { %6303 = sst [smem:[#allocation17_spill]] %s5601_s4 }
  0x31   :  { %s5616_s27 = sld [smem:[%s6279_s0 + %s5443_s22]]  }
  0x32   :  { %s5621_s4 = sld [smem:[%s6279_s0 + %s5444_s28]]  }
  0x33 LB: > { %s4244_s10 = sadd.s32 4294967295, %s5410_s7   ;;  %p4248_p0 = scmp.ge.s32.totalorder %s5410_s7, 1  ;;  %s5410_s7 = sphi %s5623_s7, %s77_s7  }
  0x34   : > { %p921_p1 = scmp.lt.s32.totalorder %s5410_s7, 3 }
  0x36   : > { %p922_p2 = pnand %p4248_p0, %p921_p1 }
  0x37   : > { %p1005_p3 = scmp.lt.s32.totalorder (!%p922_p2), %s4244_s10, 1  ;;  %vm1020_vm0 = vcmask (!%p922_p2), 261120   ;;  %vm1027_vm1 = vcmask (!%p922_p2), 253952   ;;  %v1088_v21 = vld [vmem:[%s5471_s17] sm:$0xff] (!%p922_p2)  ;;  %v1089_v22 = vld [vmem:[%s5471_s17 + $0x8] sm:$0xff] (!%p922_p2)  ;;  %v5445_v26 = vmov (!%p922_p2), 0.0|0.0  }
  0x38   : > { %925 = sbr.rel (%p922_p2) target bundleno = 6604 (0x19cc), region = 152  ;;  %v1279_v23 = vld [vmem:[%s5491_s3] sm:$0xff] (!%p922_p2)  ;;  %v5104_v24 = vpack.c.bf16 (!%p922_p2), %v1089_v22, %v1088_v21  ;;  %v1280_v25 = vld [vmem:[%s5491_s3 + $0x8] sm:$0xff] (!%p922_p2)  ;;  %5103 = vmatprep.subr.bf16.mxu1 (!%p922_p2), %v5445_v26  ;;  %5115 = vmatprep.subr.bf16.mxu0 (!%p922_p2), %v5445_v26  ;;  %v1090_v28 = vld [vmem:[%s5471_s17 + $0x10] sm:$0xff] (!%p922_p2)  ;;  %vm5446_vm2 = vmmov (!%p922_p2), 0   ;;  %v5447_v34 = vmov (!%p922_p2), 0.0  }
  0x39   : > { %v5116_v27 = vpack.c.bf16 (!%p922_p2), %v1280_v25, %v1279_v23  ;;  %v1091_v29 = vld [vmem:[%s5471_s17 + $0x18] sm:$0xff] (!%p922_p2)  ;;  %v1281_v30 = vld [vmem:[%s5491_s3 + $0x10] sm:$0xff] (!%p922_p2)  ;;  %4619 = vmatprep.mubr.msk.f32.mxu1 (!%p922_p2), %vm5446_vm2, %v5447_v34  ;;  %4653 = vmatprep.mubr.msk.f32.mxu0 (!%p922_p2), %vm5446_vm2, %v5447_v34  ;;  %v4251_v45 = vld [vmem:[%s5461_s9] ss:$0 sm:$0xff] (!%p922_p2)  ;;  %vm1516_vm3 = vcmask (!%p922_p2), 1040384   ;;  %vm1370_vm4 = vcmask (!%p922_p2), 130048  }
  0x3a   : > { %5105 = vmatpush3.bf16.msra.mxu1 (!%p922_p2), %v5104_v24  ;;  %v5107_v31 = vpack.c.bf16 (!%p922_p2), %v1091_v29, %v1090_v28  ;;  %v1282_v32 = vld [vmem:[%s5491_s3 + $0x18] sm:$0xff] (!%p922_p2)  ;;  %v1188_v47 = vld [vmem:[%s5481_s25] sm:$0xff] (!%p922_p2)  ;;  %v1189_v48 = vld [vmem:[%s5481_s25 + $0x8] sm:$0xff] (!%p922_p2)  ;;  %vm1472_vm6 = vcmask (!%p922_p2), 138240   ;;  %vm1479_vm7 = vcmask (!%p922_p2), 131072   ;;  %s6306_s15 = sld [smem:[#allocation2_spill]] (!%p922_p2) }
  0x3b   : > { %5117 = vmatpush3.bf16.msra.mxu0 (!%p922_p2), %v5116_v27  ;;  %5106 = vmatprep.subr.bf16.mxu1 (!%p922_p2), %v5445_v26  ;;  %v5119_v33 = vpack.c.bf16 (!%p922_p2), %v1282_v32, %v1281_v30  ;;  %v4252_v49 = vld [vmem:[%s5466_s13] ss:$0 sm:$0xff] (!%p922_p2)  ;;  %v5110_v52 = vpack.c.bf16 (!%p922_p2), %v1189_v48, %v1188_v47  ;;  %v1190_v57 = vld [vmem:[%s5481_s25 + $0x10] sm:$0xff] (!%p922_p2)  ;;  %v1191_v58 = vld [vmem:[%s5481_s25 + $0x18] sm:$0xff] (!%p922_p2)  ;;  %s6307_s16 = sld [smem:[#allocation3_spill]] (!%p922_p2)  ;;  %s6308_s18 = sld [smem:[#allocation4_spill]] (!%p922_p2) }
  0x3c   : > { %5118 = vmatprep.subr.bf16.mxu0 (!%p922_p2), %v5445_v26  ;;  %v5113_v62 = vpack.c.bf16 (!%p922_p2), %v1191_v58, %v1190_v57  ;;  %v4258_v22 = vld [vmem:[%s5486_s29] ss:$0 sm:$0xff] (!%p922_p2)  ;;  %vm5735_vm5 = vmpackc.low (!%p922_p2), %vm1370_vm4, %vm1370_vm4  ;;  %s6309_s22 = sld [smem:[#allocation7_spill]] (!%p922_p2)  ;;  %s6310_s23 = sld [smem:[#allocation11_spill]] (!%p922_p2) }
  0x3d   : > { %v4254_v32 = vld [vmem:[%s5476_s21] ss:$0 sm:$0xff] (!%p922_p2)  ;;  %s6311_s26 = sld [smem:[#allocation5_spill]] (!%p922_p2)  ;;  %s6312_s28 = sld [smem:[#allocation9_spill]] (!%p922_p2) }
  0x3e   : > { %5108 = vmatpush3.bf16.msra.mxu1 (!%p922_p2), %v5107_v31  ;;  %s6313_s1 = sld [smem:[#allocation6_spill]] (!%p922_p2)  ;;  %s6314_s2 = sld [smem:[#allocation12_spill]] (!%p922_p2) }
  0x3f   : > { %s6323_s10 = smov (!%p1005_p3, %s4244_s10), 1  ;;  %5120 = vmatpush3.bf16.msra.mxu0 %v5119_v33  ;;  %5109 = vmatprep.subr.bf16.mxu1 %v5445_v26 }
  0x40   : > { %s5275_s0 = smul.u32 24, %s6323_s10  ;;  %5125 = vmatprep.subr.bf16.mxu0 %v5445_v26 }
  0x42   : > { %s1009_s11 = scalar_lea.vmem %s5456_s5, %s5275_s0 }
  0x43   : > { %v5637_v0 = vld [vmem:[%s1009_s11] sm:$0xff]  ;;  %v5639_v1 = vld [vmem:[%s1009_s11 + $0x10] sm:$0x1]  ;;  %v5641_v2 = vld [vmem:[%s1009_s11 + $0x8] sm:$0xff]  ;;  %s6315_s11 = sld [smem:[#allocation10_spill]] }
  0x44   : > { %v1021_v3 = vsel %vm1020_vm0, %v5637_v0, 0.0  ;;  %v1028_v4 = vsel %vm1027_vm1, %v5639_v1, 0.0  ;;  %v1024_v5 = vsel %vm1020_vm0, %v5641_v2, 0.0 }
  0x45   : > { %1022 = vadd.xlane.f32.xlu0 %v1021_v3  ;;  %1029 = vadd.xlane.f32.xlu1 %v1028_v4 }
  0x49   : > { %1025 = vadd.xlane.f32.xlu0 %v1024_v5 }
  0xd2   : > { %v1023_v6 = vpop.xlane.xlu0 %1022  ;;  %v1030_v7 = vpop.xlane.xlu1 %1029 }
  0xd3   : > { %v1032_v8 = vmul.f32 0.03125, %v1023_v6  ;;  %v1034_v9 = vmul.f32 0.03125, %v1030_v7  ;;  %v4262_v7 = vld [vmem:[%s5496_s8] ss:$0 sm:$0xff] }
  0xd5   : > { %v1035_v10 = vsub.f32 %v5637_v0, %v1032_v8  ;;  %v5651_v11 = vsub.f32 %v5639_v1, %v1034_v9 }
  0xd6   : > { %v1026_v12 = vpop.xlane.xlu0 %1025 }
  0xd7   : > { %v1033_v13 = vmul.f32 0.03125, %v1026_v12  ;;  %v1038_v14 = vmul.f32 %v1035_v10, %v1035_v10  ;;  %v1040_v15 = vmul.f32 %v5651_v11, %v5651_v11 }
  0xd9   : > { %v1036_v16 = vsub.f32 %v5641_v2, %v1033_v13  ;;  %v1041_v17 = vsel %vm1020_vm0, %v1038_v14, 0.0  ;;  %v1047_v18 = vsel %vm1027_vm1, %v1040_v15, 0.0 }
  0xda   : > { %1042 = vadd.xlane.f32.xlu1 %v1041_v17 }
  0xdb   : > { %v1039_v19 = vmul.f32 %v1036_v16, %v1036_v16 }
  0xdd   : > { %v1044_v20 = vsel %vm1020_vm0, %v1039_v19, 0.0 }
  0xde   : > { %1048 = vadd.xlane.f32.xlu1 %v1047_v18  ;;  %1045 = vadd.xlane.f32.xlu0 %v1044_v20 }
 0x167   : > { %v1043_v35 = vpop.xlane.xlu1 %1042 }
 0x168   : > { %v1050_v36 = vmul.f32 0.03125, %v1043_v35 }
 0x16a   : > { %v1053_v37 = vadd.f32 1e-06, %v1050_v36 }
 0x16b   : > { %v1049_v38 = vpop.xlane.xlu1 %1048  ;;  %v1046_v39 = vpop.xlane.xlu0 %1045 }
 0x16c   : > { %5320 = vrsqrt.f32 %v1053_v37  ;;  %v1052_v40 = vmul.f32 0.03125, %v1049_v38  ;;  %v1051_v41 = vmul.f32 0.03125, %v1046_v39 }
 0x16e   : > { %v1055_v42 = vadd.f32 1e-06, %v1052_v40  ;;  %v1054_v43 = vadd.f32 1e-06, %v1051_v41 }
 0x170   : > { %5322 = vrsqrt.f32 %v1055_v42 }
 0x171   : > { %5324 = vrsqrt.f32 %v1054_v43 }
 0x176   : > { %v5321_v44 = vpop.eup %5320 }
 0x177   : > { %v1059_v46 = vmul.f32 %v5321_v44, %v1035_v10 }
 0x179   : > { %v1068_v50 = vmul.f32 %v4251_v45, %v1059_v46 }
 0x17a   : > { %v5323_v51 = vpop.eup %5322 }
 0x17b   : > { %v5325_v53 = vpop.eup %5324  ;;  %v5681_v54 = vadd.f32 %v4252_v49, %v1068_v50  ;;  %v1061_v55 = vmul.f32 %v5323_v51, %v5651_v11 }
 0x17c   : > { %v1060_v56 = vmul.f32 %v5325_v53, %v1036_v16 }
 0x17d   : > { %4620 = vmatmul.mubr.msk.f32.vlgmr.msra.gmra.mrb[0].mxu1 %vm1020_vm0, %v5681_v54  ;;  %4654 = vmatmul.mubr.msk.f32.vlgmr.msra.gmra.mrb[0].mxu0 %vm1020_vm0, %v5681_v54  ;;  %v1070_v60 = vmul.f32 %v4251_v45, %v1061_v55 }
 0x17e   : > { %v1069_v59 = vmul.f32 %v4251_v45, %v1060_v56  ;;  %4622 = vmatprep.mubr.msk.f32.mxu1 %vm5446_vm2, %v5447_v34  ;;  %5111 = vmatpush3.bf16.msra.mxu1 %v5110_v52 }
 0x17f   : > { %4656 = vmatprep.mubr.msk.f32.mxu0 %vm5446_vm2, %v5447_v34  ;;  %5112 = vmatprep.subr.bf16.mxu1 %v5445_v26  ;;  %v5705_v63 = vadd.f32 %v4252_v49, %v1070_v60 }
 0x180   : > { %v5695_v61 = vadd.f32 %v4252_v49, %v1069_v59 }
 0x182   : > { %4623 = vmatmul.mubr.msk.f32.gmra.mrb[2].mxu1 %vm1020_vm0, %v5695_v61  ;;  %4657 = vmatmul.mubr.msk.f32.gmra.mrb[2].mxu0 %vm1020_vm0, %v5695_v61 }
 0x183   : > { %4625 = vmatprep.mubr.msk.f32.mxu1 %vm5446_vm2, %v5447_v34  ;;  %4659 = vmatprep.mubr.msk.f32.mxu0 %vm5446_vm2, %v5447_v34 }
 0x184   : > { %5114 = vmatpush3.bf16.msra.mxu1 %v5113_v62 }
 0x185   : > { %5121 = vmatprep.subr.bf16.mxu1 %v5445_v26 }
 0x186   : > { %4626 = vmatmul.mubr.msk.f32.gmra.mrb[4].mxu1 %vm1020_vm0, %v5705_v63  ;;  %4660 = vmatmul.mubr.msk.f32.gmra.mrb[4].mxu0 %vm1020_vm0, %v5705_v63 }
 0x187   : > { %4636 = vmatprep.mubr.msk.f32.mxu1 %vm5446_vm2, %v5447_v34  ;;  %4683 = vmatprep.mubr.msk.f32.mxu0 %vm5446_vm2, %v5447_v34 }
 0x18a   : > { %4637 = vmatmul.mubr.msk.f32.vlgmr.msra.gmra.mrb[6].mxu1 %vm1020_vm0, %v5681_v54 }
 0x18b   : > { %4639 = vmatprep.mubr.msk.f32.mxu1 %vm5446_vm2, %v5447_v34 }
 0x18e   : > { %4640 = vmatmul.mubr.msk.f32.gmra.mrb[8].mxu1 %vm1020_vm0, %v5695_v61 }
 0x18f   : > { %4642 = vmatprep.mubr.msk.f32.mxu1 %vm5446_vm2, %v5447_v34 }
 0x192   : > { %4643 = vmatmul.mubr.msk.f32.gmra.mrb[10].mxu1 %vm1020_vm0, %v5705_v63 }
 0x193   : > { %4668 = vmatprep.mubr.msk.f32.mxu1 %vm5446_vm2, %v5447_v34 }
 0x250   : > { %v1174_v3 = vpop.f32.mrb[0].mxu1  ;;  %v1356_v4 = vpop.f32.mrb[0].mxu0 }
 0x251   : > { %v4621_v5 = vpop.f32.mrb[1].mxu1  ;;  %v4655_v6 = vpop.f32.mrb[1].mxu0  ;;  %v1357_v10 = vadd.f32 %v4262_v7, %v1356_v4  ;;  %v1175_v35 = vadd.f32 %v4254_v32, %v1174_v3 }
 0x255   : > { %v1179_v8 = vpop.f32.mrb[2].mxu1  ;;  %v1361_v9 = vpop.f32.mrb[2].mxu0 }
 0x256   : > { %v1362_v11 = vadd.f32 %v4262_v7, %v1361_v9  ;;  %v4624_v12 = vpop.f32.mrb[3].mxu1  ;;  %v4658_v13 = vpop.f32.mrb[3].mxu0  ;;  %v1180_v36 = vadd.f32 %v4254_v32, %v1179_v8  ;;  %v1601_v8 = vld [vmem:[%s5501_s14 + $0x8] sm:$0xff] }
 0x257   : > { %v4279_v13 = vld [vmem:[%s5471_s17 + $0x20] sm:$0xff] }
 0x258   : > { %v5126_v14 = vpack.c.bf16 %v1362_v11, %v1357_v10 }
 0x259   : > { %v1184_v15 = vpop.f32.mrb[4].mxu1  ;;  %v1366_v16 = vpop.f32.mrb[4].mxu0 }
 0x25a   : > { %v4627_v17 = vpop.f32.mrb[5].mxu1  ;;  %v4661_v18 = vpop.f32.mrb[5].mxu0  ;;  %5127 = vmatpush3.bf16.msra.mxu0 %v5126_v14  ;;  %v1367_v19 = vadd.f32 %v4262_v7, %v1366_v16  ;;  %v1185_v37 = vadd.f32 %v4254_v32, %v1184_v15  ;;  %v1600_v7 = vld [vmem:[%s5501_s14] sm:$0xff]  ;;  %v4280_v14 = vld [vmem:[%s5471_s17 + $0x28] sm:$0xff] }
 0x25b   : > { %4681 = vmatprep.subr.mxu0 %v5447_v34  ;;  %v5129_v9 = vpack.c.bf16 %v1601_v8, %v1600_v7  ;;  %v5132_v16 = vpack.c.bf16 %v4280_v14, %v4279_v13  ;;  %v4281_v18 = vld [vmem:[%s5471_s17 + $0x30] sm:$0xff] }
 0x25d   : > { %v1265_v20 = vpop.f32.mrb[6].mxu1 }
 0x25e   : > { %v4638_v21 = vpop.f32.mrb[7].mxu1  ;;  %4682 = vmatpush3.msk.msra.mxu0 %vm1516_vm3, %v1367_v19  ;;  %v1266_v24 = vadd.f32 %v4258_v22, %v1265_v20  ;;  %v4282_v19 = vld [vmem:[%s5471_s17 + $0x38] sm:$0xff] }
 0x25f   : > { %5131 = vmatprep.subr.bf16.mxu0 %v5445_v26  ;;  %v5135_v21 = vpack.c.bf16 %v4282_v19, %v4281_v18  ;;  %v4284_v18 = vld [vmem:[%s5476_s21 + $0x1] ss:$0 sm:$0xff] }
 0x261   : > { %v1270_v23 = vpop.f32.mrb[8].mxu1 }
 0x262   : > { %v1271_v25 = vadd.f32 %v4258_v22, %v1270_v23  ;;  %v4641_v27 = vpop.f32.mrb[9].mxu1 }
 0x263   : > { %v4298_v27 = vld [vmem:[%s5491_s3 + $0x28] sm:$0xff] }
 0x264   : > { %v5122_v29 = vpack.c.bf16 %v1271_v25, %v1266_v24  ;;  %v4297_v25 = vld [vmem:[%s5491_s3 + $0x20] sm:$0xff] }
 0x265   : > { %v1275_v30 = vpop.f32.mrb[10].mxu1 }
 0x266   : > { %v4644_v31 = vpop.f32.mrb[11].mxu1  ;;  %5124 = vmatpush3.bf16.xpose.msk.msra.mxu1 %vm5735_vm5, %v5122_v29  ;;  %v1276_v33 = vadd.f32 %v4258_v22, %v1275_v30  ;;  %v5144_v29 = vpack.c.bf16 %v4298_v27, %v4297_v25  ;;  %v4299_v30 = vld [vmem:[%s5491_s3 + $0x30] sm:$0xff] }
 0x267   : > { %4666 = vmatprep.subr.mxu1 %v5447_v34  ;;  %v4300_v31 = vld [vmem:[%s5491_s3 + $0x38] sm:$0xff] }
 0x268   : > { %v5147_v32 = vpack.c.bf16 %v4300_v31, %v4299_v30 }
 0x26e   : > { %4667 = vmatpush3.xpose.msk.msra.mxu1 %vm1370_vm4, %v1276_v33  ;;  %v4288_v33 = vld [vmem:[%s5481_s25 + $0x20] sm:$0xff] }
 0x26f   : > { %5128 = vmatprep.subr.bf16.mxu1 %v5445_v26 }
 0x271   : > { %4669 = vmatmul.mubr.msk.f32.vlgmr.msra.gmra.mrb[12].mxu1 %vm1370_vm4, %v1175_v35  ;;  %v4289_v35 = vld [vmem:[%s5481_s25 + $0x28] sm:$0xff] }
 0x272   : > { %4671 = vmatprep.mubr.msk.f32.mxu1 %vm5446_vm2, %v5447_v34  ;;  %5130 = vmatpush3.bf16.msra.mxu1 %v5129_v9 }
 0x273   : > { %5137 = vmatprep.subr.bf16.mxu1 %v5445_v26 }
 0x275   : > { %4672 = vmatmul.mubr.msk.f32.gmra.mrb[14].mxu1 %vm1370_vm4, %v1180_v36  ;;  %v5138_v36 = vpack.c.bf16 %v4289_v35, %v4288_v33 }
 0x276   : > { %4674 = vmatprep.mubr.msk.f32.mxu1 %vm5446_vm2, %v5447_v34 }
 0x279   : > { %4675 = vmatmul.mubr.msk.f32.gmra.mrb[16].mxu1 %vm1370_vm4, %v1185_v37  ;;  %v4290_v37 = vld [vmem:[%s5481_s25 + $0x30] sm:$0xff] }
 0x27a   : > { %4696 = vmatprep.mubr.msk.f32.mxu1 %vm5446_vm2, %v5447_v34 }
 0x344   : > { %v1455_v38 = vpop.f32.mrb[12].mxu1 }
 0x345   : > { %v1469_v39 = vmul.f32 0.25, %v1455_v38  ;;  %v4670_v40 = vpop.f32.mrb[13].mxu1  ;;  %v4291_v38 = vld [vmem:[%s5481_s25 + $0x38] sm:$0xff] }
 0x347   : > { %v1473_v41 = vsel %vm1472_vm6, %v1469_v39, -inf }
 0x348   : > { %1474 = vmax.xlane.f32.xlu0 %v1473_v41  ;;  %v1460_v42 = vpop.f32.mrb[14].mxu1  ;;  %v5141_v41 = vpack.c.bf16 %v4291_v38, %v4290_v37 }
 0x349   : > { %v1470_v43 = vmul.f32 0.25, %v1460_v42  ;;  %v4673_v44 = vpop.f32.mrb[15].mxu1 }
 0x34b   : > { %v1476_v45 = vsel %vm1472_vm6, %v1470_v43, -inf }
 0x34c   : > { %1477 = vmax.xlane.f32.xlu1 %v1476_v45  ;;  %v1465_v46 = vpop.f32.mrb[16].mxu1 }
 0x34d   : > { %v1471_v47 = vmul.f32 0.25, %v1465_v46  ;;  %v4676_v48 = vpop.f32.mrb[17].mxu1 }
 0x34f   : > { %v1480_v49 = vsel %vm1479_vm7, %v1471_v47, -inf }
 0x350   : > { %1481 = vmax.xlane.f32.xlu0 %v1480_v49 }
 0x3d5   : > { %v1475_v50 = vpop.xlane.xlu0 %1474 }
 0x3d6   : > { %v1483_v51 = vsub.f32 %v1469_v39, %v1475_v50 }
 0x3d8   : > { %v1486_v52 = vmul.f32 1.442695, %v1483_v51 }
 0x3d9   : > { %v1478_v53 = vpop.xlane.xlu1 %1477 }
 0x3da   : > { %5326 = vpow2.f32 %v1486_v52  ;;  %v1484_v55 = vsub.f32 %v1470_v43, %v1478_v53  ;;  %v4302_v53 = vld [vmem:[%s5496_s8 + $0x1] ss:$0 sm:$0xff] }
 0x3dc   : > { %v1488_v56 = vmul.f32 1.442695, %v1484_v55 }
 0x3dd   : > { %v1482_v57 = vpop.xlane.xlu0 %1481 }
 0x3de   : > { %5328 = vpow2.f32 %v1488_v56  ;;  %v1485_v58 = vsub.f32 %v1471_v47, %v1482_v57 }
 0x3e0   : > { %v1490_v59 = vmul.f32 1.442695, %v1485_v58 }
 0x3e2   : > { %5330 = vpow2.f32 %v1490_v59 }
 0x3e4   : > { %v5327_v60 = vpop.eup %5326 }
 0x3e5   : > { %v1492_v62 = vsel %vm1472_vm6, %v5327_v60, 0.0 }
 0x3e6   : > { %1493 = vadd.xlane.f32.xlu1 %v1492_v62 }
 0x3e8   : > { %v5329_v3 = vpop.eup %5328 }
 0x3e9   : > { %v1495_v4 = vsel %vm1472_vm6, %v5329_v3, 0.0 }
 0x3ea   : > { %1496 = vadd.xlane.f32.xlu0 %v1495_v4 }
 0x3ec   : > { %v5331_v5 = vpop.eup %5330 }
 0x3ed   : > { %v1498_v6 = vsel %vm1479_vm7, %v5331_v5, 0.0 }
 0x3ee   : > { %1499 = vadd.xlane.f32.xlu1 %v1498_v6 }
 0x473   : > { %v1494_v10 = vpop.xlane.xlu1 %1493 }
 0x474   : > { %5332 = vrcp.f32 %v1494_v10  ;;  %v4293_v10 = vld [vmem:[%s5486_s29 + $0x1] ss:$0 sm:$0xff] }
 0x477   : > { %v1497_v11 = vpop.xlane.xlu0 %1496 }
 0x478   : > { %5334 = vrcp.f32 %v1497_v11 }
 0x47b   : > { %v1500_v12 = vpop.xlane.xlu1 %1499 }
 0x47c   : > { %5336 = vrcp.f32 %v1500_v12 }
 0x47e   : > { %v5333_v15 = vpop.eup %5332 }
 0x47f   : > { %v1504_v17 = vmul.f32 %v5333_v15, %v5327_v60 }
 0x481   : > { %4684 = vmatmul.mubr.msk.f32.vlgmr.msra.gmra.mrb[6].mxu0 %vm1472_vm6, %v1504_v17 }
 0x482   : > { %v5335_v20 = vpop.eup %5334  ;;  %4686 = vmatprep.mubr.msk.f32.mxu0 %vm5446_vm2, %v5447_v34  ;;  %5133 = vmatpush3.bf16.msra.mxu0 %v5132_v16 }
 0x483   : > { %v1505_v22 = vmul.f32 %v5335_v20, %v5329_v3  ;;  %5134 = vmatprep.subr.bf16.mxu0 %v5445_v26 }
 0x485   : > { %4687 = vmatmul.mubr.msk.f32.gmra.mrb[8].mxu0 %vm1472_vm6, %v1505_v22 }
 0x486   : > { %v5337_v23 = vpop.eup %5336  ;;  %4689 = vmatprep.mubr.msk.f32.mxu0 %vm5446_vm2, %v5447_v34  ;;  %5136 = vmatpush3.bf16.msra.mxu0 %v5135_v21 }
 0x487   : > { %v1506_v24 = vmul.f32 %v5337_v23, %v5331_v5  ;;  %5143 = vmatprep.subr.bf16.mxu0 %v5445_v26 }
 0x489   : > { %4690 = vmatmul.mubr.msk.f32.gmra.mrb[10].mxu0 %vm1472_vm6, %v1506_v24 }
 0x48a   : > { %4713 = vmatprep.mubr.msk.f32.mxu0 %vm5446_vm2, %v5447_v34 }
 0x48d   : > { %4714 = vmatmul.mubr.msk.f32.vlgmr.msra.gmra.mrb[12].mxu0 %vm1020_vm0, %v5681_v54 }
 0x48e   : > { %4716 = vmatprep.mubr.msk.f32.mxu0 %vm5446_vm2, %v5447_v34  ;;  %5145 = vmatpush3.bf16.msra.mxu0 %v5144_v29 }
 0x48f   : > { %5146 = vmatprep.subr.bf16.mxu0 %v5445_v26 }
 0x491   : > { %4717 = vmatmul.mubr.msk.f32.gmra.mrb[14].mxu0 %vm1020_vm0, %v5695_v61 }
 0x492   : > { %4719 = vmatprep.mubr.msk.f32.mxu0 %vm5446_vm2, %v5447_v34  ;;  %5148 = vmatpush3.bf16.msra.mxu0 %v5147_v32 }
 0x493   : > { %5153 = vmatprep.subr.bf16.mxu0 %v5445_v26 }
 0x495   : > { %4720 = vmatmul.mubr.msk.f32.gmra.mrb[16].mxu0 %vm1020_vm0, %v5705_v63 }
 0x496   : > { %4747 = vmatprep.mubr.msk.f32.mxu0 %vm5446_vm2, %v5447_v34 }
 0x499   : > { %4748 = vmatmul.mubr.msk.f32.vlgmr.msra.gmra.mrb[18].mxu0 %vm1020_vm0, %v5681_v54 }
 0x49a   : > { %4750 = vmatprep.mubr.msk.f32.mxu0 %vm5446_vm2, %v5447_v34 }
 0x49d   : > { %4751 = vmatmul.mubr.msk.f32.gmra.mrb[20].mxu0 %vm1020_vm0, %v5695_v61 }
 0x49e   : > { %4753 = vmatprep.mubr.msk.f32.mxu0 %vm5446_vm2, %v5447_v34 }
 0x4a1   : > { %4754 = vmatmul.mubr.msk.f32.gmra.mrb[22].mxu0 %vm1020_vm0, %v5705_v63 }
 0x4a2   : > { %4777 = vmatprep.mubr.msk.f32.mxu0 %vm5446_vm2, %v5447_v34 }
 0x554   : > { %v1586_v39 = vpop.f32.mrb[6].mxu0 }
 0x555   : > { %v4685_v40 = vpop.f32.mrb[7].mxu0  ;;  %4697 = vmatmul.mubr.msk.f32.vlgmr.msra.gmra.mrb[18].mxu1 %vm1370_vm4, %v1586_v39 }
 0x556   : > { %4699 = vmatprep.mubr.msk.f32.mxu1 %vm5446_vm2, %v5447_v34  ;;  %5139 = vmatpush3.bf16.msra.mxu1 %v5138_v36 }
 0x557   : > { %5140 = vmatprep.subr.bf16.mxu1 %v5445_v26 }
 0x558   : > { %v1591_v42 = vpop.f32.mrb[8].mxu0 }
 0x559   : > { %v4688_v43 = vpop.f32.mrb[9].mxu0  ;;  %4700 = vmatmul.mubr.msk.f32.gmra.mrb[20].mxu1 %vm1370_vm4, %v1591_v42 }
 0x55a   : > { %4702 = vmatprep.mubr.msk.f32.mxu1 %vm5446_vm2, %v5447_v34  ;;  %5142 = vmatpush3.bf16.msra.mxu1 %v5141_v41 }
 0x55b   : > { %5149 = vmatprep.subr.bf16.mxu1 %v5445_v26 }
 0x55c   : > { %v1596_v44 = vpop.f32.mrb[10].mxu0 }
 0x55d   : > { %v4691_v45 = vpop.f32.mrb[11].mxu0  ;;  %4703 = vmatmul.mubr.msk.f32.gmra.mrb[22].mxu1 %vm1370_vm4, %v1596_v44 }
 0x55e   : > { %4730 = vmatprep.mubr.msk.f32.mxu1 %vm5446_vm2, %v5447_v34 }
 0x560   : > { %v1773_v46 = vpop.f32.mrb[12].mxu0 }
 0x561   : > { %v4715_v47 = vpop.f32.mrb[13].mxu0  ;;  %4731 = vmatmul.mubr.msk.f32.vlgmr.msra.gmra.mrb[24].mxu1 %vm1020_vm0, %v5681_v54  ;;  %v1774_v20 = vadd.f32 %v4284_v18, %v1773_v46 }
 0x562   : > { %4733 = vmatprep.mubr.msk.f32.mxu1 %vm5446_vm2, %v5447_v34 }
 0x564   : > { %v1778_v48 = vpop.f32.mrb[14].mxu0 }
 0x565   : > { %v4718_v49 = vpop.f32.mrb[15].mxu0  ;;  %4734 = vmatmul.mubr.msk.f32.gmra.mrb[26].mxu1 %vm1020_vm0, %v5695_v61  ;;  %v1779_v21 = vadd.f32 %v4284_v18, %v1778_v48 }
 0x566   : > { %4736 = vmatprep.mubr.msk.f32.mxu1 %vm5446_vm2, %v5447_v34 }
 0x568   : > { %v1783_v50 = vpop.f32.mrb[16].mxu0 }
 0x569   : > { %v4721_v51 = vpop.f32.mrb[17].mxu0  ;;  %4737 = vmatmul.mubr.msk.f32.gmra.mrb[28].mxu1 %vm1020_vm0, %v5705_v63  ;;  %v1784_v22 = vadd.f32 %v4284_v18, %v1783_v50 }
 0x56a   : > { %4762 = vmatprep.mubr.msk.f32.mxu1 %vm5446_vm2, %v5447_v34 }
 0x56c   : > { %v1959_v54 = vpop.f32.mrb[18].mxu0 }
 0x56d   : > { %v4749_v52 = vpop.f32.mrb[19].mxu0  ;;  %v1960_v56 = vadd.f32 %v4302_v53, %v1959_v54 }
 0x56e   : > { %v4316_v52 = vld [vmem:[%s5501_s14 + $0x10] sm:$0xff] }
 0x570   : > { %v1964_v55 = vpop.f32.mrb[20].mxu0 }
 0x571   : > { %v1965_v57 = vadd.f32 %v4302_v53, %v1964_v55  ;;  %v4752_v58 = vpop.f32.mrb[21].mxu0 }
 0x573   : > { %v5154_v59 = vpack.c.bf16 %v1965_v57, %v1960_v56 }
 0x574   : > { %v1969_v61 = vpop.f32.mrb[22].mxu0 }
 0x575   : > { %v4755_v60 = vpop.f32.mrb[23].mxu0  ;;  %5155 = vmatpush3.bf16.msra.mxu0 %v5154_v59  ;;  %v1970_v62 = vadd.f32 %v4302_v53, %v1969_v61  ;;  %v4317_v53 = vld [vmem:[%s5501_s14 + $0x18] sm:$0xff] }
 0x576   : > { %4775 = vmatprep.subr.mxu0 %v5447_v34  ;;  %v5157_v55 = vpack.c.bf16 %v4317_v53, %v4316_v52 }
 0x579   : > { %4776 = vmatpush3.msk.msra.mxu0 %vm1516_vm3, %v1970_v62 }
 0x57a   : > { %5159 = vmatprep.subr.bf16.mxu0 %v5445_v26 }
 0x628   : > { %v5839_v63 = vpop.f32.mrb[18].mxu1 }
 0x629   : > { %v4698_v3 = vpop.f32.mrb[19].mxu1 }
 0x62c   : > { %v5841_v4 = vpop.f32.mrb[20].mxu1 }
 0x62d   : > { %v4701_v5 = vpop.f32.mrb[21].mxu1 }
 0x630   : > { %v5843_v6 = vpop.f32.mrb[22].mxu1 }
 0x631   : > { %v4704_v7 = vpop.f32.mrb[23].mxu1 }
 0x634   : > { %v1866_v8 = vpop.f32.mrb[24].mxu1 }
 0x635   : > { %v4732_v9 = vpop.f32.mrb[25].mxu1  ;;  %v1867_v12 = vadd.f32 %v4293_v10, %v1866_v8 }
 0x638   : > { %v1871_v11 = vpop.f32.mrb[26].mxu1 }
 0x639   : > { %v1872_v13 = vadd.f32 %v4293_v10, %v1871_v11  ;;  %v4735_v14 = vpop.f32.mrb[27].mxu1 }
 0x63b   : > { %v5150_v15 = vpack.c.bf16 %v1872_v13, %v1867_v12  ;;  %v4253_v13 = vld [vmem:[%s5506_s19] ss:$0 sm:$0xff] }
 0x63c   : > { %v1876_v16 = vpop.f32.mrb[28].mxu1  ;;  %v1691_v14 = vadd.f32 %v4253_v13, %v5839_v63  ;;  %v1692_v18 = vadd.f32 %v4253_v13, %v5841_v4 }
 0x63d   : > { %v4738_v17 = vpop.f32.mrb[29].mxu1  ;;  %5152 = vmatpush3.bf16.xpose.msk.msra.mxu1 %vm5735_vm5, %v5150_v15  ;;  %v1877_v19 = vadd.f32 %v4293_v10, %v1876_v16 }
 0x63e   : > { %4760 = vmatprep.subr.mxu1 %v5447_v34 }
 0x645   : > { %4761 = vmatpush3.xpose.msk.msra.mxu1 %vm1370_vm4, %v1877_v19 }
 0x646   : > { %5156 = vmatprep.subr.bf16.mxu1 %v5445_v26 }
 0x648   : > { %4763 = vmatmul.mubr.msk.f32.vlgmr.msra.gmra.mrb[30].mxu1 %vm1370_vm4, %v1774_v20 }
 0x649   : > { %4765 = vmatprep.mubr.msk.f32.mxu1 %vm5446_vm2, %v5447_v34  ;;  %5158 = vmatpush3.bf16.msra.mxu1 %v5157_v55 }
 0x64a   : > { %5165 = vmatprep.subr.bf16.mxu1 %v5445_v26 }
 0x64c   : > { %4766 = vmatmul.mubr.msk.f32.gmra.mrb[32].mxu1 %vm1370_vm4, %v1779_v21 }
 0x64d   : > { %4768 = vmatprep.mubr.msk.f32.mxu1 %vm5446_vm2, %v5447_v34 }
 0x650   : > { %4769 = vmatmul.mubr.msk.f32.gmra.mrb[34].mxu1 %vm1370_vm4, %v1784_v22 }
 0x651   : > { %4790 = vmatprep.mubr.msk.f32.mxu1 %vm5446_vm2, %v5447_v34 }
 0x71b   : > { %v2057_v23 = vpop.f32.mrb[30].mxu1 }
 0x71c   : > { %v2071_v24 = vmul.f32 0.25, %v2057_v23  ;;  %v4764_v25 = vpop.f32.mrb[31].mxu1 }
 0x71e   : > { %v2074_v27 = vsel %vm1472_vm6, %v2071_v24, -inf }
 0x71f   : > { %2075 = vmax.xlane.f32.xlu0 %v2074_v27  ;;  %v2062_v29 = vpop.f32.mrb[32].mxu1 }
 0x720   : > { %v2072_v30 = vmul.f32 0.25, %v2062_v29  ;;  %v4767_v31 = vpop.f32.mrb[33].mxu1 }
 0x722   : > { %v2077_v32 = vsel %vm1472_vm6, %v2072_v30, -inf }
 0x723   : > { %2078 = vmax.xlane.f32.xlu1 %v2077_v32  ;;  %v2067_v33 = vpop.f32.mrb[34].mxu1 }
 0x724   : > { %v2073_v35 = vmul.f32 0.25, %v2067_v33  ;;  %v4770_v36 = vpop.f32.mrb[35].mxu1 }
 0x726   : > { %v2080_v37 = vsel %vm1479_vm7, %v2073_v35, -inf }
 0x727   : > { %2081 = vmax.xlane.f32.xlu0 %v2080_v37 }
 0x7ac   : > { %v2076_v38 = vpop.xlane.xlu0 %2075 }
 0x7ad   : > { %v2083_v39 = vsub.f32 %v2071_v24, %v2076_v38  ;;  %v1693_v24 = vadd.f32 %v4253_v13, %v5843_v6 }
 0x7af   : > { %v2086_v40 = vmul.f32 1.442695, %v2083_v39 }
 0x7b0   : > { %v2079_v41 = vpop.xlane.xlu1 %2078 }
 0x7b1   : > { %5338 = vpow2.f32 %v2086_v40  ;;  %v2084_v42 = vsub.f32 %v2072_v30, %v2079_v41 }
 0x7b3   : > { %v2088_v43 = vmul.f32 1.442695, %v2084_v42 }
 0x7b4   : > { %v2082_v44 = vpop.xlane.xlu0 %2081 }
 0x7b5   : > { %5340 = vpow2.f32 %v2088_v43  ;;  %v2085_v45 = vsub.f32 %v2073_v35, %v2082_v44  ;;  %v2356_v44 = vld [vmem:[%s5521_s6] sm:$0xff] }
 0x7b7   : > { %v2090_v46 = vmul.f32 1.442695, %v2085_v45  ;;  %v2357_v45 = vld [vmem:[%s5521_s6 + $0x8] sm:$0xff] }
 0x7b9   : > { %5342 = vpow2.f32 %v2090_v46  ;;  %v5160_v46 = vpack.c.bf16 %v2357_v45, %v2356_v44 }
 0x7bb   : > { %v5339_v47 = vpop.eup %5338 }
 0x7bc   : > { %v2092_v48 = vsel %vm1472_vm6, %v5339_v47, 0.0 }
 0x7bd   : > { %2093 = vadd.xlane.f32.xlu1 %v2092_v48  ;;  %v2359_v48 = vld [vmem:[%s5521_s6 + $0x18] sm:$0xff] }
 0x7bf   : > { %v5341_v49 = vpop.eup %5340 }
 0x7c0   : > { %v2095_v50 = vsel %vm1472_vm6, %v5341_v49, 0.0 }
 0x7c1   : > { %2096 = vadd.xlane.f32.xlu0 %v2095_v50  ;;  %v2483_v50 = vld [vmem:[%s5531_s20] sm:$0xff] }
 0x7c3   : > { %v5343_v51 = vpop.eup %5342 }
 0x7c4   : > { %v2098_v54 = vsel %vm1479_vm7, %v5343_v51, 0.0 }
 0x7c5   : > { %2099 = vadd.xlane.f32.xlu1 %v2098_v54 }
 0x84a   : > { %v2094_v56 = vpop.xlane.xlu1 %2093 }
 0x84b   : > { %5344 = vrcp.f32 %v2094_v56 }
 0x84e   : > { %v2097_v57 = vpop.xlane.xlu0 %2096 }
 0x84f   : > { %5346 = vrcp.f32 %v2097_v57 }
 0x852   : > { %v2100_v58 = vpop.xlane.xlu1 %2099 }
 0x853   : > { %5348 = vrcp.f32 %v2100_v58 }
 0x855   : > { %v5345_v59 = vpop.eup %5344 }
 0x856   : > { %v2104_v61 = vmul.f32 %v5345_v59, %v5339_v47  ;;  %v2358_v47 = vld [vmem:[%s5521_s6 + $0x10] sm:$0xff] }
 0x858   : > { %4778 = vmatmul.mubr.msk.f32.vlgmr.msra.gmra.mrb[24].mxu0 %vm1472_vm6, %v2104_v61 }
 0x859   : > { %v5347_v60 = vpop.eup %5346  ;;  %4780 = vmatprep.mubr.msk.f32.mxu0 %vm5446_vm2, %v5447_v34  ;;  %5161 = vmatpush3.bf16.msra.mxu0 %v5160_v46 }
 0x85a   : > { %v2105_v62 = vmul.f32 %v5347_v60, %v5341_v49  ;;  %5162 = vmatprep.subr.bf16.mxu0 %v5445_v26  ;;  %v5163_v49 = vpack.c.bf16 %v2359_v48, %v2358_v47 }
 0x85c   : > { %4781 = vmatmul.mubr.msk.f32.gmra.mrb[26].mxu0 %vm1472_vm6, %v2105_v62 }
 0x85d   : > { %v5349_v3 = vpop.eup %5348  ;;  %4783 = vmatprep.mubr.msk.f32.mxu0 %vm5446_vm2, %v5447_v34  ;;  %5164 = vmatpush3.bf16.msra.mxu0 %v5163_v49 }
 0x85e   : > { %v2106_v5 = vmul.f32 %v5349_v3, %v5343_v51  ;;  %5189 = vmatprep.subr.bf16.mxu0 %v5445_v26  ;;  %v2484_v51 = vld [vmem:[%s5531_s20 + $0x8] sm:$0xff]  ;;  %v4321_v3 = vld [vmem:[%s5511_s24] ss:$0 sm:$0xff] }
 0x85f   : > { %v5166_v54 = vpack.c.bf16 %v2484_v51, %v2483_v50 }
 0x860   : > { %4784 = vmatmul.mubr.msk.f32.gmra.mrb[28].mxu0 %vm1472_vm6, %v2106_v5 }
 0x861   : > { %4807 = vmatprep.mubr.msk.f32.mxu0 %vm5446_vm2, %v5447_v34 }
 0x92b   : > { %v2185_v7 = vpop.f32.mrb[24].mxu0 }
 0x92c   : > { %v4779_v8 = vpop.f32.mrb[25].mxu0  ;;  %4791 = vmatmul.mubr.msk.f32.vlgmr.msra.gmra.mrb[36].mxu1 %vm1370_vm4, %v2185_v7  ;;  %v4322_v7 = vld [vmem:[%s6306_s15] ss:$0 sm:$0xff]  ;;  %s6316_s15 = sld [smem:[#allocation8_spill]] }
 0x92d   : > { %4793 = vmatprep.mubr.msk.f32.mxu1 %vm5446_vm2, %v5447_v34  ;;  %5167 = vmatpush3.bf16.msra.mxu1 %v5166_v54 }
 0x92e   : > { %5168 = vmatprep.subr.bf16.mxu1 %v5445_v26 }
 0x92f   : > { %v2190_v9 = vpop.f32.mrb[26].mxu0 }
 0x930   : > { %v4782_v10 = vpop.f32.mrb[27].mxu0  ;;  %4794 = vmatmul.mubr.msk.f32.gmra.mrb[38].mxu1 %vm1370_vm4, %v2190_v9 }
 0x931   : > { %4796 = vmatprep.mubr.msk.f32.mxu1 %vm5446_vm2, %v5447_v34 }
 0x933   : > { %v2195_v11 = vpop.f32.mrb[28].mxu0 }
 0x934   : > { %v4785_v12 = vpop.f32.mrb[29].mxu0  ;;  %4797 = vmatmul.mubr.msk.f32.gmra.mrb[40].mxu1 %vm1370_vm4, %v2195_v11 }
 0x935   : > { %4848 = vmatprep.mubr.msk.f32.mxu1 %vm5446_vm2, %v5447_v34 }
 0x9ff   : > { %v2277_v15 = vpop.f32.mrb[36].mxu1 }
 0xa00   : > { %v2291_v16 = vadd.f32 %v2277_v15, %v1691_v14  ;;  %v4792_v17 = vpop.f32.mrb[37].mxu1 }
 0xa02   : > { %v5892_v19 = vadd.f32 %v2291_v16, %v5637_v0 }
 0xa03   : > { %v2282_v20 = vpop.f32.mrb[38].mxu1 }
 0xa04   : > { %v2292_v21 = vadd.f32 %v2282_v20, %v1692_v18  ;;  %v4795_v22 = vpop.f32.mrb[39].mxu1  ;;  %v2299_v23 = vsel %vm1020_vm0, %v5892_v19, 0.0  ;;  %v2485_v18 = vld [vmem:[%s5531_s20 + $0x10] sm:$0xff]  ;;  %v2486_v20 = vld [vmem:[%s5531_s20 + $0x18] sm:$0xff] }
 0xa05   : > { %2300 = vadd.xlane.f32.xlu0 %v2299_v23  ;;  %v2487_v22 = vld [vmem:[%s5531_s20 + $0x20] sm:$0xff]  ;;  %v2488_v23 = vld [vmem:[%s5531_s20 + $0x28] sm:$0xff] }
 0xa06   : > { %v5898_v25 = vadd.f32 %v2292_v21, %v5641_v2  ;;  %v5169_v21 = vpack.c.bf16 %v2486_v20, %v2485_v18  ;;  %v4327_v18 = vld [vmem:[%s6308_s18] ss:$0 sm:$0xff]  ;;  %s6318_s18 = sld [smem:[#allocation14_spill]] }
 0xa07   : > { %v2287_v63 = vpop.f32.mrb[40].mxu1 }
 0xa08   : > { %v2293_v27 = vadd.f32 %v2287_v63, %v1693_v24  ;;  %v4798_v29 = vpop.f32.mrb[41].mxu1  ;;  %v2302_v4 = vsel %vm1020_vm0, %v5898_v25, 0.0  ;;  %5170 = vmatpush3.bf16.msra.mxu1 %v5169_v21  ;;  %v5172_v24 = vpack.c.bf16 %v2488_v23, %v2487_v22  ;;  %v2489_v63 = vld [vmem:[%s5531_s20 + $0x30] sm:$0xff] }
 0xa09   : > { %2303 = vadd.xlane.f32.xlu1 %v2302_v4  ;;  %5171 = vmatprep.subr.bf16.mxu1 %v5445_v26  ;;  %v2491_v4 = vld [vmem:[%s5531_s20 + $0x40] sm:$0xff] }
 0xa0a   : > { %v5903_v0 = vadd.f32 %v2293_v27, %v5639_v1  ;;  %v2490_v27 = vld [vmem:[%s5531_s20 + $0x38] sm:$0xff] }
 0xa0b   : > { %v5175_v29 = vpack.c.bf16 %v2490_v27, %v2489_v63 }
 0xa0c   : > { %v2305_v30 = vsel %vm1027_vm1, %v5903_v0, 0.0  ;;  %5173 = vmatpush3.bf16.msra.mxu1 %v5172_v24 }
 0xa0d   : > { %2306 = vadd.xlane.f32.xlu0 %v2305_v30  ;;  %5174 = vmatprep.subr.bf16.mxu1 %v5445_v26  ;;  %v2492_v30 = vld [vmem:[%s5531_s20 + $0x48] sm:$0xff] }
 0xa10   : > { %5176 = vmatpush3.bf16.msra.mxu1 %v5175_v29 }
 0xa11   : > { %5177 = vmatprep.subr.bf16.mxu1 %v5445_v26 }
 0xa92   : > { %v2301_v31 = vpop.xlane.xlu0 %2300 }
 0xa93   : > { %v2308_v32 = vmul.f32 0.03125, %v2301_v31  ;;  %v5178_v31 = vpack.c.bf16 %v2492_v30, %v2491_v4 }
 0xa95   : > { %v2311_v6 = vsub.f32 %v5892_v19, %v2308_v32  ;;  %5179 = vmatpush3.bf16.msra.mxu1 %v5178_v31  ;;  %v2493_v32 = vld [vmem:[%s5531_s20 + $0x50] sm:$0xff] }
 0xa96   : > { %v2304_v2 = vpop.xlane.xlu1 %2303  ;;  %5180 = vmatprep.subr.bf16.mxu1 %v5445_v26 }
 0xa97   : > { %v2309_v33 = vmul.f32 0.03125, %v2304_v2  ;;  %v2314_v35 = vmul.f32 %v2311_v6, %v2311_v6 }
 0xa99   : > { %v2312_v36 = vsub.f32 %v5898_v25, %v2309_v33  ;;  %v2317_v37 = vsel %vm1020_vm0, %v2314_v35, 0.0  ;;  %v2495_v33 = vld [vmem:[%s5531_s20 + $0x60] sm:$0xff]  ;;  %v2496_v35 = vld [vmem:[%s5531_s20 + $0x68] sm:$0xff] }
 0xa9a   : > { %2318 = vadd.xlane.f32.xlu1 %v2317_v37  ;;  %v2307_v1 = vpop.xlane.xlu0 %2306  ;;  %v2497_v37 = vld [vmem:[%s5531_s20 + $0x70] sm:$0xff] }
 0xa9b   : > { %v2310_v38 = vmul.f32 0.03125, %v2307_v1  ;;  %v2315_v39 = vmul.f32 %v2312_v36, %v2312_v36  ;;  %v2498_v1 = vld [vmem:[%s5531_s20 + $0x78] sm:$0xff] }
 0xa9d   : > { %v2313_v40 = vsub.f32 %v5903_v0, %v2310_v38  ;;  %v2320_v41 = vsel %vm1020_vm0, %v2315_v39, 0.0  ;;  %v5187_v38 = vpack.c.bf16 %v2498_v1, %v2497_v37  ;;  %v4323_v39 = vld [vmem:[%s6307_s16] ss:$0 sm:$0xff]  ;;  %s6317_s16 = sld [smem:[#allocation13_spill]] }
 0xa9e   : > { %2321 = vadd.xlane.f32.xlu0 %v2320_v41 }
 0xa9f   : > { %v2316_v42 = vmul.f32 %v2313_v40, %v2313_v40 }
 0xaa1   : > { %v2323_v43 = vsel %vm1027_vm1, %v2316_v42, 0.0 }
 0xaa2   : > { %2324 = vadd.xlane.f32.xlu1 %v2323_v43 }
 0xb27   : > { %v2319_v52 = vpop.xlane.xlu1 %2318 }
 0xb28   : > { %v2326_v53 = vmul.f32 0.03125, %v2319_v52 }
 0xb2a   : > { %v2329_v55 = vadd.f32 1e-06, %v2326_v53 }
 0xb2b   : > { %v2322_v56 = vpop.xlane.xlu0 %2321 }
 0xb2c   : > { %5350 = vrsqrt.f32 %v2329_v55  ;;  %v2327_v57 = vmul.f32 0.03125, %v2322_v56 }
 0xb2e   : > { %v2330_v58 = vadd.f32 1e-06, %v2327_v57 }
 0xb2f   : > { %v2325_v59 = vpop.xlane.xlu1 %2324 }
 0xb30   : > { %5352 = vrsqrt.f32 %v2330_v58  ;;  %v2328_v61 = vmul.f32 0.03125, %v2325_v59 }
 0xb32   : > { %v2331_v60 = vadd.f32 1e-06, %v2328_v61 }
 0xb34   : > { %5354 = vrsqrt.f32 %v2331_v60 }
 0xb36   : > { %v5351_v62 = vpop.eup %5350 }
 0xb37   : > { %v2335_v5 = vmul.f32 %v5351_v62, %v2311_v6  ;;  %v2494_v6 = vld [vmem:[%s5531_s20 + $0x58] sm:$0xff] }
 0xb38   : > { %v5181_v2 = vpack.c.bf16 %v2494_v6, %v2493_v32 }
 0xb39   : > { %v2344_v8 = vmul.f32 %v4321_v3, %v2335_v5 }
 0xb3a   : > { %v5353_v9 = vpop.eup %5352  ;;  %5182 = vmatpush3.bf16.msra.mxu1 %v5181_v2 }
 0xb3b   : > { %v2353_v10 = vadd.f32 %v4322_v7, %v2344_v8  ;;  %v2336_v11 = vmul.f32 %v5353_v9, %v2312_v36  ;;  %v5184_v36 = vpack.c.bf16 %v2496_v35, %v2495_v33  ;;  %5183 = vmatprep.subr.bf16.mxu1 %v5445_v26 }
 0xb3d   : > { %4808 = vmatmul.mubr.msk.f32.vlgmr.msra.gmra.mrb[30].mxu0 %vm1020_vm0, %v2353_v10  ;;  %v2345_v12 = vmul.f32 %v4321_v3, %v2336_v11 }
 0xb3e   : > { %v5355_v13 = vpop.eup %5354  ;;  %4810 = vmatprep.mubr.msk.f32.mxu0 %vm5446_vm2, %v5447_v34  ;;  %5185 = vmatpush3.bf16.msra.mxu1 %v5184_v36 }
 0xb3f   : > { %v2354_v14 = vadd.f32 %v4322_v7, %v2345_v12  ;;  %v2337_v15 = vmul.f32 %v5355_v13, %v2313_v40  ;;  %5186 = vmatprep.subr.bf16.mxu1 %v5445_v26 }
 0xb41   : > { %4811 = vmatmul.mubr.msk.f32.gmra.mrb[32].mxu0 %vm1020_vm0, %v2354_v14  ;;  %v2346_v16 = vmul.f32 %v4321_v3, %v2337_v15 }
 0xb42   : > { %4813 = vmatprep.mubr.msk.f32.mxu0 %vm5446_vm2, %v5447_v34  ;;  %5188 = vmatpush3.bf16.msra.mxu1 %v5187_v38 }
 0xb43   : > { %v2355_v17 = vadd.f32 %v4322_v7, %v2346_v16  ;;  %5201 = vmatprep.subr.bf16.mxu1 %v5445_v26 }
 0xb45   : > { %4814 = vmatmul.mubr.msk.f32.gmra.mrb[34].mxu0 %vm1020_vm0, %v2355_v17 }
 0xb46   : > { %4865 = vmatprep.mubr.msk.f32.mxu0 %vm5446_vm2, %v5447_v34 }
 0xc10   : > { %v2442_v40 = vpop.f32.mrb[30].mxu0 }
 0xc11   : > { %v2443_v41 = vadd.f32 %v4323_v39, %v2442_v40  ;;  %v4809_v42 = vpop.f32.mrb[31].mxu0 }
 0xc13   : > { %v2459_v43 = vmul.f32 0.044715, %v2443_v41  ;;  %v2456_v7 = vmul.f32 0.5, %v2443_v41 }
 0xc14   : > { %v2447_v44 = vpop.f32.mrb[32].mxu0 }
 0xc15   : > { %v2462_v45 = vmul.f32 %v2459_v43, %v2443_v41  ;;  %v2448_v46 = vadd.f32 %v4323_v39, %v2447_v44  ;;  %v4812_v47 = vpop.f32.mrb[33].mxu0 }
 0xc16   : > { %v2657_v47 = vld [vmem:[%s6309_s22 + $0x8] sm:$0xff] }
 0xc17   : > { %v2465_v48 = vmul.f32 %v2462_v45, %v2443_v41  ;;  %v2460_v49 = vmul.f32 0.044715, %v2448_v46  ;;  %v2457_v11 = vmul.f32 0.5, %v2448_v46 }
 0xc18   : > { %v2452_v50 = vpop.f32.mrb[34].mxu0 }
 0xc19   : > { %v2468_v51 = vadd.f32 %v2465_v48, %v2443_v41  ;;  %v2463_v54 = vmul.f32 %v2460_v49, %v2448_v46  ;;  %v2453_v52 = vadd.f32 %v4323_v39, %v2452_v50  ;;  %v4815_v53 = vpop.f32.mrb[35].mxu0  ;;  %v2847_v48 = vld [vmem:[%s6310_s23] sm:$0xff]  ;;  %v2848_v50 = vld [vmem:[%s6310_s23 + $0x8] sm:$0xff] }
 0xc1a   : > { %v2849_v53 = vld [vmem:[%s6310_s23 + $0x10] sm:$0xff] }
 0xc1b   : > { %v2471_v55 = vmul.f32 0.7978846, %v2468_v51  ;;  %v2461_v56 = vmul.f32 0.044715, %v2453_v52  ;;  %v2466_v57 = vmul.f32 %v2463_v54, %v2448_v46  ;;  %v2458_v15 = vmul.f32 0.5, %v2453_v52  ;;  %v2658_v54 = vld [vmem:[%s6309_s22 + $0x10] sm:$0xff] }
 0xc1c   : > { %v5202_v51 = vpack.c.bf16 %v2848_v50, %v2847_v48  ;;  %v4335_v48 = vld [vmem:[%s6315_s11] ss:$0 sm:$0xff] }
 0xc1d   : > { %5356 = vtanh.f32 %v2471_v55  ;;  %v2464_v58 = vmul.f32 %v2461_v56, %v2453_v52  ;;  %v2469_v59 = vadd.f32 %v2466_v57, %v2448_v46  ;;  %v2656_v46 = vld [vmem:[%s6309_s22] sm:$0xff]  ;;  %v2850_v56 = vld [vmem:[%s6310_s23 + $0x18] sm:$0xff] }
 0xc1e   : > { %v5190_v49 = vpack.c.bf16 %v2657_v47, %v2656_v46  ;;  %v5205_v57 = vpack.c.bf16 %v2850_v56, %v2849_v53  ;;  %v4331_v56 = vld [vmem:[%s6316_s15] ss:$0 sm:$0xff] }
 0xc1f   : > { %v2472_v61 = vmul.f32 0.7978846, %v2469_v59  ;;  %v2467_v60 = vmul.f32 %v2464_v58, %v2453_v52 }
 0xc20   : > { %5191 = vmatpush3.bf16.msra.mxu0 %v5190_v49 }
 0xc21   : > { %5358 = vtanh.f32 %v2472_v61  ;;  %v2470_v62 = vadd.f32 %v2467_v60, %v2453_v52  ;;  %5192 = vmatprep.subr.bf16.mxu0 %v5445_v26  ;;  %v2659_v52 = vld [vmem:[%s6309_s22 + $0x18] sm:$0xff] }
 0xc22   : > { %v5193_v55 = vpack.c.bf16 %v2659_v52, %v2658_v54 }
 0xc23   : > { %v2473_v3 = vmul.f32 0.7978846, %v2470_v62 }
 0xc24   : > { %5194 = vmatpush3.bf16.msra.mxu0 %v5193_v55 }
 0xc25   : > { %5360 = vtanh.f32 %v2473_v3  ;;  %5195 = vmatprep.subr.bf16.mxu0 %v5445_v26 }
 0xc27   : > { %v5357_v5 = vpop.eup %5356 }
 0xc28   : > { %v2477_v8 = vadd.f32 1.0, %v5357_v5 }
 0xc2a   : > { %v2480_v9 = vmul.f32 %v2477_v8, %v2456_v7 }
 0xc2b   : > { %v5359_v10 = vpop.eup %5358 }
 0xc2c   : > { %4849 = vmatmul.mubr.f32.vlgmr.msra.gmra.mrb[42].mxu1 %v2480_v9  ;;  %v2478_v12 = vadd.f32 1.0, %v5359_v10  ;;  %v4328_v10 = vld [vmem:[%s6311_s26] ss:$0 sm:$0xff]  ;;  %s6319_s26 = sld [smem:[#allocation17_spill]] }
 0xc2d   : > { %4851 = vmatprep.mubr.msk.f32.mxu1 %vm5446_vm2, %v5447_v34  ;;  %5203 = vmatpush3.bf16.msra.mxu1 %v5202_v51 }
 0xc2e   : > { %v2481_v13 = vmul.f32 %v2478_v12, %v2457_v11  ;;  %5204 = vmatprep.subr.bf16.mxu1 %v5445_v26  ;;  %v2756_v12 = vld [vmem:[%s6312_s28] sm:$0xff] }
 0xc2f   : > { %v5361_v14 = vpop.eup %5360 }
 0xc30   : > { %4852 = vmatmul.mubr.f32.gmra.mrb[44].mxu1 %v2481_v13  ;;  %v2479_v16 = vadd.f32 1.0, %v5361_v14  ;;  %v2757_v13 = vld [vmem:[%s6312_s28 + $0x8] sm:$0xff]  ;;  %v4329_v14 = vld [vmem:[%s6313_s1] ss:$0 sm:$0xff]  ;;  %s6320_s1 = sld [smem:[#allocation15_spill]] }
 0xc31   : > { %4854 = vmatprep.mubr.msk.f32.mxu1 %vm5446_vm2, %v5447_v34  ;;  %5206 = vmatpush3.bf16.msra.mxu1 %v5205_v57 }
 0xc32   : > { %v2482_v17 = vmul.f32 %v2479_v16, %v2458_v15  ;;  %5211 = vmatprep.subr.bf16.mxu1 %v5445_v26 }
 0xc34   : > { %4855 = vmatmul.mubr.f32.gmra.mrb[46].mxu1 %v2482_v17  ;;  %v5196_v17 = vpack.c.bf16 %v2757_v13, %v2756_v12 }
 0xc35   : > { %4899 = vmatprep.mubr.msk.f32.mxu1 %vm5446_vm2, %v5447_v34 }
 0xcff   : > { %v2572_v20 = vpop.f32.mrb[42].mxu1 }
 0xd00   : > { %v2573_v21 = vadd.f32 %v4327_v18, %v2572_v20  ;;  %v4850_v22 = vpop.f32.mrb[43].mxu1 }
 0xd01   : > { %v2759_v22 = vld [vmem:[%s6312_s28 + $0x18] sm:$0xff] }
 0xd02   : > { %v5963_v23 = vadd.f32 %v2573_v21, %v5892_v19  ;;  %v2758_v21 = vld [vmem:[%s6312_s28 + $0x10] sm:$0xff] }
 0xd03   : > { %v2577_v24 = vpop.f32.mrb[44].mxu1 }
 0xd04   : > { %v2578_v63 = vadd.f32 %v4327_v18, %v2577_v24  ;;  %v4853_v27 = vpop.f32.mrb[45].mxu1  ;;  %v2591_v29 = vsel %vm1020_vm0, %v5963_v23, 0.0 }
 0xd05   : > { %2592 = vadd.xlane.f32.xlu0 %v2591_v29 }
 0xd06   : > { %v5968_v4 = vadd.f32 %v2578_v63, %v5898_v25 }
 0xd07   : > { %v2582_v30 = vpop.f32.mrb[46].mxu1 }
 0xd08   : > { %v2583_v31 = vadd.f32 %v4327_v18, %v2582_v30  ;;  %v4856_v32 = vpop.f32.mrb[47].mxu1  ;;  %v2594_v6 = vsel %vm1020_vm0, %v5968_v4, 0.0  ;;  %v5199_v30 = vpack.c.bf16 %v2759_v22, %v2758_v21 }
 0xd09   : > { %2595 = vadd.xlane.f32.xlu1 %v2594_v6 }
 0xd0a   : > { %v5973_v19 = vadd.f32 %v2583_v31, %v5903_v0 }
 0xd0c   : > { %v2597_v2 = vsel %vm1027_vm1, %v5973_v19, 0.0 }
 0xd0d   : > { %2598 = vadd.xlane.f32.xlu0 %v2597_v2 }
 0xd92   : > { %v2593_v33 = vpop.xlane.xlu0 %2592 }
 0xd93   : > { %v2600_v35 = vmul.f32 0.03125, %v2593_v33 }
 0xd95   : > { %v2603_v36 = vsub.f32 %v5963_v23, %v2600_v35 }
 0xd96   : > { %v2596_v25 = vpop.xlane.xlu1 %2595 }
 0xd97   : > { %v2601_v37 = vmul.f32 0.03125, %v2596_v25  ;;  %v2606_v1 = vmul.f32 %v2603_v36, %v2603_v36 }
 0xd99   : > { %v2604_v38 = vsub.f32 %v5968_v4, %v2601_v37  ;;  %v2609_v0 = vsel %vm1020_vm0, %v2606_v1, 0.0 }
 0xd9a   : > { %2610 = vadd.xlane.f32.xlu1 %v2609_v0  ;;  %v2599_v39 = vpop.xlane.xlu0 %2598 }
 0xd9b   : > { %v2602_v40 = vmul.f32 0.03125, %v2599_v39  ;;  %v2607_v41 = vmul.f32 %v2604_v38, %v2604_v38 }
 0xd9d   : > { %v2605_v42 = vsub.f32 %v5973_v19, %v2602_v40  ;;  %v2612_v43 = vsel %vm1020_vm0, %v2607_v41, 0.0 }
 0xd9e   : > { %2613 = vadd.xlane.f32.xlu0 %v2612_v43 }
 0xd9f   : > { %v2608_v44 = vmul.f32 %v2605_v42, %v2605_v42 }
 0xda1   : > { %v2615_v45 = vsel %vm1027_vm1, %v2608_v44, 0.0 }
 0xda2   : > { %2616 = vadd.xlane.f32.xlu1 %v2615_v45 }
 0xe27   : > { %v2611_v58 = vpop.xlane.xlu1 %2610 }
 0xe28   : > { %v2618_v59 = vmul.f32 0.03125, %v2611_v58 }
 0xe2a   : > { %v2621_v61 = vadd.f32 1e-06, %v2618_v59 }
 0xe2b   : > { %v2614_v60 = vpop.xlane.xlu0 %2613 }
 0xe2c   : > { %5362 = vrsqrt.f32 %v2621_v61  ;;  %v2619_v62 = vmul.f32 0.03125, %v2614_v60 }
 0xe2e   : > { %v2622_v3 = vadd.f32 1e-06, %v2619_v62 }
 0xe2f   : > { %v2617_v5 = vpop.xlane.xlu1 %2616 }
 0xe30   : > { %5364 = vrsqrt.f32 %v2622_v3  ;;  %v2620_v7 = vmul.f32 0.03125, %v2617_v5 }
 0xe32   : > { %v2623_v8 = vadd.f32 1e-06, %v2620_v7 }
 0xe34   : > { %5366 = vrsqrt.f32 %v2623_v8 }
 0xe36   : > { %v5363_v9 = vpop.eup %5362 }
 0xe37   : > { %v2627_v11 = vmul.f32 %v5363_v9, %v2603_v36  ;;  %v4339_v36 = vld [vmem:[%s6314_s2] ss:$0 sm:$0xff] }
 0xe39   : > { %v2636_v15 = vmul.f32 %v4328_v10, %v2627_v11 }
 0xe3a   : > { %v5365_v16 = vpop.eup %5364 }
 0xe3b   : > { %v5999_v18 = vadd.f32 %v4329_v14, %v2636_v15  ;;  %v2628_v20 = vmul.f32 %v5365_v16, %v2604_v38 }
 0xe3d   : > { %v2637_v24 = vmul.f32 %v4328_v10, %v2628_v20  ;;  %4866 = vmatmul.mubr.msk.f32.vlgmr.msra.gmra.mrb[36].mxu0 %vm1020_vm0, %v5999_v18  ;;  %4900 = vmatmul.mubr.msk.f32.vlgmr.msra.gmra.mrb[48].mxu1 %vm1020_vm0, %v5999_v18 }
 0xe3e   : > { %v5367_v63 = vpop.eup %5366  ;;  %4868 = vmatprep.mubr.msk.f32.mxu0 %vm5446_vm2, %v5447_v34  ;;  %5197 = vmatpush3.bf16.msra.mxu0 %v5196_v17 }
 0xe3f   : > { %v6009_v27 = vadd.f32 %v4329_v14, %v2637_v24  ;;  %v2629_v29 = vmul.f32 %v5367_v63, %v2605_v42  ;;  %4902 = vmatprep.mubr.msk.f32.mxu1 %vm5446_vm2, %v5447_v34  ;;  %5198 = vmatprep.subr.bf16.mxu0 %v5445_v26 }
 0xe41   : > { %v2638_v31 = vmul.f32 %v4328_v10, %v2629_v29  ;;  %4869 = vmatmul.mubr.msk.f32.gmra.mrb[38].mxu0 %vm1020_vm0, %v6009_v27  ;;  %4903 = vmatmul.mubr.msk.f32.gmra.mrb[50].mxu1 %vm1020_vm0, %v6009_v27 }
 0xe42   : > { %4871 = vmatprep.mubr.msk.f32.mxu0 %vm5446_vm2, %v5447_v34  ;;  %4905 = vmatprep.mubr.msk.f32.mxu1 %vm5446_vm2, %v5447_v34 }
 0xe43   : > { %v6022_v32 = vadd.f32 %v4329_v14, %v2638_v31  ;;  %5200 = vmatpush3.bf16.msra.mxu0 %v5199_v30 }
 0xe44   : > { %5207 = vmatprep.subr.bf16.mxu0 %v5445_v26 }
 0xe45   : > { %4872 = vmatmul.mubr.msk.f32.gmra.mrb[40].mxu0 %vm1020_vm0, %v6022_v32  ;;  %4906 = vmatmul.mubr.msk.f32.gmra.mrb[52].mxu1 %vm1020_vm0, %v6022_v32 }
 0xe46   : > { %4882 = vmatprep.mubr.msk.f32.mxu0 %vm5446_vm2, %v5447_v34  ;;  %4929 = vmatprep.mubr.msk.f32.mxu1 %vm5446_vm2, %v5447_v34 }
 0xe49   : > { %4883 = vmatmul.mubr.msk.f32.vlgmr.msra.gmra.mrb[42].mxu0 %vm1020_vm0, %v5999_v18 }
 0xe4a   : > { %4885 = vmatprep.mubr.msk.f32.mxu0 %vm5446_vm2, %v5447_v34 }
 0xe4d   : > { %4886 = vmatmul.mubr.msk.f32.gmra.mrb[44].mxu0 %vm1020_vm0, %v6009_v27 }
 0xe4e   : > { %4888 = vmatprep.mubr.msk.f32.mxu0 %vm5446_vm2, %v5447_v34 }
 0xe51   : > { %4889 = vmatmul.mubr.msk.f32.gmra.mrb[46].mxu0 %vm1020_vm0, %v6022_v32 }
 0xe52   : > { %4914 = vmatprep.mubr.msk.f32.mxu0 %vm5446_vm2, %v5447_v34 }
 0xf10   : > { %v2742_v6 = vpop.f32.mrb[36].mxu0  ;;  %v2924_v2 = vpop.f32.mrb[48].mxu1 }
 0xf11   : > { %v4867_v33 = vpop.f32.mrb[37].mxu0  ;;  %v4901_v35 = vpop.f32.mrb[49].mxu1  ;;  %v2925_v1 = vadd.f32 %v4339_v36, %v2924_v2  ;;  %v2743_v58 = vadd.f32 %v4331_v56, %v2742_v6 }
 0xf14   : > { %v2747_v25 = vpop.f32.mrb[38].mxu0  ;;  %v2929_v37 = vpop.f32.mrb[50].mxu1 }
 0xf15   : > { %v2930_v38 = vadd.f32 %v4339_v36, %v2929_v37  ;;  %v4870_v0 = vpop.f32.mrb[39].mxu0  ;;  %v4904_v39 = vpop.f32.mrb[51].mxu1  ;;  %v2748_v59 = vadd.f32 %v4331_v56, %v2747_v25  ;;  %v3165_v25 = vld [vmem:[%s6317_s16 + $0x8] sm:$0xff] }
 0xf16   : > { %v4356_v39 = vld [vmem:[%s6309_s22 + $0x20] sm:$0xff] }
 0xf17   : > { %v5212_v40 = vpack.c.bf16 %v2930_v38, %v2925_v1 }
 0xf18   : > { %v2752_v41 = vpop.f32.mrb[40].mxu0  ;;  %v2934_v42 = vpop.f32.mrb[52].mxu1 }
 0xf19   : > { %v4873_v43 = vpop.f32.mrb[41].mxu0  ;;  %v4907_v44 = vpop.f32.mrb[53].mxu1  ;;  %5213 = vmatpush3.bf16.msra.mxu1 %v5212_v40  ;;  %v2935_v45 = vadd.f32 %v4339_v36, %v2934_v42  ;;  %v2753_v61 = vadd.f32 %v4331_v56, %v2752_v41  ;;  %v3164_v36 = vld [vmem:[%s6317_s16] sm:$0xff]  ;;  %v4357_v40 = vld [vmem:[%s6309_s22 + $0x28] sm:$0xff] }
 0xf1a   : > { %4927 = vmatprep.subr.mxu1 %v5447_v34  ;;  %v5215_v37 = vpack.c.bf16 %v3165_v25, %v3164_v36  ;;  %v5218_v42 = vpack.c.bf16 %v4357_v40, %v4356_v39  ;;  %v4358_v44 = vld [vmem:[%s6309_s22 + $0x30] sm:$0xff] }
 0xf1c   : > { %v2833_v46 = vpop.f32.mrb[42].mxu0 }
 0xf1d   : > { %v4884_v47 = vpop.f32.mrb[43].mxu0  ;;  %4928 = vmatpush3.msk.msra.mxu1 %vm1516_vm3, %v2935_v45  ;;  %v2834_v50 = vadd.f32 %v4335_v48, %v2833_v46  ;;  %v4359_v45 = vld [vmem:[%s6309_s22 + $0x38] sm:$0xff] }
 0xf1e   : > { %5217 = vmatprep.subr.bf16.mxu1 %v5445_v26  ;;  %v5221_v47 = vpack.c.bf16 %v4359_v45, %v4358_v44  ;;  %v4361_v44 = vld [vmem:[%s6316_s15 + $0x1] ss:$0 sm:$0xff] }
 0xf20   : > { %v2838_v49 = vpop.f32.mrb[44].mxu0 }
 0xf21   : > { %v2839_v51 = vadd.f32 %v4335_v48, %v2838_v49  ;;  %v4887_v54 = vpop.f32.mrb[45].mxu0 }
 0xf22   : > { %v4375_v54 = vld [vmem:[%s6310_s23 + $0x28] sm:$0xff] }
 0xf23   : > { %v5208_v52 = vpack.c.bf16 %v2839_v51, %v2834_v50  ;;  %v4374_v51 = vld [vmem:[%s6310_s23 + $0x20] sm:$0xff] }
 0xf24   : > { %v2843_v53 = vpop.f32.mrb[46].mxu0 }
 0xf25   : > { %v4890_v55 = vpop.f32.mrb[47].mxu0  ;;  %5210 = vmatpush3.bf16.xpose.msk.msra.mxu0 %vm5735_vm5, %v5208_v52  ;;  %v2844_v57 = vadd.f32 %v4335_v48, %v2843_v53  ;;  %v5230_v52 = vpack.c.bf16 %v4375_v54, %v4374_v51  ;;  %v4376_v53 = vld [vmem:[%s6310_s23 + $0x30] sm:$0xff] }
 0xf26   : > { %4912 = vmatprep.subr.mxu0 %v5447_v34  ;;  %v4377_v55 = vld [vmem:[%s6310_s23 + $0x38] sm:$0xff] }
 0xf27   : > { %v5233_v56 = vpack.c.bf16 %v4377_v55, %v4376_v53 }
 0xf2d   : > { %4913 = vmatpush3.xpose.msk.msra.mxu0 %vm1370_vm4, %v2844_v57  ;;  %v4365_v57 = vld [vmem:[%s6312_s28 + $0x20] sm:$0xff] }
 0xf2e   : > { %5214 = vmatprep.subr.bf16.mxu0 %v5445_v26 }
 0xf30   : > { %4915 = vmatmul.mubr.msk.f32.vlgmr.msra.gmra.mrb[48].mxu0 %vm1370_vm4, %v2743_v58  ;;  %v4366_v58 = vld [vmem:[%s6312_s28 + $0x28] sm:$0xff] }
 0xf31   : > { %4917 = vmatprep.mubr.msk.f32.mxu0 %vm5446_vm2, %v5447_v34  ;;  %5216 = vmatpush3.bf16.msra.mxu0 %v5215_v37 }
 0xf32   : > { %5223 = vmatprep.subr.bf16.mxu0 %v5445_v26 }
 0xf34   : > { %4918 = vmatmul.mubr.msk.f32.gmra.mrb[50].mxu0 %vm1370_vm4, %v2748_v59  ;;  %v5224_v59 = vpack.c.bf16 %v4366_v58, %v4365_v57 }
 0xf35   : > { %4920 = vmatprep.mubr.msk.f32.mxu0 %vm5446_vm2, %v5447_v34 }
 0xf38   : > { %4921 = vmatmul.mubr.msk.f32.gmra.mrb[52].mxu0 %vm1370_vm4, %v2753_v61  ;;  %v4367_v61 = vld [vmem:[%s6312_s28 + $0x30] sm:$0xff] }
 0xf39   : > { %4942 = vmatprep.mubr.msk.f32.mxu0 %vm5446_vm2, %v5447_v34 }
0x1003   : > { %v3022_v60 = vpop.f32.mrb[48].mxu0 }
0x1004   : > { %v3036_v62 = vmul.f32 0.25, %v3022_v60  ;;  %v4916_v3 = vpop.f32.mrb[49].mxu0  ;;  %v4368_v60 = vld [vmem:[%s6312_s28 + $0x38] sm:$0xff] }
0x1006   : > { %v3039_v5 = vsel %vm1472_vm6, %v3036_v62, -inf }
0x1007   : > { %3040 = vmax.xlane.f32.xlu0 %v3039_v5  ;;  %v3027_v7 = vpop.f32.mrb[50].mxu0  ;;  %v5227_v5 = vpack.c.bf16 %v4368_v60, %v4367_v61 }
0x1008   : > { %v3037_v8 = vmul.f32 0.25, %v3027_v7  ;;  %v4919_v9 = vpop.f32.mrb[51].mxu0 }
0x100a   : > { %v3042_v10 = vsel %vm1472_vm6, %v3037_v8, -inf }
0x100b   : > { %3043 = vmax.xlane.f32.xlu1 %v3042_v10  ;;  %v3032_v11 = vpop.f32.mrb[52].mxu0 }
0x100c   : > { %v3038_v12 = vmul.f32 0.25, %v3032_v11  ;;  %v4922_v13 = vpop.f32.mrb[53].mxu0 }
0x100e   : > { %v3045_v14 = vsel %vm1479_vm7, %v3038_v12, -inf }
0x100f   : > { %3046 = vmax.xlane.f32.xlu0 %v3045_v14 }
0x1094   : > { %v3041_v15 = vpop.xlane.xlu0 %3040 }
0x1095   : > { %v3048_v16 = vsub.f32 %v3036_v62, %v3041_v15 }
0x1097   : > { %v3051_v17 = vmul.f32 1.442695, %v3048_v16 }
0x1098   : > { %v3044_v20 = vpop.xlane.xlu1 %3043 }
0x1099   : > { %5368 = vpow2.f32 %v3051_v17  ;;  %v3049_v21 = vsub.f32 %v3037_v8, %v3044_v20  ;;  %v4379_v20 = vld [vmem:[%s6314_s2 + $0x1] ss:$0 sm:$0xff] }
0x109b   : > { %v3053_v22 = vmul.f32 1.442695, %v3049_v21 }
0x109c   : > { %v3047_v24 = vpop.xlane.xlu0 %3046 }
0x109d   : > { %5370 = vpow2.f32 %v3053_v22  ;;  %v3050_v63 = vsub.f32 %v3038_v12, %v3047_v24 }
0x109f   : > { %v3055_v29 = vmul.f32 1.442695, %v3050_v63 }
0x10a1   : > { %5372 = vpow2.f32 %v3055_v29 }
0x10a3   : > { %v5369_v30 = vpop.eup %5368 }
0x10a4   : > { %v3057_v31 = vsel %vm1472_vm6, %v5369_v30, 0.0 }
0x10a5   : > { %3058 = vadd.xlane.f32.xlu1 %v3057_v31 }
0x10a7   : > { %v5371_v6 = vpop.eup %5370 }
0x10a8   : > { %v3060_v2 = vsel %vm1472_vm6, %v5371_v6, 0.0 }
0x10a9   : > { %3061 = vadd.xlane.f32.xlu0 %v3060_v2 }
0x10ab   : > { %v5373_v33 = vpop.eup %5372 }
0x10ac   : > { %v3063_v35 = vsel %vm1479_vm7, %v5373_v33, 0.0 }
0x10ad   : > { %3064 = vadd.xlane.f32.xlu1 %v3063_v35 }
0x1132   : > { %v3059_v1 = vpop.xlane.xlu1 %3058 }
0x1133   : > { %5374 = vrcp.f32 %v3059_v1  ;;  %v4370_v1 = vld [vmem:[%s6315_s11 + $0x1] ss:$0 sm:$0xff] }
0x1136   : > { %v3062_v38 = vpop.xlane.xlu0 %3061 }
0x1137   : > { %5376 = vrcp.f32 %v3062_v38 }
0x113a   : > { %v3065_v0 = vpop.xlane.xlu1 %3064 }
0x113b   : > { %5378 = vrcp.f32 %v3065_v0 }
0x113d   : > { %v5375_v41 = vpop.eup %5374 }
0x113e   : > { %v3069_v43 = vmul.f32 %v5375_v41, %v5369_v30 }
0x1140   : > { %4930 = vmatmul.mubr.msk.f32.vlgmr.msra.gmra.mrb[54].mxu1 %vm1472_vm6, %v3069_v43 }
0x1141   : > { %v5377_v46 = vpop.eup %5376  ;;  %4932 = vmatprep.mubr.msk.f32.mxu1 %vm5446_vm2, %v5447_v34  ;;  %5219 = vmatpush3.bf16.msra.mxu1 %v5218_v42 }
0x1142   : > { %v3070_v48 = vmul.f32 %v5377_v46, %v5371_v6  ;;  %5220 = vmatprep.subr.bf16.mxu1 %v5445_v26 }
0x1144   : > { %4933 = vmatmul.mubr.msk.f32.gmra.mrb[56].mxu1 %vm1472_vm6, %v3070_v48 }
0x1145   : > { %v5379_v49 = vpop.eup %5378  ;;  %4935 = vmatprep.mubr.msk.f32.mxu1 %vm5446_vm2, %v5447_v34  ;;  %5222 = vmatpush3.bf16.msra.mxu1 %v5221_v47 }
0x1146   : > { %v3071_v50 = vmul.f32 %v5379_v49, %v5373_v33  ;;  %5229 = vmatprep.subr.bf16.mxu1 %v5445_v26 }
0x1148   : > { %4936 = vmatmul.mubr.msk.f32.gmra.mrb[58].mxu1 %vm1472_vm6, %v3071_v50 }
0x1149   : > { %4959 = vmatprep.mubr.msk.f32.mxu1 %vm5446_vm2, %v5447_v34 }
0x114c   : > { %4960 = vmatmul.mubr.msk.f32.vlgmr.msra.gmra.mrb[60].mxu1 %vm1020_vm0, %v5999_v18 }
0x114d   : > { %4962 = vmatprep.mubr.msk.f32.mxu1 %vm5446_vm2, %v5447_v34  ;;  %5231 = vmatpush3.bf16.msra.mxu1 %v5230_v52 }
0x114e   : > { %5232 = vmatprep.subr.bf16.mxu1 %v5445_v26 }
0x1150   : > { %4963 = vmatmul.mubr.msk.f32.gmra.mrb[62].mxu1 %vm1020_vm0, %v6009_v27 }
0x1151   : > { %4965 = vmatprep.mubr.msk.f32.mxu1 %vm5446_vm2, %v5447_v34  ;;  %5234 = vmatpush3.bf16.msra.mxu1 %v5233_v56 }
0x1152   : > { %5239 = vmatprep.subr.bf16.mxu1 %v5445_v26 }
0x1154   : > { %4966 = vmatmul.mubr.msk.f32.gmra.mrb[64].mxu1 %vm1020_vm0, %v6022_v32 }
0x1155   : > { %4993 = vmatprep.mubr.msk.f32.mxu1 %vm5446_vm2, %v5447_v34 }
0x1158   : > { %4994 = vmatmul.mubr.msk.f32.vlgmr.msra.gmra.mrb[66].mxu1 %vm1020_vm0, %v5999_v18 }
0x1159   : > { %4996 = vmatprep.mubr.msk.f32.mxu1 %vm5446_vm2, %v5447_v34 }
0x115c   : > { %4997 = vmatmul.mubr.msk.f32.gmra.mrb[68].mxu1 %vm1020_vm0, %v6009_v27 }
0x115d   : > { %4999 = vmatprep.mubr.msk.f32.mxu1 %vm5446_vm2, %v5447_v34 }
0x1160   : > { %5000 = vmatmul.mubr.msk.f32.gmra.mrb[70].mxu1 %vm1020_vm0, %v6022_v32 }
0x1161   : > { %5023 = vmatprep.mubr.msk.f32.mxu1 %vm5446_vm2, %v5447_v34 }
0x1213   : > { %v3150_v62 = vpop.f32.mrb[54].mxu1 }
0x1214   : > { %v4931_v3 = vpop.f32.mrb[55].mxu1  ;;  %4943 = vmatmul.mubr.msk.f32.vlgmr.msra.gmra.mrb[54].mxu0 %vm1370_vm4, %v3150_v62 }
0x1215   : > { %4945 = vmatprep.mubr.msk.f32.mxu0 %vm5446_vm2, %v5447_v34  ;;  %5225 = vmatpush3.bf16.msra.mxu0 %v5224_v59 }
0x1216   : > { %5226 = vmatprep.subr.bf16.mxu0 %v5445_v26 }
0x1217   : > { %v3155_v7 = vpop.f32.mrb[56].mxu1 }
0x1218   : > { %v4934_v8 = vpop.f32.mrb[57].mxu1  ;;  %4946 = vmatmul.mubr.msk.f32.gmra.mrb[56].mxu0 %vm1370_vm4, %v3155_v7 }
0x1219   : > { %4948 = vmatprep.mubr.msk.f32.mxu0 %vm5446_vm2, %v5447_v34  ;;  %5228 = vmatpush3.bf16.msra.mxu0 %v5227_v5 }
0x121a   : > { %5235 = vmatprep.subr.bf16.mxu0 %v5445_v26 }
0x121b   : > { %v3160_v9 = vpop.f32.mrb[58].mxu1 }
0x121c   : > { %v4937_v10 = vpop.f32.mrb[59].mxu1  ;;  %4949 = vmatmul.mubr.msk.f32.gmra.mrb[58].mxu0 %vm1370_vm4, %v3160_v9 }
0x121d   : > { %4976 = vmatprep.mubr.msk.f32.mxu0 %vm5446_vm2, %v5447_v34 }
0x121f   : > { %v3337_v11 = vpop.f32.mrb[60].mxu1 }
0x1220   : > { %v4961_v12 = vpop.f32.mrb[61].mxu1  ;;  %4977 = vmatmul.mubr.msk.f32.vlgmr.msra.gmra.mrb[60].mxu0 %vm1020_vm0, %v5999_v18  ;;  %v3338_v46 = vadd.f32 %v4361_v44, %v3337_v11 }
0x1221   : > { %4979 = vmatprep.mubr.msk.f32.mxu0 %vm5446_vm2, %v5447_v34 }
0x1223   : > { %v3342_v13 = vpop.f32.mrb[62].mxu1 }
0x1224   : > { %v4964_v14 = vpop.f32.mrb[63].mxu1  ;;  %4980 = vmatmul.mubr.msk.f32.gmra.mrb[62].mxu0 %vm1020_vm0, %v6009_v27  ;;  %v3343_v47 = vadd.f32 %v4361_v44, %v3342_v13 }
0x1225   : > { %4982 = vmatprep.mubr.msk.f32.mxu0 %vm5446_vm2, %v5447_v34 }
0x1227   : > { %v3347_v15 = vpop.f32.mrb[64].mxu1 }
0x1228   : > { %v4967_v16 = vpop.f32.mrb[65].mxu1  ;;  %4983 = vmatmul.mubr.msk.f32.gmra.mrb[64].mxu0 %vm1020_vm0, %v6022_v32  ;;  %v3348_v28 = vadd.f32 %v4361_v44, %v3347_v15 }
0x1229   : > { %5008 = vmatprep.mubr.msk.f32.mxu0 %vm5446_vm2, %v5447_v34 }
0x122b   : > { %v3523_v18 = vpop.f32.mrb[66].mxu1 }
0x122c   : > { %v4995_v17 = vpop.f32.mrb[67].mxu1  ;;  %v3524_v22 = vadd.f32 %v4379_v20, %v3523_v18  ;;  %v4393_v18 = vld [vmem:[%s6317_s16 + $0x10] sm:$0xff] }
0x122d   : > { %v4394_v17 = vld [vmem:[%s6317_s16 + $0x18] sm:$0xff] }
0x122f   : > { %v3528_v21 = vpop.f32.mrb[68].mxu1 }
0x1230   : > { %v3529_v24 = vadd.f32 %v4379_v20, %v3528_v21  ;;  %v4998_v63 = vpop.f32.mrb[69].mxu1 }
0x1232   : > { %v5240_v29 = vpack.c.bf16 %v3529_v24, %v3524_v22 }
0x1233   : > { %v3533_v27 = vpop.f32.mrb[70].mxu1 }
0x1234   : > { %v5001_v30 = vpop.f32.mrb[71].mxu1  ;;  %5241 = vmatpush3.bf16.msra.mxu1 %v5240_v29  ;;  %v3534_v31 = vadd.f32 %v4379_v20, %v3533_v27  ;;  %v5243_v20 = vpack.c.bf16 %v4394_v17, %v4393_v18 }
0x1235   : > { %5021 = vmatprep.subr.mxu1 %v5447_v34 }
0x1238   : > { %5022 = vmatpush3.msk.msra.mxu1 %vm1516_vm3, %v3534_v31 }
0x1239   : > { %5245 = vmatprep.subr.bf16.mxu1 %v5445_v26 }
0x12e7   : > { %v6150_v32 = vpop.f32.mrb[54].mxu0 }
0x12e8   : > { %v4944_v6 = vpop.f32.mrb[55].mxu0 }
0x12eb   : > { %v6152_v2 = vpop.f32.mrb[56].mxu0 }
0x12ec   : > { %v4947_v33 = vpop.f32.mrb[57].mxu0 }
0x12ef   : > { %v6154_v35 = vpop.f32.mrb[58].mxu0 }
0x12f0   : > { %v4950_v36 = vpop.f32.mrb[59].mxu0 }
0x12f3   : > { %v3430_v25 = vpop.f32.mrb[60].mxu0 }
0x12f4   : > { %v4978_v37 = vpop.f32.mrb[61].mxu0  ;;  %v3431_v0 = vadd.f32 %v4370_v1, %v3430_v25 }
0x12f7   : > { %v3435_v38 = vpop.f32.mrb[62].mxu0 }
0x12f8   : > { %v3436_v39 = vadd.f32 %v4370_v1, %v3435_v38  ;;  %v4981_v40 = vpop.f32.mrb[63].mxu0 }
0x12fa   : > { %v5236_v41 = vpack.c.bf16 %v3436_v39, %v3431_v0  ;;  %v4330_v0 = vld [vmem:[%s6318_s18] ss:$0 sm:$0xff]  ;;  %s6321_s18 = sld [smem:[#allocation16_spill]] }
0x12fb   : > { %v3440_v42 = vpop.f32.mrb[64].mxu0  ;;  %v3255_v39 = vadd.f32 %v4330_v0, %v6150_v32 }
0x12fc   : > { %v4984_v43 = vpop.f32.mrb[65].mxu0  ;;  %5238 = vmatpush3.bf16.xpose.msk.msra.mxu0 %vm5735_vm5, %v5236_v41  ;;  %v3441_v45 = vadd.f32 %v4370_v1, %v3440_v42 }
0x12fd   : > { %5006 = vmatprep.subr.mxu0 %v5447_v34  ;;  %v3256_v43 = vadd.f32 %v4330_v0, %v6152_v2 }
0x1304   : > { %5007 = vmatpush3.xpose.msk.msra.mxu0 %vm1370_vm4, %v3441_v45 }
0x1305   : > { %5242 = vmatprep.subr.bf16.mxu0 %v5445_v26 }
0x1307   : > { %5009 = vmatmul.mubr.msk.f32.vlgmr.msra.gmra.mrb[66].mxu0 %vm1370_vm4, %v3338_v46 }
0x1308   : > { %5011 = vmatprep.mubr.msk.f32.mxu0 %vm5446_vm2, %v5447_v34  ;;  %5244 = vmatpush3.bf16.msra.mxu0 %v5243_v20 }
0x1309   : > { %5251 = vmatprep.subr.bf16.mxu0 %v5445_v26 }
0x130b   : > { %5012 = vmatmul.mubr.msk.f32.gmra.mrb[68].mxu0 %vm1370_vm4, %v3343_v47 }
0x130c   : > { %5014 = vmatprep.mubr.msk.f32.mxu0 %vm5446_vm2, %v5447_v34 }
0x130f   : > { %5015 = vmatmul.mubr.msk.f32.gmra.mrb[70].mxu0 %vm1370_vm4, %v3348_v28 }
0x1310   : > { %5036 = vmatprep.mubr.msk.f32.mxu0 %vm5446_vm2, %v5447_v34 }
0x13da   : > { %v3621_v48 = vpop.f32.mrb[66].mxu0 }
0x13db   : > { %v3635_v49 = vmul.f32 0.25, %v3621_v48  ;;  %v5010_v50 = vpop.f32.mrb[67].mxu0  ;;  %v3257_v48 = vadd.f32 %v4330_v0, %v6154_v35 }
0x13dd   : > { %v3638_v51 = vsel %vm1472_vm6, %v3635_v49, -inf }
0x13de   : > { %3639 = vmax.xlane.f32.xlu0 %v3638_v51  ;;  %v3626_v54 = vpop.f32.mrb[68].mxu0 }
0x13df   : > { %v3636_v52 = vmul.f32 0.25, %v3626_v54  ;;  %v5013_v53 = vpop.f32.mrb[69].mxu0 }
0x13e1   : > { %v3641_v55 = vsel %vm1472_vm6, %v3636_v52, -inf }
0x13e2   : > { %3642 = vmax.xlane.f32.xlu1 %v3641_v55  ;;  %v3631_v56 = vpop.f32.mrb[70].mxu0 }
0x13e3   : > { %v3637_v57 = vmul.f32 0.25, %v3631_v56  ;;  %v5016_v58 = vpop.f32.mrb[71].mxu0 }
0x13e5   : > { %v3644_v59 = vsel %vm1479_vm7, %v3637_v57, -inf }
0x13e6   : > { %3645 = vmax.xlane.f32.xlu0 %v3644_v59 }
0x146b   : > { %v3640_v61 = vpop.xlane.xlu0 %3639 }
0x146c   : > { %v3647_v60 = vsub.f32 %v3635_v49, %v3640_v61 }
0x146e   : > { %v3650_v62 = vmul.f32 1.442695, %v3647_v60 }
0x146f   : > { %v3643_v3 = vpop.xlane.xlu1 %3642 }
0x1470   : > { %5380 = vpow2.f32 %v3650_v62  ;;  %v3648_v5 = vsub.f32 %v3636_v52, %v3643_v3 }
0x1472   : > { %v3652_v7 = vmul.f32 1.442695, %v3648_v5 }
0x1473   : > { %v3646_v8 = vpop.xlane.xlu0 %3645 }
0x1474   : > { %5382 = vpow2.f32 %v3652_v7  ;;  %v3649_v9 = vsub.f32 %v3637_v57, %v3646_v8  ;;  %v3920_v7 = vld [vmem:[%s6319_s26] sm:$0xff]  ;;  %v3921_v8 = vld [vmem:[%s6319_s26 + $0x8] sm:$0xff] }
0x1476   : > { %v3654_v10 = vmul.f32 1.442695, %v3649_v9  ;;  %v5246_v9 = vpack.c.bf16 %v3921_v8, %v3920_v7 }
0x1478   : > { %5384 = vpow2.f32 %v3654_v10  ;;  %v3922_v10 = vld [vmem:[%s6319_s26 + $0x10] sm:$0xff] }
0x147a   : > { %v5381_v11 = vpop.eup %5380 }
0x147b   : > { %v3656_v12 = vsel %vm1472_vm6, %v5381_v11, 0.0 }
0x147c   : > { %3657 = vadd.xlane.f32.xlu1 %v3656_v12 }
0x147e   : > { %v5383_v13 = vpop.eup %5382 }
0x147f   : > { %v3659_v14 = vsel %vm1472_vm6, %v5383_v13, 0.0 }
0x1480   : > { %3660 = vadd.xlane.f32.xlu0 %v3659_v14  ;;  %v4048_v14 = vld [vmem:[%s5611_s30 + $0x8] sm:$0xff] }
0x1482   : > { %v5385_v15 = vpop.eup %5384 }
0x1483   : > { %v3662_v16 = vsel %vm1479_vm7, %v5385_v15, 0.0 }
0x1484   : > { %3663 = vadd.xlane.f32.xlu1 %v3662_v16 }
0x1509   : > { %v3658_v21 = vpop.xlane.xlu1 %3657 }
0x150a   : > { %5386 = vrcp.f32 %v3658_v21 }
0x150d   : > { %v3661_v22 = vpop.xlane.xlu0 %3660 }
0x150e   : > { %5388 = vrcp.f32 %v3661_v22 }
0x1511   : > { %v3664_v24 = vpop.xlane.xlu1 %3663 }
0x1512   : > { %5390 = vrcp.f32 %v3664_v24 }
0x1514   : > { %v5387_v63 = vpop.eup %5386 }
0x1515   : > { %v3668_v29 = vmul.f32 %v5387_v63, %v5381_v11  ;;  %v3923_v11 = vld [vmem:[%s6319_s26 + $0x18] sm:$0xff] }
0x1516   : > { %v5249_v12 = vpack.c.bf16 %v3923_v11, %v3922_v10 }
0x1517   : > { %5024 = vmatmul.mubr.msk.f32.vlgmr.msra.gmra.mrb[72].mxu1 %vm1472_vm6, %v3668_v29 }
0x1518   : > { %v5389_v27 = vpop.eup %5388  ;;  %5026 = vmatprep.mubr.msk.f32.mxu1 %vm5446_vm2, %v5447_v34  ;;  %5247 = vmatpush3.bf16.msra.mxu1 %v5246_v9 }
0x1519   : > { %v3669_v30 = vmul.f32 %v5389_v27, %v5383_v13  ;;  %5248 = vmatprep.subr.bf16.mxu1 %v5445_v26  ;;  %v4047_v13 = vld [vmem:[%s5611_s30] sm:$0xff] }
0x151b   : > { %5027 = vmatmul.mubr.msk.f32.gmra.mrb[74].mxu1 %vm1472_vm6, %v3669_v30  ;;  %v4398_v30 = vld [vmem:[%s6320_s1] ss:$0 sm:$0xff]  ;;  %s1014_s1 = scalar_lea.vmem %s5621_s4, %s5275_s0 }
0x151c   : > { %v5391_v31 = vpop.eup %5390  ;;  %5029 = vmatprep.mubr.msk.f32.mxu1 %vm5446_vm2, %v5447_v34  ;;  %5250 = vmatpush3.bf16.msra.mxu1 %v5249_v12 }
0x151d   : > { %v3670_v6 = vmul.f32 %v5391_v31, %v5385_v15  ;;  %v5252_v15 = vpack.c.bf16 %v4048_v14, %v4047_v13 }
0x151f   : > { %5030 = vmatmul.mubr.msk.f32.gmra.mrb[76].mxu1 %vm1472_vm6, %v3670_v6  ;;  %v4399_v6 = vld [vmem:[%s6321_s18] ss:$0 sm:$0xff] }
0x1520   : > { %5053 = vmatprep.mubr.msk.f32.mxu1 %vm5446_vm2, %v5447_v34 }
0x15ea   : > { %v3749_v33 = vpop.f32.mrb[72].mxu1 }
0x15eb   : > { %v5025_v36 = vpop.f32.mrb[73].mxu1  ;;  %5037 = vmatmul.mubr.msk.f32.vlgmr.msra.gmra.mrb[72].mxu0 %vm1370_vm4, %v3749_v33 }
0x15ec   : > { %5039 = vmatprep.mubr.msk.f32.mxu0 %vm5446_vm2, %v5447_v34  ;;  %5253 = vmatpush3.bf16.msra.mxu0 %v5252_v15 }
0x15ed   : > { %5254 = vmatprep.subr.bf16.mxu0 %v5445_v26 }
0x15ee   : > { %v3754_v25 = vpop.f32.mrb[74].mxu1 }
0x15ef   : > { %v5028_v37 = vpop.f32.mrb[75].mxu1  ;;  %5040 = vmatmul.mubr.msk.f32.gmra.mrb[74].mxu0 %vm1370_vm4, %v3754_v25 }
0x15f0   : > { %5042 = vmatprep.mubr.msk.f32.mxu0 %vm5446_vm2, %v5447_v34 }
0x15f2   : > { %v3759_v1 = vpop.f32.mrb[76].mxu1 }
0x15f3   : > { %v5031_v38 = vpop.f32.mrb[77].mxu1  ;;  %5043 = vmatmul.mubr.msk.f32.gmra.mrb[76].mxu0 %vm1370_vm4, %v3759_v1 }
0x15f4   : > { %5094 = vmatprep.mubr.msk.f32.mxu0 %vm5446_vm2, %v5447_v34 }
0x16be   : > { %v3841_v40 = vpop.f32.mrb[72].mxu0 }
0x16bf   : > { %v3855_v41 = vadd.f32 %v3841_v40, %v3255_v39  ;;  %v5038_v42 = vpop.f32.mrb[73].mxu0 }
0x16c0   : > { %v4049_v42 = vld [vmem:[%s5611_s30 + $0x10] sm:$0xff] }
0x16c1   : > { %v6203_v44 = vadd.f32 %v3855_v41, %v5963_v23 }
0x16c2   : > { %v3846_v45 = vpop.f32.mrb[74].mxu0 }
0x16c3   : > { %v3856_v46 = vadd.f32 %v3846_v45, %v3256_v43  ;;  %v5041_v47 = vpop.f32.mrb[75].mxu0  ;;  %v3863_v28 = vsel %vm1020_vm0, %v6203_v44, 0.0  ;;  %v4050_v43 = vld [vmem:[%s5611_s30 + $0x18] sm:$0xff] }
0x16c4   : > { %3864 = vadd.xlane.f32.xlu0 %v3863_v28  ;;  %v5255_v45 = vpack.c.bf16 %v4050_v43, %v4049_v42  ;;  %v4052_v47 = vld [vmem:[%s5611_s30 + $0x28] sm:$0xff] }
0x16c5   : > { %v6209_v49 = vadd.f32 %v3856_v46, %v5968_v4  ;;  %v4051_v46 = vld [vmem:[%s5611_s30 + $0x20] sm:$0xff] }
0x16c6   : > { %v3851_v32 = vpop.f32.mrb[76].mxu0  ;;  %5256 = vmatpush3.bf16.msra.mxu0 %v5255_v45  ;;  %v5258_v28 = vpack.c.bf16 %v4052_v47, %v4051_v46 }
0x16c7   : > { %v3857_v50 = vadd.f32 %v3851_v32, %v3257_v48  ;;  %v5044_v51 = vpop.f32.mrb[77].mxu0  ;;  %v3866_v2 = vsel %vm1020_vm0, %v6209_v49, 0.0  ;;  %5257 = vmatprep.subr.bf16.mxu0 %v5445_v26  ;;  %v4053_v48 = vld [vmem:[%s5611_s30 + $0x30] sm:$0xff]  ;;  %v4054_v32 = vld [vmem:[%s5611_s30 + $0x38] sm:$0xff] }
0x16c8   : > { %3867 = vadd.xlane.f32.xlu1 %v3866_v2  ;;  %v4055_v51 = vld [vmem:[%s5611_s30 + $0x40] sm:$0xff]  ;;  %v4056_v2 = vld [vmem:[%s5611_s30 + $0x48] sm:$0xff] }
0x16c9   : > { %v6214_v23 = vadd.f32 %v3857_v50, %v5973_v19  ;;  %v5261_v50 = vpack.c.bf16 %v4054_v32, %v4053_v48 }
0x16ca   : > { %5259 = vmatpush3.bf16.msra.mxu0 %v5258_v28 }
0x16cb   : > { %v3869_v54 = vsel %vm1027_vm1, %v6214_v23, 0.0  ;;  %5260 = vmatprep.subr.bf16.mxu0 %v5445_v26 }
0x16cc   : > { %3870 = vadd.xlane.f32.xlu0 %v3869_v54  ;;  %v5264_v54 = vpack.c.bf16 %v4056_v2, %v4055_v51 }
0x16ce   : > { %5262 = vmatpush3.bf16.msra.mxu0 %v5261_v50 }
0x16cf   : > { %5263 = vmatprep.subr.bf16.mxu0 %v5445_v26 }
0x16d2   : > { %5265 = vmatpush3.bf16.msra.mxu0 %v5264_v54 }
0x16d3   : > { %5266 = vmatprep.subr.bf16.mxu0 %v5445_v26 }
0x1751   : > { %v3865_v52 = vpop.xlane.xlu0 %3864 }
0x1752   : > { %v3872_v53 = vmul.f32 0.03125, %v3865_v52  ;;  %v4057_v52 = vld [vmem:[%s5611_s30 + $0x50] sm:$0xff] }
0x1754   : > { %v3875_v35 = vsub.f32 %v6203_v44, %v3872_v53  ;;  %v4058_v53 = vld [vmem:[%s5611_s30 + $0x58] sm:$0xff] }
0x1755   : > { %v3868_v4 = vpop.xlane.xlu1 %3867 }
0x1756   : > { %v3873_v55 = vmul.f32 0.03125, %v3868_v4  ;;  %v3878_v56 = vmul.f32 %v3875_v35, %v3875_v35  ;;  %v4059_v4 = vld [vmem:[%s5611_s30 + $0x60] sm:$0xff] }
0x1758   : > { %v3876_v57 = vsub.f32 %v6209_v49, %v3873_v55  ;;  %v3881_v58 = vsel %vm1020_vm0, %v3878_v56, 0.0  ;;  %v4060_v55 = vld [vmem:[%s5611_s30 + $0x68] sm:$0xff] }
0x1759   : > { %3882 = vadd.xlane.f32.xlu1 %v3881_v58  ;;  %v3871_v19 = vpop.xlane.xlu0 %3870  ;;  %v5270_v56 = vpack.c.bf16 %v4060_v55, %v4059_v4  ;;  %v4062_v58 = vld [vmem:[%s5611_s30 + $0x78] sm:$0xff] }
0x175a   : > { %v3874_v59 = vmul.f32 0.03125, %v3871_v19  ;;  %v3879_v61 = vmul.f32 %v3876_v57, %v3876_v57 }
0x175c   : > { %v3877_v60 = vsub.f32 %v6214_v23, %v3874_v59  ;;  %v3884_v62 = vsel %vm1020_vm0, %v3879_v61, 0.0  ;;  %v4400_v59 = vld [vmem:[%s5606_s12] ss:$0 sm:$0xff] }
0x175d   : > { %3885 = vadd.xlane.f32.xlu0 %v3884_v62 }
0x175e   : > { %v3880_v3 = vmul.f32 %v3877_v60, %v3877_v60 }
0x1760   : > { %v3887_v5 = vsel %vm1027_vm1, %v3880_v3, 0.0 }
0x1761   : > { %3888 = vadd.xlane.f32.xlu1 %v3887_v5 }
0x17e6   : > { %v3883_v16 = vpop.xlane.xlu1 %3882 }
0x17e7   : > { %v3890_v18 = vmul.f32 0.03125, %v3883_v16 }
0x17e9   : > { %v3893_v17 = vadd.f32 1e-06, %v3890_v18 }
0x17ea   : > { %v3886_v20 = vpop.xlane.xlu0 %3885 }
0x17eb   : > { %5392 = vrsqrt.f32 %v3893_v17  ;;  %v3891_v21 = vmul.f32 0.03125, %v3886_v20 }
0x17ed   : > { %v3894_v22 = vadd.f32 1e-06, %v3891_v21 }
0x17ee   : > { %v3889_v24 = vpop.xlane.xlu1 %3888 }
0x17ef   : > { %5394 = vrsqrt.f32 %v3894_v22  ;;  %v3892_v63 = vmul.f32 0.03125, %v3889_v24 }
0x17f1   : > { %v3895_v29 = vadd.f32 1e-06, %v3892_v63 }
0x17f3   : > { %5396 = vrsqrt.f32 %v3895_v29 }
0x17f5   : > { %v5393_v27 = vpop.eup %5392 }
0x17f6   : > { %v3899_v31 = vmul.f32 %v5393_v27, %v3875_v35  ;;  %v5267_v35 = vpack.c.bf16 %v4058_v53, %v4057_v52 }
0x17f8   : > { %v3908_v33 = vmul.f32 %v4398_v30, %v3899_v31  ;;  %5268 = vmatpush3.bf16.msra.mxu0 %v5267_v35 }
0x17f9   : > { %v5395_v36 = vpop.eup %5394  ;;  %5269 = vmatprep.subr.bf16.mxu0 %v5445_v26 }
0x17fa   : > { %v3917_v25 = vadd.f32 %v4399_v6, %v3908_v33  ;;  %v3900_v37 = vmul.f32 %v5395_v36, %v3876_v57  ;;  %v4061_v57 = vld [vmem:[%s5611_s30 + $0x70] sm:$0xff] }
0x17fb   : > { %v5273_v19 = vpack.c.bf16 %v4062_v58, %v4061_v57 }
0x17fc   : > { %5054 = vmatmul.mubr.msk.f32.vlgmr.msra.gmra.mrb[78].mxu1 %vm1020_vm0, %v3917_v25  ;;  %v3909_v1 = vmul.f32 %v4398_v30, %v3900_v37  ;;  %5271 = vmatpush3.bf16.msra.mxu0 %v5270_v56 }
0x17fd   : > { %v5397_v38 = vpop.eup %5396  ;;  %5056 = vmatprep.mubr.msk.f32.mxu1 %vm5446_vm2, %v5447_v34  ;;  %5272 = vmatprep.subr.bf16.mxu0 %v5445_v26 }
0x17fe   : > { %v3918_v0 = vadd.f32 %v4399_v6, %v3909_v1  ;;  %v3901_v39 = vmul.f32 %v5397_v38, %v3877_v60 }
0x1800   : > { %5057 = vmatmul.mubr.msk.f32.gmra.mrb[80].mxu1 %vm1020_vm0, %v3918_v0  ;;  %v3910_v40 = vmul.f32 %v4398_v30, %v3901_v39  ;;  %5274 = vmatpush3.bf16.msra.mxu0 %v5273_v19 }
0x1801   : > { %5059 = vmatprep.mubr.msk.f32.mxu1 %vm5446_vm2, %v5447_v34 }
0x1802   : > { %v3919_v41 = vadd.f32 %v4399_v6, %v3910_v40  ;;  %v4404_v40 = vld [vmem:[%s5616_s27] ss:$0 sm:$0xff] }
0x1804   : > { %5060 = vmatmul.mubr.msk.f32.gmra.mrb[82].mxu1 %vm1020_vm0, %v3919_v41 }
0x18cf   : > { %v4006_v61 = vpop.f32.mrb[78].mxu1 }
0x18d0   : > { %v4007_v60 = vadd.f32 %v4400_v59, %v4006_v61  ;;  %v5055_v62 = vpop.f32.mrb[79].mxu1 }
0x18d2   : > { %v4023_v3 = vmul.f32 0.044715, %v4007_v60  ;;  %v4020_v30 = vmul.f32 0.5, %v4007_v60 }
0x18d3   : > { %v4011_v5 = vpop.f32.mrb[80].mxu1 }
0x18d4   : > { %v4026_v7 = vmul.f32 %v4023_v3, %v4007_v60  ;;  %v4012_v8 = vadd.f32 %v4400_v59, %v4011_v5  ;;  %v5058_v9 = vpop.f32.mrb[81].mxu1 }
0x18d6   : > { %v4029_v10 = vmul.f32 %v4026_v7, %v4007_v60  ;;  %v4024_v11 = vmul.f32 0.044715, %v4012_v8  ;;  %v4021_v36 = vmul.f32 0.5, %v4012_v8 }
0x18d7   : > { %v4016_v12 = vpop.f32.mrb[82].mxu1 }
0x18d8   : > { %v4032_v13 = vadd.f32 %v4029_v10, %v4007_v60  ;;  %v4027_v14 = vmul.f32 %v4024_v11, %v4012_v8  ;;  %v4017_v15 = vadd.f32 %v4400_v59, %v4016_v12  ;;  %v5061_v16 = vpop.f32.mrb[83].mxu1 }
0x18da   : > { %v4035_v18 = vmul.f32 0.7978846, %v4032_v13  ;;  %v4025_v17 = vmul.f32 0.044715, %v4017_v15  ;;  %v4030_v26 = vmul.f32 %v4027_v14, %v4012_v8  ;;  %v4022_v38 = vmul.f32 0.5, %v4017_v15 }
0x18dc   : > { %5398 = vtanh.f32 %v4035_v18  ;;  %v4028_v20 = vmul.f32 %v4025_v17, %v4017_v15  ;;  %v4033_v21 = vadd.f32 %v4030_v26, %v4012_v8 }
0x18de   : > { %v4036_v22 = vmul.f32 0.7978846, %v4033_v21  ;;  %v4031_v24 = vmul.f32 %v4028_v20, %v4017_v15 }
0x18e0   : > { %5400 = vtanh.f32 %v4036_v22  ;;  %v4034_v63 = vadd.f32 %v4031_v24, %v4017_v15 }
0x18e2   : > { %v4037_v29 = vmul.f32 0.7978846, %v4034_v63 }
0x18e4   : > { %5402 = vtanh.f32 %v4037_v29 }
0x18e6   : > { %v5399_v27 = vpop.eup %5398 }
0x18e7   : > { %v4041_v31 = vadd.f32 1.0, %v5399_v27 }
0x18e9   : > { %v4044_v6 = vmul.f32 %v4041_v31, %v4020_v30 }
0x18ea   : > { %v5401_v33 = vpop.eup %5400 }
0x18eb   : > { %5095 = vmatmul.mubr.f32.vlgmr.msra.gmra.mrb[78].mxu0 %v4044_v6  ;;  %v4042_v25 = vadd.f32 1.0, %v5401_v33 }
0x18ec   : > { %5097 = vmatprep.mubr.msk.f32.mxu0 %vm5446_vm2, %v5447_v34 }
0x18ed   : > { %v4045_v37 = vmul.f32 %v4042_v25, %v4021_v36 }
0x18ee   : > { %v5403_v1 = vpop.eup %5402 }
0x18ef   : > { %5098 = vmatmul.mubr.f32.gmra.mrb[80].mxu0 %v4045_v37  ;;  %v4043_v0 = vadd.f32 1.0, %v5403_v1 }
0x18f0   : > { %5100 = vmatprep.mubr.msk.f32.mxu0 %vm5446_vm2, %v5447_v34 }
0x18f1   : > { %v4046_v39 = vmul.f32 %v4043_v0, %v4022_v38 }
0x18f3   : > { %5101 = vmatmul.mubr.f32.gmra.mrb[82].mxu0 %v4046_v39 }
0x19be   : > { %v4136_v41 = vpop.f32.mrb[78].mxu0 }
0x19bf   : > { %v4137_v42 = vadd.f32 %v4404_v40, %v4136_v41  ;;  %v5096_v43 = vpop.f32.mrb[79].mxu0 }
0x19c1   : > { %v4150_v45 = vadd.f32 %v4137_v42, %v6203_v44 }
0x19c2   : > { %v4141_v46 = vpop.f32.mrb[80].mxu0 }
0x19c3   : > { %4153 = vst.msk [vmem:[%s1014_s1] sm:$0xff] %vm1020_vm0, %v4150_v45  ;;  %v4142_v47 = vadd.f32 %v4404_v40, %v4141_v46  ;;  %v5099_v28 = vpop.f32.mrb[81].mxu0 }
0x19c5   : > { %v4151_v48 = vadd.f32 %v4142_v47, %v6209_v49 }
0x19c6   : > { %v4146_v32 = vpop.f32.mrb[82].mxu0 }
0x19c7   : > { %4154 = vst.msk [vmem:[%s1014_s1 + $0x8] sm:$0xff] %vm1020_vm0, %v4151_v48  ;;  %v4147_v34 = vadd.f32 %v4404_v40, %v4146_v32  ;;  %v5102_v50 = vpop.f32.mrb[83].mxu0 }
0x19c9   : > { %v4152_v51 = vadd.f32 %v4147_v34, %v6214_v23 }
0x19cb   : > { %4155 = vst.msk [vmem:[%s1014_s1 + $0x10] sm:$0x1] %vm1027_vm1, %v4152_v51 }
0x19cc PF: > { %s77_s7 = sadd.s32 1, %s5410_s7  }
0x19cd   : > { %p74_p4 = scmp.ge.s32.totalorder %s77_s7, 4  }
0x19cf   :  { %76 = sbr.rel (!%p74_p4) target bundleno = 51 (0x33), region = 229 }

// kernel: forward.8
= control target key start
LH: loop header
LB: loop body
LE: loop exit
PB: predicated region body
PF: predicated region fallthrough
CT: control target
= control target key end

     0   :  { %s8346_s0 = inlined_call_operand.vmem [shape: f32[8,5,32], index: 0, kind: input, shape index: {}]   ;;  %s8347_s1 = inlined_call_operand.vmem [shape: f32[1,32], index: 1, kind: input, shape index: {}]   ;;  %s8348_s2 = inlined_call_operand.vmem [shape: f32[1,32], index: 2, kind: input, shape index: {}]   ;;  %s8349_s3 = inlined_call_operand.vmem [shape: f32[2,32,16], index: 3, kind: input, shape index: {}]   ;;  %s8350_s4 = inlined_call_operand.vmem [shape: f32[2,1,16], index: 4, kind: input, shape index: {}]   ;;  %s8351_s5 = inlined_call_operand.vmem [shape: f32[2,32,16], index: 5, kind: input, shape index: {}]   ;;  %s8352_s6 = inlined_call_operand.vmem [shape: f32[2,1,16], index: 6, kind: input, shape index: {}]   ;;  %s8353_s7 = inlined_call_operand.vmem [shape: f32[2,32,16], index: 7, kind: input, shape index: {}]   ;;  %s8354_s8 = inlined_call_operand.vmem [shape: f32[2,1,16], index: 8, kind: input, shape index: {}]   ;;  %s8355_s9 = inlined_call_operand.vmem [shape: f32[2,16,32], index: 9, kind: input, shape index: {}]   ;;  %s8356_s10 = inlined_call_operand.vmem [shape: f32[1,32], index: 10, kind: input, shape index: {}]   ;;  %s8357_s11 = inlined_call_operand.vmem [shape: f32[1,32], index: 11, kind: input, shape index: {}]   ;;  %s8358_s12 = inlined_call_operand.vmem [shape: f32[1,32], index: 12, kind: input, shape index: {}]   ;;  %s8359_s13 = inlined_call_operand.vmem [shape: f32[32,128], index: 13, kind: input, shape index: {}]   ;;  %s8360_s14 = inlined_call_operand.vmem [shape: f32[1,128], index: 14, kind: input, shape index: {}]   ;;  %s8361_s15 = inlined_call_operand.vmem [shape: f32[128,32], index: 15, kind: input, shape index: {}]   ;;  %s8362_s16 = inlined_call_operand.vmem [shape: f32[1,32], index: 16, kind: input, shape index: {}]   ;;  %s8363_s17 = inlined_call_operand.vmem [shape: f32[1,32], index: 17, kind: input, shape index: {}]   ;;  %s8364_s18 = inlined_call_operand.vmem [shape: f32[1,32], index: 18, kind: input, shape index: {}]   ;;  %s8365_s19 = inlined_call_operand.vmem [shape: f32[8,5,32], index: 19, kind: output, shape index: {}]  }
   0x1   :  { %8369 = sst [smem:[#allocation2_spill]] %s8346_s0  ;;  %s7233_s0 = smov 0  }
   0x2   :  { %8370 = sst [smem:[#allocation3_spill]] %s8347_s1 }
   0x3   :  { %8371 = sst [smem:[#allocation4_spill]] %s8348_s2 }
   0x4   :  { %8372 = sst [smem:[#allocation5_spill]] %s8349_s3 }
   0x5 LB: > { %s5698_s30 = sadd.s32 4294967295, %s7128_s0   ;;  %p5702_p0 = scmp.ge.s32.totalorder %s7128_s0, 1  ;;  %s7128_s0 = sphi %s7233_s0, %s29_s0  }
   0x6   : > { %p538_p1 = scmp.lt.s32.totalorder %s7128_s0, 3 }
   0x8   : > { %p539_p2 = pnand %p5702_p0, %p538_p1 }
   0x9   : > { %s5703_s20 = sshll.u32 (!%p539_p2), %s5698_s30, 2  ;;  %vm609_vm0 = vcmask (!%p539_p2), 258048   ;;  %s8373_s2 = sld [smem:[#allocation2_spill]] (!%p539_p2)  ;;  %v7130_v10 = vmov (!%p539_p2), 0.0|0.0   ;;  %vm7131_vm1 = vmmov (!%p539_p2), 0   ;;  %v7132_v14 = vmov (!%p539_p2), 0.0  }
   0xa   : > { %542 = sbr.rel (%p539_p2) target bundleno = 10963 (0x2ad3), region = 96  ;;  %p595_p3 = scmp.lt.s32.totalorder (!%p539_p2), %s5703_s20, 7  ;;  %6759 = vmatprep.subr.bf16.mxu0 (!%p539_p2), %v7130_v10  ;;  %6183 = vmatprep.mubr.msk.f32.mxu0 (!%p539_p2), %vm7131_vm1, %v7132_v14  ;;  %v731_v21 = vld [vmem:[%s8351_s5] sm:$0xff] (!%p539_p2)  ;;  %v732_v22 = vld [vmem:[%s8351_s5 + $0x8] sm:$0xff] (!%p539_p2)  ;;  %vm657_vm2 = vcmask (!%p539_p2), 261120   ;;  %v733_v27 = vld [vmem:[%s8351_s5 + $0x10] sm:$0xff] (!%p539_p2) }
   0xb   : > { %s8374_s3 = sld [smem:[#allocation5_spill]] (!%p539_p2)  ;;  %6213 = vmatprep.subr.mxu1 (!%p539_p2), %v7132_v14  ;;  %6215 = vmatprep.mubr.msk.f32.mxu1 (!%p539_p2), %vm7131_vm1, %v7132_v14  ;;  %s8375_s24 = sld [smem:[#allocation3_spill]] (!%p539_p2)  ;;  %v7301_v25 = vpack.c.bf16 (!%p539_p2), %v732_v22, %v731_v21  ;;  %v734_v28 = vld [vmem:[%s8351_s5 + $0x18] sm:$0xff] (!%p539_p2)  ;;  %v812_v30 = vld [vmem:[%s8353_s7] sm:$0xff] (!%p539_p2)  ;;  %v813_v31 = vld [vmem:[%s8353_s7 + $0x8] sm:$0xff] (!%p539_p2)  ;;  %vm893_vm3 = vcmask (!%p539_p2), 130048  }
   0xc   : > { %s8376_s1 = sld [smem:[#allocation4_spill]] (!%p539_p2)  ;;  %v7315_v29 = vpack.c.bf16 (!%p539_p2), %v734_v28, %v733_v27  ;;  %v7327_v32 = vpack.c.bf16 (!%p539_p2), %v813_v31, %v812_v30  ;;  %v814_v33 = vld [vmem:[%s8353_s7 + $0x10] sm:$0xff] (!%p539_p2)  ;;  %v815_v34 = vld [vmem:[%s8353_s7 + $0x18] sm:$0xff] (!%p539_p2)  ;;  %v7353_v38 = vld [vmem:[%s8352_s6] ss:$0 sm:$0xff] (!%p539_p2)  ;;  %vm987_vm4 = vcmask (!%p539_p2), 1044480  }
   0xd   : > { %v7339_v35 = vpack.c.bf16 (!%p539_p2), %v815_v34, %v814_v33  ;;  %v7358_v40 = vld [vmem:[%s8350_s4] ss:$0 sm:$0xff] (!%p539_p2)  ;;  %vm971_vm5 = vcmask (!%p539_p2), 36864   ;;  %v1062_v58 = vld [vmem:[%s8355_s9 + $0x8] sm:$0xff] (!%p539_p2)  ;;  %vm983_vm6 = vcmask (!%p539_p2), 39936   ;;  %v5731_v21 = vld [vmem:[%s8351_s5 + $0x38] sm:$0xff] (!%p539_p2) }
   0xe   : > { %v7368_v44 = vld [vmem:[%s8354_s8] ss:$0 sm:$0xff] (!%p539_p2) }
   0xf   : > { %v1061_v57 = vld [vmem:[%s8355_s9] sm:$0xff] (!%p539_p2) }
  0x10   : > { %v7383_v59 = vpack.c.bf16 (!%p539_p2), %v1062_v58, %v1061_v57  ;;  %v5747_v57 = vld [vmem:[%s8355_s9 + $0x18] sm:$0xff] (!%p539_p2) }
  0x11   : > { %s8378_s20 = smov (!%p595_p3, %s5703_s20), 7  ;;  %v646_v7 = vld [vmem:[%s8374_s3] sm:$0xff]  ;;  %v647_v8 = vld [vmem:[%s8374_s3 + $0x8] sm:$0xff]  ;;  %v648_v11 = vld [vmem:[%s8374_s3 + $0x10] sm:$0xff] }
  0x12   : > { %s5704_s21 = sshll.u32 %s8378_s20, 3  ;;  %v7264_v9 = vpack.c.bf16 %v647_v8, %v646_v7  ;;  %v649_v12 = vld [vmem:[%s8374_s3 + $0x18] sm:$0xff]  ;;  %v7287_v19 = vld [vmem:[%s8375_s24] ss:$0 sm:$0xff]  ;;  %v5722_v62 = vld [vmem:[%s8374_s3 + $0x28] sm:$0xff] }
  0x13   : > { %s7249_s23 = scalar_lea.vmem %s8373_s2, %s5704_s21  ;;  %v7275_v13 = vpack.c.bf16 %v649_v12, %v648_v11  ;;  %v7298_v23 = vld [vmem:[%s8376_s1] ss:$0 sm:$0xff]  ;;  %v5736_v7 = vld [vmem:[%s8353_s7 + $0x28] sm:$0xff]  ;;  %v5737_v11 = vld [vmem:[%s8353_s7 + $0x30] sm:$0xff]  ;;  %s8319_s22 = scalar_lea.vmem %s8365_s19, %s5704_s21 }
  0x14   : > { %v7252_v0 = vld [vmem:[%s7249_s23] sm:$0x1f]  ;;  %6761 = vmatpush3.bf16.msra.mxu0 %v7264_v9  ;;  %v5738_v12 = vld [vmem:[%s8353_s7 + $0x38] sm:$0xff] }
  0x15   : > { %v610_v1 = vsel %vm609_vm0, %v7252_v0, 0.0  ;;  %6762 = vmatprep.subr.bf16.mxu0 %v7130_v10  ;;  %v5721_v61 = vld [vmem:[%s8374_s3 + $0x20] sm:$0xff] }
  0x16   : > { %611 = vadd.xlane.f32.xlu0 %v610_v1  ;;  %v7393_v1 = vpack.c.bf16 %v5722_v62, %v5721_v61 }
  0x18   : > { %6764 = vmatpush3.bf16.msra.mxu0 %v7275_v13 }
  0x19   : > { %6765 = vmatprep.subr.bf16.mxu0 %v7130_v10 }
  0xa3   : > { %v612_v2 = vpop.xlane.xlu0 %611 }
  0xa4   : > { %v614_v3 = vmul.f32 0.03125, %v612_v2 }
  0xa6   : > { %v615_v4 = vsub.f32 %v7252_v0, %v614_v3  ;;  %v5723_v3 = vld [vmem:[%s8374_s3 + $0x30] sm:$0xff] }
  0xa8   : > { %v616_v5 = vmul.f32 %v615_v4, %v615_v4 }
  0xaa   : > { %v617_v6 = vsel %vm609_vm0, %v616_v5, 0.0 }
  0xab   : > { %618 = vadd.xlane.f32.xlu0 %v617_v6  ;;  %v5735_v6 = vld [vmem:[%s8353_s7 + $0x20] sm:$0xff] }
  0xac   : > { %v7415_v8 = vpack.c.bf16 %v5736_v7, %v5735_v6 }
 0x138   : > { %v619_v15 = vpop.xlane.xlu0 %618 }
 0x139   : > { %v620_v16 = vmul.f32 0.03125, %v619_v15  ;;  %v7427_v15 = vpack.c.bf16 %v5738_v12, %v5737_v11 }
 0x13b   : > { %v621_v17 = vadd.f32 1e-06, %v620_v16  ;;  %v5728_v16 = vld [vmem:[%s8351_s5 + $0x20] sm:$0xff] }
 0x13d   : > { %7058 = vrsqrt.f32 %v621_v17  ;;  %v5729_v17 = vld [vmem:[%s8351_s5 + $0x28] sm:$0xff] }
 0x147   : > { %v7059_v18 = vpop.eup %7058 }
 0x148   : > { %v623_v20 = vmul.f32 %v7059_v18, %v615_v4  ;;  %v5724_v4 = vld [vmem:[%s8374_s3 + $0x38] sm:$0xff]  ;;  %v7444_v18 = vpack.c.bf16 %v5729_v17, %v5728_v16  ;;  %v7518_v17 = vld [vmem:[%s8356_s10] ss:$0 sm:$0xff] }
 0x149   : > { %v7403_v5 = vpack.c.bf16 %v5724_v4, %v5723_v3 }
 0x14a   : > { %v630_v24 = vmul.f32 %v7287_v19, %v623_v20  ;;  %v5730_v20 = vld [vmem:[%s8351_s5 + $0x30] sm:$0xff] }
 0x14b   : > { %v7454_v27 = vpack.c.bf16 %v5731_v21, %v5730_v20 }
 0x14c   : > { %v7304_v26 = vadd.f32 %v7298_v23, %v630_v24 }
 0x14e   : > { %6184 = vmatmul.mubr.msk.f32.vlgmr.msra.gmra.mrb[0].mxu0 %vm657_vm2, %v7304_v26 }
 0x14f   : > { %6767 = vmatpush3.bf16.msra.mxu0 %v7301_v25  ;;  %6194 = vmatprep.mubr.msk.f32.mxu0 %vm7131_vm1, %v7132_v14 }
 0x150   : > { %6768 = vmatprep.subr.bf16.mxu0 %v7130_v10 }
 0x153   : > { %6770 = vmatpush3.bf16.msra.mxu0 %v7315_v29 }
 0x154   : > { %6771 = vmatprep.subr.bf16.mxu0 %v7130_v10 }
 0x156   : > { %6195 = vmatmul.mubr.msk.f32.vlgmr.msra.gmra.mrb[2].mxu0 %vm657_vm2, %v7304_v26 }
 0x157   : > { %6773 = vmatpush3.bf16.msra.mxu0 %v7327_v32  ;;  %6205 = vmatprep.mubr.msk.f32.mxu0 %vm7131_vm1, %v7132_v14 }
 0x158   : > { %6774 = vmatprep.subr.bf16.mxu0 %v7130_v10 }
 0x15b   : > { %6776 = vmatpush3.bf16.msra.mxu0 %v7339_v35 }
 0x15c   : > { %6208 = vmatprep.subr.mxu0 %v7132_v14 }
 0x15e   : > { %6206 = vmatmul.mubr.msk.f32.vlgmr.msra.gmra.mrb[4].mxu0 %vm657_vm2, %v7304_v26 }
 0x15f   : > { %6210 = vmatprep.mubr.msk.f32.mxu0 %vm7131_vm1, %v7132_v14 }
 0x221   : > { %v727_v36 = vpop.f32.mrb[0].mxu0 }
 0x222   : > { %v6185_v37 = vpop.f32.mrb[1].mxu0  ;;  %v728_v43 = vadd.f32 %v7358_v40, %v727_v36 }
 0x223   : > { %v7468_v37 = vld [vmem:[%s8352_s6 + $0x1] ss:$0 sm:$0xff] }
 0x229   : > { %v808_v39 = vpop.f32.mrb[2].mxu0 }
 0x22a   : > { %v809_v41 = vadd.f32 %v7353_v38, %v808_v39  ;;  %v6196_v42 = vpop.f32.mrb[3].mxu0 }
 0x22c   : > { %6209 = vmatpush3.xpose.msk.msra.mxu0 %vm893_vm3, %v809_v41  ;;  %v7473_v41 = vld [vmem:[%s8350_s4 + $0x1] ss:$0 sm:$0xff] }
 0x22d   : > { %6777 = vmatprep.subr.bf16.mxu0 %v7130_v10 }
 0x22f   : > { %6211 = vmatmul.mubr.msk.f32.vlgmr.msra.gmra.mrb[6].mxu0 %vm893_vm3, %v728_v43  ;;  %v7479_v43 = vld [vmem:[%s8354_s8 + $0x1] ss:$0 sm:$0xff] }
 0x230   : > { %6222 = vmatprep.mubr.msk.f32.mxu0 %vm7131_vm1, %v7132_v14  ;;  %6779 = vmatpush3.bf16.msra.mxu0 %v7383_v59 }
 0x231   : > { %v889_v45 = vpop.f32.mrb[4].mxu0  ;;  %6786 = vmatprep.subr.bf16.mxu0 %v7130_v10 }
 0x232   : > { %v890_v46 = vadd.f32 %v7368_v44, %v889_v45  ;;  %v6207_v47 = vpop.f32.mrb[5].mxu0 }
 0x234   : > { %6214 = vmatpush3.msk.msra.mxu1 %vm987_vm4, %v890_v46 }
 0x235   : > { %6780 = vmatprep.subr.bf16.mxu1 %v7130_v10 }
 0x302   : > { %v966_v48 = vpop.f32.mrb[6].mxu0 }
 0x303   : > { %v970_v49 = vmul.f32 0.25, %v966_v48  ;;  %v6212_v50 = vpop.f32.mrb[7].mxu0 }
 0x305   : > { %v972_v51 = vsel %vm971_vm5, %v970_v49, -inf }
 0x306   : > { %973 = vmax.xlane.f32.xlu1 %v972_v51 }
 0x393   : > { %v974_v52 = vpop.xlane.xlu1 %973 }
 0x394   : > { %v975_v53 = vsub.f32 %v970_v49, %v974_v52 }
 0x396   : > { %v976_v54 = vmul.f32 1.442695, %v975_v53 }
 0x398   : > { %7060 = vpow2.f32 %v976_v54 }
 0x3a2   : > { %v7061_v55 = vpop.eup %7060 }
 0x3a3   : > { %v978_v56 = vsel %vm971_vm5, %v7061_v55, 0.0 }
 0x3a4   : > { %979 = vadd.xlane.f32.xlu1 %v978_v56  ;;  %v5746_v56 = vld [vmem:[%s8355_s9 + $0x10] sm:$0xff] }
 0x3a5   : > { %v7498_v58 = vpack.c.bf16 %v5747_v57, %v5746_v56 }
 0x431   : > { %v980_v60 = vpop.xlane.xlu1 %979 }
 0x432   : > { %7062 = vrcp.f32 %v980_v60 }
 0x43c   : > { %v7063_v63 = vpop.eup %7062 }
 0x43d   : > { %v982_v2 = vmul.f32 %v7063_v63, %v7061_v55  ;;  %v7506_v63 = vld [vmem:[%s7249_s23 + $0x8] sm:$0x1f] }
 0x43f   : > { %6216 = vmatmul.mubr.msk.f32.vlgmr.msra.gmra.mrb[0].mxu1 %vm983_vm6, %v982_v2  ;;  %v1878_v2 = vsel %vm609_vm0, %v7506_v63, 0.0 }
 0x440   : > { %6782 = vmatpush3.bf16.msra.mxu1 %v7393_v1  ;;  %6233 = vmatprep.mubr.msk.f32.mxu1 %vm7131_vm1, %v7132_v14 }
 0x441   : > { %6783 = vmatprep.subr.bf16.mxu1 %v7130_v10 }
 0x444   : > { %6785 = vmatpush3.bf16.msra.mxu1 %v7403_v5 }
 0x445   : > { %6792 = vmatprep.subr.bf16.mxu1 %v7130_v10 }
 0x447   : > { %6234 = vmatmul.mubr.msk.f32.vlgmr.msra.gmra.mrb[2].mxu1 %vm657_vm2, %v7304_v26 }
 0x448   : > { %6794 = vmatpush3.bf16.msra.mxu1 %v7415_v8  ;;  %6255 = vmatprep.mubr.msk.f32.mxu1 %vm7131_vm1, %v7132_v14 }
 0x449   : > { %6795 = vmatprep.subr.bf16.mxu1 %v7130_v10 }
 0x44c   : > { %6797 = vmatpush3.bf16.msra.mxu1 %v7427_v15 }
 0x44d   : > { %6798 = vmatprep.subr.bf16.mxu1 %v7130_v10 }
 0x44f   : > { %6256 = vmatmul.mubr.msk.f32.vlgmr.msra.gmra.mrb[4].mxu1 %vm657_vm2, %v7304_v26 }
 0x450   : > { %6272 = vmatprep.mubr.msk.f32.mxu1 %vm7131_vm1, %v7132_v14  ;;  %6800 = vmatpush3.bf16.msra.mxu1 %v7498_v58 }
 0x451   : > { %6807 = vmatprep.subr.bf16.mxu1 %v7130_v10 }
 0x512   : > { %v1057_v22 = vpop.f32.mrb[0].mxu1 }
 0x513   : > { %v6217_v24 = vpop.f32.mrb[1].mxu1  ;;  %6223 = vmatmul.mubr.msk.f32.vlgmr.msra.gmra.mrb[8].mxu0 %vm893_vm3, %v1057_v22 }
 0x514   : > { %6788 = vmatpush3.bf16.msra.mxu0 %v7444_v18  ;;  %6244 = vmatprep.mubr.msk.f32.mxu0 %vm7131_vm1, %v7132_v14 }
 0x515   : > { %6789 = vmatprep.subr.bf16.mxu0 %v7130_v10 }
 0x518   : > { %6791 = vmatpush3.bf16.msra.mxu0 %v7454_v27 }
 0x519   : > { %6258 = vmatprep.subr.mxu0 %v7132_v14 }
 0x51a   : > { %v1216_v28 = vpop.f32.mrb[2].mxu1 }
 0x51b   : > { %v6235_v30 = vpop.f32.mrb[3].mxu1  ;;  %6245 = vmatmul.mubr.msk.f32.vlgmr.msra.gmra.mrb[10].mxu0 %vm657_vm2, %v7304_v26  ;;  %v1217_v45 = vadd.f32 %v7473_v41, %v1216_v28 }
 0x51c   : > { %6260 = vmatprep.mubr.msk.f32.mxu0 %vm7131_vm1, %v7132_v14 }
 0x522   : > { %v1382_v31 = vpop.f32.mrb[4].mxu1 }
 0x523   : > { %v6257_v33 = vpop.f32.mrb[5].mxu1  ;;  %v1383_v46 = vadd.f32 %v7479_v43, %v1382_v31 }
 0x5e6   : > { %v1132_v34 = vpop.f32.mrb[8].mxu0 }
 0x5e7   : > { %v6224_v36 = vpop.f32.mrb[9].mxu0  ;;  %v1136_v20 = vadd.f32 %v7518_v17, %v1132_v34  ;;  %v1657_v34 = vld [vmem:[%s8359_s13] sm:$0xff] }
 0x5ee   : > { %v1299_v39 = vpop.f32.mrb[10].mxu0 }
 0x5ef   : > { %v1300_v26 = vadd.f32 %v7468_v37, %v1299_v39  ;;  %v6246_v42 = vpop.f32.mrb[11].mxu0 }
 0x5f1   : > { %6259 = vmatpush3.xpose.msk.msra.mxu0 %vm893_vm3, %v1300_v26 }
 0x5f2   : > { %6263 = vmatprep.subr.mxu0 %v7132_v14 }
 0x5f4   : > { %6261 = vmatmul.mubr.msk.f32.vlgmr.msra.gmra.mrb[12].mxu0 %vm893_vm3, %v1217_v45  ;;  %v1659_v45 = vld [vmem:[%s8359_s13 + $0x10] sm:$0xff] }
 0x5f5   : > { %6264 = vmatpush3.msk.msra.mxu0 %vm987_vm4, %v1383_v46  ;;  %6265 = vmatprep.mubr.msk.f32.mxu0 %vm7131_vm1, %v7132_v14  ;;  %v1660_v46 = vld [vmem:[%s8359_s13 + $0x18] sm:$0xff] }
 0x5f6   : > { %6801 = vmatprep.subr.bf16.mxu0 %v7130_v10 }
 0x6c7   : > { %v1458_v47 = vpop.f32.mrb[12].mxu0 }
 0x6c8   : > { %v1462_v48 = vmul.f32 0.25, %v1458_v47  ;;  %v6262_v49 = vpop.f32.mrb[13].mxu0  ;;  %v7544_v47 = vpack.c.bf16 %v1660_v46, %v1659_v45  ;;  %v1762_v46 = vld [vmem:[%s8361_s15 + $0x60] sm:$0xff] }
 0x6c9   : > { %v1751_v49 = vld [vmem:[%s8361_s15 + $0x8] sm:$0xff] }
 0x6ca   : > { %v1463_v50 = vsel %vm971_vm5, %v1462_v48, -inf }
 0x6cb   : > { %1464 = vmax.xlane.f32.xlu0 %v1463_v50 }
 0x758   : > { %v1465_v51 = vpop.xlane.xlu0 %1464 }
 0x759   : > { %v1466_v52 = vsub.f32 %v1462_v48, %v1465_v51  ;;  %v1750_v48 = vld [vmem:[%s8361_s15] sm:$0xff] }
 0x75a   : > { %v7554_v50 = vpack.c.bf16 %v1751_v49, %v1750_v48  ;;  %v1763_v48 = vld [vmem:[%s8361_s15 + $0x68] sm:$0xff] }
 0x75b   : > { %v1467_v53 = vmul.f32 1.442695, %v1466_v52  ;;  %v7657_v49 = vpack.c.bf16 %v1763_v48, %v1762_v46 }
 0x75d   : > { %7064 = vpow2.f32 %v1467_v53 }
 0x767   : > { %v7065_v54 = vpop.eup %7064 }
 0x768   : > { %v1469_v55 = vsel %vm971_vm5, %v7065_v54, 0.0 }
 0x769   : > { %1470 = vadd.xlane.f32.xlu1 %v1469_v55 }
 0x76d   : > { %1879 = vadd.xlane.f32.xlu1 %v1878_v2  ;;  %v7566_v2 = vld [vmem:[%s8358_s12] ss:$0 sm:$0xff] }
 0x7f6   : > { %v1471_v60 = vpop.xlane.xlu1 %1470 }
 0x7f7   : > { %7066 = vrcp.f32 %v1471_v60  ;;  %v7561_v60 = vld [vmem:[%s8357_s11] ss:$0 sm:$0xff] }
 0x7fa   : > { %v1880_v6 = vpop.xlane.xlu1 %1879 }
 0x7fb   : > { %v1881_v7 = vmul.f32 0.03125, %v1880_v6 }
 0x7fd   : > { %v1882_v11 = vsub.f32 %v7506_v63, %v1881_v7 }
 0x7ff   : > { %v1883_v12 = vmul.f32 %v1882_v11, %v1882_v11 }
 0x801   : > { %v7067_v61 = vpop.eup %7066  ;;  %v1884_v16 = vsel %vm609_vm0, %v1883_v12, 0.0 }
 0x802   : > { %v1473_v62 = vmul.f32 %v7067_v61, %v7065_v54  ;;  %1885 = vadd.xlane.f32.xlu1 %v1884_v16  ;;  %v1753_v16 = vld [vmem:[%s8361_s15 + $0x18] sm:$0xff] }
 0x804   : > { %6266 = vmatmul.mubr.msk.f32.vlgmr.msra.gmra.mrb[14].mxu0 %vm983_vm6, %v1473_v62 }
 0x805   : > { %6283 = vmatprep.mubr.msk.f32.mxu0 %vm7131_vm1, %v7132_v14 }
 0x88f   : > { %v1886_v51 = vpop.xlane.xlu1 %1885 }
 0x890   : > { %v1887_v52 = vmul.f32 0.03125, %v1886_v51  ;;  %v1764_v51 = vld [vmem:[%s8361_s15 + $0x70] sm:$0xff] }
 0x892   : > { %v1888_v55 = vadd.f32 1e-06, %v1887_v52  ;;  %v1765_v52 = vld [vmem:[%s8361_s15 + $0x78] sm:$0xff] }
 0x8d7   : > { %v1546_v3 = vpop.f32.mrb[14].mxu0 }
 0x8d8   : > { %v6267_v4 = vpop.f32.mrb[15].mxu0  ;;  %6273 = vmatmul.mubr.msk.f32.vlgmr.msra.gmra.mrb[6].mxu1 %vm893_vm3, %v1546_v3 }
 0x8d9   : > { %6318 = vmatprep.mubr.msk.f32.mxu1 %vm7131_vm1, %v7132_v14  ;;  %6809 = vmatpush3.bf16.msra.mxu1 %v7554_v50 }
 0x8da   : > { %6810 = vmatprep.subr.bf16.mxu1 %v7130_v10 }
 0x9ab   : > { %v1622_v21 = vpop.f32.mrb[6].mxu1 }
 0x9ac   : > { %v1626_v22 = vadd.f32 %v1622_v21, %v1136_v20  ;;  %v6274_v24 = vpop.f32.mrb[7].mxu1  ;;  %v1754_v21 = vld [vmem:[%s8361_s15 + $0x20] sm:$0xff] }
 0x9ae   : > { %v7522_v28 = vadd.f32 %v1626_v22, %v7252_v0  ;;  %v1658_v0 = vld [vmem:[%s8359_s13 + $0x8] sm:$0xff] }
 0x9af   : > { %v7534_v42 = vpack.c.bf16 %v1658_v0, %v1657_v34  ;;  %v1755_v22 = vld [vmem:[%s8361_s15 + $0x28] sm:$0xff]  ;;  %v1760_v34 = vld [vmem:[%s8361_s15 + $0x50] sm:$0xff]  ;;  %v1761_v0 = vld [vmem:[%s8361_s15 + $0x58] sm:$0xff] }
 0x9b0   : > { %v1630_v30 = vsel %vm609_vm0, %v7522_v28, 0.0  ;;  %v7617_v24 = vpack.c.bf16 %v1755_v22, %v1754_v21  ;;  %v7647_v45 = vpack.c.bf16 %v1761_v0, %v1760_v34 }
 0x9b1   : > { %1631 = vadd.xlane.f32.xlu0 %v1630_v30  ;;  %6803 = vmatpush3.bf16.msra.mxu0 %v7534_v42  ;;  %v1756_v30 = vld [vmem:[%s8361_s15 + $0x30] sm:$0xff] }
 0x9b2   : > { %6804 = vmatprep.subr.bf16.mxu0 %v7130_v10 }
 0x9b5   : > { %6806 = vmatpush3.bf16.msra.mxu0 %v7544_v47 }
 0x9b6   : > { %6831 = vmatprep.subr.bf16.mxu0 %v7130_v10 }
 0xa3e   : > { %v1632_v31 = vpop.xlane.xlu0 %1631 }
 0xa3f   : > { %v1633_v33 = vmul.f32 0.03125, %v1632_v31  ;;  %v1757_v31 = vld [vmem:[%s8361_s15 + $0x38] sm:$0xff] }
 0xa41   : > { %v1634_v36 = vsub.f32 %v7522_v28, %v1633_v33  ;;  %v7627_v33 = vpack.c.bf16 %v1757_v31, %v1756_v30 }
 0xa43   : > { %v1635_v39 = vmul.f32 %v1634_v36, %v1634_v36 }
 0xa45   : > { %v1636_v26 = vsel %vm609_vm0, %v1635_v39, 0.0  ;;  %v1759_v39 = vld [vmem:[%s8361_s15 + $0x48] sm:$0xff] }
 0xa46   : > { %1637 = vadd.xlane.f32.xlu0 %v1636_v26 }
 0xad3   : > { %v1638_v53 = vpop.xlane.xlu0 %1637 }
 0xad4   : > { %v1639_v54 = vmul.f32 0.03125, %v1638_v53  ;;  %v7667_v53 = vpack.c.bf16 %v1765_v52, %v1764_v51 }
 0xad6   : > { %v1640_v56 = vadd.f32 1e-06, %v1639_v54  ;;  %v7674_v54 = vld [vmem:[%s8360_s14] ss:$0 sm:$0xff] }
 0xad8   : > { %7068 = vrsqrt.f32 %v1640_v56 }
 0xad9   : > { %7070 = vrsqrt.f32 %v1888_v55 }
 0xae2   : > { %v7069_v57 = vpop.eup %7068 }
 0xae3   : > { %v1642_v61 = vmul.f32 %v7069_v57, %v1634_v36  ;;  %v7071_v62 = vpop.eup %7070  ;;  %v1758_v36 = vld [vmem:[%s8361_s15 + $0x40] sm:$0xff] }
 0xae4   : > { %v1890_v4 = vmul.f32 %v7071_v62, %v1882_v11  ;;  %v1752_v11 = vld [vmem:[%s8361_s15 + $0x10] sm:$0xff]  ;;  %v7637_v26 = vpack.c.bf16 %v1759_v39, %v1758_v36 }
 0xae5   : > { %v1649_v3 = vmul.f32 %v7561_v60, %v1642_v61  ;;  %v7607_v20 = vpack.c.bf16 %v1753_v16, %v1752_v11 }
 0xae6   : > { %v1897_v7 = vmul.f32 %v7287_v19, %v1890_v4 }
 0xae7   : > { %v1656_v6 = vadd.f32 %v7566_v2, %v1649_v3  ;;  %6812 = vmatpush3.bf16.msra.mxu1 %v7607_v20 }
 0xae8   : > { %v7578_v12 = vadd.f32 %v7298_v23, %v1897_v7  ;;  %6813 = vmatprep.subr.bf16.mxu1 %v7130_v10 }
 0xae9   : > { %6284 = vmatmul.mubr.msk.f32.vlgmr.msra.gmra.mrb[16].mxu0 %vm657_vm2, %v1656_v6 }
 0xaea   : > { %6833 = vmatpush3.bf16.msra.mxu0 %v7264_v9  ;;  %6329 = vmatprep.mubr.msk.f32.mxu0 %vm7131_vm1, %v7132_v14 }
 0xaeb   : > { %6834 = vmatprep.subr.bf16.mxu0 %v7130_v10  ;;  %6815 = vmatpush3.bf16.msra.mxu1 %v7617_v24 }
 0xaec   : > { %6816 = vmatprep.subr.bf16.mxu1 %v7130_v10 }
 0xaee   : > { %6836 = vmatpush3.bf16.msra.mxu0 %v7275_v13 }
 0xaef   : > { %6837 = vmatprep.subr.bf16.mxu0 %v7130_v10  ;;  %6818 = vmatpush3.bf16.msra.mxu1 %v7627_v33 }
 0xaf0   : > { %6819 = vmatprep.subr.bf16.mxu1 %v7130_v10 }
 0xaf1   : > { %6330 = vmatmul.mubr.msk.f32.vlgmr.msra.gmra.mrb[18].mxu0 %vm657_vm2, %v7578_v12 }
 0xaf2   : > { %6839 = vmatpush3.bf16.msra.mxu0 %v7301_v25  ;;  %6340 = vmatprep.mubr.msk.f32.mxu0 %vm7131_vm1, %v7132_v14 }
 0xaf3   : > { %6840 = vmatprep.subr.bf16.mxu0 %v7130_v10  ;;  %6821 = vmatpush3.bf16.msra.mxu1 %v7637_v26 }
 0xaf4   : > { %6822 = vmatprep.subr.bf16.mxu1 %v7130_v10 }
 0xaf6   : > { %6842 = vmatpush3.bf16.msra.mxu0 %v7315_v29 }
 0xaf7   : > { %6843 = vmatprep.subr.bf16.mxu0 %v7130_v10  ;;  %6824 = vmatpush3.bf16.msra.mxu1 %v7647_v45 }
 0xaf8   : > { %6825 = vmatprep.subr.bf16.mxu1 %v7130_v10 }
 0xaf9   : > { %6341 = vmatmul.mubr.msk.f32.vlgmr.msra.gmra.mrb[20].mxu0 %vm657_vm2, %v7578_v12 }
 0xafa   : > { %6845 = vmatpush3.bf16.msra.mxu0 %v7327_v32  ;;  %6351 = vmatprep.mubr.msk.f32.mxu0 %vm7131_vm1, %v7132_v14 }
 0xafb   : > { %6846 = vmatprep.subr.bf16.mxu0 %v7130_v10  ;;  %6827 = vmatpush3.bf16.msra.mxu1 %v7657_v49 }
 0xafc   : > { %6828 = vmatprep.subr.bf16.mxu1 %v7130_v10 }
 0xafe   : > { %6848 = vmatpush3.bf16.msra.mxu0 %v7339_v35 }
 0xaff   : > { %6354 = vmatprep.subr.mxu0 %v7132_v14  ;;  %6830 = vmatpush3.bf16.msra.mxu1 %v7667_v53 }
 0xb00   : > { %6359 = vmatprep.subr.mxu1 %v7132_v14 }
 0xb01   : > { %6352 = vmatmul.mubr.msk.f32.vlgmr.msra.gmra.mrb[22].mxu0 %vm657_vm2, %v7578_v12 }
 0xb02   : > { %6356 = vmatprep.mubr.msk.f32.mxu0 %vm7131_vm1, %v7132_v14 }
 0xbbc   : > { %v1737_v55 = vpop.f32.mrb[16].mxu0 }
 0xbbd   : > { %v1738_v56 = vadd.f32 %v7674_v54, %v1737_v55  ;;  %v6285_v57 = vpop.f32.mrb[17].mxu0 }
 0xbbf   : > { %v1742_v61 = vmul.f32 0.044715, %v1738_v56  ;;  %v1741_v39 = vmul.f32 0.5, %v1738_v56 }
 0xbc1   : > { %v1743_v62 = vmul.f32 %v1742_v61, %v1738_v56 }
 0xbc3   : > { %v1744_v3 = vmul.f32 %v1743_v62, %v1738_v56 }
 0xbc4   : > { %v1993_v4 = vpop.f32.mrb[18].mxu0 }
 0xbc5   : > { %v1745_v6 = vadd.f32 %v1744_v3, %v1738_v56  ;;  %v6331_v7 = vpop.f32.mrb[19].mxu0  ;;  %v1994_v30 = vadd.f32 %v7358_v40, %v1993_v4 }
 0xbc7   : > { %v1746_v11 = vmul.f32 0.7978846, %v1745_v6 }
 0xbc9   : > { %7072 = vtanh.f32 %v1746_v11 }
 0xbcc   : > { %v2074_v16 = vpop.f32.mrb[20].mxu0 }
 0xbcd   : > { %v2075_v21 = vadd.f32 %v7353_v38, %v2074_v16  ;;  %v6342_v22 = vpop.f32.mrb[21].mxu0 }
 0xbcf   : > { %6355 = vmatpush3.xpose.msk.msra.mxu0 %vm893_vm3, %v2075_v21 }
 0xbd0   : > { %6849 = vmatprep.subr.bf16.mxu0 %v7130_v10 }
 0xbd2   : > { %6357 = vmatmul.mubr.msk.f32.vlgmr.msra.gmra.mrb[24].mxu0 %vm893_vm3, %v1994_v30 }
 0xbd3   : > { %v7073_v31 = vpop.eup %7072  ;;  %6851 = vmatpush3.bf16.msra.mxu0 %v7383_v59  ;;  %6368 = vmatprep.mubr.msk.f32.mxu0 %vm7131_vm1, %v7132_v14 }
 0xbd4   : > { %v2155_v36 = vpop.f32.mrb[22].mxu0  ;;  %v1748_v34 = vadd.f32 1.0, %v7073_v31  ;;  %6858 = vmatprep.subr.bf16.mxu0 %v7130_v10 }
 0xbd5   : > { %v6353_v38 = vpop.f32.mrb[23].mxu0  ;;  %v2156_v46 = vadd.f32 %v7368_v44, %v2155_v36 }
 0xbd6   : > { %v1749_v0 = vmul.f32 %v1748_v34, %v1741_v39 }
 0xbd8   : > { %6319 = vmatmul.mubr.f32.vlgmr.msra.gmra.mrb[8].mxu1 %v1749_v0 }
 0xbd9   : > { %6360 = vmatpush3.msk.msra.mxu1 %vm987_vm4, %v2156_v46  ;;  %6361 = vmatprep.mubr.msk.f32.mxu1 %vm7131_vm1, %v7132_v14 }
 0xbda   : > { %6852 = vmatprep.subr.bf16.mxu1 %v7130_v10 }
 0xca5   : > { %v2231_v40 = vpop.f32.mrb[24].mxu0 }
 0xca6   : > { %v2235_v59 = vmul.f32 0.25, %v2231_v40  ;;  %v6358_v48 = vpop.f32.mrb[25].mxu0 }
 0xca8   : > { %v2236_v51 = vsel %vm971_vm5, %v2235_v59, -inf }
 0xca9   : > { %2237 = vmax.xlane.f32.xlu0 %v2236_v51 }
 0xcab   : > { %v7692_v52 = vpop.f32.mrb[8].mxu1 }
 0xcac   : > { %v6320_v55 = vpop.f32.mrb[9].mxu1 }
 0xd36   : > { %v2238_v56 = vpop.xlane.xlu0 %2237 }
 0xd37   : > { %v2239_v57 = vsub.f32 %v2235_v59, %v2238_v56  ;;  %v7749_v59 = vld [vmem:[%s7249_s23 + $0x10] sm:$0x1f] }
 0xd38   : > { %v3134_v48 = vsel %vm609_vm0, %v7749_v59, 0.0 }
 0xd39   : > { %v2240_v44 = vmul.f32 1.442695, %v2239_v57 }
 0xd3b   : > { %7074 = vpow2.f32 %v2240_v44 }
 0xd45   : > { %v7075_v61 = vpop.eup %7074 }
 0xd46   : > { %v2242_v62 = vsel %vm971_vm5, %v7075_v61, 0.0 }
 0xd47   : > { %2243 = vadd.xlane.f32.xlu1 %v2242_v62 }
 0xdd4   : > { %v2244_v3 = vpop.xlane.xlu1 %2243 }
 0xdd5   : > { %7076 = vrcp.f32 %v2244_v3 }
 0xddf   : > { %v7077_v4 = vpop.eup %7076 }
 0xde0   : > { %v2246_v6 = vmul.f32 %v7077_v4, %v7075_v61 }
 0xde2   : > { %6362 = vmatmul.mubr.msk.f32.vlgmr.msra.gmra.mrb[10].mxu1 %vm983_vm6, %v2246_v6 }
 0xde3   : > { %6854 = vmatpush3.bf16.msra.mxu1 %v7393_v1  ;;  %6379 = vmatprep.mubr.msk.f32.mxu1 %vm7131_vm1, %v7132_v14 }
 0xde4   : > { %6855 = vmatprep.subr.bf16.mxu1 %v7130_v10 }
 0xde7   : > { %6857 = vmatpush3.bf16.msra.mxu1 %v7403_v5 }
 0xde8   : > { %6864 = vmatprep.subr.bf16.mxu1 %v7130_v10 }
 0xdea   : > { %6380 = vmatmul.mubr.msk.f32.vlgmr.msra.gmra.mrb[12].mxu1 %vm657_vm2, %v7578_v12 }
 0xdeb   : > { %6866 = vmatpush3.bf16.msra.mxu1 %v7415_v8  ;;  %6401 = vmatprep.mubr.msk.f32.mxu1 %vm7131_vm1, %v7132_v14 }
 0xdec   : > { %6867 = vmatprep.subr.bf16.mxu1 %v7130_v10 }
 0xdef   : > { %6869 = vmatpush3.bf16.msra.mxu1 %v7427_v15 }
 0xdf0   : > { %6870 = vmatprep.subr.bf16.mxu1 %v7130_v10 }
 0xdf2   : > { %6402 = vmatmul.mubr.msk.f32.vlgmr.msra.gmra.mrb[14].mxu1 %vm657_vm2, %v7578_v12 }
 0xdf3   : > { %6872 = vmatpush3.bf16.msra.mxu1 %v7498_v58  ;;  %6418 = vmatprep.mubr.msk.f32.mxu1 %vm7131_vm1, %v7132_v14 }
 0xdf4   : > { %6879 = vmatprep.subr.bf16.mxu1 %v7130_v10 }
 0xeb5   : > { %v2319_v1 = vpop.f32.mrb[10].mxu1 }
 0xeb6   : > { %v6363_v5 = vpop.f32.mrb[11].mxu1  ;;  %6369 = vmatmul.mubr.msk.f32.vlgmr.msra.gmra.mrb[26].mxu0 %vm893_vm3, %v2319_v1 }
 0xeb7   : > { %6860 = vmatpush3.bf16.msra.mxu0 %v7444_v18  ;;  %6390 = vmatprep.mubr.msk.f32.mxu0 %vm7131_vm1, %v7132_v14 }
 0xeb8   : > { %6861 = vmatprep.subr.bf16.mxu0 %v7130_v10 }
 0xebb   : > { %6863 = vmatpush3.bf16.msra.mxu0 %v7454_v27 }
 0xebc   : > { %6404 = vmatprep.subr.mxu0 %v7132_v14 }
 0xebd   : > { %v2476_v8 = vpop.f32.mrb[12].mxu1 }
 0xebe   : > { %v6381_v15 = vpop.f32.mrb[13].mxu1  ;;  %6391 = vmatmul.mubr.msk.f32.vlgmr.msra.gmra.mrb[28].mxu0 %vm657_vm2, %v7578_v12  ;;  %v2477_v27 = vadd.f32 %v7473_v41, %v2476_v8 }
 0xebf   : > { %6406 = vmatprep.mubr.msk.f32.mxu0 %vm7131_vm1, %v7132_v14 }
 0xec5   : > { %v2638_v58 = vpop.f32.mrb[14].mxu1 }
 0xec6   : > { %v6403_v7 = vpop.f32.mrb[15].mxu1  ;;  %v2639_v12 = vadd.f32 %v7479_v43, %v2638_v58 }
 0xf89   : > { %v7727_v18 = vpop.f32.mrb[26].mxu0 }
 0xf8a   : > { %v6370_v11 = vpop.f32.mrb[27].mxu0 }
 0xf91   : > { %v2557_v16 = vpop.f32.mrb[28].mxu0 }
 0xf92   : > { %v2558_v21 = vadd.f32 %v7468_v37, %v2557_v16  ;;  %v6392_v22 = vpop.f32.mrb[29].mxu0 }
 0xf94   : > { %6405 = vmatpush3.xpose.msk.msra.mxu0 %vm893_vm3, %v2558_v21 }
 0xf95   : > { %6409 = vmatprep.subr.mxu0 %v7132_v14 }
 0xf97   : > { %6407 = vmatmul.mubr.msk.f32.vlgmr.msra.gmra.mrb[30].mxu0 %vm893_vm3, %v2477_v27 }
 0xf98   : > { %6410 = vmatpush3.msk.msra.mxu0 %vm987_vm4, %v2639_v12  ;;  %6411 = vmatprep.mubr.msk.f32.mxu0 %vm7131_vm1, %v7132_v14  ;;  %v7825_v12 = vld [vmem:[%s8350_s4] ss:$0 sm:$0xff] }
 0xf99   : > { %6873 = vmatprep.subr.bf16.mxu0 %v7130_v10 }
0x106a   : > { %v2714_v30 = vpop.f32.mrb[30].mxu0 }
0x106b   : > { %v2718_v37 = vmul.f32 0.25, %v2714_v30  ;;  %v6408_v31 = vpop.f32.mrb[31].mxu0 }
0x106d   : > { %v2719_v36 = vsel %vm971_vm5, %v2718_v37, -inf }
0x106e   : > { %2720 = vmax.xlane.f32.xlu0 %v2719_v36  ;;  %v7837_v36 = vld [vmem:[%s8354_s8] ss:$0 sm:$0xff] }
0x10fb   : > { %v2721_v41 = vpop.xlane.xlu0 %2720 }
0x10fc   : > { %v2722_v39 = vsub.f32 %v2718_v37, %v2721_v41 }
0x10fe   : > { %v2723_v34 = vmul.f32 1.442695, %v2722_v39 }
0x1100   : > { %7078 = vpow2.f32 %v2723_v34 }
0x110a   : > { %v7079_v43 = vpop.eup %7078 }
0x110b   : > { %v2725_v38 = vsel %vm971_vm5, %v7079_v43, 0.0 }
0x110c   : > { %2726 = vadd.xlane.f32.xlu1 %v2725_v38 }
0x1110   : > { %3135 = vadd.xlane.f32.xlu1 %v3134_v48 }
0x1199   : > { %v2727_v0 = vpop.xlane.xlu1 %2726 }
0x119a   : > { %7080 = vrcp.f32 %v2727_v0 }
0x11a4   : > { %v7081_v46 = vpop.eup %7080 }
0x11a5   : > { %v2729_v40 = vmul.f32 %v7081_v46, %v7079_v43 }
0x11a7   : > { %6412 = vmatmul.mubr.msk.f32.vlgmr.msra.gmra.mrb[32].mxu0 %vm983_vm6, %v2729_v40 }
0x11a8   : > { %6875 = vmatpush3.bf16.msra.mxu0 %v7534_v42  ;;  %6429 = vmatprep.mubr.msk.f32.mxu0 %vm7131_vm1, %v7132_v14  ;;  %v3136_v42 = vpop.xlane.xlu1 %3135 }
0x11a9   : > { %6876 = vmatprep.subr.bf16.mxu0 %v7130_v10 }
0x11ac   : > { %6878 = vmatpush3.bf16.msra.mxu0 %v7544_v47  ;;  %v3137_v47 = vmul.f32 0.03125, %v3136_v42 }
0x11ad   : > { %6903 = vmatprep.subr.bf16.mxu0 %v7130_v10 }
0x127a   : > { %v2802_v51 = vpop.f32.mrb[32].mxu0 }
0x127b   : > { %v6413_v55 = vpop.f32.mrb[33].mxu0  ;;  %6419 = vmatmul.mubr.msk.f32.vlgmr.msra.gmra.mrb[16].mxu1 %vm893_vm3, %v2802_v51 }
0x127c   : > { %6881 = vmatpush3.bf16.msra.mxu1 %v7554_v50  ;;  %6464 = vmatprep.mubr.msk.f32.mxu1 %vm7131_vm1, %v7132_v14  ;;  %v3138_v50 = vsub.f32 %v7749_v59, %v3137_v47 }
0x127d   : > { %6882 = vmatprep.subr.bf16.mxu1 %v7130_v10 }
0x1280   : > { %6884 = vmatpush3.bf16.msra.mxu1 %v7607_v20  ;;  %v3139_v20 = vmul.f32 %v3138_v50, %v3138_v50 }
0x1281   : > { %6885 = vmatprep.subr.bf16.mxu1 %v7130_v10 }
0x1284   : > { %6887 = vmatpush3.bf16.msra.mxu1 %v7617_v24  ;;  %v3140_v24 = vsel %vm609_vm0, %v3139_v20, 0.0 }
0x1285   : > { %6888 = vmatprep.subr.bf16.mxu1 %v7130_v10  ;;  %3141 = vadd.xlane.f32.xlu1 %v3140_v24 }
0x1288   : > { %6890 = vmatpush3.bf16.msra.mxu1 %v7627_v33  ;;  %v2398_v33 = vadd.f32 %v7518_v17, %v7727_v18 }
0x1289   : > { %6891 = vmatprep.subr.bf16.mxu1 %v7130_v10 }
0x128c   : > { %6893 = vmatpush3.bf16.msra.mxu1 %v7637_v26 }
0x128d   : > { %6894 = vmatprep.subr.bf16.mxu1 %v7130_v10 }
0x1290   : > { %6896 = vmatpush3.bf16.msra.mxu1 %v7647_v45 }
0x1291   : > { %6897 = vmatprep.subr.bf16.mxu1 %v7130_v10 }
0x1294   : > { %6899 = vmatpush3.bf16.msra.mxu1 %v7657_v49 }
0x1295   : > { %6900 = vmatprep.subr.bf16.mxu1 %v7130_v10 }
0x1298   : > { %6902 = vmatpush3.bf16.msra.mxu1 %v7667_v53 }
0x1299   : > { %6505 = vmatprep.subr.mxu1 %v7132_v14 }
0x1312   : > { %v3142_v4 = vpop.xlane.xlu1 %3141 }
0x1313   : > { %v3143_v17 = vmul.f32 0.03125, %v3142_v4  ;;  %v5824_v4 = vld [vmem:[%s8374_s3 + $0x30] sm:$0xff] }
0x1315   : > { %v3144_v5 = vadd.f32 1e-06, %v3143_v17  ;;  %v5825_v17 = vld [vmem:[%s8374_s3 + $0x38] sm:$0xff] }
0x134e   : > { %v2877_v26 = vpop.f32.mrb[16].mxu1 }
0x134f   : > { %v2881_v45 = vadd.f32 %v2877_v26, %v2398_v33  ;;  %v6420_v49 = vpop.f32.mrb[17].mxu1  ;;  %v3579_v26 = vld [vmem:[%s8355_s9] sm:$0xff] }
0x1351   : > { %v7777_v56 = vadd.f32 %v7506_v63, %v2881_v45  ;;  %v3580_v45 = vld [vmem:[%s8355_s9 + $0x8] sm:$0xff] }
0x1352   : > { %v7854_v49 = vpack.c.bf16 %v3580_v45, %v3579_v26  ;;  %v7977_v45 = vld [vmem:[%s7249_s23 + $0x18] sm:$0x1f] }
0x1353   : > { %v2885_v53 = vsel %vm609_vm0, %v7777_v56, 0.0 }
0x1354   : > { %2886 = vadd.xlane.f32.xlu0 %v2885_v53 }
0x13e1   : > { %v2887_v57 = vpop.xlane.xlu0 %2886 }
0x13e2   : > { %v2888_v44 = vmul.f32 0.03125, %v2887_v57  ;;  %v5822_v57 = vld [vmem:[%s8374_s3 + $0x20] sm:$0xff] }
0x13e4   : > { %v2889_v61 = vsub.f32 %v7777_v56, %v2888_v44  ;;  %v5823_v44 = vld [vmem:[%s8374_s3 + $0x28] sm:$0xff] }
0x13e6   : > { %v2890_v62 = vmul.f32 %v2889_v61, %v2889_v61 }
0x13e8   : > { %v2891_v3 = vsel %vm609_vm0, %v2890_v62, 0.0  ;;  %v7864_v62 = vpack.c.bf16 %v5823_v44, %v5822_v57 }
0x13e9   : > { %2892 = vadd.xlane.f32.xlu0 %v2891_v3 }
0x1476   : > { %v2893_v6 = vpop.xlane.xlu0 %2892 }
0x1477   : > { %v2894_v1 = vmul.f32 0.03125, %v2893_v6  ;;  %v7874_v6 = vpack.c.bf16 %v5825_v17, %v5824_v4 }
0x1479   : > { %v2895_v8 = vadd.f32 1e-06, %v2894_v1  ;;  %v5836_v1 = vld [vmem:[%s8353_s7 + $0x20] sm:$0xff] }
0x147b   : > { %7082 = vrsqrt.f32 %v2895_v8 }
0x147c   : > { %7084 = vrsqrt.f32 %v3144_v5  ;;  %v5837_v5 = vld [vmem:[%s8353_s7 + $0x28] sm:$0xff] }
0x147d   : > { %v7886_v8 = vpack.c.bf16 %v5837_v5, %v5836_v1  ;;  %v7989_v5 = vld [vmem:[%s8356_s10] ss:$0 sm:$0xff] }
0x1485   : > { %v7083_v63 = vpop.eup %7082 }
0x1486   : > { %v2897_v15 = vmul.f32 %v7083_v63, %v2889_v61  ;;  %v7085_v58 = vpop.eup %7084  ;;  %v5838_v63 = vld [vmem:[%s8353_s7 + $0x30] sm:$0xff] }
0x1487   : > { %v3146_v18 = vmul.f32 %v7085_v58, %v3138_v50 }
0x1488   : > { %v2904_v7 = vmul.f32 %v7561_v60, %v2897_v15  ;;  %v5839_v15 = vld [vmem:[%s8353_s7 + $0x38] sm:$0xff] }
0x1489   : > { %v3153_v16 = vmul.f32 %v7287_v19, %v3146_v18  ;;  %v7898_v58 = vpack.c.bf16 %v5839_v15, %v5838_v63  ;;  %v5830_v18 = vld [vmem:[%s8351_s5 + $0x28] sm:$0xff] }
0x148a   : > { %v2911_v11 = vadd.f32 %v7566_v2, %v2904_v7  ;;  %v5829_v7 = vld [vmem:[%s8351_s5 + $0x20] sm:$0xff] }
0x148b   : > { %v7793_v21 = vadd.f32 %v7298_v23, %v3153_v16  ;;  %v5831_v16 = vld [vmem:[%s8351_s5 + $0x30] sm:$0xff] }
0x148c   : > { %6430 = vmatmul.mubr.msk.f32.vlgmr.msra.gmra.mrb[34].mxu0 %vm657_vm2, %v2911_v11  ;;  %v7915_v11 = vpack.c.bf16 %v5830_v18, %v5829_v7 }
0x148d   : > { %6905 = vmatpush3.bf16.msra.mxu0 %v7264_v9  ;;  %6475 = vmatprep.mubr.msk.f32.mxu0 %vm7131_vm1, %v7132_v14 }
0x148e   : > { %6906 = vmatprep.subr.bf16.mxu0 %v7130_v10 }
0x1491   : > { %6908 = vmatpush3.bf16.msra.mxu0 %v7275_v13 }
0x1492   : > { %6909 = vmatprep.subr.bf16.mxu0 %v7130_v10 }
0x1494   : > { %6476 = vmatmul.mubr.msk.f32.vlgmr.msra.gmra.mrb[36].mxu0 %vm657_vm2, %v7793_v21 }
0x1495   : > { %6911 = vmatpush3.bf16.msra.mxu0 %v7301_v25  ;;  %6486 = vmatprep.mubr.msk.f32.mxu0 %vm7131_vm1, %v7132_v14 }
0x1496   : > { %6912 = vmatprep.subr.bf16.mxu0 %v7130_v10 }
0x1499   : > { %6914 = vmatpush3.bf16.msra.mxu0 %v7315_v29 }
0x149a   : > { %6915 = vmatprep.subr.bf16.mxu0 %v7130_v10 }
0x149c   : > { %6487 = vmatmul.mubr.msk.f32.vlgmr.msra.gmra.mrb[38].mxu0 %vm657_vm2, %v7793_v21 }
0x149d   : > { %6917 = vmatpush3.bf16.msra.mxu0 %v7327_v32  ;;  %6497 = vmatprep.mubr.msk.f32.mxu0 %vm7131_vm1, %v7132_v14 }
0x149e   : > { %6918 = vmatprep.subr.bf16.mxu0 %v7130_v10 }
0x14a1   : > { %6920 = vmatpush3.bf16.msra.mxu0 %v7339_v35  ;;  %v7820_v35 = vld [vmem:[%s8352_s6] ss:$0 sm:$0xff] }
0x14a2   : > { %6500 = vmatprep.subr.mxu0 %v7132_v14 }
0x14a4   : > { %6498 = vmatmul.mubr.msk.f32.vlgmr.msra.gmra.mrb[40].mxu0 %vm657_vm2, %v7793_v21 }
0x14a5   : > { %6502 = vmatprep.mubr.msk.f32.mxu0 %vm7131_vm1, %v7132_v14 }
0x155f   : > { %v2992_v9 = vpop.f32.mrb[34].mxu0 }
0x1560   : > { %v2993_v13 = vadd.f32 %v7674_v54, %v2992_v9  ;;  %v6431_v19 = vpop.f32.mrb[35].mxu0  ;;  %v5832_v9 = vld [vmem:[%s8351_s5 + $0x38] sm:$0xff] }
0x1562   : > { %v2997_v23 = vmul.f32 0.044715, %v2993_v13  ;;  %v2996_v39 = vmul.f32 0.5, %v2993_v13 }
0x1564   : > { %v2998_v25 = vmul.f32 %v2997_v23, %v2993_v13  ;;  %v7925_v23 = vpack.c.bf16 %v5832_v9, %v5831_v16 }
0x1566   : > { %v2999_v29 = vmul.f32 %v2998_v25, %v2993_v13 }
0x1567   : > { %v3249_v32 = vpop.f32.mrb[36].mxu0 }
0x1568   : > { %v3000_v60 = vadd.f32 %v2999_v29, %v2993_v13  ;;  %v6477_v2 = vpop.f32.mrb[37].mxu0  ;;  %v3250_v37 = vadd.f32 %v7825_v12, %v3249_v32 }
0x156a   : > { %v3001_v22 = vmul.f32 0.7978846, %v3000_v60 }
0x156c   : > { %7086 = vtanh.f32 %v3001_v22 }
0x156f   : > { %v3330_v27 = vpop.f32.mrb[38].mxu0 }
0x1570   : > { %v3331_v54 = vadd.f32 %v7820_v35, %v3330_v27  ;;  %v6488_v30 = vpop.f32.mrb[39].mxu0  ;;  %v7939_v27 = vld [vmem:[%s8352_s6 + $0x1] ss:$0 sm:$0xff] }
0x1571   : > { %v7944_v30 = vld [vmem:[%s8350_s4 + $0x1] ss:$0 sm:$0xff] }
0x1572   : > { %6501 = vmatpush3.xpose.msk.msra.mxu0 %vm893_vm3, %v3331_v54 }
0x1573   : > { %6921 = vmatprep.subr.bf16.mxu0 %v7130_v10 }
0x1575   : > { %6503 = vmatmul.mubr.msk.f32.vlgmr.msra.gmra.mrb[42].mxu0 %vm893_vm3, %v3250_v37 }
0x1576   : > { %v7087_v31 = vpop.eup %7086  ;;  %6514 = vmatprep.mubr.msk.f32.mxu0 %vm7131_vm1, %v7132_v14  ;;  %6923 = vmatpush3.bf16.msra.mxu0 %v7854_v49 }
0x1577   : > { %v3411_v41 = vpop.f32.mrb[40].mxu0  ;;  %v3003_v34 = vadd.f32 1.0, %v7087_v31  ;;  %6930 = vmatprep.subr.bf16.mxu0 %v7130_v10  ;;  %v7950_v31 = vld [vmem:[%s8354_s8 + $0x1] ss:$0 sm:$0xff] }
0x1578   : > { %v6499_v43 = vpop.f32.mrb[41].mxu0  ;;  %v3412_v0 = vadd.f32 %v7837_v36, %v3411_v41 }
0x1579   : > { %v3004_v38 = vmul.f32 %v3003_v34, %v2996_v39 }
0x157b   : > { %6465 = vmatmul.mubr.f32.vlgmr.msra.gmra.mrb[18].mxu1 %v3004_v38 }
0x157c   : > { %6506 = vmatpush3.msk.msra.mxu1 %vm987_vm4, %v3412_v0  ;;  %6507 = vmatprep.mubr.msk.f32.mxu1 %vm7131_vm1, %v7132_v14 }
0x157d   : > { %6924 = vmatprep.subr.bf16.mxu1 %v7130_v10 }
0x1648   : > { %v3487_v46 = vpop.f32.mrb[42].mxu0 }
0x1649   : > { %v3491_v40 = vmul.f32 0.25, %v3487_v46  ;;  %v6504_v48 = vpop.f32.mrb[43].mxu0 }
0x164b   : > { %v3492_v51 = vsel %vm971_vm5, %v3491_v40, -inf }
0x164c   : > { %3493 = vmax.xlane.f32.xlu0 %v3492_v51 }
0x164e   : > { %v7845_v55 = vpop.f32.mrb[18].mxu1 }
0x164f   : > { %v6466_v42 = vpop.f32.mrb[19].mxu1 }
0x16d9   : > { %v3494_v47 = vpop.xlane.xlu0 %3493 }
0x16da   : > { %v3495_v50 = vsub.f32 %v3491_v40, %v3494_v47  ;;  %v5847_v47 = vld [vmem:[%s8355_s9 + $0x10] sm:$0xff] }
0x16dc   : > { %v3496_v20 = vmul.f32 1.442695, %v3495_v50  ;;  %v5848_v50 = vld [vmem:[%s8355_s9 + $0x18] sm:$0xff] }
0x16de   : > { %7088 = vpow2.f32 %v3496_v20  ;;  %v7969_v20 = vpack.c.bf16 %v5848_v50, %v5847_v47  ;;  %v4425_v47 = vld [vmem:[%s8374_s3] sm:$0xff]  ;;  %v4426_v50 = vld [vmem:[%s8374_s3 + $0x8] sm:$0xff] }
0x16e8   : > { %v7089_v24 = vpop.eup %7088 }
0x16e9   : > { %v3498_v33 = vsel %vm971_vm5, %v7089_v24, 0.0 }
0x16ea   : > { %3499 = vadd.xlane.f32.xlu1 %v3498_v33 }
0x1777   : > { %v3500_v53 = vpop.xlane.xlu1 %3499 }
0x1778   : > { %7090 = vrcp.f32 %v3500_v53  ;;  %v4390_v53 = vsel %vm609_vm0, %v7977_v45, 0.0 }
0x1782   : > { %v7091_v61 = vpop.eup %7090 }
0x1783   : > { %v3502_v3 = vmul.f32 %v7091_v61, %v7089_v24 }
0x1785   : > { %6508 = vmatmul.mubr.msk.f32.vlgmr.msra.gmra.mrb[20].mxu1 %vm983_vm6, %v3502_v3 }
0x1786   : > { %6926 = vmatpush3.bf16.msra.mxu1 %v7864_v62  ;;  %6525 = vmatprep.mubr.msk.f32.mxu1 %vm7131_vm1, %v7132_v14 }
0x1787   : > { %6927 = vmatprep.subr.bf16.mxu1 %v7130_v10 }
0x178a   : > { %6929 = vmatpush3.bf16.msra.mxu1 %v7874_v6 }
0x178b   : > { %6936 = vmatprep.subr.bf16.mxu1 %v7130_v10 }
0x178d   : > { %6526 = vmatmul.mubr.msk.f32.vlgmr.msra.gmra.mrb[22].mxu1 %vm657_vm2, %v7793_v21 }
0x178e   : > { %6938 = vmatpush3.bf16.msra.mxu1 %v7886_v8  ;;  %6547 = vmatprep.mubr.msk.f32.mxu1 %vm7131_vm1, %v7132_v14 }
0x178f   : > { %6939 = vmatprep.subr.bf16.mxu1 %v7130_v10 }
0x1792   : > { %6941 = vmatpush3.bf16.msra.mxu1 %v7898_v58 }
0x1793   : > { %6942 = vmatprep.subr.bf16.mxu1 %v7130_v10 }
0x1795   : > { %6548 = vmatmul.mubr.msk.f32.vlgmr.msra.gmra.mrb[24].mxu1 %vm657_vm2, %v7793_v21 }
0x1796   : > { %6564 = vmatprep.mubr.msk.f32.mxu1 %vm7131_vm1, %v7132_v14  ;;  %6944 = vmatpush3.bf16.msra.mxu1 %v7969_v20 }
0x1797   : > { %6951 = vmatprep.subr.bf16.mxu1 %v7130_v10 }
0x1858   : > { %v3575_v13 = vpop.f32.mrb[20].mxu1 }
0x1859   : > { %v6509_v19 = vpop.f32.mrb[21].mxu1  ;;  %6515 = vmatmul.mubr.msk.f32.vlgmr.msra.gmra.mrb[44].mxu0 %vm893_vm3, %v3575_v13 }
0x185a   : > { %6932 = vmatpush3.bf16.msra.mxu0 %v7915_v11  ;;  %6536 = vmatprep.mubr.msk.f32.mxu0 %vm7131_vm1, %v7132_v14 }
0x185b   : > { %6933 = vmatprep.subr.bf16.mxu0 %v7130_v10 }
0x185e   : > { %6935 = vmatpush3.bf16.msra.mxu0 %v7925_v23 }
0x185f   : > { %6550 = vmatprep.subr.mxu0 %v7132_v14 }
0x1860   : > { %v3732_v25 = vpop.f32.mrb[22].mxu1 }
0x1861   : > { %v6527_v29 = vpop.f32.mrb[23].mxu1  ;;  %6537 = vmatmul.mubr.msk.f32.vlgmr.msra.gmra.mrb[46].mxu0 %vm657_vm2, %v7793_v21  ;;  %v3733_v41 = vadd.f32 %v7944_v30, %v3732_v25 }
0x1862   : > { %6552 = vmatprep.mubr.msk.f32.mxu0 %vm7131_vm1, %v7132_v14 }
0x1868   : > { %v3894_v32 = vpop.f32.mrb[24].mxu1 }
0x1869   : > { %v6549_v60 = vpop.f32.mrb[25].mxu1  ;;  %v3895_v39 = vadd.f32 %v7950_v31, %v3894_v32 }
0x186a   : > { %v4168_v60 = vld [vmem:[%s8359_s13] sm:$0xff] }
0x192c   : > { %v3650_v2 = vpop.f32.mrb[44].mxu0 }
0x192d   : > { %v6516_v22 = vpop.f32.mrb[45].mxu0  ;;  %v3654_v63 = vadd.f32 %v7989_v5, %v3650_v2 }
0x192e   : > { %v4170_v22 = vld [vmem:[%s8359_s13 + $0x10] sm:$0xff] }
0x1934   : > { %v3813_v54 = vpop.f32.mrb[46].mxu0 }
0x1935   : > { %v3814_v21 = vadd.f32 %v7939_v27, %v3813_v54  ;;  %v6538_v37 = vpop.f32.mrb[47].mxu0  ;;  %v4171_v54 = vld [vmem:[%s8359_s13 + $0x18] sm:$0xff] }
0x1936   : > { %v4261_v37 = vld [vmem:[%s8361_s15] sm:$0xff] }
0x1937   : > { %6551 = vmatpush3.xpose.msk.msra.mxu0 %vm893_vm3, %v3814_v21  ;;  %v8015_v21 = vpack.c.bf16 %v4171_v54, %v4170_v22  ;;  %v4593_v22 = vld [vmem:[%s8353_s7 + $0x18] sm:$0xff] }
0x1938   : > { %6555 = vmatprep.subr.mxu0 %v7132_v14 }
0x193a   : > { %6553 = vmatmul.mubr.msk.f32.vlgmr.msra.gmra.mrb[48].mxu0 %vm893_vm3, %v3733_v41  ;;  %v4262_v41 = vld [vmem:[%s8361_s15 + $0x8] sm:$0xff] }
0x193b   : > { %6556 = vmatpush3.msk.msra.mxu0 %vm987_vm4, %v3895_v39  ;;  %6557 = vmatprep.mubr.msk.f32.mxu0 %vm7131_vm1, %v7132_v14  ;;  %v8025_v39 = vpack.c.bf16 %v4262_v41, %v4261_v37  ;;  %v4263_v37 = vld [vmem:[%s8361_s15 + $0x10] sm:$0xff]  ;;  %v4264_v41 = vld [vmem:[%s8361_s15 + $0x18] sm:$0xff] }
0x193c   : > { %6945 = vmatprep.subr.bf16.mxu0 %v7130_v10 }
0x1a0d   : > { %v3970_v34 = vpop.f32.mrb[48].mxu0 }
0x1a0e   : > { %v3974_v43 = vmul.f32 0.25, %v3970_v34  ;;  %v6554_v38 = vpop.f32.mrb[49].mxu0 }
0x1a10   : > { %v3975_v0 = vsel %vm971_vm5, %v3974_v43, -inf }
0x1a11   : > { %3976 = vmax.xlane.f32.xlu0 %v3975_v0 }
0x1a9e   : > { %v3977_v46 = vpop.xlane.xlu0 %3976 }
0x1a9f   : > { %v3978_v40 = vsub.f32 %v3974_v43, %v3977_v46 }
0x1aa1   : > { %v3979_v48 = vmul.f32 1.442695, %v3978_v40 }
0x1aa3   : > { %7092 = vpow2.f32 %v3979_v48 }
0x1aad   : > { %v7093_v51 = vpop.eup %7092 }
0x1aae   : > { %v3981_v42 = vsel %vm971_vm5, %v7093_v51, 0.0 }
0x1aaf   : > { %3982 = vadd.xlane.f32.xlu1 %v3981_v42 }
0x1ab3   : > { %4391 = vadd.xlane.f32.xlu1 %v4390_v53  ;;  %v6976_v53 = vpack.c.bf16 %v4426_v50, %v4425_v47  ;;  %v4270_v47 = vld [vmem:[%s8361_s15 + $0x48] sm:$0xff] }
0x1b3c   : > { %v3983_v24 = vpop.xlane.xlu1 %3982 }
0x1b3d   : > { %7094 = vrcp.f32 %v3983_v24 }
0x1b40   : > { %v4392_v61 = vpop.xlane.xlu1 %4391 }
0x1b41   : > { %v4393_v3 = vmul.f32 0.03125, %v4392_v61  ;;  %v4427_v61 = vld [vmem:[%s8374_s3 + $0x10] sm:$0xff] }
0x1b43   : > { %v4394_v4 = vsub.f32 %v7977_v45, %v4393_v3  ;;  %v4428_v3 = vld [vmem:[%s8374_s3 + $0x18] sm:$0xff] }
0x1b45   : > { %v4395_v17 = vmul.f32 %v4394_v4, %v4394_v4 }
0x1b47   : > { %v7095_v33 = vpop.eup %7094  ;;  %v4396_v1 = vsel %vm609_vm0, %v4395_v17, 0.0  ;;  %v5859_v17 = vld [vmem:[%s8375_s24] ss:$0 sm:$0xff] }
0x1b48   : > { %v3985_v26 = vmul.f32 %v7095_v33, %v7093_v51  ;;  %4397 = vadd.xlane.f32.xlu1 %v4396_v1  ;;  %v8032_v51 = vld [vmem:[%s8357_s11] ss:$0 sm:$0xff]  ;;  %v6979_v1 = vpack.c.bf16 %v4428_v3, %v4427_v61  ;;  %v4275_v3 = vld [vmem:[%s8361_s15 + $0x70] sm:$0xff] }
0x1b49   : > { %v8043_v33 = vld [vmem:[%s8358_s12] ss:$0 sm:$0xff] }
0x1b4a   : > { %6558 = vmatmul.mubr.msk.f32.vlgmr.msra.gmra.mrb[50].mxu0 %vm983_vm6, %v3985_v26 }
0x1b4b   : > { %6575 = vmatprep.mubr.msk.f32.mxu0 %vm7131_vm1, %v7132_v14 }
0x1bd5   : > { %v4398_v34 = vpop.xlane.xlu1 %4397 }
0x1bd6   : > { %v4399_v43 = vmul.f32 0.03125, %v4398_v34  ;;  %v8112_v34 = vpack.c.bf16 %v4264_v41, %v4263_v37 }
0x1bd8   : > { %v4400_v46 = vadd.f32 1e-06, %v4399_v43  ;;  %v4265_v43 = vld [vmem:[%s8361_s15 + $0x20] sm:$0xff] }
0x1c1d   : > { %v4058_v57 = vpop.f32.mrb[50].mxu0 }
0x1c1e   : > { %v6559_v44 = vpop.f32.mrb[51].mxu0  ;;  %6565 = vmatmul.mubr.msk.f32.vlgmr.msra.gmra.mrb[26].mxu1 %vm893_vm3, %v4058_v57 }
0x1c1f   : > { %6610 = vmatprep.mubr.msk.f32.mxu1 %vm7131_vm1, %v7132_v14  ;;  %6953 = vmatpush3.bf16.msra.mxu1 %v8025_v39 }
0x1c20   : > { %6954 = vmatprep.subr.bf16.mxu1 %v7130_v10 }
0x1c23   : > { %6956 = vmatpush3.bf16.msra.mxu1 %v8112_v34 }
0x1c24   : > { %6957 = vmatprep.subr.bf16.mxu1 %v7130_v10 }
0x1cf1   : > { %v4133_v15 = vpop.f32.mrb[26].mxu1 }
0x1cf2   : > { %v4137_v7 = vadd.f32 %v4133_v15, %v3654_v63  ;;  %v6566_v18 = vpop.f32.mrb[27].mxu1  ;;  %v4509_v63 = vld [vmem:[%s8351_s5] sm:$0xff]  ;;  %v4510_v15 = vld [vmem:[%s8351_s5 + $0x8] sm:$0xff] }
0x1cf3   : > { %v6982_v18 = vpack.c.bf16 %v4510_v15, %v4509_v63 }
0x1cf4   : > { %v7993_v16 = vadd.f32 %v7749_v59, %v4137_v7  ;;  %v4169_v59 = vld [vmem:[%s8359_s13 + $0x8] sm:$0xff]  ;;  %v5860_v7 = vld [vmem:[%s8376_s1] ss:$0 sm:$0xff] }
0x1cf5   : > { %v8005_v2 = vpack.c.bf16 %v4169_v59, %v4168_v60  ;;  %v4592_v59 = vld [vmem:[%s8353_s7 + $0x10] sm:$0xff] }
0x1cf6   : > { %v4141_v9 = vsel %vm609_vm0, %v7993_v16, 0.0  ;;  %v6991_v54 = vpack.c.bf16 %v4593_v22, %v4592_v59 }
0x1cf7   : > { %4142 = vadd.xlane.f32.xlu0 %v4141_v9  ;;  %6947 = vmatpush3.bf16.msra.mxu0 %v8005_v2 }
0x1cf8   : > { %6948 = vmatprep.subr.bf16.mxu0 %v7130_v10 }
0x1cfb   : > { %6950 = vmatpush3.bf16.msra.mxu0 %v8015_v21 }
0x1cfc   : > { %6975 = vmatprep.subr.bf16.mxu0 %v7130_v10 }
0x1d84   : > { %v4143_v13 = vpop.xlane.xlu0 %4142 }
0x1d85   : > { %v4144_v19 = vmul.f32 0.03125, %v4143_v13  ;;  %v4511_v13 = vld [vmem:[%s8351_s5 + $0x10] sm:$0xff] }
0x1d87   : > { %v4145_v25 = vsub.f32 %v7993_v16, %v4144_v19  ;;  %v4512_v19 = vld [vmem:[%s8351_s5 + $0x18] sm:$0xff] }
0x1d89   : > { %v4146_v29 = vmul.f32 %v4145_v25, %v4145_v25 }
0x1d8b   : > { %v4147_v32 = vsel %vm609_vm0, %v4146_v29, 0.0  ;;  %v4590_v29 = vld [vmem:[%s8353_s7] sm:$0xff] }
0x1d8c   : > { %4148 = vadd.xlane.f32.xlu0 %v4147_v32  ;;  %v4591_v32 = vld [vmem:[%s8353_s7 + $0x8] sm:$0xff] }
0x1d8d   : > { %v6988_v60 = vpack.c.bf16 %v4591_v32, %v4590_v29 }
0x1e19   : > { %v4149_v38 = vpop.xlane.xlu0 %4148 }
0x1e1a   : > { %v4150_v0 = vmul.f32 0.03125, %v4149_v38  ;;  %v4266_v38 = vld [vmem:[%s8361_s15 + $0x28] sm:$0xff] }
0x1e1c   : > { %v4151_v40 = vadd.f32 1e-06, %v4150_v0  ;;  %v8122_v0 = vpack.c.bf16 %v4266_v38, %v4265_v43 }
0x1e1e   : > { %7096 = vrsqrt.f32 %v4151_v40  ;;  %6959 = vmatpush3.bf16.msra.mxu1 %v8122_v0  ;;  %v4268_v40 = vld [vmem:[%s8361_s15 + $0x38] sm:$0xff] }
0x1e1f   : > { %7098 = vrsqrt.f32 %v4400_v46  ;;  %6960 = vmatprep.subr.bf16.mxu1 %v7130_v10  ;;  %v4267_v46 = vld [vmem:[%s8361_s15 + $0x30] sm:$0xff] }
0x1e28   : > { %v7097_v48 = vpop.eup %7096 }
0x1e29   : > { %v4153_v42 = vmul.f32 %v7097_v48, %v4145_v25  ;;  %v7099_v24 = vpop.eup %7098  ;;  %v6985_v25 = vpack.c.bf16 %v4512_v19, %v4511_v13  ;;  %v8132_v48 = vpack.c.bf16 %v4268_v40, %v4267_v46 }
0x1e2a   : > { %v4402_v57 = vmul.f32 %v7099_v24, %v4394_v4  ;;  %v4271_v24 = vld [vmem:[%s8361_s15 + $0x50] sm:$0xff] }
0x1e2b   : > { %v4160_v26 = vmul.f32 %v8032_v51, %v4153_v42  ;;  %6962 = vmatpush3.bf16.msra.mxu1 %v8132_v48  ;;  %v4269_v42 = vld [vmem:[%s8361_s15 + $0x40] sm:$0xff] }
0x1e2c   : > { %v4409_v4 = vmul.f32 %v5859_v17, %v4402_v57  ;;  %6963 = vmatprep.subr.bf16.mxu1 %v7130_v10  ;;  %v8142_v50 = vpack.c.bf16 %v4270_v47, %v4269_v42  ;;  %v4273_v57 = vld [vmem:[%s8361_s15 + $0x60] sm:$0xff]  ;;  %v4276_v17 = vld [vmem:[%s8361_s15 + $0x78] sm:$0xff] }
0x1e2d   : > { %v4167_v44 = vadd.f32 %v8043_v33, %v4160_v26  ;;  %v4272_v26 = vld [vmem:[%s8361_s15 + $0x58] sm:$0xff] }
0x1e2e   : > { %v8069_v9 = vadd.f32 %v5860_v7, %v4409_v4  ;;  %v8179_v4 = vld [vmem:[%s8360_s14] ss:$0 sm:$0xff] }
0x1e2f   : > { %6576 = vmatmul.mubr.msk.f32.vlgmr.msra.gmra.mrb[52].mxu0 %vm657_vm2, %v4167_v44  ;;  %6965 = vmatpush3.bf16.msra.mxu1 %v8142_v50  ;;  %v4274_v44 = vld [vmem:[%s8361_s15 + $0x68] sm:$0xff] }
0x1e30   : > { %6977 = vmatpush3.bf16.msra.mxu0 %v6976_v53  ;;  %6621 = vmatprep.mubr.msk.f32.mxu0 %vm7131_vm1, %v7132_v14  ;;  %v8152_v53 = vpack.c.bf16 %v4272_v26, %v4271_v24  ;;  %v8162_v61 = vpack.c.bf16 %v4274_v44, %v4273_v57 }
0x1e31   : > { %6978 = vmatprep.subr.bf16.mxu0 %v7130_v10  ;;  %6966 = vmatprep.subr.bf16.mxu1 %v7130_v10 }
0x1e33   : > { %6968 = vmatpush3.bf16.msra.mxu1 %v8152_v53 }
0x1e34   : > { %6980 = vmatpush3.bf16.msra.mxu0 %v6979_v1  ;;  %6969 = vmatprep.subr.bf16.mxu1 %v7130_v10  ;;  %v8172_v1 = vpack.c.bf16 %v4276_v17, %v4275_v3 }
0x1e35   : > { %6981 = vmatprep.subr.bf16.mxu0 %v7130_v10 }
0x1e37   : > { %6622 = vmatmul.mubr.msk.f32.vlgmr.msra.gmra.mrb[54].mxu0 %vm657_vm2, %v8069_v9  ;;  %6971 = vmatpush3.bf16.msra.mxu1 %v8162_v61 }
0x1e38   : > { %6983 = vmatpush3.bf16.msra.mxu0 %v6982_v18  ;;  %6632 = vmatprep.mubr.msk.f32.mxu0 %vm7131_vm1, %v7132_v14 }
0x1e39   : > { %6984 = vmatprep.subr.bf16.mxu0 %v7130_v10  ;;  %6972 = vmatprep.subr.bf16.mxu1 %v7130_v10 }
0x1e3b   : > { %6974 = vmatpush3.bf16.msra.mxu1 %v8172_v1 }
0x1e3c   : > { %6986 = vmatpush3.bf16.msra.mxu0 %v6985_v25  ;;  %6651 = vmatprep.subr.mxu1 %v7132_v14 }
0x1e3d   : > { %6987 = vmatprep.subr.bf16.mxu0 %v7130_v10 }
0x1e3f   : > { %6633 = vmatmul.mubr.msk.f32.vlgmr.msra.gmra.mrb[56].mxu0 %vm657_vm2, %v8069_v9 }
0x1e40   : > { %6989 = vmatpush3.bf16.msra.mxu0 %v6988_v60  ;;  %6643 = vmatprep.mubr.msk.f32.mxu0 %vm7131_vm1, %v7132_v14 }
0x1e41   : > { %6990 = vmatprep.subr.bf16.mxu0 %v7130_v10 }
0x1e44   : > { %6992 = vmatpush3.bf16.msra.mxu0 %v6991_v54 }
0x1e45   : > { %6646 = vmatprep.subr.mxu0 %v7132_v14 }
0x1e47   : > { %6644 = vmatmul.mubr.msk.f32.vlgmr.msra.gmra.mrb[58].mxu0 %vm657_vm2, %v8069_v9 }
0x1e48   : > { %6648 = vmatprep.mubr.msk.f32.mxu0 %vm7131_vm1, %v7132_v14 }
0x1f02   : > { %v4248_v63 = vpop.f32.mrb[52].mxu0 }
0x1f03   : > { %v4249_v15 = vadd.f32 %v8179_v4, %v4248_v63  ;;  %v6577_v7 = vpop.f32.mrb[53].mxu0 }
0x1f05   : > { %v4253_v18 = vmul.f32 0.044715, %v4249_v15  ;;  %v4252_v38 = vmul.f32 0.5, %v4249_v15 }
0x1f07   : > { %v4254_v13 = vmul.f32 %v4253_v18, %v4249_v15 }
0x1f09   : > { %v4255_v19 = vmul.f32 %v4254_v13, %v4249_v15 }
0x1f0a   : > { %v4505_v25 = vpop.f32.mrb[54].mxu0 }
0x1f0b   : > { %v4256_v29 = vadd.f32 %v4255_v19, %v4249_v15  ;;  %v6623_v32 = vpop.f32.mrb[55].mxu0  ;;  %v4506_v37 = vadd.f32 %v7825_v12, %v4505_v25 }
0x1f0d   : > { %v4257_v60 = vmul.f32 0.7978846, %v4256_v29 }
0x1f0f   : > { %7100 = vtanh.f32 %v4257_v60 }
0x1f12   : > { %v4586_v59 = vpop.f32.mrb[56].mxu0 }
0x1f13   : > { %v4587_v22 = vadd.f32 %v7820_v35, %v4586_v59  ;;  %v6634_v54 = vpop.f32.mrb[57].mxu0 }
0x1f15   : > { %6647 = vmatpush3.xpose.msk.msra.mxu0 %vm893_vm3, %v4587_v22 }
0x1f16   : > { %6993 = vmatprep.subr.bf16.mxu0 %v7130_v10 }
0x1f18   : > { %6649 = vmatmul.mubr.msk.f32.vlgmr.msra.gmra.mrb[60].mxu0 %vm893_vm3, %v4506_v37 }
0x1f19   : > { %v7101_v41 = vpop.eup %7100  ;;  %6995 = vmatpush3.bf16.msra.mxu0 %v7854_v49  ;;  %6660 = vmatprep.mubr.msk.f32.mxu0 %vm7131_vm1, %v7132_v14 }
0x1f1a   : > { %v4667_v43 = vpop.f32.mrb[58].mxu0  ;;  %v4259_v46 = vadd.f32 1.0, %v7101_v41  ;;  %7002 = vmatprep.subr.bf16.mxu0 %v7130_v10 }
0x1f1b   : > { %v6645_v35 = vpop.f32.mrb[59].mxu0  ;;  %v4668_v42 = vadd.f32 %v7837_v36, %v4667_v43 }
0x1f1c   : > { %v4260_v40 = vmul.f32 %v4259_v46, %v4252_v38 }
0x1f1e   : > { %6611 = vmatmul.mubr.f32.vlgmr.msra.gmra.mrb[28].mxu1 %v4260_v40 }
0x1f1f   : > { %6652 = vmatpush3.msk.msra.mxu1 %vm987_vm4, %v4668_v42  ;;  %6653 = vmatprep.mubr.msk.f32.mxu1 %vm7131_vm1, %v7132_v14 }
0x1f20   : > { %6996 = vmatprep.subr.bf16.mxu1 %v7130_v10 }
0x1feb   : > { %v4743_v12 = vpop.f32.mrb[60].mxu0 }
0x1fec   : > { %v4747_v49 = vmul.f32 0.25, %v4743_v12  ;;  %v6650_v47 = vpop.f32.mrb[61].mxu0 }
0x1fee   : > { %v4748_v24 = vsel %vm971_vm5, %v4747_v49, -inf }
0x1fef   : > { %4749 = vmax.xlane.f32.xlu0 %v4748_v24 }
0x1ff1   : > { %v8197_v26 = vpop.f32.mrb[28].mxu1 }
0x1ff2   : > { %v6612_v57 = vpop.f32.mrb[29].mxu1 }
0x207c   : > { %v4750_v44 = vpop.xlane.xlu0 %4749 }
0x207d   : > { %v4751_v3 = vsub.f32 %v4747_v49, %v4750_v44 }
0x207f   : > { %v4752_v36 = vmul.f32 1.442695, %v4751_v3 }
0x2081   : > { %7102 = vpow2.f32 %v4752_v36 }
0x208b   : > { %v7103_v17 = vpop.eup %7102 }
0x208c   : > { %v4754_v63 = vsel %vm971_vm5, %v7103_v17, 0.0 }
0x208d   : > { %4755 = vadd.xlane.f32.xlu1 %v4754_v63 }
0x211a   : > { %v4756_v15 = vpop.xlane.xlu1 %4755 }
0x211b   : > { %7104 = vrcp.f32 %v4756_v15 }
0x2125   : > { %v7105_v7 = vpop.eup %7104 }
0x2126   : > { %v4758_v18 = vmul.f32 %v7105_v7, %v7103_v17 }
0x2128   : > { %6654 = vmatmul.mubr.msk.f32.vlgmr.msra.gmra.mrb[30].mxu1 %vm983_vm6, %v4758_v18 }
0x2129   : > { %6998 = vmatpush3.bf16.msra.mxu1 %v7864_v62  ;;  %6671 = vmatprep.mubr.msk.f32.mxu1 %vm7131_vm1, %v7132_v14 }
0x212a   : > { %6999 = vmatprep.subr.bf16.mxu1 %v7130_v10 }
0x212d   : > { %7001 = vmatpush3.bf16.msra.mxu1 %v7874_v6 }
0x212e   : > { %7008 = vmatprep.subr.bf16.mxu1 %v7130_v10 }
0x2130   : > { %6672 = vmatmul.mubr.msk.f32.vlgmr.msra.gmra.mrb[32].mxu1 %vm657_vm2, %v8069_v9 }
0x2131   : > { %7010 = vmatpush3.bf16.msra.mxu1 %v7886_v8  ;;  %6693 = vmatprep.mubr.msk.f32.mxu1 %vm7131_vm1, %v7132_v14 }
0x2132   : > { %7011 = vmatprep.subr.bf16.mxu1 %v7130_v10 }
0x2135   : > { %7013 = vmatpush3.bf16.msra.mxu1 %v7898_v58 }
0x2136   : > { %7014 = vmatprep.subr.bf16.mxu1 %v7130_v10 }
0x2138   : > { %6694 = vmatmul.mubr.msk.f32.vlgmr.msra.gmra.mrb[34].mxu1 %vm657_vm2, %v8069_v9 }
0x2139   : > { %7016 = vmatpush3.bf16.msra.mxu1 %v7969_v20  ;;  %6710 = vmatprep.mubr.msk.f32.mxu1 %vm7131_vm1, %v7132_v14 }
0x213a   : > { %7023 = vmatprep.subr.bf16.mxu1 %v7130_v10 }
0x21fb   : > { %v4831_v62 = vpop.f32.mrb[30].mxu1 }
0x21fc   : > { %v6655_v6 = vpop.f32.mrb[31].mxu1  ;;  %6661 = vmatmul.mubr.msk.f32.vlgmr.msra.gmra.mrb[62].mxu0 %vm893_vm3, %v4831_v62 }
0x21fd   : > { %7004 = vmatpush3.bf16.msra.mxu0 %v7915_v11  ;;  %6682 = vmatprep.mubr.msk.f32.mxu0 %vm7131_vm1, %v7132_v14 }
0x21fe   : > { %7005 = vmatprep.subr.bf16.mxu0 %v7130_v10 }
0x2201   : > { %7007 = vmatpush3.bf16.msra.mxu0 %v7925_v23 }
0x2202   : > { %6696 = vmatprep.subr.mxu0 %v7132_v14 }
0x2203   : > { %v4988_v8 = vpop.f32.mrb[32].mxu1 }
0x2204   : > { %v6673_v58 = vpop.f32.mrb[33].mxu1  ;;  %6683 = vmatmul.mubr.msk.f32.vlgmr.msra.gmra.mrb[64].mxu0 %vm657_vm2, %v8069_v9  ;;  %v4989_v23 = vadd.f32 %v7944_v30, %v4988_v8 }
0x2205   : > { %6698 = vmatprep.mubr.msk.f32.mxu0 %vm7131_vm1, %v7132_v14 }
0x220b   : > { %v5150_v20 = vpop.f32.mrb[34].mxu1 }
0x220c   : > { %v6695_v13 = vpop.f32.mrb[35].mxu1  ;;  %v5151_v60 = vadd.f32 %v7950_v31, %v5150_v20 }
0x22cf   : > { %v4906_v11 = vpop.f32.mrb[62].mxu0 }
0x22d0   : > { %v6662_v19 = vpop.f32.mrb[63].mxu0 }
0x22d7   : > { %v5069_v25 = vpop.f32.mrb[64].mxu0 }
0x22d8   : > { %v5070_v29 = vadd.f32 %v7939_v27, %v5069_v25  ;;  %v6684_v32 = vpop.f32.mrb[65].mxu0  ;;  %v8304_v25 = vld [vmem:[%s8363_s17] ss:$0 sm:$0xff] }
0x22da   : > { %6697 = vmatpush3.xpose.msk.msra.mxu0 %vm893_vm3, %v5070_v29 }
0x22db   : > { %6701 = vmatprep.subr.mxu0 %v7132_v14 }
0x22dd   : > { %6699 = vmatmul.mubr.msk.f32.vlgmr.msra.gmra.mrb[66].mxu0 %vm893_vm3, %v4989_v23  ;;  %v8310_v23 = vld [vmem:[%s8364_s18] ss:$0 sm:$0xff] }
0x22de   : > { %6702 = vmatpush3.msk.msra.mxu0 %vm987_vm4, %v5151_v60  ;;  %6703 = vmatprep.mubr.msk.f32.mxu0 %vm7131_vm1, %v7132_v14 }
0x22df   : > { %7017 = vmatprep.subr.bf16.mxu0 %v7130_v10 }
0x23b0   : > { %v5226_v9 = vpop.f32.mrb[66].mxu0 }
0x23b1   : > { %v5230_v27 = vmul.f32 0.25, %v5226_v9  ;;  %v6700_v59 = vpop.f32.mrb[67].mxu0 }
0x23b3   : > { %v5231_v22 = vsel %vm971_vm5, %v5230_v27, -inf }
0x23b4   : > { %5232 = vmax.xlane.f32.xlu0 %v5231_v22 }
0x2441   : > { %v5233_v30 = vpop.xlane.xlu0 %5232 }
0x2442   : > { %v5234_v54 = vsub.f32 %v5230_v27, %v5233_v30 }
0x2444   : > { %v5235_v37 = vmul.f32 1.442695, %v5234_v54 }
0x2446   : > { %7106 = vpow2.f32 %v5235_v37 }
0x2450   : > { %v7107_v31 = vpop.eup %7106 }
0x2451   : > { %v5237_v41 = vsel %vm971_vm5, %v7107_v31, 0.0 }
0x2452   : > { %5238 = vadd.xlane.f32.xlu1 %v5237_v41 }
0x24df   : > { %v5239_v43 = vpop.xlane.xlu1 %5238 }
0x24e0   : > { %7108 = vrcp.f32 %v5239_v43 }
0x24ea   : > { %v7109_v38 = vpop.eup %7108 }
0x24eb   : > { %v5241_v46 = vmul.f32 %v7109_v38, %v7107_v31 }
0x24ed   : > { %6704 = vmatmul.mubr.msk.f32.vlgmr.msra.gmra.mrb[68].mxu0 %vm983_vm6, %v5241_v46 }
0x24ee   : > { %7019 = vmatpush3.bf16.msra.mxu0 %v8005_v2  ;;  %6721 = vmatprep.mubr.msk.f32.mxu0 %vm7131_vm1, %v7132_v14  ;;  %v4910_v2 = vadd.f32 %v7989_v5, %v4906_v11 }
0x24ef   : > { %7020 = vmatprep.subr.bf16.mxu0 %v7130_v10 }
0x24f2   : > { %7022 = vmatpush3.bf16.msra.mxu0 %v8015_v21 }
0x25c0   : > { %v5314_v35 = vpop.f32.mrb[68].mxu0 }
0x25c1   : > { %v6705_v40 = vpop.f32.mrb[69].mxu0  ;;  %6711 = vmatmul.mubr.msk.f32.vlgmr.msra.gmra.mrb[36].mxu1 %vm893_vm3, %v5314_v35 }
0x25c2   : > { %7025 = vmatpush3.bf16.msra.mxu1 %v8025_v39  ;;  %6756 = vmatprep.mubr.msk.f32.mxu1 %vm7131_vm1, %v7132_v14  ;;  %v5753_v14 = vld [vmem:[%s8362_s16] ss:$0 sm:$0xff] }
0x25c3   : > { %7026 = vmatprep.subr.bf16.mxu1 %v7130_v10  ;;  %v1840_v39 = vadd.f32 %v5753_v14, %v7692_v52  ;;  %v3095_v12 = vadd.f32 %v5753_v14, %v7845_v55 }
0x25c5   : > { %v1843_v5 = vadd.f32 %v1840_v39, %v7522_v28  ;;  %v3098_v44 = vadd.f32 %v3095_v12, %v7777_v56 }
0x25c6   : > { %7028 = vmatpush3.bf16.msra.mxu1 %v8112_v34 }
0x25c7   : > { %7029 = vmatprep.subr.bf16.mxu1 %v7130_v10  ;;  %v1846_v52 = vsel %vm609_vm0, %v1843_v5, 0.0  ;;  %v3101_v63 = vsel %vm609_vm0, %v3098_v44, 0.0 }
0x25ca   : > { %7031 = vmatpush3.bf16.msra.mxu1 %v8122_v0 }
0x25cb   : > { %7032 = vmatprep.subr.bf16.mxu1 %v7130_v10 }
0x25ce   : > { %7034 = vmatpush3.bf16.msra.mxu1 %v8132_v48  ;;  %v8276_v48 = vld [vmem:[%s8362_s16] ss:$0 sm:$0xff] }
0x25cf   : > { %7035 = vmatprep.subr.bf16.mxu1 %v7130_v10 }
0x25d2   : > { %7037 = vmatpush3.bf16.msra.mxu1 %v8142_v50  ;;  %v4351_v50 = vadd.f32 %v8276_v48, %v8197_v26 }
0x25d3   : > { %7038 = vmatprep.subr.bf16.mxu1 %v7130_v10 }
0x25d6   : > { %7040 = vmatpush3.bf16.msra.mxu1 %v8152_v53 }
0x25d7   : > { %7041 = vmatprep.subr.bf16.mxu1 %v7130_v10 }
0x25da   : > { %7043 = vmatpush3.bf16.msra.mxu1 %v8162_v61  ;;  %v4354_v61 = vadd.f32 %v4351_v50, %v7993_v16 }
0x25db   : > { %7044 = vmatprep.subr.bf16.mxu1 %v7130_v10 }
0x25de   : > { %7046 = vmatpush3.bf16.msra.mxu1 %v8172_v1  ;;  %v4357_v1 = vsel %vm609_vm0, %v4354_v61, 0.0 }
0x2694   : > { %v5389_v21 = vpop.f32.mrb[36].mxu1 }
0x2695   : > { %v5393_v34 = vadd.f32 %v5389_v21, %v4910_v2  ;;  %v6712_v0 = vpop.f32.mrb[37].mxu1 }
0x2697   : > { %v8279_v10 = vadd.f32 %v7977_v45, %v5393_v34 }
0x2699   : > { %v5397_v53 = vsel %vm609_vm0, %v8279_v10, 0.0 }
0x269a   : > { %5398 = vadd.xlane.f32.xlu0 %v5397_v53 }
0x269e   : > { %1847 = vadd.xlane.f32.xlu0 %v1846_v52 }
0x26a2   : > { %4358 = vadd.xlane.f32.xlu0 %v4357_v1 }
0x2727   : > { %v5399_v42 = vpop.xlane.xlu0 %5398 }
0x2728   : > { %v5400_v45 = vmul.f32 0.03125, %v5399_v42 }
0x272a   : > { %v5401_v49 = vsub.f32 %v8279_v10, %v5400_v45 }
0x272b   : > { %v1848_v47 = vpop.xlane.xlu0 %1847 }
0x272c   : > { %v1849_v24 = vmul.f32 0.03125, %v1848_v47  ;;  %v5402_v26 = vmul.f32 %v5401_v49, %v5401_v49 }
0x272e   : > { %v1850_v57 = vsub.f32 %v1843_v5, %v1849_v24  ;;  %v5403_v28 = vsel %vm609_vm0, %v5402_v26, 0.0 }
0x272f   : > { %5404 = vadd.xlane.f32.xlu1 %v5403_v28  ;;  %v4359_v16 = vpop.xlane.xlu0 %4358 }
0x2730   : > { %v4360_v3 = vmul.f32 0.03125, %v4359_v16  ;;  %v1851_v36 = vmul.f32 %v1850_v57, %v1850_v57 }
0x2732   : > { %v8293_v17 = vsub.f32 %v4354_v61, %v4360_v3  ;;  %v1852_v55 = vsel %vm609_vm0, %v1851_v36, 0.0 }
0x2733   : > { %3102 = vadd.xlane.f32.xlu1 %v3101_v63  ;;  %1853 = vadd.xlane.f32.xlu0 %v1852_v55 }
0x2734   : > { %v4362_v15 = vmul.f32 %v8293_v17, %v8293_v17 }
0x2736   : > { %v4363_v7 = vsel %vm609_vm0, %v4362_v15, 0.0 }
0x2737   : > { %4364 = vadd.xlane.f32.xlu0 %v4363_v7 }
0x27bc   : > { %v5405_v18 = vpop.xlane.xlu1 %5404 }
0x27bd   : > { %v5406_v56 = vmul.f32 0.03125, %v5405_v18 }
0x27bf   : > { %v5407_v62 = vadd.f32 1e-06, %v5406_v56 }
0x27c0   : > { %v1854_v6 = vpop.xlane.xlu0 %1853  ;;  %v3103_v46 = vpop.xlane.xlu1 %3102 }
0x27c1   : > { %7110 = vrsqrt.f32 %v5407_v62  ;;  %v1855_v8 = vmul.f32 0.03125, %v1854_v6  ;;  %v3104_v35 = vmul.f32 0.03125, %v3103_v46 }
0x27c3   : > { %v1856_v58 = vadd.f32 1e-06, %v1855_v8  ;;  %v3105_v14 = vsub.f32 %v3098_v44, %v3104_v35 }
0x27c4   : > { %v4365_v50 = vpop.xlane.xlu0 %4364 }
0x27c5   : > { %7112 = vrsqrt.f32 %v1856_v58  ;;  %v3106_v34 = vmul.f32 %v3105_v14, %v3105_v14  ;;  %v4366_v53 = vmul.f32 0.03125, %v4365_v50 }
0x27c7   : > { %v3107_v0 = vsel %vm609_vm0, %v3106_v34, 0.0  ;;  %v4367_v5 = vadd.f32 1e-06, %v4366_v53 }
0x27cb   : > { %v7111_v20 = vpop.eup %7110 }
0x27cc   : > { %v5409_v13 = vmul.f32 %v7111_v20, %v5401_v49 }
0x27ce   : > { %v5416_v11 = vmul.f32 %v8032_v51, %v5409_v13 }
0x27cf   : > { %v7113_v19 = vpop.eup %7112 }
0x27d0   : > { %v1858_v29 = vmul.f32 %v7113_v19, %v1850_v57  ;;  %v5423_v32 = vadd.f32 %v8043_v33, %v5416_v11 }
0x27d2   : > { %v1865_v60 = vmul.f32 %v8304_v25, %v1858_v29  ;;  %6722 = vmatmul.mubr.msk.f32.vlgmr.msra.gmra.mrb[70].mxu0 %vm657_vm2, %v5423_v32 }
0x27d4   : > { %v1872_v51 = vadd.f32 %v8310_v23, %v1865_v60 }
0x27d6   : > { %1873 = vst.msk [vmem:[%s8319_s22] sm:$0x1f] %vm609_vm0, %v1872_v51 }
0x28a5   : > { %v5504_v33 = vpop.f32.mrb[70].mxu0 }
0x28a6   : > { %v5505_v9 = vadd.f32 %v8179_v4, %v5504_v33  ;;  %v6723_v27 = vpop.f32.mrb[71].mxu0 }
0x28a8   : > { %v5509_v59 = vmul.f32 0.044715, %v5505_v9  ;;  %v5508_v41 = vmul.f32 0.5, %v5505_v9 }
0x28aa   : > { %v5510_v22 = vmul.f32 %v5509_v59, %v5505_v9 }
0x28ac   : > { %v5511_v30 = vmul.f32 %v5510_v22, %v5505_v9 }
0x28ae   : > { %v5512_v54 = vadd.f32 %v5511_v30, %v5505_v9 }
0x28b0   : > { %v5513_v37 = vmul.f32 0.7978846, %v5512_v54 }
0x28b2   : > { %7114 = vtanh.f32 %v5513_v37 }
0x28b3   : > { %7116 = vrsqrt.f32 %v4367_v5 }
0x28bc   : > { %v7115_v31 = vpop.eup %7114 }
0x28bd   : > { %v5515_v43 = vadd.f32 1.0, %v7115_v31  ;;  %v7117_v49 = vpop.eup %7116 }
0x28be   : > { %v4369_v47 = vmul.f32 %v7117_v49, %v8293_v17 }
0x28bf   : > { %v5516_v38 = vmul.f32 %v5515_v43, %v5508_v41 }
0x28c0   : > { %v4376_v57 = vmul.f32 %v8304_v25, %v4369_v47 }
0x28c1   : > { %6757 = vmatmul.mubr.f32.vlgmr.msra.gmra.mrb[38].mxu1 %v5516_v38 }
0x28c2   : > { %v4383_v16 = vadd.f32 %v8310_v23, %v4376_v57 }
0x28c4   : > { %5857 = vst.msk [vmem:[%s8319_s22 + $0x10] sm:$0x1f] %vm609_vm0, %v4383_v16 }
0x2994   : > { %v5606_v40 = vpop.f32.mrb[38].mxu1 }
0x2995   : > { %v5607_v2 = vadd.f32 %v8276_v48, %v5606_v40  ;;  %v6758_v21 = vpop.f32.mrb[39].mxu1 }
0x2997   : > { %v5610_v4 = vadd.f32 %v5607_v2, %v8279_v10 }
0x2999   : > { %v5613_v39 = vsel %vm609_vm0, %v5610_v4, 0.0 }
0x299a   : > { %5614 = vadd.xlane.f32.xlu1 %v5613_v39 }
0x299e   : > { %3108 = vadd.xlane.f32.xlu1 %v3107_v0 }
0x2a27   : > { %v5615_v52 = vpop.xlane.xlu1 %5614 }
0x2a28   : > { %v5616_v61 = vmul.f32 0.03125, %v5615_v52 }
0x2a2a   : > { %v5617_v1 = vsub.f32 %v5610_v4, %v5616_v61 }
0x2a2b   : > { %v3109_v42 = vpop.xlane.xlu1 %3108 }
0x2a2c   : > { %v3110_v48 = vmul.f32 0.03125, %v3109_v42  ;;  %v5618_v45 = vmul.f32 %v5617_v1, %v5617_v1 }
0x2a2e   : > { %v3111_v10 = vadd.f32 1e-06, %v3110_v48  ;;  %v5619_v12 = vsel %vm609_vm0, %v5618_v45, 0.0 }
0x2a2f   : > { %5620 = vadd.xlane.f32.xlu1 %v5619_v12 }
0x2a30   : > { %7118 = vrsqrt.f32 %v3111_v10 }
0x2a3a   : > { %v7119_v24 = vpop.eup %7118 }
0x2a3b   : > { %v3113_v26 = vmul.f32 %v7119_v24, %v3105_v14 }
0x2a3d   : > { %v3120_v28 = vmul.f32 %v8304_v25, %v3113_v26 }
0x2a3f   : > { %v3127_v44 = vadd.f32 %v8310_v23, %v3120_v28 }
0x2a41   : > { %5806 = vst.msk [vmem:[%s8319_s22 + $0x8] sm:$0x1f] %vm609_vm0, %v3127_v44 }
0x2abc   : > { %v5621_v3 = vpop.xlane.xlu1 %5620 }
0x2abd   : > { %v5622_v36 = vmul.f32 0.03125, %v5621_v3 }
0x2abf   : > { %v5623_v63 = vadd.f32 1e-06, %v5622_v36 }
0x2ac1   : > { %7120 = vrsqrt.f32 %v5623_v63 }
0x2acb   : > { %v7121_v17 = vpop.eup %7120 }
0x2acc   : > { %v5625_v55 = vmul.f32 %v7121_v17, %v5617_v1 }
0x2ace   : > { %v5632_v15 = vmul.f32 %v8304_v25, %v5625_v55 }
0x2ad0   : > { %v5639_v7 = vadd.f32 %v8310_v23, %v5632_v15 }
0x2ad2   : > { %5908 = vst.msk [vmem:[%s8319_s22 + $0x18] sm:$0x1f] %vm609_vm0, %v5639_v7 }
0x2ad3 PF: > { %s29_s0 = sadd.s32 1, %s7128_s0  }
0x2ad4   : > { %p26_p4 = scmp.ge.s32.totalorder %s29_s0, 4  }
0x2ad6   :  { %28 = sbr.rel (!%p26_p4) target bundleno = 5 (0x5), region = 139 }

</bundles_post_ra>
